<compile_context>
chip_gen: v7x
topology: tpu7x:2x2x1
jax: 0.10.0
libtpu: 0.0.40
codegen_flags: <defaults>
</compile_context>

<pallas_src>
import functools

import jax
import jax.numpy as jnp
from jax import lax
from jax.experimental import pallas as pl
from jax.experimental.pallas import tpu as pltpu

_VMEM_LIMIT = 48 * 1024 * 1024   # <= v7x 64 MiB/TC; plenty on v5e/v6e (128 MiB)
_LANES = 128


def _round_up(x, m):
    return (x + m - 1) // m * m


def _pad_to(x, shape):
    return jnp.pad(x, [(0, t - s) for s, t in zip(x.shape, shape)])


# ----------------------------------------------------------------------------
# Fused conv3x3(same) + bias + ReLU + 2x2 maxpool kernel (one image per step)
# ----------------------------------------------------------------------------
def _conv_relu_pool_kernel(x_ref, w_ref, b_ref, o_ref, *, H, W, Cout, use_mxu):
    """x_ref: (1, H+2, W+2, Cin) spatially pre-padded input (halo in VMEM)
       w_ref: (9, Cin, Cout) tap-major weights, Cout padded to 128 lanes
       b_ref: (1, Cout) f32 bias
       o_ref: (1, H//2, W//2, Cout) bf16 pooled output
    """
    bias = b_ref[...].astype(jnp.float32)                           # (1, Cout)

    # 0/1 selection matrices picking even/odd columns of a (W, Cout) row slab
    # via tiny MXU matmuls -> horizontal half of the 2x2 max pool (no strided
    # loads / views needed).
    row_i = lax.broadcasted_iota(jnp.int32, (W // 2, W), 0)
    col_i = lax.broadcasted_iota(jnp.int32, (W // 2, W), 1)
    sel_even = jnp.where(col_i == 2 * row_i, 1.0, 0.0).astype(jnp.bfloat16)
    sel_odd = jnp.where(col_i == 2 * row_i + 1, 1.0, 0.0).astype(jnp.bfloat16)

    def conv_row(h):                                                # output row h
        acc = jnp.zeros((W, Cout), jnp.float32)
        for di in range(3):
            for dj in range(3):
                xs = x_ref[0, h + di, pl.ds(dj, W), :]              # (W, Cin)
                wt = w_ref[di * 3 + dj, :, :]                       # (Cin, Cout)
                if use_mxu:
                    acc = acc + jnp.dot(xs, wt,
                                        preferred_element_type=jnp.float32)
                else:   # Cin == 1: 9 shifted multiply-adds on the VPU
                    acc = acc + xs.astype(jnp.float32) * wt.astype(jnp.float32)
        return acc + bias

    def body(r, carry):
        # relu(maxpool(conv)) == maxpool(relu(conv)); vertical max of 2 rows:
        v = jnp.maximum(jnp.maximum(conv_row(2 * r), conv_row(2 * r + 1)), 0.0)
        v16 = v.astype(jnp.bfloat16)                                # (W, Cout)
        pooled = jnp.maximum(
            jnp.dot(sel_even, v16, preferred_element_type=jnp.float32),
            jnp.dot(sel_odd, v16, preferred_element_type=jnp.float32))
        o_ref[0, r, :, :] = pooled.astype(o_ref.dtype)
        return carry

    lax.fori_loop(0, H // 2, body, 0)


def conv3x3_relu_pool(x_padded, w_taps, bias, *, use_mxu):
    n, hp, wp, cin = x_padded.shape
    H, W = hp - 2, wp - 2
    cout = w_taps.shape[-1]
    kern = functools.partial(_conv_relu_pool_kernel,
                             H=H, W=W, Cout=cout, use_mxu=use_mxu)
    return pl.pallas_call(
        kern,
        out_shape=jax.ShapeDtypeStruct((n, H // 2, W // 2, cout), jnp.bfloat16),
        grid=(n,),
        in_specs=[
            pl.BlockSpec((1, hp, wp, cin), lambda i: (i, 0, 0, 0)),
            pl.BlockSpec((9, cin, cout), lambda i: (0, 0, 0)),
            pl.BlockSpec((1, cout), lambda i: (0, 0)),
        ],
        out_specs=pl.BlockSpec((1, H // 2, W // 2, cout),
                               lambda i: (i, 0, 0, 0)),
        compiler_params=pltpu.CompilerParams(
            dimension_semantics=("parallel",),
            vmem_limit_bytes=_VMEM_LIMIT),
    )(x_padded, w_taps, bias)


# ----------------------------------------------------------------------------
# Fused linear1+ReLU -> linear2+ReLU -> linear3 -> log_softmax(dim=0) kernel
# ----------------------------------------------------------------------------
def _fused_mlp_kernel(x_ref, w1_ref, b1_ref, w2_ref, b2_ref, w3_ref, b3_ref,
                      o_ref):
    h1 = jnp.dot(x_ref[...], w1_ref[...],
                 preferred_element_type=jnp.float32) + b1_ref[...]
    h1 = jnp.maximum(h1, 0.0).astype(jnp.bfloat16)    # dropout(0.4): identity (eval)
    h2 = jnp.dot(h1, w2_ref[...],
                 preferred_element_type=jnp.float32) + b2_ref[...]
    h2 = jnp.maximum(h2, 0.0).astype(jnp.bfloat16)    # dropout(0.4): identity (eval)
    z = jnp.dot(h2, w3_ref[...],
                preferred_element_type=jnp.float32) + b3_ref[...]
    # torch.log_softmax(z, dim=0): normalize over the BATCH axis.
    m = jnp.max(z, axis=0, keepdims=True)
    s = z - m
    lse = jnp.log(jnp.sum(jnp.exp(s), axis=0, keepdims=True))
    o_ref[...] = s - lse


def fused_mlp(x, w1, b1, w2, b2, w3, b3):
    n = x.shape[0]
    cout = w3.shape[1]
    return pl.pallas_call(
        _fused_mlp_kernel,
        out_shape=jax.ShapeDtypeStruct((n, cout), jnp.float32),
        compiler_params=pltpu.CompilerParams(vmem_limit_bytes=_VMEM_LIMIT),
    )(x, w1, b1, w2, b2, w3, b3)


# ----------------------------------------------------------------------------
# Parameters (deterministic, PyTorch-default-style uniform init) + one-time
# layout preparation (tap-major conv weights, 128-lane padding, bf16 cast).
# ----------------------------------------------------------------------------
def init_params(key):
    ks = jax.random.split(key, 10)

    def u(k, shape, fan_in):
        bound = 1.0 / jnp.sqrt(jnp.float32(fan_in))
        return jax.random.uniform(k, shape, jnp.float32, -bound, bound)

    return {
        "conv1_w": u(ks[0], (25, 1, 3, 3), 1 * 9),
        "conv1_b": u(ks[1], (25,), 1 * 9),
        "conv2_w": u(ks[2], (50, 25, 3, 3), 25 * 9),
        "conv2_b": u(ks[3], (50,), 25 * 9),
        "lin1_w": u(ks[4], (7 * 7 * 50, 1000), 7 * 7 * 50),   # stored (in, out)
        "lin1_b": u(ks[5], (1000,), 7 * 7 * 50),
        "lin2_w": u(ks[6], (1000, 100), 1000),
        "lin2_b": u(ks[7], (100,), 1000),
        "lin3_w": u(ks[8], (100, 10), 100),
        "lin3_b": u(ks[9], (10,), 100),
    }


def prepare_params(p):
    co1 = _round_up(25, _LANES)      # 128
    co2 = _round_up(50, _LANES)      # 128
    f1 = _round_up(1000, _LANES)     # 1024
    f2 = _round_up(100, _LANES)      # 128
    f3 = _round_up(10, _LANES)       # 128

    # (Cout,Cin,3,3) -> (3,3,Cin,Cout) -> (9,Cin,Cout); pad Cin/Cout with zeros.
    c1w = jnp.transpose(p["conv1_w"], (2, 3, 1, 0)).reshape(9, 1, 25)
    c2w = jnp.transpose(p["conv2_w"], (2, 3, 1, 0)).reshape(9, 25, 50)
    return {
        # conv1 (Cin=1) runs on the VPU -> keep f32 weights.
        "c1w": _pad_to(c1w, (9, 1, co1)).astype(jnp.float32),
        "c1b": _pad_to(p["conv1_b"].reshape(1, 25), (1, co1)).astype(jnp.float32),
        # conv2 input channels padded 25->128 (those activations are exactly 0).
        "c2w": _pad_to(c2w, (9, co1, co2)).astype(jnp.bfloat16),
        "c2b": _pad_to(p["conv2_b"].reshape(1, 50), (1, co2)).astype(jnp.float32),
        "w1": _pad_to(p["lin1_w"], (7 * 7 * 50, f1)).astype(jnp.bfloat16),
        "b1": _pad_to(p["lin1_b"].reshape(1, 1000), (1, f1)).astype(jnp.float32),
        "w2": _pad_to(p["lin2_w"], (f1, f2)).astype(jnp.bfloat16),
        "b2": _pad_to(p["lin2_b"].reshape(1, 100), (1, f2)).astype(jnp.float32),
        "w3": _pad_to(p["lin3_w"], (f2, f3)).astype(jnp.bfloat16),
        "b3": _pad_to(p["lin3_b"].reshape(1, 10), (1, f3)).astype(jnp.float32),
    }


# ----------------------------------------------------------------------------
# Forward pass (mirrors MY_CNN.forward, eval mode)
# ----------------------------------------------------------------------------
@jax.jit
def my_cnn_forward(prepared, x_nchw):
    n = x_nchw.shape[0]
    # NCHW -> NHWC, zero-pad spatially for the 3x3 "same" convs.
    x = jnp.transpose(x_nchw, (0, 2, 3, 1)).astype(jnp.float32)      # (N,28,28,1)
    x = jnp.pad(x, ((0, 0), (1, 1), (1, 1), (0, 0)))                 # (N,30,30,1)
    y = conv3x3_relu_pool(x, prepared["c1w"], prepared["c1b"],
                          use_mxu=False)                             # (N,14,14,128) bf16
    y = jnp.pad(y, ((0, 0), (1, 1), (1, 1), (0, 0)))                 # (N,16,16,128)
    y = conv3x3_relu_pool(y, prepared["c2w"], prepared["c2b"],
                          use_mxu=True)                              # (N,7,7,128) bf16
    # dropout2d(0.2): identity in eval mode.
    # torch .view(-1, 7*7*50) flattens NCHW order -> drop channel padding,
    # back to (N,C,H,W), flatten (wrapper-side layout glue only).
    y = jnp.transpose(y[..., :50], (0, 3, 1, 2)).reshape(n, 7 * 7 * 50)
    out = fused_mlp(y, prepared["w1"], prepared["b1"],
                    prepared["w2"], prepared["b2"],
                    prepared["w3"], prepared["b3"])                  # (N,128) f32
    return out[:, :10]                                               # (N,10) log_softmax over dim=0


if __name__ == "__main__":
    key = jax.random.PRNGKey(0)
    pkey, xkey = jax.random.split(key)
    params = init_params(pkey)
    prepared = prepare_params(params)            # one-time weight layout/padding
    # Spatial must be 28x28 for the 7*7*50 flatten to hold; small batch of 2.
    x = jax.random.normal(xkey, (2, 1, 28, 28), jnp.float32)
    out = my_cnn_forward(prepared, x)
    jax.block_until_ready(out)
    assert out.shape == (2, 10)
    assert out.dtype == jnp.float32
    assert bool(jnp.all(jnp.isfinite(out)))
    print("KERNEL_OK")
</pallas_src>

<mosaic_0001>
module attributes {stable_mosaic.version = 11 : i64} {
  func.func @_conv_relu_pool_kernel(%arg0: i32, %arg1: memref<1x30x30x1xf32, #tpu.memory_space<vmem>>, %arg2: memref<9x1x128xf32, #tpu.memory_space<vmem>>, %arg3: memref<1x128xf32, #tpu.memory_space<vmem>>, %arg4: memref<1x14x14x128xbf16, #tpu.memory_space<vmem>>) attributes {dimension_semantics = [#tpu.dimension_semantics<parallel>], iteration_bounds = array<i64: 2>, scalar_prefetch = 0 : i64, scratch_operands = 0 : i64, tpu.core_type = #tpu.core_type<tc>, window_params = [{transform_indices = @transform_0, window_bounds = array<i64: 1, 30, 30, 1>}, {pipeline_mode = #tpu.pipeline_mode<synchronous>, transform_indices = @transform_1, window_bounds = array<i64: 9, 1, 128>}, {pipeline_mode = #tpu.pipeline_mode<synchronous>, transform_indices = @transform_2, window_bounds = array<i64: 1, 128>}, {transform_indices = @transform_3, window_bounds = array<i64: 1, 14, 14, 128>}]} {
    %c0 = arith.constant 0 : index
    %c0_0 = arith.constant 0 : index
    %0 = vector.load %arg3[%c0, %c0_0] : memref<1x128xf32, #tpu.memory_space<vmem>>, vector<1x128xf32>
    %1 = tpu.iota {dimensions = array<i32: 0>} : vector<14x28xi32>
    %2 = tpu.iota {dimensions = array<i32: 1>} : vector<14x28xi32>
    %c2_i32 = arith.constant 2 : i32
    %3 = vector.broadcast %c2_i32 : i32 to vector<14x28xi32>
    %4 = arith.muli %3, %1 : vector<14x28xi32>
    %5 = arith.cmpi eq, %2, %4 : vector<14x28xi32>
    %cst = arith.constant 1.000000e+00 : f32
    %cst_1 = arith.constant 0.000000e+00 : f32
    %6 = vector.broadcast %cst : f32 to vector<14x28xf32>
    %7 = vector.broadcast %cst_1 : f32 to vector<14x28xf32>
    %8 = arith.select %5, %6, %7 : vector<14x28xi1>, vector<14x28xf32>
    %9 = arith.truncf %8 : vector<14x28xf32> to vector<14x28xbf16>
    %c2_i32_2 = arith.constant 2 : i32
    %10 = vector.broadcast %c2_i32_2 : i32 to vector<14x28xi32>
    %11 = arith.muli %10, %1 : vector<14x28xi32>
    %c1_i32 = arith.constant 1 : i32
    %12 = vector.broadcast %c1_i32 : i32 to vector<14x28xi32>
    %13 = arith.addi %11, %12 : vector<14x28xi32>
    %14 = arith.cmpi eq, %2, %13 : vector<14x28xi32>
    %cst_3 = arith.constant 1.000000e+00 : f32
    %cst_4 = arith.constant 0.000000e+00 : f32
    %15 = vector.broadcast %cst_3 : f32 to vector<14x28xf32>
    %16 = vector.broadcast %cst_4 : f32 to vector<14x28xf32>
    %17 = arith.select %14, %15, %16 : vector<14x28xi1>, vector<14x28xf32>
    %18 = arith.truncf %17 : vector<14x28xf32> to vector<14x28xbf16>
    %c0_i32 = arith.constant 0 : i32
    %c14_i32 = arith.constant 14 : i32
    %19 = arith.addi %c0_i32, %c14_i32 : i32
    %c1_i32_5 = arith.constant 1 : i32
    scf.for %arg5 = %c0_i32 to %19 step %c1_i32_5  : i32 {
      %c2_i32_7 = arith.constant 2 : i32
      %20 = arith.muli %c2_i32_7, %arg5 : i32
      %cst_8 = arith.constant 0.000000e+00 : f32
      %21 = vector.broadcast %cst_8 : f32 to vector<28x128xf32>
      %c0_i32_9 = arith.constant 0 : i32
      %22 = arith.addi %20, %c0_i32_9 : i32
      %c0_10 = arith.constant 0 : index
      %23 = arith.index_cast %22 : i32 to index
      %c0_11 = arith.constant 0 : index
      %c0_12 = arith.constant 0 : index
      %24 = vector.load %arg1[%c0_10, %23, %c0_11, %c0_12] : memref<1x30x30x1xf32, #tpu.memory_space<vmem>>, vector<1x1x28x1xf32>
      %25 = vector.shape_cast %24 : vector<1x1x28x1xf32> to vector<28x1xf32>
      %c0_13 = arith.constant 0 : index
      %c0_14 = arith.constant 0 : index
      %c0_15 = arith.constant 0 : index
      %26 = vector.load %arg2[%c0_13, %c0_14, %c0_15] : memref<9x1x128xf32, #tpu.memory_space<vmem>>, vector<1x1x128xf32>
      %27 = vector.shape_cast %26 : vector<1x1x128xf32> to vector<1x128xf32>
      %28 = vector.broadcast %25 : vector<28x1xf32> to vector<28x128xf32>
      %29 = vector.broadcast %27 : vector<1x128xf32> to vector<28x128xf32>
      %30 = arith.mulf %28, %29 : vector<28x128xf32>
      %31 = arith.addf %21, %30 : vector<28x128xf32>
      %c0_i32_16 = arith.constant 0 : i32
      %32 = arith.addi %20, %c0_i32_16 : i32
      %c0_17 = arith.constant 0 : index
      %33 = arith.index_cast %32 : i32 to index
      %c1 = arith.constant 1 : index
      %c0_18 = arith.constant 0 : index
      %34 = vector.load %arg1[%c0_17, %33, %c1, %c0_18] : memref<1x30x30x1xf32, #tpu.memory_space<vmem>>, vector<1x1x28x1xf32>
      %35 = vector.shape_cast %34 : vector<1x1x28x1xf32> to vector<28x1xf32>
      %c1_19 = arith.constant 1 : index
      %c0_20 = arith.constant 0 : index
      %c0_21 = arith.constant 0 : index
      %36 = vector.load %arg2[%c1_19, %c0_20, %c0_21] : memref<9x1x128xf32, #tpu.memory_space<vmem>>, vector<1x1x128xf32>
      %37 = vector.shape_cast %36 : vector<1x1x128xf32> to vector<1x128xf32>
      %38 = vector.broadcast %35 : vector<28x1xf32> to vector<28x128xf32>
      %39 = vector.broadcast %37 : vector<1x128xf32> to vector<28x128xf32>
      %40 = arith.mulf %38, %39 : vector<28x128xf32>
      %41 = arith.addf %31, %40 : vector<28x128xf32>
      %c0_i32_22 = arith.constant 0 : i32
      %42 = arith.addi %20, %c0_i32_22 : i32
      %c0_23 = arith.constant 0 : index
      %43 = arith.index_cast %42 : i32 to index
      %c2 = arith.constant 2 : index
      %c0_24 = arith.constant 0 : index
      %44 = vector.load %arg1[%c0_23, %43, %c2, %c0_24] : memref<1x30x30x1xf32, #tpu.memory_space<vmem>>, vector<1x1x28x1xf32>
      %45 = vector.shape_cast %44 : vector<1x1x28x1xf32> to vector<28x1xf32>
      %c2_25 = arith.constant 2 : index
      %c0_26 = arith.constant 0 : index
      %c0_27 = arith.constant 0 : index
      %46 = vector.load %arg2[%c2_25, %c0_26, %c0_27] : memref<9x1x128xf32, #tpu.memory_space<vmem>>, vector<1x1x128xf32>
      %47 = vector.shape_cast %46 : vector<1x1x128xf32> to vector<1x128xf32>
      %48 = vector.broadcast %45 : vector<28x1xf32> to vector<28x128xf32>
      %49 = vector.broadcast %47 : vector<1x128xf32> to vector<28x128xf32>
      %50 = arith.mulf %48, %49 : vector<28x128xf32>
      %51 = arith.addf %41, %50 : vector<28x128xf32>
      %c1_i32_28 = arith.constant 1 : i32
      %52 = arith.addi %20, %c1_i32_28 : i32
      %c0_29 = arith.constant 0 : index
      %53 = arith.index_cast %52 : i32 to index
      %c0_30 = arith.constant 0 : index
      %c0_31 = arith.constant 0 : index
      %54 = vector.load %arg1[%c0_29, %53, %c0_30, %c0_31] : memref<1x30x30x1xf32, #tpu.memory_space<vmem>>, vector<1x1x28x1xf32>
      %55 = vector.shape_cast %54 : vector<1x1x28x1xf32> to vector<28x1xf32>
      %c3 = arith.constant 3 : index
      %c0_32 = arith.constant 0 : index
      %c0_33 = arith.constant 0 : index
      %56 = vector.load %arg2[%c3, %c0_32, %c0_33] : memref<9x1x128xf32, #tpu.memory_space<vmem>>, vector<1x1x128xf32>
      %57 = vector.shape_cast %56 : vector<1x1x128xf32> to vector<1x128xf32>
      %58 = vector.broadcast %55 : vector<28x1xf32> to vector<28x128xf32>
      %59 = vector.broadcast %57 : vector<1x128xf32> to vector<28x128xf32>
      %60 = arith.mulf %58, %59 : vector<28x128xf32>
      %61 = arith.addf %51, %60 : vector<28x128xf32>
      %c1_i32_34 = arith.constant 1 : i32
      %62 = arith.addi %20, %c1_i32_34 : i32
      %c0_35 = arith.constant 0 : index
      %63 = arith.index_cast %62 : i32 to index
      %c1_36 = arith.constant 1 : index
      %c0_37 = arith.constant 0 : index
      %64 = vector.load %arg1[%c0_35, %63, %c1_36, %c0_37] : memref<1x30x30x1xf32, #tpu.memory_space<vmem>>, vector<1x1x28x1xf32>
      %65 = vector.shape_cast %64 : vector<1x1x28x1xf32> to vector<28x1xf32>
      %c4 = arith.constant 4 : index
      %c0_38 = arith.constant 0 : index
      %c0_39 = arith.constant 0 : index
      %66 = vector.load %arg2[%c4, %c0_38, %c0_39] : memref<9x1x128xf32, #tpu.memory_space<vmem>>, vector<1x1x128xf32>
      %67 = vector.shape_cast %66 : vector<1x1x128xf32> to vector<1x128xf32>
      %68 = vector.broadcast %65 : vector<28x1xf32> to vector<28x128xf32>
      %69 = vector.broadcast %67 : vector<1x128xf32> to vector<28x128xf32>
      %70 = arith.mulf %68, %69 : vector<28x128xf32>
      %71 = arith.addf %61, %70 : vector<28x128xf32>
      %c1_i32_40 = arith.constant 1 : i32
      %72 = arith.addi %20, %c1_i32_40 : i32
      %c0_41 = arith.constant 0 : index
      %73 = arith.index_cast %72 : i32 to index
      %c2_42 = arith.constant 2 : index
      %c0_43 = arith.constant 0 : index
      %74 = vector.load %arg1[%c0_41, %73, %c2_42, %c0_43] : memref<1x30x30x1xf32, #tpu.memory_space<vmem>>, vector<1x1x28x1xf32>
      %75 = vector.shape_cast %74 : vector<1x1x28x1xf32> to vector<28x1xf32>
      %c5 = arith.constant 5 : index
      %c0_44 = arith.constant 0 : index
      %c0_45 = arith.constant 0 : index
      %76 = vector.load %arg2[%c5, %c0_44, %c0_45] : memref<9x1x128xf32, #tpu.memory_space<vmem>>, vector<1x1x128xf32>
      %77 = vector.shape_cast %76 : vector<1x1x128xf32> to vector<1x128xf32>
      %78 = vector.broadcast %75 : vector<28x1xf32> to vector<28x128xf32>
      %79 = vector.broadcast %77 : vector<1x128xf32> to vector<28x128xf32>
      %80 = arith.mulf %78, %79 : vector<28x128xf32>
      %81 = arith.addf %71, %80 : vector<28x128xf32>
      %c2_i32_46 = arith.constant 2 : i32
      %82 = arith.addi %20, %c2_i32_46 : i32
      %c0_47 = arith.constant 0 : index
      %83 = arith.index_cast %82 : i32 to index
      %c0_48 = arith.constant 0 : index
      %c0_49 = arith.constant 0 : index
      %84 = vector.load %arg1[%c0_47, %83, %c0_48, %c0_49] : memref<1x30x30x1xf32, #tpu.memory_space<vmem>>, vector<1x1x28x1xf32>
      %85 = vector.shape_cast %84 : vector<1x1x28x1xf32> to vector<28x1xf32>
      %c6 = arith.constant 6 : index
      %c0_50 = arith.constant 0 : index
      %c0_51 = arith.constant 0 : index
      %86 = vector.load %arg2[%c6, %c0_50, %c0_51] : memref<9x1x128xf32, #tpu.memory_space<vmem>>, vector<1x1x128xf32>
      %87 = vector.shape_cast %86 : vector<1x1x128xf32> to vector<1x128xf32>
      %88 = vector.broadcast %85 : vector<28x1xf32> to vector<28x128xf32>
      %89 = vector.broadcast %87 : vector<1x128xf32> to vector<28x128xf32>
      %90 = arith.mulf %88, %89 : vector<28x128xf32>
      %91 = arith.addf %81, %90 : vector<28x128xf32>
      %c2_i32_52 = arith.constant 2 : i32
      %92 = arith.addi %20, %c2_i32_52 : i32
      %c0_53 = arith.constant 0 : index
      %93 = arith.index_cast %92 : i32 to index
      %c1_54 = arith.constant 1 : index
      %c0_55 = arith.constant 0 : index
      %94 = vector.load %arg1[%c0_53, %93, %c1_54, %c0_55] : memref<1x30x30x1xf32, #tpu.memory_space<vmem>>, vector<1x1x28x1xf32>
      %95 = vector.shape_cast %94 : vector<1x1x28x1xf32> to vector<28x1xf32>
      %c7 = arith.constant 7 : index
      %c0_56 = arith.constant 0 : index
      %c0_57 = arith.constant 0 : index
      %96 = vector.load %arg2[%c7, %c0_56, %c0_57] : memref<9x1x128xf32, #tpu.memory_space<vmem>>, vector<1x1x128xf32>
      %97 = vector.shape_cast %96 : vector<1x1x128xf32> to vector<1x128xf32>
      %98 = vector.broadcast %95 : vector<28x1xf32> to vector<28x128xf32>
      %99 = vector.broadcast %97 : vector<1x128xf32> to vector<28x128xf32>
      %100 = arith.mulf %98, %99 : vector<28x128xf32>
      %101 = arith.addf %91, %100 : vector<28x128xf32>
      %c2_i32_58 = arith.constant 2 : i32
      %102 = arith.addi %20, %c2_i32_58 : i32
      %c0_59 = arith.constant 0 : index
      %103 = arith.index_cast %102 : i32 to index
      %c2_60 = arith.constant 2 : index
      %c0_61 = arith.constant 0 : index
      %104 = vector.load %arg1[%c0_59, %103, %c2_60, %c0_61] : memref<1x30x30x1xf32, #tpu.memory_space<vmem>>, vector<1x1x28x1xf32>
      %105 = vector.shape_cast %104 : vector<1x1x28x1xf32> to vector<28x1xf32>
      %c8 = arith.constant 8 : index
      %c0_62 = arith.constant 0 : index
      %c0_63 = arith.constant 0 : index
      %106 = vector.load %arg2[%c8, %c0_62, %c0_63] : memref<9x1x128xf32, #tpu.memory_space<vmem>>, vector<1x1x128xf32>
      %107 = vector.shape_cast %106 : vector<1x1x128xf32> to vector<1x128xf32>
      %108 = vector.broadcast %105 : vector<28x1xf32> to vector<28x128xf32>
      %109 = vector.broadcast %107 : vector<1x128xf32> to vector<28x128xf32>
      %110 = arith.mulf %108, %109 : vector<28x128xf32>
      %111 = arith.addf %101, %110 : vector<28x128xf32>
      %112 = vector.broadcast %0 : vector<1x128xf32> to vector<28x128xf32>
      %113 = arith.addf %111, %112 : vector<28x128xf32>
      %c2_i32_64 = arith.constant 2 : i32
      %114 = arith.muli %c2_i32_64, %arg5 : i32
      %c1_i32_65 = arith.constant 1 : i32
      %115 = arith.addi %114, %c1_i32_65 : i32
      %cst_66 = arith.constant 0.000000e+00 : f32
      %116 = vector.broadcast %cst_66 : f32 to vector<28x128xf32>
      %c0_i32_67 = arith.constant 0 : i32
      %117 = arith.addi %115, %c0_i32_67 : i32
      %c0_68 = arith.constant 0 : index
      %118 = arith.index_cast %117 : i32 to index
      %c0_69 = arith.constant 0 : index
      %c0_70 = arith.constant 0 : index
      %119 = vector.load %arg1[%c0_68, %118, %c0_69, %c0_70] : memref<1x30x30x1xf32, #tpu.memory_space<vmem>>, vector<1x1x28x1xf32>
      %120 = vector.shape_cast %119 : vector<1x1x28x1xf32> to vector<28x1xf32>
      %c0_71 = arith.constant 0 : index
      %c0_72 = arith.constant 0 : index
      %c0_73 = arith.constant 0 : index
      %121 = vector.load %arg2[%c0_71, %c0_72, %c0_73] : memref<9x1x128xf32, #tpu.memory_space<vmem>>, vector<1x1x128xf32>
      %122 = vector.shape_cast %121 : vector<1x1x128xf32> to vector<1x128xf32>
      %123 = vector.broadcast %120 : vector<28x1xf32> to vector<28x128xf32>
      %124 = vector.broadcast %122 : vector<1x128xf32> to vector<28x128xf32>
      %125 = arith.mulf %123, %124 : vector<28x128xf32>
      %126 = arith.addf %116, %125 : vector<28x128xf32>
      %c0_i32_74 = arith.constant 0 : i32
      %127 = arith.addi %115, %c0_i32_74 : i32
      %c0_75 = arith.constant 0 : index
      %128 = arith.index_cast %127 : i32 to index
      %c1_76 = arith.constant 1 : index
      %c0_77 = arith.constant 0 : index
      %129 = vector.load %arg1[%c0_75, %128, %c1_76, %c0_77] : memref<1x30x30x1xf32, #tpu.memory_space<vmem>>, vector<1x1x28x1xf32>
      %130 = vector.shape_cast %129 : vector<1x1x28x1xf32> to vector<28x1xf32>
      %c1_78 = arith.constant 1 : index
      %c0_79 = arith.constant 0 : index
      %c0_80 = arith.constant 0 : index
      %131 = vector.load %arg2[%c1_78, %c0_79, %c0_80] : memref<9x1x128xf32, #tpu.memory_space<vmem>>, vector<1x1x128xf32>
      %132 = vector.shape_cast %131 : vector<1x1x128xf32> to vector<1x128xf32>
      %133 = vector.broadcast %130 : vector<28x1xf32> to vector<28x128xf32>
      %134 = vector.broadcast %132 : vector<1x128xf32> to vector<28x128xf32>
      %135 = arith.mulf %133, %134 : vector<28x128xf32>
      %136 = arith.addf %126, %135 : vector<28x128xf32>
      %c0_i32_81 = arith.constant 0 : i32
      %137 = arith.addi %115, %c0_i32_81 : i32
      %c0_82 = arith.constant 0 : index
      %138 = arith.index_cast %137 : i32 to index
      %c2_83 = arith.constant 2 : index
      %c0_84 = arith.constant 0 : index
      %139 = vector.load %arg1[%c0_82, %138, %c2_83, %c0_84] : memref<1x30x30x1xf32, #tpu.memory_space<vmem>>, vector<1x1x28x1xf32>
      %140 = vector.shape_cast %139 : vector<1x1x28x1xf32> to vector<28x1xf32>
      %c2_85 = arith.constant 2 : index
      %c0_86 = arith.constant 0 : index
      %c0_87 = arith.constant 0 : index
      %141 = vector.load %arg2[%c2_85, %c0_86, %c0_87] : memref<9x1x128xf32, #tpu.memory_space<vmem>>, vector<1x1x128xf32>
      %142 = vector.shape_cast %141 : vector<1x1x128xf32> to vector<1x128xf32>
      %143 = vector.broadcast %140 : vector<28x1xf32> to vector<28x128xf32>
      %144 = vector.broadcast %142 : vector<1x128xf32> to vector<28x128xf32>
      %145 = arith.mulf %143, %144 : vector<28x128xf32>
      %146 = arith.addf %136, %145 : vector<28x128xf32>
      %c1_i32_88 = arith.constant 1 : i32
      %147 = arith.addi %115, %c1_i32_88 : i32
      %c0_89 = arith.constant 0 : index
      %148 = arith.index_cast %147 : i32 to index
      %c0_90 = arith.constant 0 : index
      %c0_91 = arith.constant 0 : index
      %149 = vector.load %arg1[%c0_89, %148, %c0_90, %c0_91] : memref<1x30x30x1xf32, #tpu.memory_space<vmem>>, vector<1x1x28x1xf32>
      %150 = vector.shape_cast %149 : vector<1x1x28x1xf32> to vector<28x1xf32>
      %c3_92 = arith.constant 3 : index
      %c0_93 = arith.constant 0 : index
      %c0_94 = arith.constant 0 : index
      %151 = vector.load %arg2[%c3_92, %c0_93, %c0_94] : memref<9x1x128xf32, #tpu.memory_space<vmem>>, vector<1x1x128xf32>
      %152 = vector.shape_cast %151 : vector<1x1x128xf32> to vector<1x128xf32>
      %153 = vector.broadcast %150 : vector<28x1xf32> to vector<28x128xf32>
      %154 = vector.broadcast %152 : vector<1x128xf32> to vector<28x128xf32>
      %155 = arith.mulf %153, %154 : vector<28x128xf32>
      %156 = arith.addf %146, %155 : vector<28x128xf32>
      %c1_i32_95 = arith.constant 1 : i32
      %157 = arith.addi %115, %c1_i32_95 : i32
      %c0_96 = arith.constant 0 : index
      %158 = arith.index_cast %157 : i32 to index
      %c1_97 = arith.constant 1 : index
      %c0_98 = arith.constant 0 : index
      %159 = vector.load %arg1[%c0_96, %158, %c1_97, %c0_98] : memref<1x30x30x1xf32, #tpu.memory_space<vmem>>, vector<1x1x28x1xf32>
      %160 = vector.shape_cast %159 : vector<1x1x28x1xf32> to vector<28x1xf32>
      %c4_99 = arith.constant 4 : index
      %c0_100 = arith.constant 0 : index
      %c0_101 = arith.constant 0 : index
      %161 = vector.load %arg2[%c4_99, %c0_100, %c0_101] : memref<9x1x128xf32, #tpu.memory_space<vmem>>, vector<1x1x128xf32>
      %162 = vector.shape_cast %161 : vector<1x1x128xf32> to vector<1x128xf32>
      %163 = vector.broadcast %160 : vector<28x1xf32> to vector<28x128xf32>
      %164 = vector.broadcast %162 : vector<1x128xf32> to vector<28x128xf32>
      %165 = arith.mulf %163, %164 : vector<28x128xf32>
      %166 = arith.addf %156, %165 : vector<28x128xf32>
      %c1_i32_102 = arith.constant 1 : i32
      %167 = arith.addi %115, %c1_i32_102 : i32
      %c0_103 = arith.constant 0 : index
      %168 = arith.index_cast %167 : i32 to index
      %c2_104 = arith.constant 2 : index
      %c0_105 = arith.constant 0 : index
      %169 = vector.load %arg1[%c0_103, %168, %c2_104, %c0_105] : memref<1x30x30x1xf32, #tpu.memory_space<vmem>>, vector<1x1x28x1xf32>
      %170 = vector.shape_cast %169 : vector<1x1x28x1xf32> to vector<28x1xf32>
      %c5_106 = arith.constant 5 : index
      %c0_107 = arith.constant 0 : index
      %c0_108 = arith.constant 0 : index
      %171 = vector.load %arg2[%c5_106, %c0_107, %c0_108] : memref<9x1x128xf32, #tpu.memory_space<vmem>>, vector<1x1x128xf32>
      %172 = vector.shape_cast %171 : vector<1x1x128xf32> to vector<1x128xf32>
      %173 = vector.broadcast %170 : vector<28x1xf32> to vector<28x128xf32>
      %174 = vector.broadcast %172 : vector<1x128xf32> to vector<28x128xf32>
      %175 = arith.mulf %173, %174 : vector<28x128xf32>
      %176 = arith.addf %166, %175 : vector<28x128xf32>
      %c2_i32_109 = arith.constant 2 : i32
      %177 = arith.addi %115, %c2_i32_109 : i32
      %c0_110 = arith.constant 0 : index
      %178 = arith.index_cast %177 : i32 to index
      %c0_111 = arith.constant 0 : index
      %c0_112 = arith.constant 0 : index
      %179 = vector.load %arg1[%c0_110, %178, %c0_111, %c0_112] : memref<1x30x30x1xf32, #tpu.memory_space<vmem>>, vector<1x1x28x1xf32>
      %180 = vector.shape_cast %179 : vector<1x1x28x1xf32> to vector<28x1xf32>
      %c6_113 = arith.constant 6 : index
      %c0_114 = arith.constant 0 : index
      %c0_115 = arith.constant 0 : index
      %181 = vector.load %arg2[%c6_113, %c0_114, %c0_115] : memref<9x1x128xf32, #tpu.memory_space<vmem>>, vector<1x1x128xf32>
      %182 = vector.shape_cast %181 : vector<1x1x128xf32> to vector<1x128xf32>
      %183 = vector.broadcast %180 : vector<28x1xf32> to vector<28x128xf32>
      %184 = vector.broadcast %182 : vector<1x128xf32> to vector<28x128xf32>
      %185 = arith.mulf %183, %184 : vector<28x128xf32>
      %186 = arith.addf %176, %185 : vector<28x128xf32>
      %c2_i32_116 = arith.constant 2 : i32
      %187 = arith.addi %115, %c2_i32_116 : i32
      %c0_117 = arith.constant 0 : index
      %188 = arith.index_cast %187 : i32 to index
      %c1_118 = arith.constant 1 : index
      %c0_119 = arith.constant 0 : index
      %189 = vector.load %arg1[%c0_117, %188, %c1_118, %c0_119] : memref<1x30x30x1xf32, #tpu.memory_space<vmem>>, vector<1x1x28x1xf32>
      %190 = vector.shape_cast %189 : vector<1x1x28x1xf32> to vector<28x1xf32>
      %c7_120 = arith.constant 7 : index
      %c0_121 = arith.constant 0 : index
      %c0_122 = arith.constant 0 : index
      %191 = vector.load %arg2[%c7_120, %c0_121, %c0_122] : memref<9x1x128xf32, #tpu.memory_space<vmem>>, vector<1x1x128xf32>
      %192 = vector.shape_cast %191 : vector<1x1x128xf32> to vector<1x128xf32>
      %193 = vector.broadcast %190 : vector<28x1xf32> to vector<28x128xf32>
      %194 = vector.broadcast %192 : vector<1x128xf32> to vector<28x128xf32>
      %195 = arith.mulf %193, %194 : vector<28x128xf32>
      %196 = arith.addf %186, %195 : vector<28x128xf32>
      %c2_i32_123 = arith.constant 2 : i32
      %197 = arith.addi %115, %c2_i32_123 : i32
      %c0_124 = arith.constant 0 : index
      %198 = arith.index_cast %197 : i32 to index
      %c2_125 = arith.constant 2 : index
      %c0_126 = arith.constant 0 : index
      %199 = vector.load %arg1[%c0_124, %198, %c2_125, %c0_126] : memref<1x30x30x1xf32, #tpu.memory_space<vmem>>, vector<1x1x28x1xf32>
      %200 = vector.shape_cast %199 : vector<1x1x28x1xf32> to vector<28x1xf32>
      %c8_127 = arith.constant 8 : index
      %c0_128 = arith.constant 0 : index
      %c0_129 = arith.constant 0 : index
      %201 = vector.load %arg2[%c8_127, %c0_128, %c0_129] : memref<9x1x128xf32, #tpu.memory_space<vmem>>, vector<1x1x128xf32>
      %202 = vector.shape_cast %201 : vector<1x1x128xf32> to vector<1x128xf32>
      %203 = vector.broadcast %200 : vector<28x1xf32> to vector<28x128xf32>
      %204 = vector.broadcast %202 : vector<1x128xf32> to vector<28x128xf32>
      %205 = arith.mulf %203, %204 : vector<28x128xf32>
      %206 = arith.addf %196, %205 : vector<28x128xf32>
      %207 = vector.broadcast %0 : vector<1x128xf32> to vector<28x128xf32>
      %208 = arith.addf %206, %207 : vector<28x128xf32>
      %209 = arith.maximumf %113, %208 : vector<28x128xf32>
      %cst_130 = arith.constant 0.000000e+00 : f32
      %210 = vector.broadcast %cst_130 : f32 to vector<28x128xf32>
      %211 = arith.maximumf %209, %210 : vector<28x128xf32>
      %212 = arith.truncf %211 : vector<28x128xf32> to vector<28x128xbf16>
      %cst_131 = arith.constant dense<0.000000e+00> : vector<14x128xf32>
      %213 = tpu.matmul %9, %212, %cst_131 {dimension_numbers = #tpu.dot_dimension_numbers<[1], [0], [0], [1], [0, 0, 1, 1], [], []>} : vector<14x28xbf16>, vector<28x128xbf16>, vector<14x128xf32> -> vector<14x128xf32>
      %cst_132 = arith.constant dense<0.000000e+00> : vector<14x128xf32>
      %214 = tpu.matmul %18, %212, %cst_132 {dimension_numbers = #tpu.dot_dimension_numbers<[1], [0], [0], [1], [0, 0, 1, 1], [], []>} : vector<14x28xbf16>, vector<28x128xbf16>, vector<14x128xf32> -> vector<14x128xf32>
      %215 = arith.maximumf %213, %214 : vector<14x128xf32>
      %216 = arith.truncf %215 : vector<14x128xf32> to vector<14x128xbf16>
      %c0_133 = arith.constant 0 : index
      %217 = arith.index_cast %arg5 : i32 to index
      %c0_134 = arith.constant 0 : index
      %c0_135 = arith.constant 0 : index
      %218 = vector.load %arg4[%c0_133, %217, %c0_134, %c0_135] : memref<1x14x14x128xbf16, #tpu.memory_space<vmem>>, vector<1x1x14x128xbf16>
      %219 = vector.shape_cast %218 : vector<1x1x14x128xbf16> to vector<14x128xbf16>
      %220 = vector.shape_cast %216 : vector<14x128xbf16> to vector<1x1x14x128xbf16>
      tpu.vector_store %arg4[%c0_133, %217, %c0_134, %c0_135], %220 {strides = array<i32>} : memref<1x14x14x128xbf16, #tpu.memory_space<vmem>>, vector<1x1x14x128xbf16>,
    }
    %c14_i32_6 = arith.constant 14 : i32
    return
  }
  func.func @transform_0(%arg0: i32) -> (i32, i32, i32, i32) {
    %c0_i32 = arith.constant 0 : i32
    %c0_i32_0 = arith.constant 0 : i32
    %c0_i32_1 = arith.constant 0 : i32
    %c0_i32_2 = arith.constant 0 : i32
    return %arg0, %c0_i32, %c0_i32_0, %c0_i32_1 : i32, i32, i32, i32
  }
  func.func @transform_1(%arg0: i32) -> (i32, i32, i32) {
    %c0_i32 = arith.constant 0 : i32
    %c0_i32_0 = arith.constant 0 : i32
    %c0_i32_1 = arith.constant 0 : i32
    %c0_i32_2 = arith.constant 0 : i32
    return %c0_i32, %c0_i32_0, %c0_i32_1 : i32, i32, i32
  }
  func.func @transform_2(%arg0: i32) -> (i32, i32) {
    %c0_i32 = arith.constant 0 : i32
    %c0_i32_0 = arith.constant 0 : i32
    %c0_i32_1 = arith.constant 0 : i32
    return %c0_i32, %c0_i32_0 : i32, i32
  }
  func.func @transform_3(%arg0: i32) -> (i32, i32, i32, i32) {
    %c0_i32 = arith.constant 0 : i32
    %c0_i32_0 = arith.constant 0 : i32
    %c0_i32_1 = arith.constant 0 : i32
    %c0_i32_2 = arith.constant 0 : i32
    return %arg0, %c0_i32, %c0_i32_0, %c0_i32_1 : i32, i32, i32, i32
  }
}

module attributes {stable_mosaic.version = 11 : i64} {
  func.func @_conv_relu_pool_kernel(%arg0: i32, %arg1: memref<1x16x16x128xbf16, #tpu.memory_space<vmem>>, %arg2: memref<9x128x128xbf16, #tpu.memory_space<vmem>>, %arg3: memref<1x128xf32, #tpu.memory_space<vmem>>, %arg4: memref<1x7x7x128xbf16, #tpu.memory_space<vmem>>) attributes {dimension_semantics = [#tpu.dimension_semantics<parallel>], iteration_bounds = array<i64: 2>, scalar_prefetch = 0 : i64, scratch_operands = 0 : i64, tpu.core_type = #tpu.core_type<tc>, window_params = [{transform_indices = @transform_0, window_bounds = array<i64: 1, 16, 16, 128>}, {pipeline_mode = #tpu.pipeline_mode<synchronous>, transform_indices = @transform_1, window_bounds = array<i64: 9, 128, 128>}, {pipeline_mode = #tpu.pipeline_mode<synchronous>, transform_indices = @transform_2, window_bounds = array<i64: 1, 128>}, {transform_indices = @transform_3, window_bounds = array<i64: 1, 7, 7, 128>}]} {
    %c0 = arith.constant 0 : index
    %c0_0 = arith.constant 0 : index
    %0 = vector.load %arg3[%c0, %c0_0] : memref<1x128xf32, #tpu.memory_space<vmem>>, vector<1x128xf32>
    %1 = tpu.iota {dimensions = array<i32: 0>} : vector<7x14xi32>
    %2 = tpu.iota {dimensions = array<i32: 1>} : vector<7x14xi32>
    %c2_i32 = arith.constant 2 : i32
    %3 = vector.broadcast %c2_i32 : i32 to vector<7x14xi32>
    %4 = arith.muli %3, %1 : vector<7x14xi32>
    %5 = arith.cmpi eq, %2, %4 : vector<7x14xi32>
    %cst = arith.constant 1.000000e+00 : f32
    %cst_1 = arith.constant 0.000000e+00 : f32
    %6 = vector.broadcast %cst : f32 to vector<7x14xf32>
    %7 = vector.broadcast %cst_1 : f32 to vector<7x14xf32>
    %8 = arith.select %5, %6, %7 : vector<7x14xi1>, vector<7x14xf32>
    %9 = arith.truncf %8 : vector<7x14xf32> to vector<7x14xbf16>
    %c2_i32_2 = arith.constant 2 : i32
    %10 = vector.broadcast %c2_i32_2 : i32 to vector<7x14xi32>
    %11 = arith.muli %10, %1 : vector<7x14xi32>
    %c1_i32 = arith.constant 1 : i32
    %12 = vector.broadcast %c1_i32 : i32 to vector<7x14xi32>
    %13 = arith.addi %11, %12 : vector<7x14xi32>
    %14 = arith.cmpi eq, %2, %13 : vector<7x14xi32>
    %cst_3 = arith.constant 1.000000e+00 : f32
    %cst_4 = arith.constant 0.000000e+00 : f32
    %15 = vector.broadcast %cst_3 : f32 to vector<7x14xf32>
    %16 = vector.broadcast %cst_4 : f32 to vector<7x14xf32>
    %17 = arith.select %14, %15, %16 : vector<7x14xi1>, vector<7x14xf32>
    %18 = arith.truncf %17 : vector<7x14xf32> to vector<7x14xbf16>
    %c0_i32 = arith.constant 0 : i32
    %c7_i32 = arith.constant 7 : i32
    %19 = arith.addi %c0_i32, %c7_i32 : i32
    %c1_i32_5 = arith.constant 1 : i32
    scf.for %arg5 = %c0_i32 to %19 step %c1_i32_5  : i32 {
      %c2_i32_7 = arith.constant 2 : i32
      %20 = arith.muli %c2_i32_7, %arg5 : i32
      %cst_8 = arith.constant 0.000000e+00 : f32
      %21 = vector.broadcast %cst_8 : f32 to vector<14x128xf32>
      %c0_i32_9 = arith.constant 0 : i32
      %22 = arith.addi %20, %c0_i32_9 : i32
      %c0_10 = arith.constant 0 : index
      %23 = arith.index_cast %22 : i32 to index
      %c0_11 = arith.constant 0 : index
      %c0_12 = arith.constant 0 : index
      %24 = vector.load %arg1[%c0_10, %23, %c0_11, %c0_12] : memref<1x16x16x128xbf16, #tpu.memory_space<vmem>>, vector<1x1x14x128xbf16>
      %25 = vector.shape_cast %24 : vector<1x1x14x128xbf16> to vector<14x128xbf16>
      %c0_13 = arith.constant 0 : index
      %c0_14 = arith.constant 0 : index
      %c0_15 = arith.constant 0 : index
      %26 = vector.load %arg2[%c0_13, %c0_14, %c0_15] : memref<9x128x128xbf16, #tpu.memory_space<vmem>>, vector<1x128x128xbf16>
      %27 = vector.shape_cast %26 : vector<1x128x128xbf16> to vector<128x128xbf16>
      %cst_16 = arith.constant dense<0.000000e+00> : vector<14x128xf32>
      %28 = tpu.matmul %25, %27, %cst_16 {dimension_numbers = #tpu.dot_dimension_numbers<[1], [0], [0], [1], [0, 0, 1, 1], [], []>} : vector<14x128xbf16>, vector<128x128xbf16>, vector<14x128xf32> -> vector<14x128xf32>
      %29 = arith.addf %21, %28 : vector<14x128xf32>
      %c0_i32_17 = arith.constant 0 : i32
      %30 = arith.addi %20, %c0_i32_17 : i32
      %c0_18 = arith.constant 0 : index
      %31 = arith.index_cast %30 : i32 to index
      %c1 = arith.constant 1 : index
      %c0_19 = arith.constant 0 : index
      %32 = vector.load %arg1[%c0_18, %31, %c1, %c0_19] : memref<1x16x16x128xbf16, #tpu.memory_space<vmem>>, vector<1x1x14x128xbf16>
      %33 = vector.shape_cast %32 : vector<1x1x14x128xbf16> to vector<14x128xbf16>
      %c1_20 = arith.constant 1 : index
      %c0_21 = arith.constant 0 : index
      %c0_22 = arith.constant 0 : index
      %34 = vector.load %arg2[%c1_20, %c0_21, %c0_22] : memref<9x128x128xbf16, #tpu.memory_space<vmem>>, vector<1x128x128xbf16>
      %35 = vector.shape_cast %34 : vector<1x128x128xbf16> to vector<128x128xbf16>
      %cst_23 = arith.constant dense<0.000000e+00> : vector<14x128xf32>
      %36 = tpu.matmul %33, %35, %cst_23 {dimension_numbers = #tpu.dot_dimension_numbers<[1], [0], [0], [1], [0, 0, 1, 1], [], []>} : vector<14x128xbf16>, vector<128x128xbf16>, vector<14x128xf32> -> vector<14x128xf32>
      %37 = arith.addf %29, %36 : vector<14x128xf32>
      %c0_i32_24 = arith.constant 0 : i32
      %38 = arith.addi %20, %c0_i32_24 : i32
      %c0_25 = arith.constant 0 : index
      %39 = arith.index_cast %38 : i32 to index
      %c2 = arith.constant 2 : index
      %c0_26 = arith.constant 0 : index
      %40 = vector.load %arg1[%c0_25, %39, %c2, %c0_26] : memref<1x16x16x128xbf16, #tpu.memory_space<vmem>>, vector<1x1x14x128xbf16>
      %41 = vector.shape_cast %40 : vector<1x1x14x128xbf16> to vector<14x128xbf16>
      %c2_27 = arith.constant 2 : index
      %c0_28 = arith.constant 0 : index
      %c0_29 = arith.constant 0 : index
      %42 = vector.load %arg2[%c2_27, %c0_28, %c0_29] : memref<9x128x128xbf16, #tpu.memory_space<vmem>>, vector<1x128x128xbf16>
      %43 = vector.shape_cast %42 : vector<1x128x128xbf16> to vector<128x128xbf16>
      %cst_30 = arith.constant dense<0.000000e+00> : vector<14x128xf32>
      %44 = tpu.matmul %41, %43, %cst_30 {dimension_numbers = #tpu.dot_dimension_numbers<[1], [0], [0], [1], [0, 0, 1, 1], [], []>} : vector<14x128xbf16>, vector<128x128xbf16>, vector<14x128xf32> -> vector<14x128xf32>
      %45 = arith.addf %37, %44 : vector<14x128xf32>
      %c1_i32_31 = arith.constant 1 : i32
      %46 = arith.addi %20, %c1_i32_31 : i32
      %c0_32 = arith.constant 0 : index
      %47 = arith.index_cast %46 : i32 to index
      %c0_33 = arith.constant 0 : index
      %c0_34 = arith.constant 0 : index
      %48 = vector.load %arg1[%c0_32, %47, %c0_33, %c0_34] : memref<1x16x16x128xbf16, #tpu.memory_space<vmem>>, vector<1x1x14x128xbf16>
      %49 = vector.shape_cast %48 : vector<1x1x14x128xbf16> to vector<14x128xbf16>
      %c3 = arith.constant 3 : index
      %c0_35 = arith.constant 0 : index
      %c0_36 = arith.constant 0 : index
      %50 = vector.load %arg2[%c3, %c0_35, %c0_36] : memref<9x128x128xbf16, #tpu.memory_space<vmem>>, vector<1x128x128xbf16>
      %51 = vector.shape_cast %50 : vector<1x128x128xbf16> to vector<128x128xbf16>
      %cst_37 = arith.constant dense<0.000000e+00> : vector<14x128xf32>
      %52 = tpu.matmul %49, %51, %cst_37 {dimension_numbers = #tpu.dot_dimension_numbers<[1], [0], [0], [1], [0, 0, 1, 1], [], []>} : vector<14x128xbf16>, vector<128x128xbf16>, vector<14x128xf32> -> vector<14x128xf32>
      %53 = arith.addf %45, %52 : vector<14x128xf32>
      %c1_i32_38 = arith.constant 1 : i32
      %54 = arith.addi %20, %c1_i32_38 : i32
      %c0_39 = arith.constant 0 : index
      %55 = arith.index_cast %54 : i32 to index
      %c1_40 = arith.constant 1 : index
      %c0_41 = arith.constant 0 : index
      %56 = vector.load %arg1[%c0_39, %55, %c1_40, %c0_41] : memref<1x16x16x128xbf16, #tpu.memory_space<vmem>>, vector<1x1x14x128xbf16>
      %57 = vector.shape_cast %56 : vector<1x1x14x128xbf16> to vector<14x128xbf16>
      %c4 = arith.constant 4 : index
      %c0_42 = arith.constant 0 : index
      %c0_43 = arith.constant 0 : index
      %58 = vector.load %arg2[%c4, %c0_42, %c0_43] : memref<9x128x128xbf16, #tpu.memory_space<vmem>>, vector<1x128x128xbf16>
      %59 = vector.shape_cast %58 : vector<1x128x128xbf16> to vector<128x128xbf16>
      %cst_44 = arith.constant dense<0.000000e+00> : vector<14x128xf32>
      %60 = tpu.matmul %57, %59, %cst_44 {dimension_numbers = #tpu.dot_dimension_numbers<[1], [0], [0], [1], [0, 0, 1, 1], [], []>} : vector<14x128xbf16>, vector<128x128xbf16>, vector<14x128xf32> -> vector<14x128xf32>
      %61 = arith.addf %53, %60 : vector<14x128xf32>
      %c1_i32_45 = arith.constant 1 : i32
      %62 = arith.addi %20, %c1_i32_45 : i32
      %c0_46 = arith.constant 0 : index
      %63 = arith.index_cast %62 : i32 to index
      %c2_47 = arith.constant 2 : index
      %c0_48 = arith.constant 0 : index
      %64 = vector.load %arg1[%c0_46, %63, %c2_47, %c0_48] : memref<1x16x16x128xbf16, #tpu.memory_space<vmem>>, vector<1x1x14x128xbf16>
      %65 = vector.shape_cast %64 : vector<1x1x14x128xbf16> to vector<14x128xbf16>
      %c5 = arith.constant 5 : index
      %c0_49 = arith.constant 0 : index
      %c0_50 = arith.constant 0 : index
      %66 = vector.load %arg2[%c5, %c0_49, %c0_50] : memref<9x128x128xbf16, #tpu.memory_space<vmem>>, vector<1x128x128xbf16>
      %67 = vector.shape_cast %66 : vector<1x128x128xbf16> to vector<128x128xbf16>
      %cst_51 = arith.constant dense<0.000000e+00> : vector<14x128xf32>
      %68 = tpu.matmul %65, %67, %cst_51 {dimension_numbers = #tpu.dot_dimension_numbers<[1], [0], [0], [1], [0, 0, 1, 1], [], []>} : vector<14x128xbf16>, vector<128x128xbf16>, vector<14x128xf32> -> vector<14x128xf32>
      %69 = arith.addf %61, %68 : vector<14x128xf32>
      %c2_i32_52 = arith.constant 2 : i32
      %70 = arith.addi %20, %c2_i32_52 : i32
      %c0_53 = arith.constant 0 : index
      %71 = arith.index_cast %70 : i32 to index
      %c0_54 = arith.constant 0 : index
      %c0_55 = arith.constant 0 : index
      %72 = vector.load %arg1[%c0_53, %71, %c0_54, %c0_55] : memref<1x16x16x128xbf16, #tpu.memory_space<vmem>>, vector<1x1x14x128xbf16>
      %73 = vector.shape_cast %72 : vector<1x1x14x128xbf16> to vector<14x128xbf16>
      %c6 = arith.constant 6 : index
      %c0_56 = arith.constant 0 : index
      %c0_57 = arith.constant 0 : index
      %74 = vector.load %arg2[%c6, %c0_56, %c0_57] : memref<9x128x128xbf16, #tpu.memory_space<vmem>>, vector<1x128x128xbf16>
      %75 = vector.shape_cast %74 : vector<1x128x128xbf16> to vector<128x128xbf16>
      %cst_58 = arith.constant dense<0.000000e+00> : vector<14x128xf32>
      %76 = tpu.matmul %73, %75, %cst_58 {dimension_numbers = #tpu.dot_dimension_numbers<[1], [0], [0], [1], [0, 0, 1, 1], [], []>} : vector<14x128xbf16>, vector<128x128xbf16>, vector<14x128xf32> -> vector<14x128xf32>
      %77 = arith.addf %69, %76 : vector<14x128xf32>
      %c2_i32_59 = arith.constant 2 : i32
      %78 = arith.addi %20, %c2_i32_59 : i32
      %c0_60 = arith.constant 0 : index
      %79 = arith.index_cast %78 : i32 to index
      %c1_61 = arith.constant 1 : index
      %c0_62 = arith.constant 0 : index
      %80 = vector.load %arg1[%c0_60, %79, %c1_61, %c0_62] : memref<1x16x16x128xbf16, #tpu.memory_space<vmem>>, vector<1x1x14x128xbf16>
      %81 = vector.shape_cast %80 : vector<1x1x14x128xbf16> to vector<14x128xbf16>
      %c7 = arith.constant 7 : index
      %c0_63 = arith.constant 0 : index
      %c0_64 = arith.constant 0 : index
      %82 = vector.load %arg2[%c7, %c0_63, %c0_64] : memref<9x128x128xbf16, #tpu.memory_space<vmem>>, vector<1x128x128xbf16>
      %83 = vector.shape_cast %82 : vector<1x128x128xbf16> to vector<128x128xbf16>
      %cst_65 = arith.constant dense<0.000000e+00> : vector<14x128xf32>
      %84 = tpu.matmul %81, %83, %cst_65 {dimension_numbers = #tpu.dot_dimension_numbers<[1], [0], [0], [1], [0, 0, 1, 1], [], []>} : vector<14x128xbf16>, vector<128x128xbf16>, vector<14x128xf32> -> vector<14x128xf32>
      %85 = arith.addf %77, %84 : vector<14x128xf32>
      %c2_i32_66 = arith.constant 2 : i32
      %86 = arith.addi %20, %c2_i32_66 : i32
      %c0_67 = arith.constant 0 : index
      %87 = arith.index_cast %86 : i32 to index
      %c2_68 = arith.constant 2 : index
      %c0_69 = arith.constant 0 : index
      %88 = vector.load %arg1[%c0_67, %87, %c2_68, %c0_69] : memref<1x16x16x128xbf16, #tpu.memory_space<vmem>>, vector<1x1x14x128xbf16>
      %89 = vector.shape_cast %88 : vector<1x1x14x128xbf16> to vector<14x128xbf16>
      %c8 = arith.constant 8 : index
      %c0_70 = arith.constant 0 : index
      %c0_71 = arith.constant 0 : index
      %90 = vector.load %arg2[%c8, %c0_70, %c0_71] : memref<9x128x128xbf16, #tpu.memory_space<vmem>>, vector<1x128x128xbf16>
      %91 = vector.shape_cast %90 : vector<1x128x128xbf16> to vector<128x128xbf16>
      %cst_72 = arith.constant dense<0.000000e+00> : vector<14x128xf32>
      %92 = tpu.matmul %89, %91, %cst_72 {dimension_numbers = #tpu.dot_dimension_numbers<[1], [0], [0], [1], [0, 0, 1, 1], [], []>} : vector<14x128xbf16>, vector<128x128xbf16>, vector<14x128xf32> -> vector<14x128xf32>
      %93 = arith.addf %85, %92 : vector<14x128xf32>
      %94 = vector.broadcast %0 : vector<1x128xf32> to vector<14x128xf32>
      %95 = arith.addf %93, %94 : vector<14x128xf32>
      %c2_i32_73 = arith.constant 2 : i32
      %96 = arith.muli %c2_i32_73, %arg5 : i32
      %c1_i32_74 = arith.constant 1 : i32
      %97 = arith.addi %96, %c1_i32_74 : i32
      %cst_75 = arith.constant 0.000000e+00 : f32
      %98 = vector.broadcast %cst_75 : f32 to vector<14x128xf32>
      %c0_i32_76 = arith.constant 0 : i32
      %99 = arith.addi %97, %c0_i32_76 : i32
      %c0_77 = arith.constant 0 : index
      %100 = arith.index_cast %99 : i32 to index
      %c0_78 = arith.constant 0 : index
      %c0_79 = arith.constant 0 : index
      %101 = vector.load %arg1[%c0_77, %100, %c0_78, %c0_79] : memref<1x16x16x128xbf16, #tpu.memory_space<vmem>>, vector<1x1x14x128xbf16>
      %102 = vector.shape_cast %101 : vector<1x1x14x128xbf16> to vector<14x128xbf16>
      %c0_80 = arith.constant 0 : index
      %c0_81 = arith.constant 0 : index
      %c0_82 = arith.constant 0 : index
      %103 = vector.load %arg2[%c0_80, %c0_81, %c0_82] : memref<9x128x128xbf16, #tpu.memory_space<vmem>>, vector<1x128x128xbf16>
      %104 = vector.shape_cast %103 : vector<1x128x128xbf16> to vector<128x128xbf16>
      %cst_83 = arith.constant dense<0.000000e+00> : vector<14x128xf32>
      %105 = tpu.matmul %102, %104, %cst_83 {dimension_numbers = #tpu.dot_dimension_numbers<[1], [0], [0], [1], [0, 0, 1, 1], [], []>} : vector<14x128xbf16>, vector<128x128xbf16>, vector<14x128xf32> -> vector<14x128xf32>
      %106 = arith.addf %98, %105 : vector<14x128xf32>
      %c0_i32_84 = arith.constant 0 : i32
      %107 = arith.addi %97, %c0_i32_84 : i32
      %c0_85 = arith.constant 0 : index
      %108 = arith.index_cast %107 : i32 to index
      %c1_86 = arith.constant 1 : index
      %c0_87 = arith.constant 0 : index
      %109 = vector.load %arg1[%c0_85, %108, %c1_86, %c0_87] : memref<1x16x16x128xbf16, #tpu.memory_space<vmem>>, vector<1x1x14x128xbf16>
      %110 = vector.shape_cast %109 : vector<1x1x14x128xbf16> to vector<14x128xbf16>
      %c1_88 = arith.constant 1 : index
      %c0_89 = arith.constant 0 : index
      %c0_90 = arith.constant 0 : index
      %111 = vector.load %arg2[%c1_88, %c0_89, %c0_90] : memref<9x128x128xbf16, #tpu.memory_space<vmem>>, vector<1x128x128xbf16>
      %112 = vector.shape_cast %111 : vector<1x128x128xbf16> to vector<128x128xbf16>
      %cst_91 = arith.constant dense<0.000000e+00> : vector<14x128xf32>
      %113 = tpu.matmul %110, %112, %cst_91 {dimension_numbers = #tpu.dot_dimension_numbers<[1], [0], [0], [1], [0, 0, 1, 1], [], []>} : vector<14x128xbf16>, vector<128x128xbf16>, vector<14x128xf32> -> vector<14x128xf32>
      %114 = arith.addf %106, %113 : vector<14x128xf32>
      %c0_i32_92 = arith.constant 0 : i32
      %115 = arith.addi %97, %c0_i32_92 : i32
      %c0_93 = arith.constant 0 : index
      %116 = arith.index_cast %115 : i32 to index
      %c2_94 = arith.constant 2 : index
      %c0_95 = arith.constant 0 : index
      %117 = vector.load %arg1[%c0_93, %116, %c2_94, %c0_95] : memref<1x16x16x128xbf16, #tpu.memory_space<vmem>>, vector<1x1x14x128xbf16>
      %118 = vector.shape_cast %117 : vector<1x1x14x128xbf16> to vector<14x128xbf16>
      %c2_96 = arith.constant 2 : index
      %c0_97 = arith.constant 0 : index
      %c0_98 = arith.constant 0 : index
      %119 = vector.load %arg2[%c2_96, %c0_97, %c0_98] : memref<9x128x128xbf16, #tpu.memory_space<vmem>>, vector<1x128x128xbf16>
      %120 = vector.shape_cast %119 : vector<1x128x128xbf16> to vector<128x128xbf16>
      %cst_99 = arith.constant dense<0.000000e+00> : vector<14x128xf32>
      %121 = tpu.matmul %118, %120, %cst_99 {dimension_numbers = #tpu.dot_dimension_numbers<[1], [0], [0], [1], [0, 0, 1, 1], [], []>} : vector<14x128xbf16>, vector<128x128xbf16>, vector<14x128xf32> -> vector<14x128xf32>
      %122 = arith.addf %114, %121 : vector<14x128xf32>
      %c1_i32_100 = arith.constant 1 : i32
      %123 = arith.addi %97, %c1_i32_100 : i32
      %c0_101 = arith.constant 0 : index
      %124 = arith.index_cast %123 : i32 to index
      %c0_102 = arith.constant 0 : index
      %c0_103 = arith.constant 0 : index
      %125 = vector.load %arg1[%c0_101, %124, %c0_102, %c0_103] : memref<1x16x16x128xbf16, #tpu.memory_space<vmem>>, vector<1x1x14x128xbf16>
      %126 = vector.shape_cast %125 : vector<1x1x14x128xbf16> to vector<14x128xbf16>
      %c3_104 = arith.constant 3 : index
      %c0_105 = arith.constant 0 : index
      %c0_106 = arith.constant 0 : index
      %127 = vector.load %arg2[%c3_104, %c0_105, %c0_106] : memref<9x128x128xbf16, #tpu.memory_space<vmem>>, vector<1x128x128xbf16>
      %128 = vector.shape_cast %127 : vector<1x128x128xbf16> to vector<128x128xbf16>
      %cst_107 = arith.constant dense<0.000000e+00> : vector<14x128xf32>
      %129 = tpu.matmul %126, %128, %cst_107 {dimension_numbers = #tpu.dot_dimension_numbers<[1], [0], [0], [1], [0, 0, 1, 1], [], []>} : vector<14x128xbf16>, vector<128x128xbf16>, vector<14x128xf32> -> vector<14x128xf32>
      %130 = arith.addf %122, %129 : vector<14x128xf32>
      %c1_i32_108 = arith.constant 1 : i32
      %131 = arith.addi %97, %c1_i32_108 : i32
      %c0_109 = arith.constant 0 : index
      %132 = arith.index_cast %131 : i32 to index
      %c1_110 = arith.constant 1 : index
      %c0_111 = arith.constant 0 : index
      %133 = vector.load %arg1[%c0_109, %132, %c1_110, %c0_111] : memref<1x16x16x128xbf16, #tpu.memory_space<vmem>>, vector<1x1x14x128xbf16>
      %134 = vector.shape_cast %133 : vector<1x1x14x128xbf16> to vector<14x128xbf16>
      %c4_112 = arith.constant 4 : index
      %c0_113 = arith.constant 0 : index
      %c0_114 = arith.constant 0 : index
      %135 = vector.load %arg2[%c4_112, %c0_113, %c0_114] : memref<9x128x128xbf16, #tpu.memory_space<vmem>>, vector<1x128x128xbf16>
      %136 = vector.shape_cast %135 : vector<1x128x128xbf16> to vector<128x128xbf16>
      %cst_115 = arith.constant dense<0.000000e+00> : vector<14x128xf32>
      %137 = tpu.matmul %134, %136, %cst_115 {dimension_numbers = #tpu.dot_dimension_numbers<[1], [0], [0], [1], [0, 0, 1, 1], [], []>} : vector<14x128xbf16>, vector<128x128xbf16>, vector<14x128xf32> -> vector<14x128xf32>
      %138 = arith.addf %130, %137 : vector<14x128xf32>
      %c1_i32_116 = arith.constant 1 : i32
      %139 = arith.addi %97, %c1_i32_116 : i32
      %c0_117 = arith.constant 0 : index
      %140 = arith.index_cast %139 : i32 to index
      %c2_118 = arith.constant 2 : index
      %c0_119 = arith.constant 0 : index
      %141 = vector.load %arg1[%c0_117, %140, %c2_118, %c0_119] : memref<1x16x16x128xbf16, #tpu.memory_space<vmem>>, vector<1x1x14x128xbf16>
      %142 = vector.shape_cast %141 : vector<1x1x14x128xbf16> to vector<14x128xbf16>
      %c5_120 = arith.constant 5 : index
      %c0_121 = arith.constant 0 : index
      %c0_122 = arith.constant 0 : index
      %143 = vector.load %arg2[%c5_120, %c0_121, %c0_122] : memref<9x128x128xbf16, #tpu.memory_space<vmem>>, vector<1x128x128xbf16>
      %144 = vector.shape_cast %143 : vector<1x128x128xbf16> to vector<128x128xbf16>
      %cst_123 = arith.constant dense<0.000000e+00> : vector<14x128xf32>
      %145 = tpu.matmul %142, %144, %cst_123 {dimension_numbers = #tpu.dot_dimension_numbers<[1], [0], [0], [1], [0, 0, 1, 1], [], []>} : vector<14x128xbf16>, vector<128x128xbf16>, vector<14x128xf32> -> vector<14x128xf32>
      %146 = arith.addf %138, %145 : vector<14x128xf32>
      %c2_i32_124 = arith.constant 2 : i32
      %147 = arith.addi %97, %c2_i32_124 : i32
      %c0_125 = arith.constant 0 : index
      %148 = arith.index_cast %147 : i32 to index
      %c0_126 = arith.constant 0 : index
      %c0_127 = arith.constant 0 : index
      %149 = vector.load %arg1[%c0_125, %148, %c0_126, %c0_127] : memref<1x16x16x128xbf16, #tpu.memory_space<vmem>>, vector<1x1x14x128xbf16>
      %150 = vector.shape_cast %149 : vector<1x1x14x128xbf16> to vector<14x128xbf16>
      %c6_128 = arith.constant 6 : index
      %c0_129 = arith.constant 0 : index
      %c0_130 = arith.constant 0 : index
      %151 = vector.load %arg2[%c6_128, %c0_129, %c0_130] : memref<9x128x128xbf16, #tpu.memory_space<vmem>>, vector<1x128x128xbf16>
      %152 = vector.shape_cast %151 : vector<1x128x128xbf16> to vector<128x128xbf16>
      %cst_131 = arith.constant dense<0.000000e+00> : vector<14x128xf32>
      %153 = tpu.matmul %150, %152, %cst_131 {dimension_numbers = #tpu.dot_dimension_numbers<[1], [0], [0], [1], [0, 0, 1, 1], [], []>} : vector<14x128xbf16>, vector<128x128xbf16>, vector<14x128xf32> -> vector<14x128xf32>
      %154 = arith.addf %146, %153 : vector<14x128xf32>
      %c2_i32_132 = arith.constant 2 : i32
      %155 = arith.addi %97, %c2_i32_132 : i32
      %c0_133 = arith.constant 0 : index
      %156 = arith.index_cast %155 : i32 to index
      %c1_134 = arith.constant 1 : index
      %c0_135 = arith.constant 0 : index
      %157 = vector.load %arg1[%c0_133, %156, %c1_134, %c0_135] : memref<1x16x16x128xbf16, #tpu.memory_space<vmem>>, vector<1x1x14x128xbf16>
      %158 = vector.shape_cast %157 : vector<1x1x14x128xbf16> to vector<14x128xbf16>
      %c7_136 = arith.constant 7 : index
      %c0_137 = arith.constant 0 : index
      %c0_138 = arith.constant 0 : index
      %159 = vector.load %arg2[%c7_136, %c0_137, %c0_138] : memref<9x128x128xbf16, #tpu.memory_space<vmem>>, vector<1x128x128xbf16>
      %160 = vector.shape_cast %159 : vector<1x128x128xbf16> to vector<128x128xbf16>
      %cst_139 = arith.constant dense<0.000000e+00> : vector<14x128xf32>
      %161 = tpu.matmul %158, %160, %cst_139 {dimension_numbers = #tpu.dot_dimension_numbers<[1], [0], [0], [1], [0, 0, 1, 1], [], []>} : vector<14x128xbf16>, vector<128x128xbf16>, vector<14x128xf32> -> vector<14x128xf32>
      %162 = arith.addf %154, %161 : vector<14x128xf32>
      %c2_i32_140 = arith.constant 2 : i32
      %163 = arith.addi %97, %c2_i32_140 : i32
      %c0_141 = arith.constant 0 : index
      %164 = arith.index_cast %163 : i32 to index
      %c2_142 = arith.constant 2 : index
      %c0_143 = arith.constant 0 : index
      %165 = vector.load %arg1[%c0_141, %164, %c2_142, %c0_143] : memref<1x16x16x128xbf16, #tpu.memory_space<vmem>>, vector<1x1x14x128xbf16>
      %166 = vector.shape_cast %165 : vector<1x1x14x128xbf16> to vector<14x128xbf16>
      %c8_144 = arith.constant 8 : index
      %c0_145 = arith.constant 0 : index
      %c0_146 = arith.constant 0 : index
      %167 = vector.load %arg2[%c8_144, %c0_145, %c0_146] : memref<9x128x128xbf16, #tpu.memory_space<vmem>>, vector<1x128x128xbf16>
      %168 = vector.shape_cast %167 : vector<1x128x128xbf16> to vector<128x128xbf16>
      %cst_147 = arith.constant dense<0.000000e+00> : vector<14x128xf32>
      %169 = tpu.matmul %166, %168, %cst_147 {dimension_numbers = #tpu.dot_dimension_numbers<[1], [0], [0], [1], [0, 0, 1, 1], [], []>} : vector<14x128xbf16>, vector<128x128xbf16>, vector<14x128xf32> -> vector<14x128xf32>
      %170 = arith.addf %162, %169 : vector<14x128xf32>
      %171 = vector.broadcast %0 : vector<1x128xf32> to vector<14x128xf32>
      %172 = arith.addf %170, %171 : vector<14x128xf32>
      %173 = arith.maximumf %95, %172 : vector<14x128xf32>
      %cst_148 = arith.constant 0.000000e+00 : f32
      %174 = vector.broadcast %cst_148 : f32 to vector<14x128xf32>
      %175 = arith.maximumf %173, %174 : vector<14x128xf32>
      %176 = arith.truncf %175 : vector<14x128xf32> to vector<14x128xbf16>
      %cst_149 = arith.constant dense<0.000000e+00> : vector<7x128xf32>
      %177 = tpu.matmul %9, %176, %cst_149 {dimension_numbers = #tpu.dot_dimension_numbers<[1], [0], [0], [1], [0, 0, 1, 1], [], []>} : vector<7x14xbf16>, vector<14x128xbf16>, vector<7x128xf32> -> vector<7x128xf32>
      %cst_150 = arith.constant dense<0.000000e+00> : vector<7x128xf32>
      %178 = tpu.matmul %18, %176, %cst_150 {dimension_numbers = #tpu.dot_dimension_numbers<[1], [0], [0], [1], [0, 0, 1, 1], [], []>} : vector<7x14xbf16>, vector<14x128xbf16>, vector<7x128xf32> -> vector<7x128xf32>
      %179 = arith.maximumf %177, %178 : vector<7x128xf32>
      %180 = arith.truncf %179 : vector<7x128xf32> to vector<7x128xbf16>
      %c0_151 = arith.constant 0 : index
      %181 = arith.index_cast %arg5 : i32 to index
      %c0_152 = arith.constant 0 : index
      %c0_153 = arith.constant 0 : index
      %182 = vector.load %arg4[%c0_151, %181, %c0_152, %c0_153] : memref<1x7x7x128xbf16, #tpu.memory_space<vmem>>, vector<1x1x7x128xbf16>
      %183 = vector.shape_cast %182 : vector<1x1x7x128xbf16> to vector<7x128xbf16>
      %184 = vector.shape_cast %180 : vector<7x128xbf16> to vector<1x1x7x128xbf16>
      tpu.vector_store %arg4[%c0_151, %181, %c0_152, %c0_153], %184 {strides = array<i32>} : memref<1x7x7x128xbf16, #tpu.memory_space<vmem>>, vector<1x1x7x128xbf16>,
    }
    %c7_i32_6 = arith.constant 7 : i32
    return
  }
  func.func @transform_0(%arg0: i32) -> (i32, i32, i32, i32) {
    %c0_i32 = arith.constant 0 : i32
    %c0_i32_0 = arith.constant 0 : i32
    %c0_i32_1 = arith.constant 0 : i32
    %c0_i32_2 = arith.constant 0 : i32
    return %arg0, %c0_i32, %c0_i32_0, %c0_i32_1 : i32, i32, i32, i32
  }
  func.func @transform_1(%arg0: i32) -> (i32, i32, i32) {
    %c0_i32 = arith.constant 0 : i32
    %c0_i32_0 = arith.constant 0 : i32
    %c0_i32_1 = arith.constant 0 : i32
    %c0_i32_2 = arith.constant 0 : i32
    return %c0_i32, %c0_i32_0, %c0_i32_1 : i32, i32, i32
  }
  func.func @transform_2(%arg0: i32) -> (i32, i32) {
    %c0_i32 = arith.constant 0 : i32
    %c0_i32_0 = arith.constant 0 : i32
    %c0_i32_1 = arith.constant 0 : i32
    return %c0_i32, %c0_i32_0 : i32, i32
  }
  func.func @transform_3(%arg0: i32) -> (i32, i32, i32, i32) {
    %c0_i32 = arith.constant 0 : i32
    %c0_i32_0 = arith.constant 0 : i32
    %c0_i32_1 = arith.constant 0 : i32
    %c0_i32_2 = arith.constant 0 : i32
    return %arg0, %c0_i32, %c0_i32_0, %c0_i32_1 : i32, i32, i32, i32
  }
}

module attributes {stable_mosaic.version = 11 : i64} {
  func.func @_fused_mlp_kernel(%arg0: memref<2x2450xbf16, #tpu.memory_space<vmem>>, %arg1: memref<2450x1024xbf16, #tpu.memory_space<vmem>>, %arg2: memref<1x1024xf32, #tpu.memory_space<vmem>>, %arg3: memref<1024x128xbf16, #tpu.memory_space<vmem>>, %arg4: memref<1x128xf32, #tpu.memory_space<vmem>>, %arg5: memref<128x128xbf16, #tpu.memory_space<vmem>>, %arg6: memref<1x128xf32, #tpu.memory_space<vmem>>, %arg7: memref<2x128xf32, #tpu.memory_space<vmem>>) attributes {dimension_semantics = [], scalar_prefetch = 0 : i64, scratch_operands = 0 : i64, tpu.core_type = #tpu.core_type<tc>} {
    %c0 = arith.constant 0 : index
    %c0_0 = arith.constant 0 : index
    %0 = vector.load %arg0[%c0, %c0_0] : memref<2x2450xbf16, #tpu.memory_space<vmem>>, vector<2x2450xbf16>
    %c0_1 = arith.constant 0 : index
    %c0_2 = arith.constant 0 : index
    %1 = vector.load %arg1[%c0_1, %c0_2] : memref<2450x1024xbf16, #tpu.memory_space<vmem>>, vector<2450x1024xbf16>
    %cst = arith.constant dense<0.000000e+00> : vector<2x1024xf32>
    %2 = tpu.matmul %0, %1, %cst {dimension_numbers = #tpu.dot_dimension_numbers<[1], [0], [0], [1], [0, 0, 1, 1], [], []>} : vector<2x2450xbf16>, vector<2450x1024xbf16>, vector<2x1024xf32> -> vector<2x1024xf32>
    %c0_3 = arith.constant 0 : index
    %c0_4 = arith.constant 0 : index
    %3 = vector.load %arg2[%c0_3, %c0_4] : memref<1x1024xf32, #tpu.memory_space<vmem>>, vector<1x1024xf32>
    %4 = vector.broadcast %3 : vector<1x1024xf32> to vector<2x1024xf32>
    %5 = arith.addf %2, %4 : vector<2x1024xf32>
    %cst_5 = arith.constant 0.000000e+00 : f32
    %6 = vector.broadcast %cst_5 : f32 to vector<2x1024xf32>
    %7 = arith.maximumf %5, %6 : vector<2x1024xf32>
    %8 = arith.truncf %7 : vector<2x1024xf32> to vector<2x1024xbf16>
    %c0_6 = arith.constant 0 : index
    %c0_7 = arith.constant 0 : index
    %9 = vector.load %arg3[%c0_6, %c0_7] : memref<1024x128xbf16, #tpu.memory_space<vmem>>, vector<1024x128xbf16>
    %cst_8 = arith.constant dense<0.000000e+00> : vector<2x128xf32>
    %10 = tpu.matmul %8, %9, %cst_8 {dimension_numbers = #tpu.dot_dimension_numbers<[1], [0], [0], [1], [0, 0, 1, 1], [], []>} : vector<2x1024xbf16>, vector<1024x128xbf16>, vector<2x128xf32> -> vector<2x128xf32>
    %c0_9 = arith.constant 0 : index
    %c0_10 = arith.constant 0 : index
    %11 = vector.load %arg4[%c0_9, %c0_10] : memref<1x128xf32, #tpu.memory_space<vmem>>, vector<1x128xf32>
    %12 = vector.broadcast %11 : vector<1x128xf32> to vector<2x128xf32>
    %13 = arith.addf %10, %12 : vector<2x128xf32>
    %cst_11 = arith.constant 0.000000e+00 : f32
    %14 = vector.broadcast %cst_11 : f32 to vector<2x128xf32>
    %15 = arith.maximumf %13, %14 : vector<2x128xf32>
    %16 = arith.truncf %15 : vector<2x128xf32> to vector<2x128xbf16>
    %c0_12 = arith.constant 0 : index
    %c0_13 = arith.constant 0 : index
    %17 = vector.load %arg5[%c0_12, %c0_13] : memref<128x128xbf16, #tpu.memory_space<vmem>>, vector<128x128xbf16>
    %cst_14 = arith.constant dense<0.000000e+00> : vector<2x128xf32>
    %18 = tpu.matmul %16, %17, %cst_14 {dimension_numbers = #tpu.dot_dimension_numbers<[1], [0], [0], [1], [0, 0, 1, 1], [], []>} : vector<2x128xbf16>, vector<128x128xbf16>, vector<2x128xf32> -> vector<2x128xf32>
    %c0_15 = arith.constant 0 : index
    %c0_16 = arith.constant 0 : index
    %19 = vector.load %arg6[%c0_15, %c0_16] : memref<1x128xf32, #tpu.memory_space<vmem>>, vector<1x128xf32>
    %20 = vector.broadcast %19 : vector<1x128xf32> to vector<2x128xf32>
    %21 = arith.addf %18, %20 : vector<2x128xf32>
    %cst_17 = arith.constant dense<0xFF800000> : vector<128xf32>
    %22 = vector.multi_reduction <maximumf>, %21, %cst_17 [0] : vector<2x128xf32> to vector<128xf32>
    %23 = vector.shape_cast %22 : vector<128xf32> to vector<1x128xf32>
    %24 = vector.broadcast %23 : vector<1x128xf32> to vector<2x128xf32>
    %25 = arith.subf %21, %24 : vector<2x128xf32>
    %26 = math.exp %25 : vector<2x128xf32>
    %cst_18 = arith.constant dense<0.000000e+00> : vector<128xf32>
    %27 = vector.multi_reduction <add>, %26, %cst_18 [0] : vector<2x128xf32> to vector<128xf32>
    %28 = vector.shape_cast %27 : vector<128xf32> to vector<1x128xf32>
    %29 = math.log %28 : vector<1x128xf32>
    %30 = vector.broadcast %29 : vector<1x128xf32> to vector<2x128xf32>
    %31 = arith.subf %25, %30 : vector<2x128xf32>
    %c0_19 = arith.constant 0 : index
    %c0_20 = arith.constant 0 : index
    %32 = vector.load %arg7[%c0_19, %c0_20] : memref<2x128xf32, #tpu.memory_space<vmem>>, vector<2x128xf32>
    tpu.vector_store %arg7[%c0_19, %c0_20], %31 {strides = array<i32>} : memref<2x128xf32, #tpu.memory_space<vmem>>, vector<2x128xf32>,
    return
  }
}

</mosaic_0001>

<bundles_post_ra>
// kernel: my_cnn_forward.3
= control target key start
LH: loop header
LB: loop body
LE: loop exit
PB: predicated region body
PF: predicated region fallthrough
CT: control target
= control target key end

     0   :  { %8 = vsyncpa [#allocation3], 0  ;;  %s1561_s0 = inlined_call_operand.vmem [shape: f32[2,30,30,1], index: 0, kind: input, shape index: {}]   ;;  %s1562_s1 = inlined_call_operand.hbm [shape: f32[9,1,128], index: 1, kind: input, shape index: {}]   ;;  %s1563_s2 = inlined_call_operand.hbm [shape: f32[1,128], index: 2, kind: input, shape index: {}]   ;;  %s1564_s3 = inlined_call_operand.vmem [shape: bf16[2,14,14,128], index: 3, kind: output, shape index: {}]  }
   0x1   :  { %9 = vsyncpa [#allocation5], 0  ;;  %s1226_s12 = smov 0  }
   0x2 LB: > { %s1232_s13 = sadd.s32 4294967295, %s1192_s12   ;;  %p972_p0 = scmp.ge.s32.totalorder %s1192_s12, 1  ;;  %s1192_s12 = sphi %s1226_s12, %s15_s12  }
   0x3   : > { %p114_p1 = scmp.lt.s32.totalorder %s1192_s12, 3  ;;  %s1198_s14 = smov [#allocation2]  }
   0x4   : > { %s126_s15 = sshll.u32 %s1198_s14, 4  ;;  %p1565_p3 = scmp.eq.s32.totalorder %s1232_s13, 0  ;;  %s127_s15 = int_to_ptr.vmem [resolvable:$true] %s126_s15 }
   0x5   : > { %p1236_p2 = pnand %p972_p0, %p114_p1  ;;  %s1199_s17 = smov [#allocation4]  }
   0x6   : > { %s140_s18 = sshll.u32 %s1199_s17, 4  ;;  %s1118_s22 = scalar_lea.hbm %s1562_s1, 144  ;;  %s1249_s18 = int_to_ptr.vmem [resolvable:$true] %s140_s18 }
   0x7   : > { %s1567_s16 = scalar_select %p1236_p2, 1, 0 }
   0x8   : > { %p1081_p4 = pneg %p1236_p2  ;;  %p1119_p6 = scmp.ne.s32.totalorder %s1562_s1, %s1118_s22 }
   0x9   : > { %p1125_p10 = scmp.lt.u32.totalorder %s1118_s22, %s1562_s1 }
   0xa   : > { %p1245_p5 = pnand %p1565_p3, %p1081_p4 }
   0xc   : > { %p1120_p7 = pneg %p1245_p5 }
   0xe   : > { %p1121_p8 = pnand %p1120_p7, %p1119_p6 }
  0x10   : > { %p1122_p9 = pneg %p1121_p8 }
  0x12   : > { %p1127_p11 = pnand %p1125_p10, %p1122_p9 }
  0x14   : > { %1130 = shalt.err (!%p1127_p11)
}
  0x15   : > { %s1131_s27 = scalar_lea.vmem %s127_s15, 144  ;;  %s1138_s28 = scalar_lea.vmem %s127_s15, 160 }
  0x16   : > { %p1132_p12 = scmp.ne.s32.totalorder %s127_s15, %s1131_s27  ;;  %p1139_p1 = scmp.lt.s32.totalorder %s127_s15, %s127_s15 }
  0x17   : > { %p1140_p4 = scmp.lt.s32.totalorder %s1138_s28, %s1131_s27 }
  0x18   : > { %p1134_p13 = pnand %p1132_p12, %p1120_p7 }
  0x19   : > { %p1141_p3 = por %p1140_p4, %p1139_p1 }
  0x1a   : > { %p1135_p0 = pneg %p1134_p13 }
  0x1c   : > { %p1142_p2 = pnand %p1141_p3, %p1135_p0 }
  0x1e   : > { %1145 = shalt.err (!%p1142_p2)
}
  0x1f   : > { %s1200_s29 = smov 16   ;;  %s1201_s30 = smov 1  }
  0x20   : > { %1084 = dma.hbm_to_vmem [thread:$0]  (!%p1245_p5), %s1562_s1, 144, %s127_s15, [#allocation3], %s1200_s29, %s1200_s29, %s1201_s30  }
  0x21   : > { %s1146_s8 = scalar_lea.hbm %s1563_s2, 16 }
  0x22   : > { %p1147_p6 = scmp.ne.s32.totalorder %s1563_s2, %s1146_s8  ;;  %p1153_p8 = scmp.lt.u32.totalorder %s1146_s8, %s1563_s2 }
  0x24   : > { %p1149_p2 = pnand %p1147_p6, %p1120_p7 }
  0x26   : > { %p1150_p3 = pneg %p1149_p2 }
  0x28   : > { %p1155_p9 = pnand %p1153_p8, %p1150_p3 }
  0x2a   : > { %1158 = shalt.err (!%p1155_p9)
}
  0x2b   : > { %s1159_s15 = scalar_lea.vmem %s1249_s18, 16  ;;  %s1166_s17 = scalar_lea.vmem %s1249_s18, 32 }
  0x2c   : > { %p1160_p10 = scmp.ne.s32.totalorder %s1249_s18, %s1159_s15  ;;  %p1167_p13 = scmp.lt.s32.totalorder %s1249_s18, %s1249_s18 }
  0x2d   : > { %p1168_p0 = scmp.lt.s32.totalorder %s1166_s17, %s1159_s15 }
  0x2e   : > { %p1162_p11 = pnand %p1160_p10, %p1120_p7 }
  0x2f   : > { %p1169_p1 = por %p1168_p0, %p1167_p13 }
  0x30   : > { %p1163_p12 = pneg %p1162_p11 }
  0x32   : > { %p1170_p4 = pnand %p1169_p1, %p1163_p12 }
  0x34   : > { %1173 = shalt.err (!%p1170_p4)
}
  0x35   : > { %1087 = dma.hbm_to_vmem [thread:$0]  (!%p1245_p5), %s1563_s2, 16, %s1249_s18, [#allocation5]  }
  0x36   : > { %p1569_p6 = scmp.ne.s32.totalorder %s1567_s16, 0 }
  0x37   : > { %p1570_p7 = scmp.eq.s32.totalorder (!%p1569_p6), %s1232_s13, 0 }
  0x38   : > { %161 = sbr.rel (%p1569_p6) target bundleno = 540 (0x21c), region = 32 }
  0x3f   : > { %1183 = dma.done.wait (%p1570_p7), [#allocation3], 144   ;;  %p1571_p2 = pmov %p1570_p7 }
  0x41   : > { %1185 = vsyncadd (%p1571_p2), [#allocation3], 4294967152  ;;  %p1572_p3 = pmov %p1571_p2 }
  0x42   : > { %p1573_p8 = pmov %p1571_p2 }
  0x43   : > { %1187 = dma.done.wait (%p1572_p3), [#allocation5], 16  }
  0x44   : > { %1189 = vsyncadd (%p1573_p8), [#allocation5], 4294967280  ;;  %p189_p9 = scmp.lt.s32.totalorder %s1232_s13, 1  ;;  %v201_v0 = vlaneseq  ;;  %v1316_v7 = vld [vmem:[#allocation4] ss:$0 sm:$0xff]  ;;  %v1202_v8 = vmov 0.0  }
  0x46   : > { %s1575_s13 = smov (!%p189_p9, %s1232_s13), 1  ;;  %v202_v1 = vshrl.u32 %v201_v0, 7  ;;  %v205_v2 = vand.u32 127, %v201_v0 }
  0x47   : > { %s1071_s16 = smul.u32 960, %s1575_s13 }
  0x48   : > { %v203_v3 = vadd.s32 8, %v202_v1  ;;  %v206_v4 = vmul.u32 2, %v202_v1  ;;  %s1072_s18 = smul.u32 112, %s1575_s13  ;;  %s1335_s13 = smov 0  }
  0x49   : > { %s1314_s23 = scalar_lea.vmem %s1561_s0, %s1071_s16 }
  0x4a   : > { %v207_v5 = vmul.u32 2, %v203_v3  ;;  %vm208_vm0 = vcmp.eq.s32.totalorder %v205_v2, %v206_v4  ;;  %v213_v6 = vadd.s32 1, %v206_v4  ;;  %s1321_s26 = scalar_lea.vmem %s1564_s3, %s1072_s18 }
  0x4b   : > { %v1323_v9 = vsel %vm208_vm0, 1.0, %v1202_v8 }
  0x4c   : > { %vm209_vm1 = vcmp.eq.s32.totalorder %v205_v2, %v207_v5  ;;  %v214_v10 = vadd.s32 1, %v207_v5  ;;  %vm215_vm2 = vcmp.eq.s32.totalorder %v205_v2, %v213_v6 }
  0x4d   : > { %v1325_v11 = vsel %vm209_vm1, 1.0, %v1202_v8  ;;  %v1327_v12 = vsel %vm215_vm2, 1.0, %v1202_v8 }
  0x4e   : > { %v212_v13 = vpack.c.bf16 %v1325_v11, %v1323_v9  ;;  %vm216_vm3 = vcmp.eq.s32.totalorder %v205_v2, %v214_v10 }
  0x4f   : > { %v1331_v14 = vsel %vm216_vm3, 1.0, %v1202_v8 }
  0x50   : > { %v219_v15 = vpack.c.bf16 %v1331_v14, %v1327_v12 }
  0x51 LB: >> { %v1203_v16 = vmov 0   ;;  %s1042_s27 = sshll.u32 %s1196_s13, 6  ;;  %v1204_v1 = vmov 0.0   ;;  %vm1205_vm4 = vmmov 0   ;;  %v1396_v2 = vld [vmem:[#allocation2 + $0x1] ss:$0 sm:$0xff]  ;;  %s1196_s13 = sphi %s1335_s13, %s225_s13  }
  0x52   : >> { %1117 = vset.pattern.permute.xlu1 %v1203_v16  ;;  %1116 = vset.pattern.permute.xlu0 %v1203_v16  ;;  %s1342_s28 = scalar_lea.vmem %s1314_s23, %s1042_s27  ;;  %v1398_v3 = vld [vmem:[#allocation2] ss:$0 sm:$0xff]  ;;  %vm769_vm5 = vcmask 1045504   ;;  %vm765_vm6 = vcmask 228352   ;;  %s1048_s29 = sshll.u32 %s1196_s13, 3 }
  0x53   : >> { %v268_v17 = vld [vmem:[%s1342_s28 + $0x1] sm:$0xff]  ;;  %v269_v19 = vld [vmem:[%s1342_s28 + $0x9] sm:$0xff]  ;;  %v232_v29 = vld [vmem:[%s1342_s28 + $0x18] sm:$0xf]  ;;  %1055 = vmatprep.subr.bf16.mxu0 %v1204_v1  ;;  %1063 = vmatprep.subr.bf16.mxu1 %v1204_v1  ;;  %s869_s30 = scalar_lea.vmem %s1321_s26, %s1048_s29  ;;  %s225_s13 = sadd.s32 1, %s1196_s13  }
  0x54   : >> { %v229_v18 = vld [vmem:[%s1342_s28] sm:$0xff]  ;;  %276 = vperm.xlu1 %1117, %v268_v17   ;;  %v230_v20 = vld [vmem:[%s1342_s28 + $0x8] sm:$0xff]  ;;  %v231_v30 = vld [vmem:[%s1342_s28 + $0x10] sm:$0xff]  ;;  %1059 = vmatprep.mubr.msk.bf16.mxu0 %vm1205_vm4, %v1204_v1  ;;  %p222_p5 = scmp.ge.s32.totalorder %s225_s13, 14  }
  0x55   : >> { %236 = vperm.xlu0 %1116, %v229_v18   ;;  %v989_v21 = vld [vmem:[%s1342_s28 + $0x28] sm:$0xff]  ;;  %v988_v22 = vld [vmem:[%s1342_s28 + $0x20] sm:$0xff]  ;;  %v271_v31 = vld [vmem:[%s1342_s28 + $0x19] sm:$0xf]  ;;  %1067 = vmatprep.mubr.msk.bf16.mxu1 %vm1205_vm4, %v1204_v1 }
  0x56   : >> { %v994_v23 = vld [vmem:[%s1342_s28 + $0x29] sm:$0xff]  ;;  %v993_v24 = vld [vmem:[%s1342_s28 + $0x21] sm:$0xff]  ;;  %v270_v32 = vld [vmem:[%s1342_s28 + $0x11] sm:$0xff] }
  0x57   : >> { %v309_v25 = vld [vmem:[%s1342_s28 + $0xa] sm:$0xff]  ;;  %v308_v26 = vld [vmem:[%s1342_s28 + $0x2] sm:$0xff]  ;;  %v991_v33 = vld [vmem:[%s1342_s28 + $0x38] sm:$0xf] }
  0x58   : >> { %281 = vperm.xlu1 %1117, %v269_v19   ;;  %v999_v27 = vld [vmem:[%s1342_s28 + $0x2a] sm:$0xff]  ;;  %v998_v28 = vld [vmem:[%s1342_s28 + $0x22] sm:$0xff]  ;;  %v996_v35 = vld [vmem:[%s1342_s28 + $0x39] sm:$0xf] }
  0x59   : >> { %241 = vperm.xlu0 %1116, %v230_v20   ;;  %v990_v34 = vld [vmem:[%s1342_s28 + $0x30] sm:$0xff]  ;;  %v1006_v37 = vld [vmem:[%s1342_s28 + $0x48] sm:$0xff]  ;;  %v1005_v38 = vld [vmem:[%s1342_s28 + $0x40] sm:$0xff] }
  0x5a   : >> { %v995_v36 = vld [vmem:[%s1342_s28 + $0x31] sm:$0xff]  ;;  %v311_v39 = vld [vmem:[%s1342_s28 + $0x1a] sm:$0xf]  ;;  %v1011_v43 = vld [vmem:[%s1342_s28 + $0x49] sm:$0xff] }
  0x5b   : >> { %v310_v40 = vld [vmem:[%s1342_s28 + $0x12] sm:$0xff]  ;;  %v1001_v41 = vld [vmem:[%s1342_s28 + $0x3a] sm:$0xf]  ;;  %v1010_v44 = vld [vmem:[%s1342_s28 + $0x41] sm:$0xff] }
  0x5c   : >> { %364 = vperm.xlu1 %1117, %v989_v21   ;;  %v1000_v42 = vld [vmem:[%s1342_s28 + $0x32] sm:$0xff]  ;;  %v1016_v47 = vld [vmem:[%s1342_s28 + $0x4a] sm:$0xff]  ;;  %v1015_v48 = vld [vmem:[%s1342_s28 + $0x42] sm:$0xff] }
  0x5d   : >> { %359 = vperm.xlu0 %1116, %v988_v22   ;;  %v1008_v45 = vld [vmem:[%s1342_s28 + $0x58] sm:$0xf]  ;;  %v1007_v46 = vld [vmem:[%s1342_s28 + $0x50] sm:$0xff]  ;;  %v1024_v51 = vld [vmem:[%s1342_s28 + $0x68] sm:$0xff] }
  0x5e   : >> { %v1013_v49 = vld [vmem:[%s1342_s28 + $0x59] sm:$0xf]  ;;  %v1012_v50 = vld [vmem:[%s1342_s28 + $0x51] sm:$0xff]  ;;  %v1023_v52 = vld [vmem:[%s1342_s28 + $0x60] sm:$0xff] }
  0x5f   : >> { %v1018_v53 = vld [vmem:[%s1342_s28 + $0x5a] sm:$0xf]  ;;  %v1017_v54 = vld [vmem:[%s1342_s28 + $0x52] sm:$0xff]  ;;  %v1028_v55 = vld [vmem:[%s1342_s28 + $0x69] sm:$0xff] }
  0x60   : >> { %404 = vperm.xlu1 %1117, %v994_v23   ;;  %v1027_v56 = vld [vmem:[%s1342_s28 + $0x61] sm:$0xff]  ;;  %v1026_v57 = vld [vmem:[%s1342_s28 + $0x78] sm:$0xf]  ;;  %v1025_v58 = vld [vmem:[%s1342_s28 + $0x70] sm:$0xff] }
  0x61   : >> { %399 = vperm.xlu0 %1116, %v993_v24   ;;  %v1032_v59 = vld [vmem:[%s1342_s28 + $0x6a] sm:$0xff]  ;;  %v1031_v60 = vld [vmem:[%s1342_s28 + $0x62] sm:$0xff]  ;;  %v1030_v61 = vld [vmem:[%s1342_s28 + $0x79] sm:$0xf] }
  0x62   : >> { %v1029_v62 = vld [vmem:[%s1342_s28 + $0x71] sm:$0xff]  ;;  %v1034_v63 = vld [vmem:[%s1342_s28 + $0x7a] sm:$0xf] }
  0x63   : >> { %v1033_v0 = vld [vmem:[%s1342_s28 + $0x72] sm:$0xff] }
  0x64   : >> { %321 = vperm.xlu1 %1117, %v309_v25   ;;  %v1404_v25 = vld [vmem:[#allocation2 + $0x2] ss:$0 sm:$0xff] }
  0x65   : >> { %316 = vperm.xlu0 %1116, %v308_v26   ;;  %v1406_v26 = vld [vmem:[#allocation2 + $0x3] ss:$0 sm:$0xff] }
  0x68   : >> { %444 = vperm.xlu1 %1117, %v999_v27  }
  0x69   : >> { %439 = vperm.xlu0 %1116, %v998_v28  }
  0x6c   : >> { %251 = vperm.xlu1 %1117, %v232_v29  }
  0x6d   : >> { %246 = vperm.xlu0 %1116, %v231_v30  }
  0x70   : >> { %291 = vperm.xlu1 %1117, %v271_v31   ;;  %v1410_v31 = vld [vmem:[#allocation2 + $0x4] ss:$0 sm:$0xff] }
  0x71   : >> { %286 = vperm.xlu0 %1116, %v270_v32  }
  0x74   : >> { %374 = vperm.xlu1 %1117, %v991_v33  }
  0x75   : >> { %369 = vperm.xlu0 %1116, %v990_v34  }
  0x78   : >> { %414 = vperm.xlu1 %1117, %v996_v35  }
  0x79   : >> { %409 = vperm.xlu0 %1116, %v995_v36  }
  0x7c   : >> { %487 = vperm.xlu1 %1117, %v1006_v37  }
  0x7d   : >> { %482 = vperm.xlu0 %1116, %v1005_v38  }
  0x80   : >> { %331 = vperm.xlu1 %1117, %v311_v39  }
  0x81   : >> { %326 = vperm.xlu0 %1116, %v310_v40  }
  0x84   : >> { %454 = vperm.xlu1 %1117, %v1001_v41  }
  0x85   : >> { %449 = vperm.xlu0 %1116, %v1000_v42  }
  0x88   : >> { %527 = vperm.xlu1 %1117, %v1011_v43  }
  0x89   : >> { %522 = vperm.xlu0 %1116, %v1010_v44  }
  0x8c   : >> { %497 = vperm.xlu1 %1117, %v1008_v45  }
  0x8d   : >> { %492 = vperm.xlu0 %1116, %v1007_v46  }
  0x90   : >> { %567 = vperm.xlu1 %1117, %v1016_v47  }
  0x91   : >> { %562 = vperm.xlu0 %1116, %v1015_v48  }
  0x94   : >> { %537 = vperm.xlu1 %1117, %v1013_v49  }
  0x95   : >> { %532 = vperm.xlu0 %1116, %v1012_v50  }
  0x98   : >> { %666 = vperm.xlu1 %1117, %v1024_v51  }
  0x99   : >> { %661 = vperm.xlu0 %1116, %v1023_v52  }
  0x9c   : >> { %577 = vperm.xlu1 %1117, %v1018_v53  }
  0x9d   : >> { %572 = vperm.xlu0 %1116, %v1017_v54  }
  0xa0   : >> { %698 = vperm.xlu1 %1117, %v1028_v55  }
  0xa1   : >> { %693 = vperm.xlu0 %1116, %v1027_v56  }
  0xa4   : >> { %676 = vperm.xlu1 %1117, %v1026_v57  }
  0xa5   : >> { %671 = vperm.xlu0 %1116, %v1025_v58  }
  0xa8   : >> { %730 = vperm.xlu1 %1117, %v1032_v59  }
  0xa9   : >> { %725 = vperm.xlu0 %1116, %v1031_v60  }
  0xac   : >> { %708 = vperm.xlu1 %1117, %v1030_v61  }
  0xad   : >> { %703 = vperm.xlu0 %1116, %v1029_v62  }
  0xb0   : >> { %740 = vperm.xlu1 %1117, %v1034_v63  }
  0xb1   : >> { %735 = vperm.xlu0 %1116, %v1033_v0  }
  0xd3   : >> { %v277_v4 = vpop.permute.xlu1 %276 }
  0xd4   : >> { %v237_v5 = vpop.permute.xlu0 %236  ;;  %v300_v6 = vmul.f32 %v1396_v2, %v277_v4 }
  0xd5   : >> { %v260_v8 = vmul.f32 %v1398_v3, %v237_v5 }
  0xd7   : >> { %v304_v10 = vadd.f32 %v300_v6, %v260_v8  ;;  %v282_v16 = vpop.permute.xlu1 %281 }
  0xd8   : >> { %v242_v17 = vpop.permute.xlu0 %241  ;;  %v301_v18 = vmul.f32 %v1396_v2, %v282_v16 }
  0xd9   : >> { %v261_v19 = vmul.f32 %v1398_v3, %v242_v17 }
  0xdb   : >> { %v305_v20 = vadd.f32 %v301_v18, %v261_v19  ;;  %v365_v21 = vpop.permute.xlu1 %364  ;;  %v1442_v18 = vld [vmem:[#allocation2 + $0x5] ss:$0 sm:$0xff] }
  0xdc   : >> { %v360_v22 = vpop.permute.xlu0 %359  ;;  %v384_v32 = vmul.f32 %v1406_v26, %v365_v21 }
  0xdd   : >> { %v383_v33 = vmul.f32 %v1406_v26, %v360_v22 }
  0xdf   : >> { %v405_v23 = vpop.permute.xlu1 %404 }
  0xe0   : >> { %v400_v24 = vpop.permute.xlu0 %399  ;;  %v424_v38 = vmul.f32 %v1410_v31, %v405_v23  ;;  %v613_v16 = vmul.f32 %v1396_v2, %v405_v23 }
  0xe1   : >> { %v423_v39 = vmul.f32 %v1410_v31, %v400_v24  ;;  %v612_v17 = vmul.f32 %v1396_v2, %v400_v24 }
  0xe3   : >> { %v322_v27 = vpop.permute.xlu1 %321 }
  0xe4   : >> { %v317_v28 = vpop.permute.xlu0 %316  ;;  %v341_v29 = vmul.f32 %v1404_v25, %v322_v27  ;;  %v605_v27 = vmul.f32 %v1398_v3, %v365_v21 }
  0xe5   : >> { %v340_v30 = vmul.f32 %v1404_v25, %v317_v28  ;;  %v604_v28 = vmul.f32 %v1398_v3, %v360_v22 }
  0xe6   : >> { %v345_v34 = vadd.f32 %v341_v29, %v305_v20 }
  0xe7   : >> { %v344_v35 = vadd.f32 %v340_v30, %v304_v10  ;;  %v445_v36 = vpop.permute.xlu1 %444  ;;  %v616_v23 = vadd.f32 %v612_v17, %v604_v28 }
  0xe8   : >> { %v440_v37 = vpop.permute.xlu0 %439  ;;  %v388_v40 = vadd.f32 %v384_v32, %v345_v34  ;;  %v621_v29 = vmul.f32 %v1404_v25, %v445_v36  ;;  %v464_v24 = vmul.f32 %v1442_v18, %v445_v36 }
  0xe9   : >> { %v387_v41 = vadd.f32 %v383_v33, %v344_v35  ;;  %v617_v35 = vadd.f32 %v613_v16, %v605_v27  ;;  %v620_v21 = vmul.f32 %v1404_v25, %v440_v37 }
  0xea   : >> { %v428_v42 = vadd.f32 %v424_v38, %v388_v40  ;;  %v1452_v38 = vld [vmem:[#allocation2 + $0x6] ss:$0 sm:$0xff] }
  0xeb   : >> { %v1416_v43 = vadd.f32 %v423_v39, %v387_v41  ;;  %v252_v44 = vpop.permute.xlu1 %251  ;;  %v463_v39 = vmul.f32 %v1442_v18, %v440_v37  ;;  %v624_v17 = vadd.f32 %v620_v21, %v616_v23 }
  0xec   : >> { %v247_v45 = vpop.permute.xlu0 %246  ;;  %v263_v5 = vmul.f32 %v1398_v3, %v252_v44  ;;  %v468_v41 = vadd.f32 %v464_v24, %v428_v42  ;;  %v625_v44 = vadd.f32 %v621_v29, %v617_v35 }
  0xed   : >> { %v262_v6 = vmul.f32 %v1398_v3, %v247_v45  ;;  %v467_v16 = vadd.f32 %v463_v39, %v1416_v43 }
  0xef   : >> { %v292_v46 = vpop.permute.xlu1 %291 }
  0xf0   : >> { %v287_v47 = vpop.permute.xlu0 %286  ;;  %v303_v62 = vmul.f32 %v1396_v2, %v292_v46 }
  0xf1   : >> { %v302_v63 = vmul.f32 %v1396_v2, %v287_v47 }
  0xf2   : >> { %v307_v19 = vadd.f32 %v303_v62, %v263_v5 }
  0xf3   : >> { %v375_v48 = vpop.permute.xlu1 %374  ;;  %v306_v20 = vadd.f32 %v302_v63, %v262_v6 }
  0xf4   : >> { %v370_v49 = vpop.permute.xlu0 %369  ;;  %v386_v22 = vmul.f32 %v1406_v26, %v375_v48  ;;  %v607_v37 = vmul.f32 %v1398_v3, %v375_v48 }
  0xf5   : >> { %v385_v40 = vmul.f32 %v1406_v26, %v370_v49  ;;  %v606_v5 = vmul.f32 %v1398_v3, %v370_v49 }
  0xf7   : >> { %v415_v50 = vpop.permute.xlu1 %414 }
  0xf8   : >> { %v410_v51 = vpop.permute.xlu0 %409  ;;  %v615_v45 = vmul.f32 %v1396_v2, %v415_v50 }
  0xf9   : >> { %v614_v46 = vmul.f32 %v1396_v2, %v410_v51  ;;  %v425_v2 = vmul.f32 %v1410_v31, %v410_v51  ;;  %v1477_v51 = vld [vmem:[#allocation2 + $0x7] ss:$0 sm:$0xff] }
  0xfa   : >> { %v619_v48 = vadd.f32 %v615_v45, %v607_v37 }
  0xfb   : >> { %v488_v52 = vpop.permute.xlu1 %487 }
  0xfc   : >> { %v483_v53 = vpop.permute.xlu0 %482  ;;  %v507_v36 = vmul.f32 %v1452_v38, %v488_v52 }
  0xfd   : >> { %v506_v6 = vmul.f32 %v1452_v38, %v483_v53  ;;  %v628_v42 = vmul.f32 %v1406_v26, %v483_v53 }
  0xfe   : >> { %v511_v53 = vadd.f32 %v507_v36, %v468_v41 }
  0xff   : >> { %v332_v54 = vpop.permute.xlu1 %331  ;;  %v510_v28 = vadd.f32 %v506_v6, %v467_v16  ;;  %v632_v29 = vadd.f32 %v628_v42, %v624_v17 }
 0x100   : >> { %v327_v55 = vpop.permute.xlu0 %326  ;;  %v343_v8 = vmul.f32 %v1404_v25, %v332_v54 }
 0x101   : >> { %v342_v10 = vmul.f32 %v1404_v25, %v327_v55  ;;  %v629_v55 = vmul.f32 %v1406_v26, %v488_v52 }
 0x102   : >> { %v347_v33 = vadd.f32 %v343_v8, %v307_v19  ;;  %v426_v8 = vmul.f32 %v1410_v31, %v415_v50  ;;  %v618_v19 = vadd.f32 %v614_v46, %v606_v5 }
 0x103   : >> { %v1418_v56 = vpop.permute.xlu1 %454  ;;  %v346_v34 = vadd.f32 %v342_v10, %v306_v20  ;;  %v633_v20 = vadd.f32 %v629_v55, %v625_v44 }
 0x104   : >> { %v1420_v57 = vpop.permute.xlu0 %449  ;;  %v390_v62 = vadd.f32 %v386_v22, %v347_v33  ;;  %v623_v10 = vmul.f32 %v1404_v25, %v1418_v56  ;;  %v466_v33 = vmul.f32 %v1442_v18, %v1418_v56 }
 0x105   : >> { %v389_v63 = vadd.f32 %v385_v40, %v346_v34  ;;  %v622_v52 = vmul.f32 %v1404_v25, %v1420_v57  ;;  %v465_v35 = vmul.f32 %v1442_v18, %v1420_v57  ;;  %v1495_v40 = vld [vmem:[#allocation2 + $0x8] ss:$0 sm:$0xff] }
 0x106   : >> { %v430_v50 = vadd.f32 %v426_v8, %v390_v62  ;;  %v627_v34 = vadd.f32 %v623_v10, %v619_v48 }
 0x107   : >> { %v1422_v58 = vpop.permute.xlu1 %527  ;;  %v429_v27 = vadd.f32 %v425_v2, %v389_v63  ;;  %v626_v23 = vadd.f32 %v622_v52, %v618_v19 }
 0x108   : >> { %v1424_v59 = vpop.permute.xlu0 %522  ;;  %v637_v25 = vmul.f32 %v1410_v31, %v1422_v58  ;;  %v547_v24 = vmul.f32 %v1477_v51, %v1422_v58  ;;  %v470_v44 = vadd.f32 %v466_v33, %v430_v50 }
 0x109   : >> { %v636_v43 = vmul.f32 %v1410_v31, %v1424_v59  ;;  %v546_v39 = vmul.f32 %v1477_v51, %v1424_v59  ;;  %v469_v45 = vadd.f32 %v465_v35, %v429_v27 }
 0x10a   : >> { %v641_v46 = vadd.f32 %v637_v25, %v633_v20  ;;  %v551_v5 = vadd.f32 %v547_v24, %v511_v53 }
 0x10b   : >> { %v1426_v60 = vpop.permute.xlu1 %497  ;;  %v640_v59 = vadd.f32 %v636_v43, %v632_v29  ;;  %v550_v6 = vadd.f32 %v546_v39, %v510_v28 }
 0x10c   : >> { %v1428_v61 = vpop.permute.xlu0 %492  ;;  %v509_v21 = vmul.f32 %v1452_v38, %v1426_v60  ;;  %v631_v22 = vmul.f32 %v1406_v26, %v1426_v60 }
 0x10d   : >> { %v508_v36 = vmul.f32 %v1452_v38, %v1428_v61  ;;  %v630_v60 = vmul.f32 %v1406_v26, %v1428_v61 }
 0x10e   : >> { %v513_v42 = vadd.f32 %v509_v21, %v470_v44  ;;  %v635_v8 = vadd.f32 %v631_v22, %v627_v34 }
 0x10f   : >> { %v1432_v0 = vpop.permute.xlu1 %567  ;;  %v634_v17 = vadd.f32 %v630_v60, %v626_v23 }
 0x110   : >> { %v1434_v4 = vpop.permute.xlu0 %562  ;;  %v645_v57 = vmul.f32 %v1442_v18, %v1432_v0  ;;  %v587_v55 = vmul.f32 %v1495_v40, %v1432_v0  ;;  %v512_v0 = vadd.f32 %v508_v36, %v469_v45 }
 0x111   : >> { %v644_v58 = vmul.f32 %v1442_v18, %v1434_v4  ;;  %v586_v62 = vmul.f32 %v1495_v40, %v1434_v4 }
 0x112   : >> { %v649_v52 = vadd.f32 %v645_v57, %v641_v46 }
 0x113   : >> { %v1447_v30 = vpop.permute.xlu1 %537  ;;  %v648_v16 = vadd.f32 %v644_v58, %v640_v59  ;;  %v590_v48 = vadd.f32 %v586_v62, %v550_v6 }
 0x114   : >> { %v1449_v32 = vpop.permute.xlu0 %532  ;;  %v639_v4 = vmul.f32 %v1410_v31, %v1447_v30  ;;  %v549_v20 = vmul.f32 %v1477_v51, %v1447_v30 }
 0x115   : >> { %v548_v50 = vmul.f32 %v1477_v51, %v1449_v32  ;;  %v600_v39 = vadd.f32 %v1316_v7, %v590_v48 }
 0x116   : >> { %v643_v35 = vadd.f32 %v639_v4, %v635_v8  ;;  %v553_v36 = vadd.f32 %v549_v20, %v513_v42 }
 0x117   : >> { %v667_v47 = vpop.permute.xlu1 %666  ;;  %v552_v60 = vadd.f32 %v548_v50, %v512_v0 }
 0x118   : >> { %v662_v54 = vpop.permute.xlu0 %661  ;;  %v680_v63 = vmul.f32 %v1452_v38, %v667_v47  ;;  %v638_v47 = vmul.f32 %v1410_v31, %v1449_v32 }
 0x119   : >> { %v679_v37 = vmul.f32 %v1452_v38, %v662_v54  ;;  %v591_v54 = vadd.f32 %v587_v55, %v551_v5 }
 0x11a   : >> { %v684_v19 = vadd.f32 %v680_v63, %v649_v52  ;;  %v642_v23 = vadd.f32 %v638_v47, %v634_v17 }
 0x11b   : >> { %v1473_v3 = vpop.permute.xlu1 %577  ;;  %v683_v53 = vadd.f32 %v679_v37, %v648_v16  ;;  %v601_v24 = vadd.f32 %v1316_v7, %v591_v54 }
 0x11c   : >> { %v1475_v49 = vpop.permute.xlu0 %572  ;;  %v647_v27 = vmul.f32 %v1442_v18, %v1473_v3  ;;  %v589_v22 = vmul.f32 %v1495_v40, %v1473_v3 }
 0x11d   : >> { %v646_v28 = vmul.f32 %v1442_v18, %v1475_v49 }
 0x11e   : >> { %v593_v37 = vadd.f32 %v589_v22, %v553_v36 }
 0x11f   : >> { %v699_v56 = vpop.permute.xlu1 %698  ;;  %v650_v44 = vadd.f32 %v646_v28, %v642_v23 }
 0x120   : >> { %v694_v41 = vpop.permute.xlu0 %693  ;;  %v712_v26 = vmul.f32 %v1477_v51, %v699_v56  ;;  %v651_v56 = vadd.f32 %v647_v27, %v643_v35  ;;  %v603_v0 = vadd.f32 %v1316_v7, %v593_v37 }
 0x121   : >> { %v711_v61 = vmul.f32 %v1477_v51, %v694_v41  ;;  %v588_v41 = vmul.f32 %v1495_v40, %v1475_v49 }
 0x122   : >> { %v716_v43 = vadd.f32 %v712_v26, %v684_v19 }
 0x123   : >> { %v677_v2 = vpop.permute.xlu1 %676  ;;  %v715_v31 = vadd.f32 %v711_v61, %v683_v53  ;;  %v592_v5 = vadd.f32 %v588_v41, %v552_v60 }
 0x124   : >> { %v672_v10 = vpop.permute.xlu0 %671  ;;  %v682_v30 = vmul.f32 %v1452_v38, %v677_v2 }
 0x125   : >> { %v681_v32 = vmul.f32 %v1452_v38, %v672_v10  ;;  %v602_v17 = vadd.f32 %v1316_v7, %v592_v5 }
 0x126   : >> { %v686_v55 = vadd.f32 %v682_v30, %v651_v56 }
 0x127   : >> { %v731_v29 = vpop.permute.xlu1 %730  ;;  %v685_v62 = vadd.f32 %v681_v32, %v650_v44 }
 0x128   : >> { %v726_v25 = vpop.permute.xlu0 %725  ;;  %v744_v33 = vmul.f32 %v1495_v40, %v731_v29 }
 0x129   : >> { %v743_v34 = vmul.f32 %v1495_v40, %v726_v25 }
 0x12a   : >> { %v748_v21 = vadd.f32 %v744_v33, %v716_v43 }
 0x12b   : >> { %v747_v18 = vadd.f32 %v743_v34, %v715_v31  ;;  %v709_v45 = vpop.permute.xlu1 %708 }
 0x12c   : >> { %v704_v57 = vpop.permute.xlu0 %703  ;;  %v752_v58 = vadd.f32 %v1316_v7, %v748_v21  ;;  %v714_v46 = vmul.f32 %v1477_v51, %v709_v45 }
 0x12d   : >> { %v751_v38 = vadd.f32 %v1316_v7, %v747_v18  ;;  %v713_v59 = vmul.f32 %v1477_v51, %v704_v57 }
 0x12e   : >> { %v756_v63 = vmax.f32 %v601_v24, %v752_v58  ;;  %v718_v49 = vadd.f32 %v714_v46, %v686_v55 }
 0x12f   : >> { %v755_v3 = vmax.f32 %v600_v39, %v751_v38  ;;  %v717_v6 = vadd.f32 %v713_v59, %v685_v62  ;;  %v741_v8 = vpop.permute.xlu1 %740 }
 0x130   : >> { %v736_v2 = vpop.permute.xlu0 %735  ;;  %v746_v10 = vmul.f32 %v1495_v40, %v741_v8  ;;  %v760_v26 = vmax.f32 %v756_v63, 0.0 }
 0x131   : >> { %v745_v52 = vmul.f32 %v1495_v40, %v736_v2  ;;  %v759_v16 = vmax.f32 %v755_v3, 0.0 }
 0x132   : >> { %v750_v61 = vadd.f32 %v746_v10, %v718_v49 }
 0x133   : >> { %v749_v51 = vadd.f32 %v745_v52, %v717_v6  ;;  %v763_v42 = vpack.c.bf16 %v760_v26, %v759_v16 }
 0x134   : >> { %v754_v4 = vadd.f32 %v1316_v7, %v750_v61 }
 0x135   : >> { %v753_v47 = vadd.f32 %v1316_v7, %v749_v51  ;;  %1056 = vmatpush3.bf16.msra.mxu0 %v763_v42  ;;  %1064 = vmatpush3.bf16.msra.mxu1 %v763_v42 }
 0x136   : >> { %1057 = vmatprep.subr.bf16.mxu0 %v1204_v1  ;;  %1065 = vmatprep.subr.bf16.mxu1 %v1204_v1  ;;  %v758_v40 = vmax.f32 %v603_v0, %v754_v4 }
 0x137   : >> { %v757_v54 = vmax.f32 %v602_v17, %v753_v47 }
 0x138   : >> { %v762_v48 = vmax.f32 %v758_v40, 0.0 }
 0x139   : >> { %v761_v19 = vmax.f32 %v757_v54, 0.0 }
 0x13b   : >> { %v764_v53 = vpack.c.bf16 %v762_v48, %v761_v19 }
 0x13d   : >> { %v771_v20 = vsel %vm769_vm5, %v764_v53, 0 }
 0x13e   : >> { %1058 = vmatpush3.bf16.msra.mxu0 %v771_v20  ;;  %1066 = vmatpush3.bf16.msra.mxu1 %v771_v20 }
 0x141   : >> { %1060 = vmatmul.mubr.msk.bf16.vlgmr.msra.gmra.mrb[0].mxu0 %vm765_vm6, %v212_v13  ;;  %1068 = vmatmul.mubr.msk.bf16.vlgmr.msra.gmra.mrb[0].mxu1 %vm765_vm6, %v219_v15 }
 0x214   : >> { %v807_v1 = vpop.f32.mrb[0].mxu0  ;;  %v851_v50 = vpop.f32.mrb[0].mxu1 }
 0x215   : >> { %v858_v27 = vmax.f32 %v807_v1, %v851_v50  ;;  %v1061_v28 = vpop.f32.mrb[1].mxu0  ;;  %v1069_v29 = vpop.f32.mrb[1].mxu1  ;;  %224 = sbr.rel (!%p222_p5) target bundleno = 81 (0x51), region = 91 }
 0x216   : >> { %v810_v25 = vpop.f32.mrb[2].mxu0  ;;  %v854_v43 = vpop.f32.mrb[2].mxu1 }
 0x217   : >> { %v1046_v31 = vpack.c.bf16 %v858_v27, %v858_v27  ;;  %v859_v33 = vmax.f32 %v810_v25, %v854_v43  ;;  %v1062_v34 = vpop.f32.mrb[3].mxu0  ;;  %v1070_v35 = vpop.f32.mrb[3].mxu1 }
 0x219   : >> { %870 = vst [vmem:[%s869_s30] sm:$0xf] %v1046_v31  ;;  %v1047_v23 = vpack.c.bf16 %v859_v33, %v859_v33 }
 0x21b   : >> { %871 = vst [vmem:[%s869_s30 + $0x4] sm:$0x7] %v1047_v23 }
 0x21c PF: > { %s15_s12 = sadd.s32 1, %s1192_s12  }
 0x21d   : > { %p12_p10 = scmp.ge.s32.totalorder %s15_s12, 4  }
 0x21f   :  { %14 = sbr.rel (!%p12_p10) target bundleno = 2 (0x2), region = 102 }
 0x226   :  { %893 = vsyncpa [#allocation3], 1 }
 0x227   :  { %895 = vsyncpa [#allocation3 + $0x1], 1 }
 0x228   :  { %896 = vsyncpa [#allocation5], 1 }

// kernel: my_cnn_forward.4
= control target key start
LH: loop header
LB: loop body
LE: loop exit
PB: predicated region body
PF: predicated region fallthrough
CT: control target
= control target key end

     0   :  { %8 = vsyncpa [#allocation3], 0  ;;  %s3458_s0 = inlined_call_operand.vmem [shape: bf16[2,16,16,128], index: 0, kind: input, shape index: {}]   ;;  %s3459_s1 = inlined_call_operand.hbm [shape: bf16[9,128,128], index: 1, kind: input, shape index: {}]   ;;  %s3460_s2 = inlined_call_operand.hbm [shape: f32[1,128], index: 2, kind: input, shape index: {}]   ;;  %s3461_s3 = inlined_call_operand.vmem [shape: bf16[2,7,7,128], index: 3, kind: output, shape index: {}]  }
   0x1   :  { %9 = vsyncpa [#allocation5], 0  ;;  %s2804_s12 = smov 0  }
   0x2 LB: > { %s2810_s13 = sadd.s32 4294967295, %s2771_s12   ;;  %p1905_p0 = scmp.ge.s32.totalorder %s2771_s12, 1  ;;  %s2771_s12 = sphi %s2804_s12, %s15_s12  }
   0x3   : > { %p114_p1 = scmp.lt.s32.totalorder %s2771_s12, 3  ;;  %s2777_s14 = smov [#allocation2]  }
   0x4   : > { %s126_s15 = sshll.u32 %s2777_s14, 4  ;;  %p3462_p3 = scmp.eq.s32.totalorder %s2810_s13, 0  ;;  %s127_s15 = int_to_ptr.vmem [resolvable:$true] %s126_s15 }
   0x5   : > { %p2814_p2 = pnand %p1905_p0, %p114_p1  ;;  %s2778_s17 = smov [#allocation4]  }
   0x6   : > { %s140_s18 = sshll.u32 %s2778_s17, 4  ;;  %s2697_s22 = scalar_lea.hbm %s3459_s1, 9216  ;;  %s2827_s18 = int_to_ptr.vmem [resolvable:$true] %s140_s18 }
   0x7   : > { %s3483_s16 = scalar_select %p2814_p2, 1, 0 }
   0x8   : > { %p2579_p4 = pneg %p2814_p2  ;;  %p2698_p6 = scmp.ne.s32.totalorder %s3459_s1, %s2697_s22 }
   0x9   : > { %p2704_p10 = scmp.lt.u32.totalorder %s2697_s22, %s3459_s1 }
   0xa   : > { %p2823_p5 = pnand %p3462_p3, %p2579_p4 }
   0xc   : > { %p2699_p7 = pneg %p2823_p5 }
   0xe   : > { %p2700_p8 = pnand %p2699_p7, %p2698_p6 }
  0x10   : > { %p2701_p9 = pneg %p2700_p8 }
  0x12   : > { %p2706_p11 = pnand %p2704_p10, %p2701_p9 }
  0x14   : > { %2709 = shalt.err (!%p2706_p11)
}
  0x15   : > { %s2710_s27 = scalar_lea.vmem %s127_s15, 9216  ;;  %p2718_p1 = scmp.lt.s32.totalorder %s127_s15, %s127_s15 }
  0x16   : > { %p2711_p12 = scmp.ne.s32.totalorder %s127_s15, %s2710_s27  ;;  %p2719_p4 = scmp.lt.s32.totalorder %s2710_s27, %s2710_s27 }
  0x18   : > { %p2713_p13 = pnand %p2711_p12, %p2699_p7  ;;  %p2720_p3 = por %p2719_p4, %p2718_p1 }
  0x1a   : > { %p2714_p0 = pneg %p2713_p13 }
  0x1c   : > { %p2721_p2 = pnand %p2720_p3, %p2714_p0 }
  0x1e   : > { %2724 = shalt.err (!%p2721_p2)
}
  0x1f   : > { %s2779_s28 = smov 64   ;;  %s2780_s29 = smov 4  }
  0x20   : > { %2582 = dma.hbm_to_vmem [thread:$0]  (!%p2823_p5), %s3459_s1, 9216, %s127_s15, [#allocation3], %s2779_s28, %s2779_s28, %s2780_s29  }
  0x21   : > { %s2725_s7 = scalar_lea.hbm %s3460_s2, 16 }
  0x22   : > { %p2726_p6 = scmp.ne.s32.totalorder %s3460_s2, %s2725_s7  ;;  %p2732_p8 = scmp.lt.u32.totalorder %s2725_s7, %s3460_s2 }
  0x24   : > { %p2728_p2 = pnand %p2726_p6, %p2699_p7 }
  0x26   : > { %p2729_p3 = pneg %p2728_p2 }
  0x28   : > { %p2734_p9 = pnand %p2732_p8, %p2729_p3 }
  0x2a   : > { %2737 = shalt.err (!%p2734_p9)
}
  0x2b   : > { %s2738_s14 = scalar_lea.vmem %s2827_s18, 16  ;;  %s2745_s15 = scalar_lea.vmem %s2827_s18, 32 }
  0x2c   : > { %p2739_p10 = scmp.ne.s32.totalorder %s2827_s18, %s2738_s14  ;;  %p2746_p13 = scmp.lt.s32.totalorder %s2827_s18, %s2827_s18 }
  0x2d   : > { %p2747_p0 = scmp.lt.s32.totalorder %s2745_s15, %s2738_s14 }
  0x2e   : > { %p2741_p11 = pnand %p2739_p10, %p2699_p7 }
  0x2f   : > { %p2748_p1 = por %p2747_p0, %p2746_p13 }
  0x30   : > { %p2742_p12 = pneg %p2741_p11 }
  0x32   : > { %p2749_p4 = pnand %p2748_p1, %p2742_p12 }
  0x34   : > { %2752 = shalt.err (!%p2749_p4)
}
  0x35   : > { %2585 = dma.hbm_to_vmem [thread:$0]  (!%p2823_p5), %s3460_s2, 16, %s2827_s18, [#allocation5]  }
  0x36   : > { %p3485_p6 = scmp.ne.s32.totalorder %s3483_s16, 0 }
  0x37   : > { %p3486_p7 = scmp.eq.s32.totalorder (!%p3485_p6), %s2810_s13, 0 }
  0x38   : > { %161 = sbr.rel (%p3485_p6) target bundleno = 816 (0x330), region = 32 }
  0x3f   : > { %2762 = dma.done.wait (%p3486_p7), [#allocation3], 9216   ;;  %p3487_p2 = pmov %p3486_p7 }
  0x41   : > { %2764 = vsyncadd (%p3487_p2), [#allocation3], 4294958080  ;;  %p3488_p3 = pmov %p3487_p2 }
  0x42   : > { %p3489_p8 = pmov %p3487_p2 }
  0x43   : > { %2766 = dma.done.wait (%p3488_p3), [#allocation5], 16  }
  0x44   : > { %2768 = vsyncadd (%p3489_p8), [#allocation5], 4294967280  ;;  %p189_p9 = scmp.lt.s32.totalorder %s2810_s13, 1  ;;  %v201_v0 = vlaneseq  ;;  %v2899_v5 = vld [vmem:[#allocation4] ss:$0 sm:$0xff]  ;;  %v2781_v6 = vmov 0.0  }
  0x45   : > { %3490 = vst [vmem:[#allocation8_spill] sm:$0xff] %v2899_v5 }
  0x46   : > { %s3527_s13 = smov (!%p189_p9, %s2810_s13), 1  ;;  %v202_v1 = vshrl.u32 %v201_v0, 7  ;;  %v204_v2 = vand.u32 127, %v201_v0 }
  0x47   : > { %s2026_s16 = sshll.u32 %s3527_s13, 7  ;;  %s2570_s18 = smul.u32 28, %s3527_s13 }
  0x48   : > { %v205_v3 = vmul.u32 2, %v202_v1  ;;  %s2892_s22 = scalar_lea.vmem %s3458_s0, %s2026_s16  ;;  %s2909_s13 = smov 0  }
  0x49   : > { %s2897_s25 = scalar_lea.vmem %s3461_s3, %s2570_s18 }
  0x4a   : > { %vm206_vm0 = vcmp.eq.s32.totalorder %v204_v2, %v205_v3  ;;  %v209_v4 = vadd.s32 1, %v205_v3 }
  0x4b   : > { %v2901_v7 = vsel %vm206_vm0, 1.0, %v2781_v6 }
  0x4c   : > { %3491 = vst [vmem:[#allocation9_spill] sm:$0xff] %v2901_v7  ;;  %vm210_vm1 = vcmp.eq.s32.totalorder %v204_v2, %v209_v4 }
  0x4d   : > { %v2905_v9 = vsel %vm210_vm1, 1.0, %v2781_v6 }
  0x4e   : > { %3492 = vst [vmem:[#allocation10_spill] sm:$0xff] %v2905_v9 }
  0x4f LB: >> { %v2914_v11 = vld [vmem:[#allocation2 + $0x40] sm:$0xff]   ;;  %v2782_v12 = vmov 0.0   ;;  %v2921_v14 = vld [vmem:[#allocation2 + $0x48] sm:$0xff]   ;;  %vm2783_vm2 = vmmov 0   ;;  %v2933_v16 = vld [vmem:[#allocation2 + $0x50] sm:$0xff]   ;;  %s2028_s26 = sshll.u32 %s2775_s13, 4  ;;  %s2775_s13 = sphi %s2909_s13, %s218_s13  }
  0x50   : >> { %2198 = vmatprep.subr.bf16.mxu0 %v2782_v12  ;;  %2218 = vmatprep.subr.bf16.mxu1 %v2782_v12  ;;  %v2918_v13 = vld [vmem:[#allocation2] sm:$0xff]   ;;  %v2927_v15 = vld [vmem:[#allocation2 + $0x8] sm:$0xff]   ;;  %v2937_v17 = vld [vmem:[#allocation2 + $0x10] sm:$0xff]   ;;  %s2950_s27 = scalar_lea.vmem %s2892_s22, %s2028_s26  ;;  %vm1708_vm3 = vcmask 1046528   ;;  %vm1704_vm4 = vcmask 113664   ;;  %s2023_s28 = sshll.u32 %s2775_s13, 2 }
  0x51   : >> { %2199 = vmatpush3.bf16.msra.mxu0 %v2914_v11  ;;  %2214 = vmatprep.mubr.msk.bf16.mxu0 %vm2783_vm2, %v2782_v12  ;;  %v2941_v18 = vld [vmem:[#allocation2 + $0x58] sm:$0xff]   ;;  %v2953_v20 = vld [vmem:[#allocation2 + $0x60] sm:$0xff]   ;;  %v2966_v25 = vld [vmem:[#allocation2 + $0x68] sm:$0xff]   ;;  %s1798_s29 = scalar_lea.vmem %s2897_s25, %s2023_s28  ;;  %vm1799_vm5 = vcmask 1043456   ;;  %vm1800_vm6 = vsmask.f32 3328 }
  0x52   : >> { %2219 = vmatpush3.bf16.msra.mxu1 %v2918_v13  ;;  %2200 = vmatprep.subr.bf16.mxu0 %v2782_v12  ;;  %v2946_v19 = vld [vmem:[#allocation2 + $0x18] sm:$0xff]   ;;  %v2957_v21 = vld [vmem:[#allocation2 + $0x20] sm:$0xff]   ;;  %v2970_v26 = vld [vmem:[#allocation2 + $0x28] sm:$0xff]   ;;  %s218_s13 = sadd.s32 1, %s2775_s13  }
  0x53   : >> { %2220 = vmatprep.subr.bf16.mxu1 %v2782_v12  ;;  %2234 = vmatprep.mubr.msk.bf16.mxu1 %vm2783_vm2, %v2782_v12  ;;  %v223_v22 = vld [vmem:[%s2950_s27] sm:$0xf]  ;;  %v2962_v23 = vld [vmem:[%s2950_s27 + $0x4] sm:$0xf]  ;;  %v2974_v28 = vld [vmem:[#allocation2 + $0x70] sm:$0xff]   ;;  %p215_p5 = scmp.ge.s32.totalorder %s218_s13, 7  }
  0x54   : >> { %v1918_v24 = vcombine.low %v223_v22, %v2962_v23  ;;  %v2978_v29 = vld [vmem:[#allocation2 + $0x30] sm:$0xff]   ;;  %v2981_v30 = vld [vmem:[#allocation2 + $0x78] sm:$0xff]   ;;  %v224_v34 = vld [vmem:[%s2950_s27 + $0x4] sm:$0x7] }
  0x55   : >> { %2201 = vmatpush3.bf16.msra.mxu0 %v2921_v14  ;;  %v2984_v33 = vld [vmem:[#allocation2 + $0x38] sm:$0xff]   ;;  %v1927_v36 = vcombine.low %v223_v22, %v224_v34  ;;  %v2991_v37 = vld [vmem:[#allocation2 + $0x80] sm:$0xff]   ;;  %v2999_v39 = vld [vmem:[#allocation2 + $0x88] sm:$0xff]  }
  0x56   : >> { %2221 = vmatpush3.bf16.msra.mxu1 %v2927_v15  ;;  %2202 = vmatprep.subr.bf16.mxu0 %v2782_v12  ;;  %v267_v27 = vshll.u32 %v1918_v24, 16  ;;  %v265_v31 = vshrl.u32 %v1918_v24, 16  ;;  %v2995_v38 = vld [vmem:[#allocation2 + $0xc0] sm:$0xff]   ;;  %v3003_v40 = vld [vmem:[#allocation2 + $0xc8] sm:$0xff]   ;;  %v3011_v41 = vld [vmem:[#allocation2 + $0x90] sm:$0xff]  }
  0x57   : >> { %2222 = vmatprep.subr.bf16.mxu1 %v2782_v12  ;;  %v3015_v42 = vld [vmem:[#allocation2 + $0xd0] sm:$0xff]   ;;  %v3019_v43 = vld [vmem:[#allocation2 + $0x98] sm:$0xff]   ;;  %v3027_v45 = vld [vmem:[#allocation2 + $0xa0] sm:$0xff]  }
  0x58   : >> { %v269_v32 = vrot.slane %v267_v27, 1  ;;  %v3023_v44 = vld [vmem:[#allocation2 + $0xd8] sm:$0xff]   ;;  %v3031_v46 = vld [vmem:[#allocation2 + $0xe0] sm:$0xff]   ;;  %v3035_v47 = vld [vmem:[#allocation2 + $0xa8] sm:$0xff]  }
  0x59   : >> { %2203 = vmatpush3.bf16.msra.mxu0 %v2933_v16  ;;  %v3039_v48 = vld [vmem:[#allocation2 + $0xe8] sm:$0xff]   ;;  %v3042_v49 = vld [vmem:[#allocation2 + $0xb0] sm:$0xff]   ;;  %v454_v50 = vld [vmem:[%s2950_s27] sm:$0xe] }
  0x5a   : >> { %2223 = vmatpush3.bf16.msra.mxu1 %v2937_v17  ;;  %2204 = vmatprep.subr.bf16.mxu0 %v2782_v12  ;;  %v270_v35 = vor.u32 %v269_v32, %v265_v31  ;;  %v3048_v51 = vld [vmem:[#allocation2 + $0xf0] sm:$0xff]   ;;  %v3051_v52 = vld [vmem:[#allocation2 + $0xb8] sm:$0xff]   ;;  %v1936_v54 = vcombine.low %v454_v50, %v2962_v23  ;;  %v1947_v55 = vld [vmem:[%s2950_s27 + $0x8] sm:$0xf] }
  0x5b   : >> { %2224 = vmatprep.subr.bf16.mxu1 %v2782_v12  ;;  %v3053_v53 = vld [vmem:[#allocation2 + $0xf8] sm:$0xff]   ;;  %v1948_v56 = vld [vmem:[%s2950_s27 + $0xc] sm:$0x7]  ;;  %v3065_v59 = vld [vmem:[#allocation2 + $0x100] sm:$0xff]  }
  0x5c   : >> { %v475_v57 = vrot.slane %v1936_v54, 1  ;;  %v3063_v58 = vcombine.low %v1947_v55, %v1948_v56  ;;  %v3069_v60 = vld [vmem:[#allocation2 + $0x140] sm:$0xff]   ;;  %v3074_v61 = vld [vmem:[#allocation2 + $0x108] sm:$0xff]   ;;  %v3086_v63 = vld [vmem:[#allocation2 + $0x110] sm:$0xff]  }
  0x5d   : >> { %2205 = vmatpush3.bf16.msra.mxu0 %v2941_v18  ;;  %v3078_v62 = vld [vmem:[#allocation2 + $0x148] sm:$0xff]   ;;  %v3090_v0 = vld [vmem:[#allocation2 + $0x150] sm:$0xff]   ;;  %v3094_v1 = vld [vmem:[#allocation2 + $0x118] sm:$0xff]  }
  0x5e   : >> { %2225 = vmatpush3.bf16.msra.mxu1 %v2946_v19  ;;  %2206 = vmatprep.subr.bf16.mxu0 %v2782_v12  ;;  %v3098_v2 = vld [vmem:[#allocation2 + $0x158] sm:$0xff]   ;;  %v1958_v3 = vld [vmem:[%s2950_s27 + $0xc] sm:$0xf]  ;;  %v3103_v4 = vld [vmem:[#allocation2 + $0x120] sm:$0xff]  }
  0x5f   : >> { %2226 = vmatprep.subr.bf16.mxu1 %v2782_v12  ;;  %v3107_v6 = vld [vmem:[#allocation2 + $0x160] sm:$0xff]   ;;  %v1959_v22 = vcombine.low %v1947_v55, %v1958_v3  ;;  %v3111_v23 = vld [vmem:[#allocation2 + $0x128] sm:$0xff]   ;;  %v3119_v31 = vld [vmem:[#allocation2 + $0x130] sm:$0xff]  }
  0x60   : >> { %3493 = vst [vmem:[#allocation11_spill] sm:$0xff] %v3107_v6  ;;  %v3115_v24 = vld [vmem:[#allocation2 + $0x168] sm:$0xff]   ;;  %v3123_v32 = vld [vmem:[#allocation2 + $0x170] sm:$0xff]   ;;  %v3128_v50 = vld [vmem:[#allocation2 + $0x138] sm:$0xff]  }
  0x61   : >> { %2207 = vmatpush3.bf16.msra.mxu0 %v2953_v20  ;;  %3494 = vst [vmem:[#allocation12_spill] sm:$0xff] %v3115_v24  ;;  %v712_v27 = vshll.u32 %v1959_v22, 16  ;;  %3495 = vst [vmem:[#allocation13_spill] sm:$0xff] %v3123_v32  ;;  %v1968_v34 = vld [vmem:[%s2950_s27 + $0x8] sm:$0xe]  ;;  %v3132_v55 = vld [vmem:[#allocation2 + $0x178] sm:$0xff]  }
  0x62   : >> { %2227 = vmatpush3.bf16.msra.mxu1 %v2957_v21  ;;  %2208 = vmatprep.subr.bf16.mxu0 %v2782_v12  ;;  %v1969_v54 = vcombine.low %v1968_v34, %v1958_v3  ;;  %3496 = vst [vmem:[#allocation14_spill] sm:$0xff] %v3132_v55  ;;  %v3144_v3 = vld [vmem:[#allocation2 + $0x1c0] sm:$0xff]   ;;  %v3154_v34 = vld [vmem:[#allocation2 + $0x1c8] sm:$0xff]   ;;  %v3174_v10 = vld [vmem:[#allocation2 + $0x1d8] sm:$0xff]  }
  0x63   : >> { %2228 = vmatprep.subr.bf16.mxu1 %v2782_v12  ;;  %3497 = vst [vmem:[#allocation15_spill] sm:$0xff] %v3144_v3  ;;  %3498 = vst [vmem:[#allocation16_spill] sm:$0xff] %v3154_v34  ;;  %v3178_v8 = vld [vmem:[#allocation2 + $0x1a0] sm:$0xff]   ;;  %v1980_v7 = vld [vmem:[%s2950_s27 + $0x10] sm:$0xf] }
  0x64   : >> { %3501 = vst [vmem:[#allocation19_spill] sm:$0xff] %v3174_v10  ;;  %3502 = vst [vmem:[#allocation20_spill] sm:$0xff] %v3178_v8  ;;  %v3182_v9 = vld [vmem:[#allocation2 + $0x1e0] sm:$0xff]   ;;  %v3186_v5 = vld [vmem:[%s2950_s27 + $0x14] sm:$0xf] }
  0x65   : >> { %2209 = vmatpush3.bf16.msra.mxu0 %v2966_v25  ;;  %3503 = vst [vmem:[#allocation21_spill] sm:$0xff] %v3182_v9  ;;  %vm1801_vm7 = vmand %vm1799_vm5, %vm1800_vm6 }
  0x66   : >> { %2229 = vmatpush3.bf16.msra.mxu1 %v2970_v26  ;;  %2210 = vmatprep.subr.bf16.mxu0 %v2782_v12 }
  0x67   : >> { %2230 = vmatprep.subr.bf16.mxu1 %v2782_v12 }
  0x69   : >> { %2211 = vmatpush3.bf16.msra.mxu0 %v2974_v28 }
  0x6a   : >> { %2231 = vmatpush3.bf16.msra.mxu1 %v2978_v29  ;;  %2212 = vmatprep.subr.bf16.mxu0 %v2782_v12 }
  0x6b   : >> { %2232 = vmatprep.subr.bf16.mxu1 %v2782_v12 }
  0x6d   : >> { %2213 = vmatpush3.bf16.msra.mxu0 %v2981_v30 }
  0x6e   : >> { %2233 = vmatpush3.bf16.msra.mxu1 %v2984_v33  ;;  %2238 = vmatprep.subr.bf16.mxu0 %v2782_v12 }
  0x6f   : >> { %2258 = vmatprep.subr.bf16.mxu1 %v2782_v12 }
  0x70   : >> { %2215 = vmatmul.mubr.bf16.vlgmr.msra.gmra.mrb[0].mxu0 %v270_v35  ;;  %v710_v35 = vshrl.u32 %v1959_v22, 16  ;;  %v3140_v22 = vld [vmem:[#allocation2 + $0x180] sm:$0xff]  }
  0x71   : >> { %2235 = vmatmul.mubr.bf16.vlgmr.msra.gmra.mrb[0].mxu1 %v1927_v36  ;;  %2239 = vmatpush3.bf16.msra.mxu0 %v2991_v37  ;;  %v714_v36 = vrot.slane %v712_v27, 1  ;;  %v3150_v27 = vld [vmem:[#allocation2 + $0x188] sm:$0xff]  }
  0x72   : >> { %2259 = vmatpush3.bf16.msra.mxu1 %v2995_v38  ;;  %2240 = vmatprep.subr.bf16.mxu0 %v2782_v12 }
  0x73   : >> { %2260 = vmatprep.subr.bf16.mxu1 %v2782_v12  ;;  %2254 = vmatprep.mubr.msk.bf16.mxu0 %vm2783_vm2, %v2782_v12  ;;  %v3135_v56 = vor.u32 %v714_v36, %v710_v35  ;;  %v3162_v35 = vld [vmem:[#allocation2 + $0x190] sm:$0xff]  }
  0x74   : >> { %2274 = vmatprep.mubr.msk.bf16.mxu1 %vm2783_vm2, %v2782_v12  ;;  %v3166_v36 = vld [vmem:[#allocation2 + $0x1d0] sm:$0xff]  }
  0x75   : >> { %2241 = vmatpush3.bf16.msra.mxu0 %v2999_v39  ;;  %3499 = vst [vmem:[#allocation17_spill] sm:$0xff] %v3166_v36 }
  0x76   : >> { %2261 = vmatpush3.bf16.msra.mxu1 %v3003_v40  ;;  %2242 = vmatprep.subr.bf16.mxu0 %v2782_v12 }
  0x77   : >> { %2262 = vmatprep.subr.bf16.mxu1 %v2782_v12 }
  0x79   : >> { %2243 = vmatpush3.bf16.msra.mxu0 %v3011_v41 }
  0x7a   : >> { %2263 = vmatpush3.bf16.msra.mxu1 %v3015_v42  ;;  %2244 = vmatprep.subr.bf16.mxu0 %v2782_v12 }
  0x7b   : >> { %2264 = vmatprep.subr.bf16.mxu1 %v2782_v12 }
  0x7d   : >> { %2245 = vmatpush3.bf16.msra.mxu0 %v3019_v43 }
  0x7e   : >> { %2265 = vmatpush3.bf16.msra.mxu1 %v3023_v44  ;;  %2246 = vmatprep.subr.bf16.mxu0 %v2782_v12 }
  0x7f   : >> { %2266 = vmatprep.subr.bf16.mxu1 %v2782_v12 }
  0x81   : >> { %2247 = vmatpush3.bf16.msra.mxu0 %v3027_v45 }
  0x82   : >> { %2267 = vmatpush3.bf16.msra.mxu1 %v3031_v46  ;;  %2248 = vmatprep.subr.bf16.mxu0 %v2782_v12 }
  0x83   : >> { %2268 = vmatprep.subr.bf16.mxu1 %v2782_v12 }
  0x85   : >> { %2249 = vmatpush3.bf16.msra.mxu0 %v3035_v47 }
  0x86   : >> { %2269 = vmatpush3.bf16.msra.mxu1 %v3039_v48  ;;  %2250 = vmatprep.subr.bf16.mxu0 %v2782_v12 }
  0x87   : >> { %2270 = vmatprep.subr.bf16.mxu1 %v2782_v12 }
  0x89   : >> { %2251 = vmatpush3.bf16.msra.mxu0 %v3042_v49 }
  0x8a   : >> { %2271 = vmatpush3.bf16.msra.mxu1 %v3048_v51  ;;  %2252 = vmatprep.subr.bf16.mxu0 %v2782_v12 }
  0x8b   : >> { %2272 = vmatprep.subr.bf16.mxu1 %v2782_v12 }
  0x8d   : >> { %2253 = vmatpush3.bf16.msra.mxu0 %v3051_v52 }
  0x8e   : >> { %2273 = vmatpush3.bf16.msra.mxu1 %v3053_v53  ;;  %2278 = vmatprep.subr.bf16.mxu0 %v2782_v12 }
  0x8f   : >> { %2298 = vmatprep.subr.bf16.mxu1 %v2782_v12 }
  0x90   : >> { %2255 = vmatmul.mubr.bf16.vlgmr.msra.gmra.mrb[4].mxu0 %v475_v57  ;;  %v3138_v57 = vrot.slane %v1969_v54, 1  ;;  %v3170_v54 = vld [vmem:[#allocation2 + $0x198] sm:$0xff]  }
  0x91   : >> { %2275 = vmatmul.mubr.bf16.vlgmr.msra.gmra.mrb[4].mxu1 %v3063_v58  ;;  %2279 = vmatpush3.bf16.msra.mxu0 %v3065_v59  ;;  %3500 = vst [vmem:[#allocation18_spill] sm:$0xff] %v3170_v54 }
  0x92   : >> { %2299 = vmatpush3.bf16.msra.mxu1 %v3069_v60  ;;  %2280 = vmatprep.subr.bf16.mxu0 %v2782_v12 }
  0x93   : >> { %2300 = vmatprep.subr.bf16.mxu1 %v2782_v12  ;;  %2294 = vmatprep.mubr.msk.bf16.mxu0 %vm2783_vm2, %v2782_v12 }
  0x94   : >> { %2314 = vmatprep.mubr.msk.bf16.mxu1 %vm2783_vm2, %v2782_v12 }
  0x95   : >> { %2281 = vmatpush3.bf16.msra.mxu0 %v3074_v61 }
  0x96   : >> { %2301 = vmatpush3.bf16.msra.mxu1 %v3078_v62  ;;  %2282 = vmatprep.subr.bf16.mxu0 %v2782_v12 }
  0x97   : >> { %2302 = vmatprep.subr.bf16.mxu1 %v2782_v12 }
  0x99   : >> { %2283 = vmatpush3.bf16.msra.mxu0 %v3086_v63 }
  0x9a   : >> { %2303 = vmatpush3.bf16.msra.mxu1 %v3090_v0  ;;  %2284 = vmatprep.subr.bf16.mxu0 %v2782_v12 }
  0x9b   : >> { %2304 = vmatprep.subr.bf16.mxu1 %v2782_v12 }
  0x9d   : >> { %2285 = vmatpush3.bf16.msra.mxu0 %v3094_v1 }
  0x9e   : >> { %2305 = vmatpush3.bf16.msra.mxu1 %v3098_v2  ;;  %2286 = vmatprep.subr.bf16.mxu0 %v2782_v12 }
  0x9f   : >> { %2306 = vmatprep.subr.bf16.mxu1 %v2782_v12 }
  0xa1   : >> { %2287 = vmatpush3.bf16.msra.mxu0 %v3103_v4 }
  0xa2   : >> { %2307 = vmatpush3.bf16.msra.mxu1 %v3107_v6  ;;  %2288 = vmatprep.subr.bf16.mxu0 %v2782_v12 }
  0xa3   : >> { %2308 = vmatprep.subr.bf16.mxu1 %v2782_v12 }
  0xa5   : >> { %2289 = vmatpush3.bf16.msra.mxu0 %v3111_v23 }
  0xa6   : >> { %2309 = vmatpush3.bf16.msra.mxu1 %v3115_v24  ;;  %2290 = vmatprep.subr.bf16.mxu0 %v2782_v12  ;;  %v1981_v24 = vld [vmem:[%s2950_s27 + $0x14] sm:$0x7] }
  0xa7   : >> { %2310 = vmatprep.subr.bf16.mxu1 %v2782_v12 }
  0xa9   : >> { %2291 = vmatpush3.bf16.msra.mxu0 %v3119_v31 }
  0xaa   : >> { %2311 = vmatpush3.bf16.msra.mxu1 %v3123_v32  ;;  %2292 = vmatprep.subr.bf16.mxu0 %v2782_v12  ;;  %v3203_v32 = vld [vmem:[#allocation2 + $0x1f0] sm:$0xff]  }
  0xab   : >> { %2312 = vmatprep.subr.bf16.mxu1 %v2782_v12 }
  0xad   : >> { %2293 = vmatpush3.bf16.msra.mxu0 %v3128_v50 }
  0xae   : >> { %2313 = vmatpush3.bf16.msra.mxu1 %v3132_v55  ;;  %2318 = vmatprep.subr.bf16.mxu0 %v2782_v12 }
  0xaf   : >> { %2338 = vmatprep.subr.bf16.mxu1 %v2782_v12 }
  0xb0   : >> { %2295 = vmatmul.mubr.bf16.vlgmr.msra.gmra.mrb[8].mxu0 %v3135_v56 }
  0xb1   : >> { %2315 = vmatmul.mubr.bf16.vlgmr.msra.gmra.mrb[8].mxu1 %v3138_v57  ;;  %2319 = vmatpush3.bf16.msra.mxu0 %v3140_v22 }
  0xb2   : >> { %2339 = vmatpush3.bf16.msra.mxu1 %v3144_v3  ;;  %2320 = vmatprep.subr.bf16.mxu0 %v2782_v12  ;;  %v3199_v3 = vld [vmem:[#allocation2 + $0x1b0] sm:$0xff]  }
  0xb3   : >> { %2340 = vmatprep.subr.bf16.mxu1 %v2782_v12  ;;  %2334 = vmatprep.mubr.msk.bf16.mxu0 %vm2783_vm2, %v2782_v12  ;;  %3506 = vst [vmem:[#allocation24_spill] sm:$0xff] %v3199_v3 }
  0xb4   : >> { %2354 = vmatprep.mubr.msk.bf16.mxu1 %vm2783_vm2, %v2782_v12 }
  0xb5   : >> { %2321 = vmatpush3.bf16.msra.mxu0 %v3150_v27 }
  0xb6   : >> { %2341 = vmatpush3.bf16.msra.mxu1 %v3154_v34  ;;  %2322 = vmatprep.subr.bf16.mxu0 %v2782_v12  ;;  %v1992_v34 = vcombine.low %v1980_v7, %v3186_v5 }
  0xb7   : >> { %2342 = vmatprep.subr.bf16.mxu1 %v2782_v12 }
  0xb8   : >> { %v1066_v55 = vshll.u32 %v1992_v34, 16 }
  0xb9   : >> { %2323 = vmatpush3.bf16.msra.mxu0 %v3162_v35 }
  0xba   : >> { %2343 = vmatpush3.bf16.msra.mxu1 %v3166_v36  ;;  %2324 = vmatprep.subr.bf16.mxu0 %v2782_v12  ;;  %v3190_v36 = vld [vmem:[#allocation2 + $0x1a8] sm:$0xff]   ;;  %v1068_v6 = vrot.slane %v1066_v55, 1 }
  0xbb   : >> { %2344 = vmatprep.subr.bf16.mxu1 %v2782_v12  ;;  %3504 = vst [vmem:[#allocation22_spill] sm:$0xff] %v3190_v36 }
  0xbd   : >> { %2325 = vmatpush3.bf16.msra.mxu0 %v3170_v54 }
  0xbe   : >> { %2345 = vmatpush3.bf16.msra.mxu1 %v3174_v10  ;;  %2326 = vmatprep.subr.bf16.mxu0 %v2782_v12  ;;  %v3195_v10 = vld [vmem:[#allocation2 + $0x1e8] sm:$0xff]  }
  0xbf   : >> { %2346 = vmatprep.subr.bf16.mxu1 %v2782_v12  ;;  %3505 = vst [vmem:[#allocation23_spill] sm:$0xff] %v3195_v10 }
  0xc1   : >> { %2327 = vmatpush3.bf16.msra.mxu0 %v3178_v8  ;;  %v1064_v8 = vshrl.u32 %v1992_v34, 16 }
  0xc2   : >> { %2347 = vmatpush3.bf16.msra.mxu1 %v3182_v9  ;;  %2328 = vmatprep.subr.bf16.mxu0 %v2782_v12  ;;  %v3207_v9 = vld [vmem:[#allocation2 + $0x1b8] sm:$0xff]  }
  0xc3   : >> { %2348 = vmatprep.subr.bf16.mxu1 %v2782_v12  ;;  %v3218_v54 = vor.u32 %v1068_v6, %v1064_v8  ;;  %v3238_v8 = vld [vmem:[#allocation2 + $0x210] sm:$0xff]   ;;  %v3250_v6 = vld [vmem:[#allocation2 + $0x220] sm:$0xff]  }
  0xc5   : >> { %2329 = vmatpush3.bf16.msra.mxu0 %v3190_v36  ;;  %v3212_v36 = vld [vmem:[#allocation2 + $0x1f8] sm:$0xff]  }
  0xc6   : >> { %2349 = vmatpush3.bf16.msra.mxu1 %v3195_v10  ;;  %2330 = vmatprep.subr.bf16.mxu0 %v2782_v12  ;;  %v3215_v10 = vcombine.low %v1980_v7, %v1981_v24  ;;  %v3228_v7 = vld [vmem:[#allocation2 + $0x208] sm:$0xff]   ;;  %v2001_v24 = vld [vmem:[%s2950_s27 + $0x10] sm:$0xe] }
  0xc7   : >> { %2350 = vmatprep.subr.bf16.mxu1 %v2782_v12 }
  0xc9   : >> { %2331 = vmatpush3.bf16.msra.mxu0 %v3199_v3  ;;  %v3220_v3 = vld [vmem:[#allocation2 + $0x200] sm:$0xff]  }
  0xca   : >> { %2351 = vmatpush3.bf16.msra.mxu1 %v3203_v32  ;;  %2332 = vmatprep.subr.bf16.mxu0 %v2782_v12 }
  0xcb   : >> { %2352 = vmatprep.subr.bf16.mxu1 %v2782_v12 }
  0xcd   : >> { %2333 = vmatpush3.bf16.msra.mxu0 %v3207_v9 }
  0xce   : >> { %2353 = vmatpush3.bf16.msra.mxu1 %v3212_v36  ;;  %2358 = vmatprep.subr.bf16.mxu0 %v2782_v12 }
  0xcf   : >> { %2378 = vmatprep.subr.bf16.mxu1 %v2782_v12 }
  0xd0   : >> { %2335 = vmatmul.mubr.bf16.vlgmr.msra.gmra.mrb[12].mxu0 %v3215_v10 }
  0xd1   : >> { %2355 = vmatmul.mubr.bf16.vlgmr.msra.gmra.mrb[12].mxu1 %v3218_v54  ;;  %2359 = vmatpush3.bf16.msra.mxu0 %v3220_v3 }
  0xd2   : >> { %2379 = vmatpush3.bf16.msra.mxu1 %v2914_v11  ;;  %2360 = vmatprep.subr.bf16.mxu0 %v2782_v12  ;;  %v3244_v11 = vld [vmem:[#allocation2 + $0x218] sm:$0xff]  }
  0xd3   : >> { %2380 = vmatprep.subr.bf16.mxu1 %v2782_v12  ;;  %2374 = vmatprep.mubr.msk.bf16.mxu0 %vm2783_vm2, %v2782_v12 }
  0xd4   : >> { %2394 = vmatprep.mubr.msk.bf16.mxu1 %vm2783_vm2, %v2782_v12 }
  0xd5   : >> { %2361 = vmatpush3.bf16.msra.mxu0 %v3228_v7 }
  0xd6   : >> { %2381 = vmatpush3.bf16.msra.mxu1 %v2921_v14  ;;  %2362 = vmatprep.subr.bf16.mxu0 %v2782_v12  ;;  %v3256_v14 = vld [vmem:[#allocation2 + $0x228] sm:$0xff]  }
  0xd7   : >> { %2382 = vmatprep.subr.bf16.mxu1 %v2782_v12 }
  0xd9   : >> { %2363 = vmatpush3.bf16.msra.mxu0 %v3238_v8 }
  0xda   : >> { %2383 = vmatpush3.bf16.msra.mxu1 %v2933_v16  ;;  %2364 = vmatprep.subr.bf16.mxu0 %v2782_v12  ;;  %v3262_v16 = vld [vmem:[#allocation2 + $0x230] sm:$0xff]  }
  0xdb   : >> { %2384 = vmatprep.subr.bf16.mxu1 %v2782_v12 }
  0xdd   : >> { %2365 = vmatpush3.bf16.msra.mxu0 %v3244_v11 }
  0xde   : >> { %2385 = vmatpush3.bf16.msra.mxu1 %v2941_v18  ;;  %2366 = vmatprep.subr.bf16.mxu0 %v2782_v12  ;;  %v2002_v18 = vcombine.low %v2001_v24, %v3186_v5  ;;  %v3507_v5 = vld [vmem:[#allocation18_spill] sm:$0xff] }
  0xdf   : >> { %2386 = vmatprep.subr.bf16.mxu1 %v2782_v12 }
  0xe0   : >> { %v3275_v55 = vrot.slane %v2002_v18, 1 }
  0xe1   : >> { %2367 = vmatpush3.bf16.msra.mxu0 %v3250_v6 }
  0xe2   : >> { %2387 = vmatpush3.bf16.msra.mxu1 %v2953_v20  ;;  %2368 = vmatprep.subr.bf16.mxu0 %v2782_v12  ;;  %v3270_v20 = vld [vmem:[#allocation2 + $0x238] sm:$0xff]  }
  0xe3   : >> { %2388 = vmatprep.subr.bf16.mxu1 %v2782_v12 }
  0xe5   : >> { %2369 = vmatpush3.bf16.msra.mxu0 %v3256_v14 }
  0xe6   : >> { %2389 = vmatpush3.bf16.msra.mxu1 %v2966_v25  ;;  %2370 = vmatprep.subr.bf16.mxu0 %v2782_v12 }
  0xe7   : >> { %2390 = vmatprep.subr.bf16.mxu1 %v2782_v12 }
  0xe9   : >> { %2371 = vmatpush3.bf16.msra.mxu0 %v3262_v16 }
  0xea   : >> { %2391 = vmatpush3.bf16.msra.mxu1 %v2974_v28  ;;  %2372 = vmatprep.subr.bf16.mxu0 %v2782_v12  ;;  %v3510_v28 = vld [vmem:[#allocation12_spill] sm:$0xff] }
  0xeb   : >> { %2392 = vmatprep.subr.bf16.mxu1 %v2782_v12 }
  0xed   : >> { %2373 = vmatpush3.bf16.msra.mxu0 %v3270_v20 }
  0xee   : >> { %2393 = vmatpush3.bf16.msra.mxu1 %v2981_v30  ;;  %2398 = vmatprep.subr.bf16.mxu0 %v2782_v12  ;;  %v3511_v30 = vld [vmem:[#allocation22_spill] sm:$0xff] }
  0xef   : >> { %2418 = vmatprep.subr.bf16.mxu1 %v2782_v12 }
  0xf0   : >> { %2375 = vmatmul.mubr.bf16.vlgmr.msra.gmra.mrb[16].mxu0 %v3275_v55 }
  0xf1   : >> { %2395 = vmatmul.mubr.bf16.vlgmr.msra.gmra.mrb[16].mxu1 %v3135_v56  ;;  %2399 = vmatpush3.bf16.msra.mxu0 %v2918_v13  ;;  %v3509_v13 = vld [vmem:[#allocation20_spill] sm:$0xff] }
  0xf2   : >> { %2419 = vmatpush3.bf16.msra.mxu1 %v2991_v37  ;;  %2400 = vmatprep.subr.bf16.mxu0 %v2782_v12 }
  0xf3   : >> { %2420 = vmatprep.subr.bf16.mxu1 %v2782_v12  ;;  %2414 = vmatprep.mubr.msk.bf16.mxu0 %vm2783_vm2, %v2782_v12 }
  0xf4   : >> { %2434 = vmatprep.mubr.msk.bf16.mxu1 %vm2783_vm2, %v2782_v12 }
  0xf5   : >> { %2401 = vmatpush3.bf16.msra.mxu0 %v2927_v15 }
  0xf6   : >> { %2421 = vmatpush3.bf16.msra.mxu1 %v2999_v39  ;;  %2402 = vmatprep.subr.bf16.mxu0 %v2782_v12  ;;  %v3512_v39 = vld [vmem:[#allocation13_spill] sm:$0xff] }
  0xf7   : >> { %2422 = vmatprep.subr.bf16.mxu1 %v2782_v12 }
  0xf9   : >> { %2403 = vmatpush3.bf16.msra.mxu0 %v2937_v17 }
  0xfa   : >> { %2423 = vmatpush3.bf16.msra.mxu1 %v3011_v41  ;;  %2404 = vmatprep.subr.bf16.mxu0 %v2782_v12  ;;  %v2014_v41 = vld [vmem:[%s2950_s27 + $0x18] sm:$0xf] }
  0xfb   : >> { %2424 = vmatprep.subr.bf16.mxu1 %v2782_v12 }
  0xfd   : >> { %2405 = vmatpush3.bf16.msra.mxu0 %v2946_v19 }
  0xfe   : >> { %2425 = vmatpush3.bf16.msra.mxu1 %v3019_v43  ;;  %2406 = vmatprep.subr.bf16.mxu0 %v2782_v12  ;;  %v3514_v43 = vld [vmem:[#allocation14_spill] sm:$0xff] }
  0xff   : >> { %2426 = vmatprep.subr.bf16.mxu1 %v2782_v12 }
 0x101   : >> { %2407 = vmatpush3.bf16.msra.mxu0 %v2957_v21 }
 0x102   : >> { %2427 = vmatpush3.bf16.msra.mxu1 %v3027_v45  ;;  %2408 = vmatprep.subr.bf16.mxu0 %v2782_v12  ;;  %v3515_v45 = vld [vmem:[#allocation15_spill] sm:$0xff] }
 0x103   : >> { %2428 = vmatprep.subr.bf16.mxu1 %v2782_v12 }
 0x105   : >> { %2409 = vmatpush3.bf16.msra.mxu0 %v2970_v26 }
 0x106   : >> { %2429 = vmatpush3.bf16.msra.mxu1 %v3035_v47  ;;  %2410 = vmatprep.subr.bf16.mxu0 %v2782_v12  ;;  %v2017_v47 = vld [vmem:[%s2950_s27 + $0x1c] sm:$0xf] }
 0x107   : >> { %2430 = vmatprep.subr.bf16.mxu1 %v2782_v12 }
 0x109   : >> { %2411 = vmatpush3.bf16.msra.mxu0 %v2978_v29 }
 0x10a   : >> { %2431 = vmatpush3.bf16.msra.mxu1 %v3042_v49  ;;  %2412 = vmatprep.subr.bf16.mxu0 %v2782_v12  ;;  %v2018_v49 = vcombine.low %v2014_v41, %v2017_v47 }
 0x10b   : >> { %2432 = vmatprep.subr.bf16.mxu1 %v2782_v12 }
 0x10c   : >> { %v1598_v56 = vshrl.u32 %v2018_v49, 16 }
 0x10d   : >> { %2413 = vmatpush3.bf16.msra.mxu0 %v2984_v33 }
 0x10e   : >> { %2433 = vmatpush3.bf16.msra.mxu1 %v3051_v52  ;;  %2438 = vmatprep.subr.bf16.mxu0 %v2782_v12 }
 0x10f   : >> { %2458 = vmatprep.subr.bf16.mxu1 %v2782_v12 }
 0x110   : >> { %2415 = vmatmul.mubr.bf16.vlgmr.msra.gmra.mrb[20].mxu0 %v3063_v58 }
 0x111   : >> { %2435 = vmatmul.mubr.bf16.vlgmr.msra.gmra.mrb[20].mxu1 %v3138_v57  ;;  %2439 = vmatpush3.bf16.msra.mxu0 %v2995_v38 }
 0x112   : >> { %2459 = vmatpush3.bf16.msra.mxu1 %v3065_v59  ;;  %2440 = vmatprep.subr.bf16.mxu0 %v2782_v12 }
 0x113   : >> { %2460 = vmatprep.subr.bf16.mxu1 %v2782_v12  ;;  %2454 = vmatprep.mubr.msk.bf16.mxu0 %vm2783_vm2, %v2782_v12 }
 0x114   : >> { %2474 = vmatprep.mubr.msk.bf16.mxu1 %vm2783_vm2, %v2782_v12 }
 0x115   : >> { %2441 = vmatpush3.bf16.msra.mxu0 %v3003_v40  ;;  %v3513_v40 = vld [vmem:[#allocation24_spill] sm:$0xff] }
 0x116   : >> { %2461 = vmatpush3.bf16.msra.mxu1 %v3074_v61  ;;  %2442 = vmatprep.subr.bf16.mxu0 %v2782_v12 }
 0x117   : >> { %2462 = vmatprep.subr.bf16.mxu1 %v2782_v12 }
 0x119   : >> { %2443 = vmatpush3.bf16.msra.mxu0 %v3015_v42  ;;  %v2015_v42 = vld [vmem:[%s2950_s27 + $0x1c] sm:$0x7] }
 0x11a   : >> { %2463 = vmatpush3.bf16.msra.mxu1 %v3086_v63  ;;  %2444 = vmatprep.subr.bf16.mxu0 %v2782_v12  ;;  %v3520_v63 = vld [vmem:[#allocation23_spill] sm:$0xff] }
 0x11b   : >> { %2464 = vmatprep.subr.bf16.mxu1 %v2782_v12 }
 0x11d   : >> { %2445 = vmatpush3.bf16.msra.mxu0 %v3023_v44  ;;  %v2016_v44 = vcombine.low %v2014_v41, %v2015_v42 }
 0x11e   : >> { %2465 = vmatpush3.bf16.msra.mxu1 %v3094_v1  ;;  %2446 = vmatprep.subr.bf16.mxu0 %v2782_v12 }
 0x11f   : >> { %2466 = vmatprep.subr.bf16.mxu1 %v2782_v12 }
 0x121   : >> { %2447 = vmatpush3.bf16.msra.mxu0 %v3031_v46  ;;  %v3517_v46 = vld [vmem:[#allocation17_spill] sm:$0xff] }
 0x122   : >> { %2467 = vmatpush3.bf16.msra.mxu1 %v3103_v4  ;;  %2448 = vmatprep.subr.bf16.mxu0 %v2782_v12 }
 0x123   : >> { %2468 = vmatprep.subr.bf16.mxu1 %v2782_v12 }
 0x125   : >> { %2449 = vmatpush3.bf16.msra.mxu0 %v3039_v48  ;;  %v3518_v48 = vld [vmem:[#allocation19_spill] sm:$0xff] }
 0x126   : >> { %2469 = vmatpush3.bf16.msra.mxu1 %v3111_v23  ;;  %2450 = vmatprep.subr.bf16.mxu0 %v2782_v12  ;;  %v2019_v23 = vld [vmem:[%s2950_s27 + $0x18] sm:$0xe] }
 0x127   : >> { %2470 = vmatprep.subr.bf16.mxu1 %v2782_v12 }
 0x129   : >> { %2451 = vmatpush3.bf16.msra.mxu0 %v3048_v51  ;;  %v3519_v51 = vld [vmem:[#allocation21_spill] sm:$0xff] }
 0x12a   : >> { %2471 = vmatpush3.bf16.msra.mxu1 %v3119_v31  ;;  %2452 = vmatprep.subr.bf16.mxu0 %v2782_v12 }
 0x12b   : >> { %2472 = vmatprep.subr.bf16.mxu1 %v2782_v12 }
 0x12d   : >> { %2453 = vmatpush3.bf16.msra.mxu0 %v3053_v53 }
 0x12e   : >> { %2473 = vmatpush3.bf16.msra.mxu1 %v3128_v50  ;;  %2478 = vmatprep.subr.bf16.mxu0 %v2782_v12 }
 0x12f   : >> { %2498 = vmatprep.subr.bf16.mxu1 %v2782_v12 }
 0x130   : >> { %2455 = vmatmul.mubr.bf16.vlgmr.msra.gmra.mrb[24].mxu0 %v3215_v10  ;;  %v3508_v10 = vld [vmem:[#allocation11_spill] sm:$0xff] }
 0x131   : >> { %2475 = vmatmul.mubr.bf16.vlgmr.msra.gmra.mrb[24].mxu1 %v3218_v54  ;;  %2479 = vmatpush3.bf16.msra.mxu0 %v3069_v60  ;;  %v1600_v60 = vshll.u32 %v2018_v49, 16 }
 0x132   : >> { %2499 = vmatpush3.bf16.msra.mxu1 %v3140_v22  ;;  %2480 = vmatprep.subr.bf16.mxu0 %v2782_v12  ;;  %v2020_v22 = vcombine.low %v2019_v23, %v2017_v47 }
 0x133   : >> { %2500 = vmatprep.subr.bf16.mxu1 %v2782_v12  ;;  %2494 = vmatprep.mubr.msk.bf16.mxu0 %vm2783_vm2, %v2782_v12  ;;  %v1602_v57 = vrot.slane %v1600_v60, 1 }
 0x134   : >> { %2514 = vmatprep.mubr.msk.bf16.mxu1 %vm2783_vm2, %v2782_v12 }
 0x135   : >> { %2481 = vmatpush3.bf16.msra.mxu0 %v3078_v62 }
 0x136   : >> { %2501 = vmatpush3.bf16.msra.mxu1 %v3150_v27  ;;  %2482 = vmatprep.subr.bf16.mxu0 %v2782_v12  ;;  %v1652_v27 = vrot.slane %v2020_v22, 1 }
 0x137   : >> { %2502 = vmatprep.subr.bf16.mxu1 %v2782_v12 }
 0x139   : >> { %2483 = vmatpush3.bf16.msra.mxu0 %v3090_v0 }
 0x13a   : >> { %2503 = vmatpush3.bf16.msra.mxu1 %v3162_v35  ;;  %2484 = vmatprep.subr.bf16.mxu0 %v2782_v12 }
 0x13b   : >> { %2504 = vmatprep.subr.bf16.mxu1 %v2782_v12 }
 0x13d   : >> { %2485 = vmatpush3.bf16.msra.mxu0 %v3098_v2 }
 0x13e   : >> { %2505 = vmatpush3.bf16.msra.mxu1 %v3507_v5  ;;  %2486 = vmatprep.subr.bf16.mxu0 %v2782_v12 }
 0x13f   : >> { %2506 = vmatprep.subr.bf16.mxu1 %v2782_v12 }
 0x141   : >> { %2487 = vmatpush3.bf16.msra.mxu0 %v3508_v10 }
 0x142   : >> { %2507 = vmatpush3.bf16.msra.mxu1 %v3509_v13  ;;  %2488 = vmatprep.subr.bf16.mxu0 %v2782_v12 }
 0x143   : >> { %v354_v15 = vpop.f32.mrb[0].mxu0  ;;  %2508 = vmatprep.subr.bf16.mxu1 %v2782_v12 }
 0x144   : >> { %v447_v17 = vpop.f32.mrb[0].mxu1  ;;  %v2216_v19 = vpop.f32.mrb[1].mxu0 }
 0x145   : >> { %v448_v21 = vadd.f32 %v447_v17, %v354_v15  ;;  %v2236_v25 = vpop.f32.mrb[1].mxu1  ;;  %v357_v26 = vpop.f32.mrb[2].mxu0  ;;  %2489 = vmatpush3.bf16.msra.mxu0 %v3510_v28 }
 0x146   : >> { %v450_v29 = vpop.f32.mrb[2].mxu1  ;;  %2509 = vmatpush3.bf16.msra.mxu1 %v3511_v30  ;;  %v2217_v33 = vpop.f32.mrb[3].mxu0  ;;  %2490 = vmatprep.subr.bf16.mxu0 %v2782_v12 }
 0x147   : >> { %v451_v37 = vadd.f32 %v450_v29, %v357_v26  ;;  %v2237_v38 = vpop.f32.mrb[3].mxu1  ;;  %2510 = vmatprep.subr.bf16.mxu1 %v2782_v12 }
 0x149   : >> { %2491 = vmatpush3.bf16.msra.mxu0 %v3512_v39 }
 0x14a   : >> { %2511 = vmatpush3.bf16.msra.mxu1 %v3513_v40  ;;  %2492 = vmatprep.subr.bf16.mxu0 %v2782_v12 }
 0x14b   : >> { %2512 = vmatprep.subr.bf16.mxu1 %v2782_v12 }
 0x14d   : >> { %2493 = vmatpush3.bf16.msra.mxu0 %v3514_v43 }
 0x14e   : >> { %2513 = vmatpush3.bf16.msra.mxu1 %v3207_v9  ;;  %2518 = vmatprep.subr.bf16.mxu0 %v2782_v12  ;;  %v3516_v9 = vld [vmem:[#allocation16_spill] sm:$0xff] }
 0x14f   : >> { %2538 = vmatprep.subr.bf16.mxu1 %v2782_v12 }
 0x150   : >> { %2495 = vmatmul.mubr.bf16.vlgmr.msra.gmra.mrb[28].mxu0 %v3275_v55 }
 0x151   : >> { %2515 = vmatmul.mubr.bf16.vlgmr.msra.gmra.mrb[28].mxu1 %v2016_v44  ;;  %2519 = vmatpush3.bf16.msra.mxu0 %v3515_v45 }
 0x152   : >> { %2539 = vmatpush3.bf16.msra.mxu1 %v3220_v3  ;;  %2520 = vmatprep.subr.bf16.mxu0 %v2782_v12  ;;  %v1603_v3 = vor.u32 %v1602_v57, %v1598_v56 }
 0x153   : >> { %2540 = vmatprep.subr.bf16.mxu1 %v2782_v12  ;;  %2534 = vmatprep.mubr.msk.bf16.mxu0 %vm2783_vm2, %v2782_v12 }
 0x154   : >> { %2554 = vmatprep.mubr.msk.bf16.mxu1 %vm2783_vm2, %v2782_v12 }
 0x155   : >> { %2521 = vmatpush3.bf16.msra.mxu0 %v3516_v9 }
 0x156   : >> { %2541 = vmatpush3.bf16.msra.mxu1 %v3228_v7  ;;  %2522 = vmatprep.subr.bf16.mxu0 %v2782_v12 }
 0x157   : >> { %2542 = vmatprep.subr.bf16.mxu1 %v2782_v12 }
 0x159   : >> { %2523 = vmatpush3.bf16.msra.mxu0 %v3517_v46 }
 0x15a   : >> { %2543 = vmatpush3.bf16.msra.mxu1 %v3238_v8  ;;  %2524 = vmatprep.subr.bf16.mxu0 %v2782_v12 }
 0x15b   : >> { %2544 = vmatprep.subr.bf16.mxu1 %v2782_v12 }
 0x15d   : >> { %2525 = vmatpush3.bf16.msra.mxu0 %v3518_v48 }
 0x15e   : >> { %2545 = vmatpush3.bf16.msra.mxu1 %v3244_v11  ;;  %2526 = vmatprep.subr.bf16.mxu0 %v2782_v12 }
 0x15f   : >> { %2546 = vmatprep.subr.bf16.mxu1 %v2782_v12 }
 0x161   : >> { %2527 = vmatpush3.bf16.msra.mxu0 %v3519_v51 }
 0x162   : >> { %2547 = vmatpush3.bf16.msra.mxu1 %v3250_v6  ;;  %2528 = vmatprep.subr.bf16.mxu0 %v2782_v12 }
 0x163   : >> { %v559_v52 = vpop.f32.mrb[4].mxu0  ;;  %2548 = vmatprep.subr.bf16.mxu1 %v2782_v12 }
 0x164   : >> { %v566_v53 = vadd.f32 %v559_v52, %v448_v21  ;;  %v679_v58 = vpop.f32.mrb[4].mxu1  ;;  %v2256_v59 = vpop.f32.mrb[5].mxu0 }
 0x165   : >> { %v2276_v61 = vpop.f32.mrb[5].mxu1  ;;  %v562_v62 = vpop.f32.mrb[6].mxu0  ;;  %2529 = vmatpush3.bf16.msra.mxu0 %v3520_v63 }
 0x166   : >> { %v686_v0 = vadd.f32 %v679_v58, %v566_v53  ;;  %v567_v1 = vadd.f32 %v562_v62, %v451_v37  ;;  %v682_v2 = vpop.f32.mrb[6].mxu1  ;;  %2549 = vmatpush3.bf16.msra.mxu1 %v3256_v14  ;;  %v2257_v4 = vpop.f32.mrb[7].mxu0  ;;  %2530 = vmatprep.subr.bf16.mxu0 %v2782_v12 }
 0x167   : >> { %v2277_v31 = vpop.f32.mrb[7].mxu1  ;;  %2550 = vmatprep.subr.bf16.mxu1 %v2782_v12 }
 0x168   : >> { %v687_v50 = vadd.f32 %v682_v2, %v567_v1 }
 0x169   : >> { %2531 = vmatpush3.bf16.msra.mxu0 %v3203_v32 }
 0x16a   : >> { %2551 = vmatpush3.bf16.msra.mxu1 %v3262_v16  ;;  %2532 = vmatprep.subr.bf16.mxu0 %v2782_v12 }
 0x16b   : >> { %2552 = vmatprep.subr.bf16.mxu1 %v2782_v12 }
 0x16d   : >> { %2533 = vmatpush3.bf16.msra.mxu0 %v3212_v36 }
 0x16e   : >> { %2553 = vmatpush3.bf16.msra.mxu1 %v3270_v20  ;;  %2558 = vmatprep.subr.bf16.mxu0 %v2782_v12 }
 0x16f   : >> { %2564 = vmatprep.subr.bf16.mxu1 %v2782_v12 }
 0x170   : >> { %2535 = vmatmul.mubr.bf16.vlgmr.msra.gmra.mrb[32].mxu0 %v1603_v3 }
 0x171   : >> { %2555 = vmatmul.mubr.bf16.vlgmr.msra.gmra.mrb[32].mxu1 %v1652_v27  ;;  %2560 = vmatprep.mubr.msk.bf16.mxu0 %vm2783_vm2, %v2782_v12 }
 0x172   : >> { %2566 = vmatprep.mubr.msk.bf16.mxu1 %vm2783_vm2, %v2782_v12 }
 0x183   : >> { %v799_v32 = vpop.f32.mrb[8].mxu0 }
 0x184   : >> { %v806_v34 = vadd.f32 %v799_v32, %v686_v0  ;;  %v913_v35 = vpop.f32.mrb[8].mxu1  ;;  %v2296_v54 = vpop.f32.mrb[9].mxu0 }
 0x185   : >> { %v2316_v36 = vpop.f32.mrb[9].mxu1  ;;  %v802_v7 = vpop.f32.mrb[10].mxu0 }
 0x186   : >> { %v920_v8 = vadd.f32 %v913_v35, %v806_v34  ;;  %v807_v11 = vadd.f32 %v802_v7, %v687_v50  ;;  %v916_v6 = vpop.f32.mrb[10].mxu1  ;;  %v2297_v14 = vpop.f32.mrb[11].mxu0 }
 0x187   : >> { %v2317_v16 = vpop.f32.mrb[11].mxu1 }
 0x188   : >> { %v921_v24 = vadd.f32 %v916_v6, %v807_v11 }
 0x1a3   : >> { %v1033_v18 = vpop.f32.mrb[12].mxu0 }
 0x1a4   : >> { %v1040_v20 = vadd.f32 %v1033_v18, %v920_v8  ;;  %v1153_v55 = vpop.f32.mrb[12].mxu1  ;;  %v2336_v5 = vpop.f32.mrb[13].mxu0 }
 0x1a5   : >> { %v2356_v10 = vpop.f32.mrb[13].mxu1  ;;  %v1036_v13 = vpop.f32.mrb[14].mxu0 }
 0x1a6   : >> { %v1160_v15 = vadd.f32 %v1153_v55, %v1040_v20  ;;  %v1041_v12 = vadd.f32 %v1036_v13, %v921_v24  ;;  %v1156_v17 = vpop.f32.mrb[14].mxu1  ;;  %v2337_v19 = vpop.f32.mrb[15].mxu0  ;;  %v3521_v13 = vld [vmem:[#allocation8_spill] sm:$0xff] }
 0x1a7   : >> { %v2357_v21 = vpop.f32.mrb[15].mxu1 }
 0x1a8   : >> { %v1161_v25 = vadd.f32 %v1156_v17, %v1041_v12 }
 0x1c3   : >> { %v1267_v26 = vpop.f32.mrb[16].mxu0 }
 0x1c4   : >> { %v1274_v28 = vadd.f32 %v1267_v26, %v1160_v15  ;;  %v1318_v29 = vpop.f32.mrb[16].mxu1  ;;  %v2376_v30 = vpop.f32.mrb[17].mxu0 }
 0x1c5   : >> { %v2396_v33 = vpop.f32.mrb[17].mxu1  ;;  %v1270_v37 = vpop.f32.mrb[18].mxu0 }
 0x1c6   : >> { %v1275_v38 = vadd.f32 %v1270_v37, %v1161_v25  ;;  %v1321_v39 = vpop.f32.mrb[18].mxu1  ;;  %v2377_v40 = vpop.f32.mrb[19].mxu0  ;;  %v1282_v15 = vadd.f32 %v3521_v13, %v1274_v28  ;;  %v3522_v28 = vld [vmem:[#allocation9_spill] sm:$0xff] }
 0x1c7   : >> { %v2397_v41 = vpop.f32.mrb[19].mxu1  ;;  %v3524_v40 = vld [vmem:[#allocation10_spill] sm:$0xff] }
 0x1c8   : >> { %v1283_v19 = vadd.f32 %v3521_v13, %v1275_v38  ;;  %v3525_v41 = vpack.c.bf16 %v3524_v40, %v3524_v40 }
 0x1e3   : >> { %v1359_v42 = vpop.f32.mrb[20].mxu0 }
 0x1e4   : >> { %v1360_v43 = vadd.f32 %v1359_v42, %v1318_v29  ;;  %v1400_v44 = vpop.f32.mrb[20].mxu1  ;;  %v2416_v45 = vpop.f32.mrb[21].mxu0 }
 0x1e5   : >> { %v2436_v9 = vpop.f32.mrb[21].mxu1  ;;  %v1362_v46 = vpop.f32.mrb[22].mxu0 }
 0x1e6   : >> { %v1407_v47 = vadd.f32 %v1400_v44, %v1360_v43  ;;  %v1363_v48 = vadd.f32 %v1362_v46, %v1321_v39  ;;  %v1403_v49 = vpop.f32.mrb[22].mxu1  ;;  %v2417_v51 = vpop.f32.mrb[23].mxu0  ;;  %v3523_v39 = vpack.c.bf16 %v3522_v28, %v3522_v28  ;;  %v1802_v9 = vld [vmem:[%s1798_s29] sm:$0xf] }
 0x1e7   : >> { %v2437_v52 = vpop.f32.mrb[23].mxu1 }
 0x1e8   : >> { %v1408_v53 = vadd.f32 %v1403_v49, %v1363_v48 }
 0x203   : >> { %v1443_v58 = vpop.f32.mrb[24].mxu0 }
 0x204   : >> { %v1450_v59 = vadd.f32 %v1443_v58, %v1407_v47  ;;  %v1486_v60 = vpop.f32.mrb[24].mxu1  ;;  %v2456_v61 = vpop.f32.mrb[25].mxu0 }
 0x205   : >> { %v2476_v62 = vpop.f32.mrb[25].mxu1  ;;  %v1446_v63 = vpop.f32.mrb[26].mxu0 }
 0x206   : >> { %v1493_v0 = vadd.f32 %v1486_v60, %v1450_v59  ;;  %v1451_v1 = vadd.f32 %v1446_v63, %v1408_v53  ;;  %v1489_v2 = vpop.f32.mrb[26].mxu1  ;;  %v2457_v4 = vpop.f32.mrb[27].mxu0 }
 0x207   : >> { %v2477_v23 = vpop.f32.mrb[27].mxu1 }
 0x208   : >> { %v1494_v31 = vadd.f32 %v1489_v2, %v1451_v1 }
 0x223   : >> { %v1529_v50 = vpop.f32.mrb[28].mxu0 }
 0x224   : >> { %v1536_v56 = vadd.f32 %v1529_v50, %v1493_v0  ;;  %v1584_v57 = vpop.f32.mrb[28].mxu1  ;;  %v2496_v22 = vpop.f32.mrb[29].mxu0 }
 0x225   : >> { %v2516_v3 = vpop.f32.mrb[29].mxu1  ;;  %v1532_v27 = vpop.f32.mrb[30].mxu0 }
 0x226   : >> { %v1591_v32 = vadd.f32 %v1584_v57, %v1536_v56  ;;  %v1537_v34 = vadd.f32 %v1532_v27, %v1494_v31  ;;  %v1587_v35 = vpop.f32.mrb[30].mxu1  ;;  %v2497_v54 = vpop.f32.mrb[31].mxu0 }
 0x227   : >> { %v2517_v36 = vpop.f32.mrb[31].mxu1 }
 0x228   : >> { %v1592_v7 = vadd.f32 %v1587_v35, %v1537_v34 }
 0x243   : >> { %v1639_v8 = vpop.f32.mrb[32].mxu0 }
 0x244   : >> { %v1646_v11 = vadd.f32 %v1639_v8, %v1591_v32  ;;  %v1688_v6 = vpop.f32.mrb[32].mxu1  ;;  %v2536_v14 = vpop.f32.mrb[33].mxu0 }
 0x245   : >> { %v2556_v16 = vpop.f32.mrb[33].mxu1  ;;  %v1642_v24 = vpop.f32.mrb[34].mxu0 }
 0x246   : >> { %v1695_v18 = vadd.f32 %v1688_v6, %v1646_v11  ;;  %v1647_v20 = vadd.f32 %v1642_v24, %v1592_v7  ;;  %v1691_v55 = vpop.f32.mrb[34].mxu1  ;;  %v2537_v5 = vpop.f32.mrb[35].mxu0 }
 0x247   : >> { %v2557_v10 = vpop.f32.mrb[35].mxu1 }
 0x248   : >> { %v1697_v12 = vadd.f32 %v3521_v13, %v1695_v18  ;;  %v1696_v17 = vadd.f32 %v1691_v55, %v1647_v20 }
 0x24a   : >> { %v1699_v21 = vmax.f32 %v1282_v15, %v1697_v12  ;;  %v1698_v25 = vadd.f32 %v3521_v13, %v1696_v17 }
 0x24c   : >> { %v1700_v26 = vmax.f32 %v1283_v19, %v1698_v25  ;;  %v1701_v29 = vmax.f32 %v1699_v21, 0.0 }
 0x24e   : >> { %v1702_v30 = vmax.f32 %v1700_v26, 0.0 }
 0x250   : >> { %v1703_v33 = vpack.c.bf16 %v1702_v30, %v1701_v29 }
 0x252   : >> { %v1710_v37 = vsel %vm1708_vm3, %v1703_v33, 0 }
 0x253   : >> { %2559 = vmatpush3.bf16.msra.mxu0 %v1710_v37  ;;  %2565 = vmatpush3.bf16.msra.mxu1 %v1710_v37 }
 0x256   : >> { %2561 = vmatmul.mubr.msk.bf16.vlgmr.msra.gmra.mrb[36].mxu0 %vm1704_vm4, %v3523_v39  ;;  %2567 = vmatmul.mubr.msk.bf16.vlgmr.msra.gmra.mrb[36].mxu1 %vm1704_vm4, %v3525_v41 }
 0x329   : >> { %v1746_v38 = vpop.f32.mrb[36].mxu0  ;;  %v1789_v42 = vpop.f32.mrb[36].mxu1  ;;  %217 = sbr.rel (!%p215_p5) target bundleno = 79 (0x4f), region = 91 }
 0x32a   : >> { %v1795_v43 = vmax.f32 %v1746_v38, %v1789_v42  ;;  %v2562_v44 = vpop.f32.mrb[37].mxu0  ;;  %v2568_v45 = vpop.f32.mrb[37].mxu1 }
 0x32b   : >> { %v1749_v46 = vpop.f32.mrb[38].mxu0  ;;  %v1792_v47 = vpop.f32.mrb[38].mxu1 }
 0x32c   : >> { %v1796_v48 = vpack.c.bf16 %v1795_v43, %v1795_v43  ;;  %v2563_v49 = vpop.f32.mrb[39].mxu0  ;;  %v2569_v51 = vpop.f32.mrb[39].mxu1 }
 0x32e   : >> { %v1803_v52 = vsel %vm1801_vm7, %v1796_v48, %v1802_v9 }
 0x32f   : >> { %1804 = vst [vmem:[%s1798_s29] sm:$0xf] %v1803_v52 }
 0x330 PF: > { %s15_s12 = sadd.s32 1, %s2771_s12  }
 0x331   : > { %p12_p10 = scmp.ge.s32.totalorder %s15_s12, 4  }
 0x333   :  { %14 = sbr.rel (!%p12_p10) target bundleno = 2 (0x2), region = 102 }
 0x33a   :  { %1826 = vsyncpa [#allocation3], 1 }
 0x33b   :  { %1828 = vsyncpa [#allocation3 + $0x1], 1 }
 0x33c   :  { %1829 = vsyncpa [#allocation5], 1 }

// kernel: my_cnn_forward.5
= control target key start
LH: loop header
LB: loop body
LE: loop exit
PB: predicated region body
PF: predicated region fallthrough
CT: control target
= control target key end

     0   :  { %12 = vsyncpa [#allocation3], 0  ;;  %s15882_s0 = inlined_call_operand.vmem [shape: bf16[2,2450], index: 0, kind: input, shape index: {}]   ;;  %s15883_s1 = inlined_call_operand.vmem [shape: bf16[2450,1024], index: 1, kind: input, shape index: {}]   ;;  %s15884_s2 = inlined_call_operand.vmem [shape: f32[1,1024], index: 2, kind: input, shape index: {}]   ;;  %s15885_s3 = inlined_call_operand.hbm [shape: bf16[1024,128], index: 3, kind: input, shape index: {}]   ;;  %s15886_s4 = inlined_call_operand.vmem [shape: f32[1,128], index: 4, kind: input, shape index: {}]   ;;  %s15887_s5 = inlined_call_operand.vmem [shape: bf16[128,128], index: 5, kind: input, shape index: {}]   ;;  %s15888_s6 = inlined_call_operand.vmem [shape: f32[1,128], index: 6, kind: input, shape index: {}]   ;;  %s15889_s7 = inlined_call_operand.hbm [shape: f32[2,128], index: 7, kind: output, shape index: {}]  }
   0x1   :  { %13 = vsyncpa [#allocation4], 0  ;;  %s11838_s24 = smov [#allocation2]   ;;  %s11790_s28 = scalar_lea.hbm %s15885_s3, 8192 }
   0x2   :  { %s25_s25 = sshll.u32 %s11838_s24, 4  ;;  %p11791_p0 = scmp.ne.s32.totalorder %s15885_s3, %s11790_s28  ;;  %s26_s25 = int_to_ptr.vmem [resolvable:$true] %s25_s25 }
   0x3   :  { %p11794_p1 = scmp.lt.u32.totalorder %s11790_s28, %s15885_s3 }
   0x5   :  { %p11796_p2 = pnand %p11794_p1, %p11791_p0 }
   0x7   :  { %11799 = shalt.err (!%p11796_p2)
}
   0x8   :  { %s11800_s10 = scalar_lea.vmem %s26_s25, 8192  ;;  %p11805_p4 = scmp.lt.s32.totalorder %s26_s25, %s26_s25 }
   0x9   :  { %p11801_p3 = scmp.ne.s32.totalorder %s26_s25, %s11800_s10  ;;  %p11806_p5 = scmp.lt.s32.totalorder %s11800_s10, %s11800_s10 }
   0xb   :  { %p11807_p6 = por %p11806_p5, %p11805_p4 }
   0xd   :  { %p11808_p7 = pnand %p11807_p6, %p11801_p3 }
   0xf   :  { %11811 = shalt.err (!%p11808_p7)
}
  0x10   :  { %s11839_s11 = smov 64   ;;  %s11840_s12 = smov 4  }
  0x11   :  { %31 = dma.hbm_to_vmem [thread:$0]  %s15885_s3, 8192, %s26_s25, [#allocation3], %s11839_s11, %s11839_s11, %s11840_s12  }
  0x12   :  { %11834 = dma.done.wait [#allocation3], 8192  }
  0x13   :  { %11835 = vsyncadd [#allocation3], 4294959104  ;;  %v45_v0 = vld [vmem:[%s15883_s1] sm:$0xff]  ;;  %v46_v2 = vld [vmem:[%s15883_s1 + $0x8] sm:$0xff]  ;;  %v1275_v32 = vlaneseq  ;;  %v11841_v33 = vmov 1966171168  }
  0x14   :  { %v49_v1 = vld [vmem:[%s15883_s1 + $0x20] sm:$0xff]  ;;  %v50_v4 = vld [vmem:[%s15883_s1 + $0x28] sm:$0xff]  ;;  %v1320_v34 = vunpack.c.l.s4 %v11841_v33  ;;  %vm7599_vm0 = vcmask 146432   ;;  %vm7603_vm1 = vcmask 1040384   ;;  %vm11843_vm2 = vmmov 0  }
  0x15   :  { %v10115_v3 = vcombine.high %v45_v0, %v49_v1  ;;  %v10114_v5 = vcombine.low %v45_v0, %v49_v1  ;;  %v53_v6 = vld [vmem:[%s15883_s1 + $0x40] sm:$0xff]  ;;  %v10117_v8 = vcombine.high %v46_v2, %v50_v4  ;;  %v10116_v9 = vcombine.low %v46_v2, %v50_v4  ;;  %v54_v11 = vld [vmem:[%s15883_s1 + $0x48] sm:$0xff] }
  0x16   :  { %v57_v7 = vld [vmem:[%s15883_s1 + $0x60] sm:$0xff]  ;;  %v58_v12 = vld [vmem:[%s15883_s1 + $0x68] sm:$0xff]  ;;  %v11963_v43 = vshrl.u32 %v1275_v32, 7  ;;  %v1321_v44 = vunpack.c.0.s8 %v1320_v34  ;;  %vm10076_vm3 = vcmask 1041408  }
  0x17   :  { %v10123_v10 = vcombine.high %v53_v6, %v57_v7  ;;  %v61_v13 = vld [vmem:[%s15883_s1 + $0x80] sm:$0xff]  ;;  %7628 = vmatprep.subr.bf16.mxu0 %v10115_v3  ;;  %v10125_v14 = vcombine.high %v54_v11, %v58_v12  ;;  %v62_v16 = vld [vmem:[%s15883_s1 + $0x88] sm:$0xff]  ;;  %8038 = vmatprep.subr.bf16.mxu1 %v10117_v8  ;;  %v10122_v18 = vcombine.low %v53_v6, %v57_v7 }
  0x18   :  { %v65_v15 = vld [vmem:[%s15883_s1 + $0xa0] sm:$0xff]  ;;  %v66_v17 = vld [vmem:[%s15883_s1 + $0xa8] sm:$0xff]  ;;  %7629 = vmatpush1.bf16.msra.mxu0 %v10114_v5  ;;  %8039 = vmatpush1.bf16.msra.mxu1 %v10116_v9  ;;  %v10124_v19 = vcombine.low %v54_v11, %v58_v12  ;;  %v11978_v53 = vsub.s32 %v1321_v44, %v11963_v43 }
  0x19   :  { %7630 = vmatprep.subr.bf16.mxu0 %v10123_v10  ;;  %v10131_v20 = vcombine.high %v61_v13, %v65_v15  ;;  %8040 = vmatprep.subr.bf16.mxu1 %v10125_v14  ;;  %v10133_v21 = vcombine.high %v62_v16, %v66_v17  ;;  %v69_v22 = vld [vmem:[%s15883_s1 + $0xc0] sm:$0xff]  ;;  %v70_v24 = vld [vmem:[%s15883_s1 + $0xc8] sm:$0xff]  ;;  %v10130_v26 = vcombine.low %v61_v13, %v65_v15 }
  0x1a   :  { %v73_v23 = vld [vmem:[%s15883_s1 + $0xe0] sm:$0xff]  ;;  %v74_v25 = vld [vmem:[%s15883_s1 + $0xe8] sm:$0xff]  ;;  %v10132_v27 = vcombine.low %v62_v16, %v66_v17 }
  0x1b   :  { %v10139_v28 = vcombine.high %v69_v22, %v73_v23  ;;  %v10141_v29 = vcombine.high %v70_v24, %v74_v25  ;;  %v77_v30 = vld [vmem:[%s15883_s1 + $0x100] sm:$0xff]  ;;  %v78_v35 = vld [vmem:[%s15883_s1 + $0x108] sm:$0xff]  ;;  %v10138_v37 = vcombine.low %v69_v22, %v73_v23  ;;  %v10140_v38 = vcombine.low %v70_v24, %v74_v25 }
  0x1c   :  { %7631 = vmatpush1.bf16.msra.mxu0 %v10122_v18  ;;  %8041 = vmatpush1.bf16.msra.mxu1 %v10124_v19  ;;  %v81_v31 = vld [vmem:[%s15883_s1 + $0x120] sm:$0xff]  ;;  %v82_v36 = vld [vmem:[%s15883_s1 + $0x128] sm:$0xff] }
  0x1d   :  { %7632 = vmatprep.subr.bf16.mxu0 %v10131_v20  ;;  %8042 = vmatprep.subr.bf16.mxu1 %v10133_v21  ;;  %v10147_v39 = vcombine.high %v77_v30, %v81_v31  ;;  %v10149_v40 = vcombine.high %v78_v35, %v82_v36  ;;  %v85_v41 = vld [vmem:[%s15883_s1 + $0x140] sm:$0xff]  ;;  %v86_v45 = vld [vmem:[%s15883_s1 + $0x148] sm:$0xff]  ;;  %v10146_v47 = vcombine.low %v77_v30, %v81_v31 }
  0x1e   :  { %v89_v42 = vld [vmem:[%s15883_s1 + $0x160] sm:$0xff]  ;;  %v90_v46 = vld [vmem:[%s15883_s1 + $0x168] sm:$0xff]  ;;  %v10148_v48 = vcombine.low %v78_v35, %v82_v36 }
  0x1f   :  { %v10155_v49 = vcombine.high %v85_v41, %v89_v42  ;;  %v10157_v50 = vcombine.high %v86_v45, %v90_v46  ;;  %v93_v51 = vld [vmem:[%s15883_s1 + $0x180] sm:$0xff]  ;;  %v94_v54 = vld [vmem:[%s15883_s1 + $0x188] sm:$0xff]  ;;  %v10154_v56 = vcombine.low %v85_v41, %v89_v42  ;;  %v10156_v57 = vcombine.low %v86_v45, %v90_v46 }
  0x20   :  { %7633 = vmatpush1.bf16.msra.mxu0 %v10130_v26  ;;  %8043 = vmatpush1.bf16.msra.mxu1 %v10132_v27  ;;  %v97_v52 = vld [vmem:[%s15883_s1 + $0x1a0] sm:$0xff]  ;;  %v98_v55 = vld [vmem:[%s15883_s1 + $0x1a8] sm:$0xff] }
  0x21   :  { %7634 = vmatprep.subr.bf16.mxu0 %v10139_v28  ;;  %8044 = vmatprep.subr.bf16.mxu1 %v10141_v29  ;;  %v10163_v58 = vcombine.high %v93_v51, %v97_v52  ;;  %v11989_v59 = vld [vmem:[%s15882_s0] sm:$0xff]  ;;  %v10165_v60 = vcombine.high %v94_v54, %v98_v55  ;;  %v102_v0 = vld [vmem:[%s15883_s1 + $0x1c8] sm:$0xff]  ;;  %v10162_v2 = vcombine.low %v93_v51, %v97_v52 }
  0x22   :  { %v101_v61 = vld [vmem:[%s15883_s1 + $0x1c0] sm:$0xff]  ;;  %v11999_v63 = vrot.slane %v11989_v59, %v11978_v53  ;;  %v106_v1 = vld [vmem:[%s15883_s1 + $0x1e8] sm:$0xff]  ;;  %v10164_v4 = vcombine.low %v94_v54, %v98_v55 }
  0x23   :  { %v105_v62 = vld [vmem:[%s15883_s1 + $0x1e0] sm:$0xff]  ;;  %v10173_v6 = vcombine.high %v102_v0, %v106_v1  ;;  %v110_v10 = vld [vmem:[%s15883_s1 + $0x208] sm:$0xff]  ;;  %v10172_v13 = vcombine.low %v102_v0, %v106_v1 }
  0x24   :  { %7635 = vmatpush1.bf16.msra.mxu0 %v10138_v37  ;;  %8045 = vmatpush1.bf16.msra.mxu1 %v10140_v38  ;;  %v1333_v3 = vcombine.high %v11999_v63, %v11999_v63  ;;  %v10171_v5 = vcombine.high %v101_v61, %v105_v62  ;;  %v109_v7 = vld [vmem:[%s15883_s1 + $0x200] sm:$0xff]  ;;  %v114_v11 = vld [vmem:[%s15883_s1 + $0x228] sm:$0xff]  ;;  %v10170_v12 = vcombine.low %v101_v61, %v105_v62 }
  0x25   :  { %7636 = vmatprep.subr.bf16.mxu0 %v10147_v39  ;;  %8046 = vmatprep.subr.bf16.mxu1 %v10149_v40  ;;  %v113_v8 = vld [vmem:[%s15883_s1 + $0x220] sm:$0xff]  ;;  %v10181_v15 = vcombine.high %v110_v10, %v114_v11  ;;  %v118_v18 = vld [vmem:[%s15883_s1 + $0x248] sm:$0xff]  ;;  %v10180_v21 = vcombine.low %v110_v10, %v114_v11 }
  0x26   :  { %v12016_v9 = vrot.slane %v1333_v3, %v11978_v53  ;;  %v10179_v14 = vcombine.high %v109_v7, %v113_v8  ;;  %v117_v16 = vld [vmem:[%s15883_s1 + $0x240] sm:$0xff]  ;;  %v122_v19 = vld [vmem:[%s15883_s1 + $0x268] sm:$0xff]  ;;  %v10178_v20 = vcombine.low %v109_v7, %v113_v8 }
  0x27   :  { %v121_v17 = vld [vmem:[%s15883_s1 + $0x260] sm:$0xff]  ;;  %v10189_v23 = vcombine.high %v118_v18, %v122_v19  ;;  %v126_v26 = vld [vmem:[%s15883_s1 + $0x288] sm:$0xff]  ;;  %v10188_v29 = vcombine.low %v118_v18, %v122_v19 }
  0x28   :  { %7637 = vmatpush1.bf16.msra.mxu0 %v10146_v47  ;;  %8047 = vmatpush1.bf16.msra.mxu1 %v10148_v48  ;;  %v10187_v22 = vcombine.high %v117_v16, %v121_v17  ;;  %v125_v24 = vld [vmem:[%s15883_s1 + $0x280] sm:$0xff]  ;;  %v130_v27 = vld [vmem:[%s15883_s1 + $0x2a8] sm:$0xff]  ;;  %v10186_v28 = vcombine.low %v117_v16, %v121_v17 }
  0x29   :  { %7638 = vmatprep.subr.bf16.mxu0 %v10155_v49  ;;  %8048 = vmatprep.subr.bf16.mxu1 %v10157_v50  ;;  %v129_v25 = vld [vmem:[%s15883_s1 + $0x2a0] sm:$0xff]  ;;  %v10197_v31 = vcombine.high %v126_v26, %v130_v27  ;;  %v134_v34 = vld [vmem:[%s15883_s1 + $0x2c8] sm:$0xff]  ;;  %v10196_v37 = vcombine.low %v126_v26, %v130_v27 }
  0x2a   :  { %7660 = vmatprep.mubr.bf16.mxu0 %v12016_v9  ;;  %8070 = vmatprep.mubr.bf16.mxu1 %v12016_v9  ;;  %v10195_v30 = vcombine.high %v125_v24, %v129_v25  ;;  %v133_v32 = vld [vmem:[%s15883_s1 + $0x2c0] sm:$0xff]  ;;  %v138_v35 = vld [vmem:[%s15883_s1 + $0x2e8] sm:$0xff]  ;;  %v10194_v36 = vcombine.low %v125_v24, %v129_v25 }
  0x2b   :  { %v137_v33 = vld [vmem:[%s15883_s1 + $0x2e0] sm:$0xff]  ;;  %v10205_v39 = vcombine.high %v134_v34, %v138_v35  ;;  %v142_v42 = vld [vmem:[%s15883_s1 + $0x308] sm:$0xff]  ;;  %v10204_v46 = vcombine.low %v134_v34, %v138_v35 }
  0x2c   :  { %7639 = vmatpush1.bf16.msra.mxu0 %v10154_v56  ;;  %8049 = vmatpush1.bf16.msra.mxu1 %v10156_v57  ;;  %v10203_v38 = vcombine.high %v133_v32, %v137_v33  ;;  %v141_v40 = vld [vmem:[%s15883_s1 + $0x300] sm:$0xff]  ;;  %v146_v44 = vld [vmem:[%s15883_s1 + $0x328] sm:$0xff]  ;;  %v10202_v45 = vcombine.low %v133_v32, %v137_v33  ;;  %v12152_v33 = vcombine.high %v12016_v9, %v12016_v9 }
  0x2d   :  { %7640 = vmatprep.subr.bf16.mxu0 %v10163_v58  ;;  %8050 = vmatprep.subr.bf16.mxu1 %v10165_v60  ;;  %v145_v41 = vld [vmem:[%s15883_s1 + $0x320] sm:$0xff]  ;;  %v10213_v48 = vcombine.high %v142_v42, %v146_v44  ;;  %v150_v51 = vld [vmem:[%s15883_s1 + $0x348] sm:$0xff]  ;;  %v10212_v55 = vcombine.low %v142_v42, %v146_v44 }
  0x2e   :  { %v10211_v47 = vcombine.high %v141_v40, %v145_v41  ;;  %v149_v49 = vld [vmem:[%s15883_s1 + $0x340] sm:$0xff]  ;;  %v154_v52 = vld [vmem:[%s15883_s1 + $0x368] sm:$0xff]  ;;  %v10210_v54 = vcombine.low %v141_v40, %v145_v41 }
  0x2f   :  { %v153_v50 = vld [vmem:[%s15883_s1 + $0x360] sm:$0xff]  ;;  %v10221_v57 = vcombine.high %v150_v51, %v154_v52  ;;  %v158_v61 = vld [vmem:[%s15883_s1 + $0x388] sm:$0xff]  ;;  %v10220_v1 = vcombine.low %v150_v51, %v154_v52 }
  0x30   :  { %7641 = vmatpush1.bf16.msra.mxu0 %v10162_v2  ;;  %8051 = vmatpush1.bf16.msra.mxu1 %v10164_v4  ;;  %v10219_v56 = vcombine.high %v149_v49, %v153_v50  ;;  %v157_v58 = vld [vmem:[%s15883_s1 + $0x380] sm:$0xff]  ;;  %v162_v62 = vld [vmem:[%s15883_s1 + $0x3a8] sm:$0xff]  ;;  %v10218_v0 = vcombine.low %v149_v49, %v153_v50 }
  0x31   :  { %7642 = vmatprep.subr.bf16.mxu0 %v10171_v5  ;;  %8052 = vmatprep.subr.bf16.mxu1 %v10173_v6  ;;  %v161_v60 = vld [vmem:[%s15883_s1 + $0x3a0] sm:$0xff]  ;;  %v10229_v3 = vcombine.high %v158_v61, %v162_v62  ;;  %v166_v6 = vld [vmem:[%s15883_s1 + $0x3c8] sm:$0xff]  ;;  %v10228_v10 = vcombine.low %v158_v61, %v162_v62 }
  0x32   :  { %v10227_v2 = vcombine.high %v157_v58, %v161_v60  ;;  %v165_v4 = vld [vmem:[%s15883_s1 + $0x3c0] sm:$0xff]  ;;  %v170_v7 = vld [vmem:[%s15883_s1 + $0x3e8] sm:$0xff]  ;;  %v10226_v8 = vcombine.low %v157_v58, %v161_v60 }
  0x33   :  { %v169_v5 = vld [vmem:[%s15883_s1 + $0x3e0] sm:$0xff]  ;;  %v178_v16 = vld [vmem:[%s15883_s1 + $0x428] sm:$0xff]  ;;  %v10236_v18 = vcombine.low %v166_v6, %v170_v7 }
  0x34   :  { %7643 = vmatpush1.bf16.msra.mxu0 %v10170_v12  ;;  %8053 = vmatpush1.bf16.msra.mxu1 %v10172_v13  ;;  %v10235_v11 = vcombine.high %v165_v4, %v169_v5  ;;  %v10237_v12 = vcombine.high %v166_v6, %v170_v7  ;;  %v173_v13 = vld [vmem:[%s15883_s1 + $0x400] sm:$0xff]  ;;  %v10234_v17 = vcombine.low %v165_v4, %v169_v5  ;;  %v182_v24 = vld [vmem:[%s15883_s1 + $0x448] sm:$0xff] }
  0x35   :  { %7644 = vmatprep.subr.bf16.mxu0 %v10179_v14  ;;  %8054 = vmatprep.subr.bf16.mxu1 %v10181_v15  ;;  %v177_v14 = vld [vmem:[%s15883_s1 + $0x420] sm:$0xff]  ;;  %v174_v15 = vld [vmem:[%s15883_s1 + $0x408] sm:$0xff] }
  0x36   :  { %v10243_v19 = vcombine.high %v173_v13, %v177_v14  ;;  %v186_v25 = vld [vmem:[%s15883_s1 + $0x468] sm:$0xff]  ;;  %v10242_v26 = vcombine.low %v173_v13, %v177_v14  ;;  %v10244_v27 = vcombine.low %v174_v15, %v178_v16 }
  0x37   :  { %v194_v32 = vld [vmem:[%s15883_s1 + $0x4a8] sm:$0xff]  ;;  %v10252_v35 = vcombine.low %v182_v24, %v186_v25 }
  0x38   :  { %7645 = vmatpush1.bf16.msra.mxu0 %v10178_v20  ;;  %8055 = vmatpush1.bf16.msra.mxu1 %v10180_v21  ;;  %v10245_v20 = vcombine.high %v174_v15, %v178_v16  ;;  %v181_v21 = vld [vmem:[%s15883_s1 + $0x440] sm:$0xff]  ;;  %v202_v41 = vld [vmem:[%s15883_s1 + $0x4e8] sm:$0xff] }
  0x39   :  { %7646 = vmatprep.subr.bf16.mxu0 %v10187_v22  ;;  %8056 = vmatprep.subr.bf16.mxu1 %v10189_v23  ;;  %v185_v22 = vld [vmem:[%s15883_s1 + $0x460] sm:$0xff]  ;;  %v12130_v23 = vrot.slane %v11999_v63, %v11978_v53  ;;  %v210_v50 = vld [vmem:[%s15883_s1 + $0x528] sm:$0xff] }
  0x3a   :  { %v193_v63 = vld [vmem:[%s15883_s1 + $0x4a0] sm:$0xff]  ;;  %v10250_v34 = vcombine.low %v181_v21, %v185_v22  ;;  %v218_v60 = vld [vmem:[%s15883_s1 + $0x568] sm:$0xff] }
  0x3b   :  { %v226_v5 = vld [vmem:[%s15883_s1 + $0x5a8] sm:$0xff] }
  0x3c   :  { %7647 = vmatpush1.bf16.msra.mxu0 %v10186_v28  ;;  %8057 = vmatpush1.bf16.msra.mxu1 %v10188_v29  ;;  %v10251_v28 = vcombine.high %v181_v21, %v185_v22  ;;  %v189_v29 = vld [vmem:[%s15883_s1 + $0x480] sm:$0xff]  ;;  %v234_v14 = vld [vmem:[%s15883_s1 + $0x5e8] sm:$0xff] }
  0x3d   :  { %7648 = vmatprep.subr.bf16.mxu0 %v10195_v30  ;;  %8058 = vmatprep.subr.bf16.mxu1 %v10197_v31  ;;  %v190_v30 = vld [vmem:[%s15883_s1 + $0x488] sm:$0xff]  ;;  %v10253_v31 = vcombine.high %v182_v24, %v186_v25  ;;  %v10258_v42 = vcombine.low %v189_v29, %v193_v63 }
  0x3e   :  { %v10261_v40 = vcombine.high %v190_v30, %v194_v32  ;;  %v10260_v44 = vcombine.low %v190_v30, %v194_v32  ;;  %v242_v22 = vld [vmem:[%s15883_s1 + $0x628] sm:$0xff] }
  0x3f   :  { %v250_v30 = vld [vmem:[%s15883_s1 + $0x668] sm:$0xff] }
  0x40   :  { %7649 = vmatpush1.bf16.msra.mxu0 %v10194_v36  ;;  %8059 = vmatpush1.bf16.msra.mxu1 %v10196_v37  ;;  %v10259_v36 = vcombine.high %v189_v29, %v193_v63  ;;  %v197_v37 = vld [vmem:[%s15883_s1 + $0x4c0] sm:$0xff]  ;;  %v246_v29 = vld [vmem:[%s15883_s1 + $0x648] sm:$0xff] }
  0x41   :  { %7650 = vmatprep.subr.bf16.mxu0 %v10203_v38  ;;  %8060 = vmatprep.subr.bf16.mxu1 %v10205_v39  ;;  %v201_v38 = vld [vmem:[%s15883_s1 + $0x4e0] sm:$0xff]  ;;  %v198_v39 = vld [vmem:[%s15883_s1 + $0x4c8] sm:$0xff] }
  0x42   :  { %v10269_v49 = vcombine.high %v198_v39, %v202_v41  ;;  %v10266_v51 = vcombine.low %v197_v37, %v201_v38  ;;  %v10268_v52 = vcombine.low %v198_v39, %v202_v41  ;;  %v258_v39 = vld [vmem:[%s15883_s1 + $0x6a8] sm:$0xff]  ;;  %v10316_v41 = vcombine.low %v246_v29, %v250_v30 }
  0x44   :  { %7651 = vmatpush1.bf16.msra.mxu0 %v10202_v45  ;;  %8061 = vmatpush1.bf16.msra.mxu1 %v10204_v46  ;;  %v10267_v45 = vcombine.high %v197_v37, %v201_v38  ;;  %v205_v46 = vld [vmem:[%s15883_s1 + $0x500] sm:$0xff]  ;;  %v254_v37 = vld [vmem:[%s15883_s1 + $0x688] sm:$0xff]  ;;  %v10317_v38 = vcombine.high %v246_v29, %v250_v30 }
  0x45   :  { %7652 = vmatprep.subr.bf16.mxu0 %v10211_v47  ;;  %8062 = vmatprep.subr.bf16.mxu1 %v10213_v48  ;;  %v209_v47 = vld [vmem:[%s15883_s1 + $0x520] sm:$0xff]  ;;  %v206_v48 = vld [vmem:[%s15883_s1 + $0x508] sm:$0xff] }
  0x46   :  { %v10277_v58 = vcombine.high %v206_v48, %v210_v50  ;;  %v10274_v61 = vcombine.low %v205_v46, %v209_v47  ;;  %v10276_v62 = vcombine.low %v206_v48, %v210_v50  ;;  %v266_v48 = vld [vmem:[%s15883_s1 + $0x6e8] sm:$0xff]  ;;  %v10324_v50 = vcombine.low %v254_v37, %v258_v39 }
  0x47   :  { %v306_v29 = vld [vmem:[%s15883_s1 + $0x828] sm:$0xff] }
  0x48   :  { %7653 = vmatpush1.bf16.msra.mxu0 %v10210_v54  ;;  %8063 = vmatpush1.bf16.msra.mxu1 %v10212_v55  ;;  %v10275_v54 = vcombine.high %v205_v46, %v209_v47  ;;  %v213_v55 = vld [vmem:[%s15883_s1 + $0x540] sm:$0xff]  ;;  %v262_v46 = vld [vmem:[%s15883_s1 + $0x6c8] sm:$0xff]  ;;  %v10325_v47 = vcombine.high %v254_v37, %v258_v39 }
  0x49   :  { %7654 = vmatprep.subr.bf16.mxu0 %v10219_v56  ;;  %8064 = vmatprep.subr.bf16.mxu1 %v10221_v57  ;;  %v217_v56 = vld [vmem:[%s15883_s1 + $0x560] sm:$0xff]  ;;  %v214_v57 = vld [vmem:[%s15883_s1 + $0x548] sm:$0xff] }
  0x4a   :  { %v10285_v4 = vcombine.high %v214_v57, %v218_v60  ;;  %v10282_v6 = vcombine.low %v213_v55, %v217_v56  ;;  %v10284_v7 = vcombine.low %v214_v57, %v218_v60  ;;  %v274_v57 = vld [vmem:[%s15883_s1 + $0x728] sm:$0xff]  ;;  %v10332_v60 = vcombine.low %v262_v46, %v266_v48 }
  0x4c   :  { %7655 = vmatpush1.bf16.msra.mxu0 %v10218_v0  ;;  %8065 = vmatpush1.bf16.msra.mxu1 %v10220_v1  ;;  %v10283_v0 = vcombine.high %v213_v55, %v217_v56  ;;  %v221_v1 = vld [vmem:[%s15883_s1 + $0x580] sm:$0xff]  ;;  %v270_v55 = vld [vmem:[%s15883_s1 + $0x708] sm:$0xff]  ;;  %v10333_v56 = vcombine.high %v262_v46, %v266_v48 }
  0x4d   :  { %7656 = vmatprep.subr.bf16.mxu0 %v10227_v2  ;;  %8066 = vmatprep.subr.bf16.mxu1 %v10229_v3  ;;  %v225_v2 = vld [vmem:[%s15883_s1 + $0x5a0] sm:$0xff]  ;;  %v222_v3 = vld [vmem:[%s15883_s1 + $0x588] sm:$0xff] }
  0x4e   :  { %v10293_v13 = vcombine.high %v222_v3, %v226_v5  ;;  %v10290_v15 = vcombine.low %v221_v1, %v225_v2  ;;  %v10292_v16 = vcombine.low %v222_v3, %v226_v5  ;;  %v282_v3 = vld [vmem:[%s15883_s1 + $0x768] sm:$0xff]  ;;  %v10340_v5 = vcombine.low %v270_v55, %v274_v57  ;;  %v321_v46 = vld [vmem:[%s15883_s1 + $0x8a0] sm:$0xff] }
  0x50   :  { %7657 = vmatpush1.bf16.msra.mxu0 %v10226_v8  ;;  %8067 = vmatpush1.bf16.msra.mxu1 %v10228_v10  ;;  %v10291_v8 = vcombine.high %v221_v1, %v225_v2  ;;  %v229_v10 = vld [vmem:[%s15883_s1 + $0x5c0] sm:$0xff]  ;;  %v278_v1 = vld [vmem:[%s15883_s1 + $0x748] sm:$0xff]  ;;  %v10341_v2 = vcombine.high %v270_v55, %v274_v57 }
  0x51   :  { %7658 = vmatprep.subr.bf16.mxu0 %v10235_v11  ;;  %8068 = vmatprep.subr.bf16.mxu1 %v10237_v12  ;;  %v233_v11 = vld [vmem:[%s15883_s1 + $0x5e0] sm:$0xff]  ;;  %v230_v12 = vld [vmem:[%s15883_s1 + $0x5c8] sm:$0xff] }
  0x52   :  { %v10301_v21 = vcombine.high %v230_v12, %v234_v14  ;;  %v10298_v24 = vcombine.low %v229_v10, %v233_v11  ;;  %v10300_v25 = vcombine.low %v230_v12, %v234_v14  ;;  %v290_v12 = vld [vmem:[%s15883_s1 + $0x7a8] sm:$0xff]  ;;  %v10348_v14 = vcombine.low %v278_v1, %v282_v3  ;;  %v325_v55 = vld [vmem:[%s15883_s1 + $0x8c0] sm:$0xff] }
  0x53   :  { %v326_v57 = vld [vmem:[%s15883_s1 + $0x8c8] sm:$0xff] }
  0x54   :  { %7659 = vmatpush1.bf16.msra.mxu0 %v10234_v17  ;;  %8069 = vmatpush1.bf16.msra.mxu1 %v10236_v18  ;;  %v10299_v17 = vcombine.high %v229_v10, %v233_v11  ;;  %v237_v18 = vld [vmem:[%s15883_s1 + $0x600] sm:$0xff]  ;;  %v286_v10 = vld [vmem:[%s15883_s1 + $0x788] sm:$0xff]  ;;  %v10349_v11 = vcombine.high %v278_v1, %v282_v3 }
  0x55   :  { %7669 = vmatprep.subr.bf16.mxu0 %v10243_v19  ;;  %8079 = vmatprep.subr.bf16.mxu1 %v10245_v20  ;;  %v241_v19 = vld [vmem:[%s15883_s1 + $0x620] sm:$0xff]  ;;  %v238_v20 = vld [vmem:[%s15883_s1 + $0x608] sm:$0xff] }
  0x56   :  { %v10309_v63 = vcombine.high %v238_v20, %v242_v22  ;;  %v10308_v32 = vcombine.low %v238_v20, %v242_v22  ;;  %v298_v20 = vld [vmem:[%s15883_s1 + $0x7e8] sm:$0xff]  ;;  %v337_v3 = vld [vmem:[%s15883_s1 + $0x920] sm:$0xff] }
  0x57   :  { %7661 = vmatmul.mubr.bf16.vlgmr.msra.gmra.mrb[0].mxu0 %v12130_v23  ;;  %8071 = vmatmul.mubr.bf16.vlgmr.msra.gmra.mrb[0].mxu1 %v12130_v23 }
  0x58   :  { %7670 = vmatpush1.bf16.msra.mxu0 %v10242_v26  ;;  %8080 = vmatpush1.bf16.msra.mxu1 %v10244_v27  ;;  %v10307_v26 = vcombine.high %v237_v18, %v241_v19  ;;  %v245_v27 = vld [vmem:[%s15883_s1 + $0x640] sm:$0xff] }
  0x59   :  { %7671 = vmatprep.subr.bf16.mxu0 %v10251_v28  ;;  %8081 = vmatprep.subr.bf16.mxu1 %v10253_v31  ;;  %v249_v28 = vld [vmem:[%s15883_s1 + $0x660] sm:$0xff]  ;;  %v10306_v31 = vcombine.low %v237_v18, %v241_v19  ;;  %v294_v18 = vld [vmem:[%s15883_s1 + $0x7c8] sm:$0xff]  ;;  %v10357_v19 = vcombine.high %v286_v10, %v290_v12 }
  0x5a   :  { %7701 = vmatprep.mubr.bf16.mxu0 %v12152_v33  ;;  %8111 = vmatprep.mubr.bf16.mxu1 %v12152_v33 }
  0x5c   :  { %7672 = vmatpush1.bf16.msra.mxu0 %v10250_v34  ;;  %8082 = vmatpush1.bf16.msra.mxu1 %v10252_v35  ;;  %v10315_v34 = vcombine.high %v245_v27, %v249_v28  ;;  %v253_v35 = vld [vmem:[%s15883_s1 + $0x680] sm:$0xff] }
  0x5d   :  { %7673 = vmatprep.subr.bf16.mxu0 %v10259_v36  ;;  %8083 = vmatprep.subr.bf16.mxu1 %v10261_v40  ;;  %v257_v36 = vld [vmem:[%s15883_s1 + $0x6a0] sm:$0xff]  ;;  %v10314_v40 = vcombine.low %v245_v27, %v249_v28  ;;  %v302_v28 = vld [vmem:[%s15883_s1 + $0x808] sm:$0xff] }
  0x5e   :  { %v305_v27 = vld [vmem:[%s15883_s1 + $0x820] sm:$0xff]  ;;  %v10373_v37 = vcombine.high %v302_v28, %v306_v29 }
  0x60   :  { %7674 = vmatpush1.bf16.msra.mxu0 %v10258_v42  ;;  %8084 = vmatpush1.bf16.msra.mxu1 %v10260_v44  ;;  %v10323_v42 = vcombine.high %v253_v35, %v257_v36  ;;  %v261_v44 = vld [vmem:[%s15883_s1 + $0x6c0] sm:$0xff] }
  0x61   :  { %7675 = vmatprep.subr.bf16.mxu0 %v10267_v45  ;;  %8085 = vmatprep.subr.bf16.mxu1 %v10269_v49  ;;  %v265_v45 = vld [vmem:[%s15883_s1 + $0x6e0] sm:$0xff]  ;;  %v10322_v49 = vcombine.low %v253_v35, %v257_v36  ;;  %v310_v36 = vld [vmem:[%s15883_s1 + $0x848] sm:$0xff] }
  0x62   :  { %v313_v35 = vld [vmem:[%s15883_s1 + $0x860] sm:$0xff] }
  0x64   :  { %7676 = vmatpush1.bf16.msra.mxu0 %v10266_v51  ;;  %8086 = vmatpush1.bf16.msra.mxu1 %v10268_v52  ;;  %v10331_v51 = vcombine.high %v261_v44, %v265_v45  ;;  %v269_v52 = vld [vmem:[%s15883_s1 + $0x700] sm:$0xff] }
  0x65   :  { %7677 = vmatprep.subr.bf16.mxu0 %v10275_v54  ;;  %8087 = vmatprep.subr.bf16.mxu1 %v10277_v58  ;;  %v273_v54 = vld [vmem:[%s15883_s1 + $0x720] sm:$0xff]  ;;  %v10330_v58 = vcombine.low %v261_v44, %v265_v45 }
  0x66   :  { %v317_v45 = vld [vmem:[%s15883_s1 + $0x880] sm:$0xff] }
  0x68   :  { %7678 = vmatpush1.bf16.msra.mxu0 %v10274_v61  ;;  %8088 = vmatpush1.bf16.msra.mxu1 %v10276_v62  ;;  %v10339_v61 = vcombine.high %v269_v52, %v273_v54  ;;  %v277_v62 = vld [vmem:[%s15883_s1 + $0x740] sm:$0xff] }
  0x69   :  { %7679 = vmatprep.subr.bf16.mxu0 %v10283_v0  ;;  %8089 = vmatprep.subr.bf16.mxu1 %v10285_v4  ;;  %v281_v0 = vld [vmem:[%s15883_s1 + $0x760] sm:$0xff]  ;;  %v10338_v4 = vcombine.low %v269_v52, %v273_v54  ;;  %v10387_v54 = vcombine.high %v317_v45, %v321_v46 }
  0x6c   :  { %7680 = vmatpush1.bf16.msra.mxu0 %v10282_v6  ;;  %8090 = vmatpush1.bf16.msra.mxu1 %v10284_v7  ;;  %v10347_v6 = vcombine.high %v277_v62, %v281_v0  ;;  %v285_v7 = vld [vmem:[%s15883_s1 + $0x780] sm:$0xff] }
  0x6d   :  { %7681 = vmatprep.subr.bf16.mxu0 %v10291_v8  ;;  %8091 = vmatprep.subr.bf16.mxu1 %v10293_v13  ;;  %v289_v8 = vld [vmem:[%s15883_s1 + $0x7a0] sm:$0xff]  ;;  %v10346_v13 = vcombine.low %v277_v62, %v281_v0 }
  0x6e   :  { %v10354_v22 = vcombine.low %v285_v7, %v289_v8 }
  0x70   :  { %7682 = vmatpush1.bf16.msra.mxu0 %v10290_v15  ;;  %8092 = vmatpush1.bf16.msra.mxu1 %v10292_v16  ;;  %v10355_v15 = vcombine.high %v285_v7, %v289_v8  ;;  %v293_v16 = vld [vmem:[%s15883_s1 + $0x7c0] sm:$0xff] }
  0x71   :  { %7683 = vmatprep.subr.bf16.mxu0 %v10299_v17  ;;  %8093 = vmatprep.subr.bf16.mxu1 %v10301_v21  ;;  %v297_v17 = vld [vmem:[%s15883_s1 + $0x7e0] sm:$0xff]  ;;  %v1318_v21 = vcombine.high %v11989_v59, %v11989_v59  ;;  %v10365_v59 = vcombine.high %v294_v18, %v298_v20 }
  0x72   :  { %v10362_v30 = vcombine.low %v293_v16, %v297_v17 }
  0x74   :  { %7684 = vmatpush1.bf16.msra.mxu0 %v10298_v24  ;;  %8094 = vmatpush1.bf16.msra.mxu1 %v10300_v25  ;;  %v10356_v24 = vcombine.low %v286_v10, %v290_v12  ;;  %v10363_v25 = vcombine.high %v293_v16, %v297_v17  ;;  %v345_v12 = vld [vmem:[%s15883_s1 + $0x960] sm:$0xff] }
  0x75   :  { %7685 = vmatprep.subr.bf16.mxu0 %v10307_v26  ;;  %8095 = vmatprep.subr.bf16.mxu1 %v10309_v63  ;;  %v301_v26 = vld [vmem:[%s15883_s1 + $0x800] sm:$0xff]  ;;  %v12329_v63 = vrot.slane %v1318_v21, %v11978_v53  ;;  %v350_v21 = vld [vmem:[%s15883_s1 + $0x988] sm:$0xff] }
  0x77   :  { %v1334_v39 = vcombine.high %v12329_v63, %v12329_v63 }
  0x78   :  { %7686 = vmatpush1.bf16.msra.mxu0 %v10306_v31  ;;  %8096 = vmatpush1.bf16.msra.mxu1 %v10308_v32  ;;  %v10364_v31 = vcombine.low %v294_v18, %v298_v20  ;;  %v10371_v32 = vcombine.high %v301_v26, %v305_v27  ;;  %v353_v20 = vld [vmem:[%s15883_s1 + $0x9a0] sm:$0xff] }
  0x79   :  { %7687 = vmatprep.subr.bf16.mxu0 %v10315_v34  ;;  %8097 = vmatprep.subr.bf16.mxu1 %v10317_v38  ;;  %v309_v34 = vld [vmem:[%s15883_s1 + $0x840] sm:$0xff]  ;;  %v314_v38 = vld [vmem:[%s15883_s1 + $0x868] sm:$0xff] }
  0x7a   :  { %v10379_v44 = vcombine.high %v309_v34, %v313_v35  ;;  %v10381_v48 = vcombine.high %v310_v36, %v314_v38  ;;  %v10380_v52 = vcombine.low %v310_v36, %v314_v38  ;;  %v365_v36 = vld [vmem:[%s15883_s1 + $0xa00] sm:$0xff]  ;;  %v366_v38 = vld [vmem:[%s15883_s1 + $0xa08] sm:$0xff] }
  0x7c   :  { %7688 = vmatpush1.bf16.msra.mxu0 %v10314_v40  ;;  %8098 = vmatpush1.bf16.msra.mxu1 %v10316_v41  ;;  %v12347_v40 = vcombine.high %v12130_v23, %v12130_v23  ;;  %v10370_v41 = vcombine.low %v301_v26, %v305_v27 }
  0x7d   :  { %7689 = vmatprep.subr.bf16.mxu0 %v10323_v42  ;;  %8099 = vmatprep.subr.bf16.mxu1 %v10325_v47  ;;  %v10372_v42 = vcombine.low %v302_v28, %v306_v29  ;;  %v318_v47 = vld [vmem:[%s15883_s1 + $0x888] sm:$0xff]  ;;  %v357_v28 = vld [vmem:[%s15883_s1 + $0x9c0] sm:$0xff] }
  0x7e   :  { %v358_v29 = vld [vmem:[%s15883_s1 + $0x9c8] sm:$0xff] }
  0x80   :  { %7690 = vmatpush1.bf16.msra.mxu0 %v10322_v49  ;;  %8100 = vmatpush1.bf16.msra.mxu1 %v10324_v50  ;;  %v322_v49 = vld [vmem:[%s15883_s1 + $0x8a8] sm:$0xff]  ;;  %v12362_v50 = vrot.slane %v1334_v39, %v11978_v53 }
  0x81   :  { %7691 = vmatprep.subr.bf16.mxu0 %v10331_v51  ;;  %8101 = vmatprep.subr.bf16.mxu1 %v10333_v56  ;;  %v10378_v51 = vcombine.low %v309_v34, %v313_v35  ;;  %v329_v56 = vld [vmem:[%s15883_s1 + $0x8e0] sm:$0xff]  ;;  %v10388_v62 = vcombine.low %v318_v47, %v322_v49  ;;  %v370_v39 = vld [vmem:[%s15883_s1 + $0xa28] sm:$0xff] }
  0x82   :  { %v10395_v0 = vcombine.high %v325_v55, %v329_v56 }
  0x84   :  { %7692 = vmatpush1.bf16.msra.mxu0 %v10330_v58  ;;  %8102 = vmatpush1.bf16.msra.mxu1 %v10332_v60  ;;  %v10389_v58 = vcombine.high %v318_v47, %v322_v49  ;;  %v330_v60 = vld [vmem:[%s15883_s1 + $0x8e8] sm:$0xff]  ;;  %v377_v47 = vld [vmem:[%s15883_s1 + $0xa60] sm:$0xff] }
  0x85   :  { %7693 = vmatprep.subr.bf16.mxu0 %v10339_v61  ;;  %8103 = vmatprep.subr.bf16.mxu1 %v10341_v2  ;;  %v10386_v61 = vcombine.low %v317_v45, %v321_v46  ;;  %v10397_v1 = vcombine.high %v326_v57, %v330_v60  ;;  %v333_v2 = vld [vmem:[%s15883_s1 + $0x900] sm:$0xff]  ;;  %v10396_v7 = vcombine.low %v326_v57, %v330_v60  ;;  %v378_v49 = vld [vmem:[%s15883_s1 + $0xa68] sm:$0xff] }
  0x86   :  { %v10403_v8 = vcombine.high %v333_v2, %v337_v3  ;;  %v10437_v45 = vcombine.high %v366_v38, %v370_v39  ;;  %v373_v46 = vld [vmem:[%s15883_s1 + $0xa40] sm:$0xff]  ;;  %v386_v60 = vld [vmem:[%s15883_s1 + $0xaa8] sm:$0xff] }
  0x87   :  { %v385_v57 = vld [vmem:[%s15883_s1 + $0xaa0] sm:$0xff] }
  0x88   :  { %7694 = vmatpush1.bf16.msra.mxu0 %v10338_v4  ;;  %8104 = vmatpush1.bf16.msra.mxu1 %v10340_v5  ;;  %v334_v4 = vld [vmem:[%s15883_s1 + $0x908] sm:$0xff] }
  0x89   :  { %7695 = vmatprep.subr.bf16.mxu0 %v10347_v6  ;;  %8105 = vmatprep.subr.bf16.mxu1 %v10349_v11  ;;  %v338_v5 = vld [vmem:[%s15883_s1 + $0x928] sm:$0xff]  ;;  %v10394_v6 = vcombine.low %v325_v55, %v329_v56  ;;  %v341_v11 = vld [vmem:[%s15883_s1 + $0x940] sm:$0xff] }
  0x8a   :  { %v10405_v10 = vcombine.high %v334_v4, %v338_v5  ;;  %v10404_v16 = vcombine.low %v334_v4, %v338_v5  ;;  %v10411_v17 = vcombine.high %v341_v11, %v345_v12  ;;  %v381_v56 = vld [vmem:[%s15883_s1 + $0xa80] sm:$0xff]  ;;  %v390_v4 = vld [vmem:[%s15883_s1 + $0xac8] sm:$0xff] }
  0x8b   :  { %v394_v5 = vld [vmem:[%s15883_s1 + $0xae8] sm:$0xff] }
  0x8c   :  { %7696 = vmatpush1.bf16.msra.mxu0 %v10346_v13  ;;  %8106 = vmatpush1.bf16.msra.mxu1 %v10348_v14  ;;  %v342_v13 = vld [vmem:[%s15883_s1 + $0x948] sm:$0xff] }
  0x8d   :  { %7697 = vmatprep.subr.bf16.mxu0 %v10355_v15  ;;  %8107 = vmatprep.subr.bf16.mxu1 %v10357_v19  ;;  %v346_v14 = vld [vmem:[%s15883_s1 + $0x968] sm:$0xff]  ;;  %v10402_v15 = vcombine.low %v333_v2, %v337_v3  ;;  %v349_v19 = vld [vmem:[%s15883_s1 + $0x980] sm:$0xff] }
  0x8e   :  { %v10413_v18 = vcombine.high %v342_v13, %v346_v14  ;;  %v10419_v26 = vcombine.high %v349_v19, %v353_v20  ;;  %v389_v2 = vld [vmem:[%s15883_s1 + $0xac0] sm:$0xff] }
  0x8f   :  { %v393_v3 = vld [vmem:[%s15883_s1 + $0xae0] sm:$0xff] }
  0x90   :  { %7698 = vmatpush1.bf16.msra.mxu0 %v10354_v22  ;;  %8108 = vmatpush1.bf16.msra.mxu1 %v10356_v24  ;;  %v354_v22 = vld [vmem:[%s15883_s1 + $0x9a8] sm:$0xff]  ;;  %v10410_v24 = vcombine.low %v341_v11, %v345_v12  ;;  %v397_v11 = vld [vmem:[%s15883_s1 + $0xb00] sm:$0xff] }
  0x91   :  { %7699 = vmatprep.subr.bf16.mxu0 %v10363_v25  ;;  %8109 = vmatprep.subr.bf16.mxu1 %v10365_v59  ;;  %v10412_v25 = vcombine.low %v342_v13, %v346_v14  ;;  %v10421_v27 = vcombine.high %v350_v21, %v354_v22  ;;  %v361_v59 = vld [vmem:[%s15883_s1 + $0x9e0] sm:$0xff]  ;;  %v398_v13 = vld [vmem:[%s15883_s1 + $0xb08] sm:$0xff] }
  0x92   :  { %v10427_v34 = vcombine.high %v357_v28, %v361_v59  ;;  %v401_v12 = vld [vmem:[%s15883_s1 + $0xb20] sm:$0xff]  ;;  %v402_v14 = vld [vmem:[%s15883_s1 + $0xb28] sm:$0xff] }
  0x94   :  { %7700 = vmatpush1.bf16.msra.mxu0 %v10362_v30  ;;  %8110 = vmatpush1.bf16.msra.mxu1 %v10364_v31  ;;  %v362_v30 = vld [vmem:[%s15883_s1 + $0x9e8] sm:$0xff]  ;;  %v10418_v31 = vcombine.low %v349_v19, %v353_v20  ;;  %v405_v19 = vld [vmem:[%s15883_s1 + $0xb40] sm:$0xff] }
  0x95   :  { %7710 = vmatprep.subr.bf16.mxu0 %v10371_v32  ;;  %8120 = vmatprep.subr.bf16.mxu1 %v10373_v37  ;;  %v10420_v32 = vcombine.low %v350_v21, %v354_v22  ;;  %v10429_v35 = vcombine.high %v358_v29, %v362_v30  ;;  %v369_v37 = vld [vmem:[%s15883_s1 + $0xa20] sm:$0xff]  ;;  %v406_v21 = vld [vmem:[%s15883_s1 + $0xb48] sm:$0xff] }
  0x96   :  { %v409_v20 = vld [vmem:[%s15883_s1 + $0xb60] sm:$0xff]  ;;  %v410_v22 = vld [vmem:[%s15883_s1 + $0xb68] sm:$0xff] }
  0x97   :  { %7702 = vmatmul.mubr.bf16.vlgmr.msra.gmra.mrb[0].mxu0 %v12347_v40  ;;  %8112 = vmatmul.mubr.bf16.vlgmr.msra.gmra.mrb[0].mxu1 %v12347_v40 }
  0x98   :  { %7711 = vmatpush1.bf16.msra.mxu0 %v10370_v41  ;;  %8121 = vmatpush1.bf16.msra.mxu1 %v10372_v42  ;;  %v10426_v41 = vcombine.low %v357_v28, %v361_v59  ;;  %v10428_v42 = vcombine.low %v358_v29, %v362_v30  ;;  %v413_v28 = vld [vmem:[%s15883_s1 + $0xb80] sm:$0xff]  ;;  %v414_v29 = vld [vmem:[%s15883_s1 + $0xb88] sm:$0xff] }
  0x99   :  { %7712 = vmatprep.subr.bf16.mxu0 %v10379_v44  ;;  %8122 = vmatprep.subr.bf16.mxu1 %v10381_v48  ;;  %v10435_v44 = vcombine.high %v365_v36, %v369_v37  ;;  %v374_v48 = vld [vmem:[%s15883_s1 + $0xa48] sm:$0xff]  ;;  %v417_v59 = vld [vmem:[%s15883_s1 + $0xba0] sm:$0xff] }
  0x9a   :  { %7742 = vmatprep.mubr.bf16.mxu0 %v12362_v50  ;;  %8152 = vmatprep.mubr.bf16.mxu1 %v12362_v50  ;;  %v10445_v55 = vcombine.high %v374_v48, %v378_v49  ;;  %v418_v30 = vld [vmem:[%s15883_s1 + $0xba8] sm:$0xff] }
  0x9c   :  { %7713 = vmatpush1.bf16.msra.mxu0 %v10378_v51  ;;  %8123 = vmatpush1.bf16.msra.mxu1 %v10380_v52  ;;  %v10434_v51 = vcombine.low %v365_v36, %v369_v37  ;;  %v10436_v52 = vcombine.low %v366_v38, %v370_v39  ;;  %v421_v36 = vld [vmem:[%s15883_s1 + $0xbc0] sm:$0xff]  ;;  %v422_v38 = vld [vmem:[%s15883_s1 + $0xbc8] sm:$0xff] }
  0x9d   :  { %7714 = vmatprep.subr.bf16.mxu0 %v10387_v54  ;;  %8124 = vmatprep.subr.bf16.mxu1 %v10389_v58  ;;  %v10443_v54 = vcombine.high %v373_v46, %v377_v47  ;;  %v382_v58 = vld [vmem:[%s15883_s1 + $0xa88] sm:$0xff]  ;;  %v425_v37 = vld [vmem:[%s15883_s1 + $0xbe0] sm:$0xff] }
  0x9e   :  { %v426_v39 = vld [vmem:[%s15883_s1 + $0xbe8] sm:$0xff] }
  0xa0   :  { %7715 = vmatpush1.bf16.msra.mxu0 %v10386_v61  ;;  %8125 = vmatpush1.bf16.msra.mxu1 %v10388_v62  ;;  %v10442_v61 = vcombine.low %v373_v46, %v377_v47  ;;  %v10444_v62 = vcombine.low %v374_v48, %v378_v49  ;;  %v429_v46 = vld [vmem:[%s15883_s1 + $0xc00] sm:$0xff]  ;;  %v430_v48 = vld [vmem:[%s15883_s1 + $0xc08] sm:$0xff] }
  0xa1   :  { %7716 = vmatprep.subr.bf16.mxu0 %v10395_v0  ;;  %8126 = vmatprep.subr.bf16.mxu1 %v10397_v1  ;;  %v10451_v0 = vcombine.high %v381_v56, %v385_v57  ;;  %v10453_v1 = vcombine.high %v382_v58, %v386_v60  ;;  %v433_v47 = vld [vmem:[%s15883_s1 + $0xc20] sm:$0xff]  ;;  %v434_v49 = vld [vmem:[%s15883_s1 + $0xc28] sm:$0xff] }
  0xa4   :  { %7717 = vmatpush1.bf16.msra.mxu0 %v10394_v6  ;;  %8127 = vmatpush1.bf16.msra.mxu1 %v10396_v7  ;;  %v10450_v6 = vcombine.low %v381_v56, %v385_v57  ;;  %v10452_v7 = vcombine.low %v382_v58, %v386_v60  ;;  %v437_v56 = vld [vmem:[%s15883_s1 + $0xc40] sm:$0xff]  ;;  %v12544_v58 = vrot.slane %v12329_v63, %v11978_v53  ;;  %v438_v60 = vld [vmem:[%s15883_s1 + $0xc48] sm:$0xff] }
  0xa5   :  { %7718 = vmatprep.subr.bf16.mxu0 %v10403_v8  ;;  %8128 = vmatprep.subr.bf16.mxu1 %v10405_v10  ;;  %v10459_v8 = vcombine.high %v389_v2, %v393_v3  ;;  %v10461_v10 = vcombine.high %v390_v4, %v394_v5  ;;  %v441_v57 = vld [vmem:[%s15883_s1 + $0xc60] sm:$0xff] }
  0xa6   :  { %v445_v63 = vld [vmem:[%s15883_s1 + $0xc80] sm:$0xff] }
  0xa8   :  { %7719 = vmatpush1.bf16.msra.mxu0 %v10402_v15  ;;  %8129 = vmatpush1.bf16.msra.mxu1 %v10404_v16  ;;  %v10458_v15 = vcombine.low %v389_v2, %v393_v3  ;;  %v10460_v16 = vcombine.low %v390_v4, %v394_v5  ;;  %v449_v3 = vld [vmem:[%s15883_s1 + $0xca0] sm:$0xff]  ;;  %v12560_v4 = vcombine.high %v12362_v50, %v12362_v50  ;;  %v446_v5 = vld [vmem:[%s15883_s1 + $0xc88] sm:$0xff] }
  0xa9   :  { %7720 = vmatprep.subr.bf16.mxu0 %v10411_v17  ;;  %8130 = vmatprep.subr.bf16.mxu1 %v10413_v18  ;;  %v10467_v17 = vcombine.high %v397_v11, %v401_v12  ;;  %v10469_v18 = vcombine.high %v398_v13, %v402_v14 }
  0xac   :  { %7721 = vmatpush1.bf16.msra.mxu0 %v10410_v24  ;;  %8131 = vmatpush1.bf16.msra.mxu1 %v10412_v25  ;;  %v10466_v24 = vcombine.low %v397_v11, %v401_v12  ;;  %v10468_v25 = vcombine.low %v398_v13, %v402_v14  ;;  %v453_v12 = vld [vmem:[%s15883_s1 + $0xcc0] sm:$0xff]  ;;  %v454_v14 = vld [vmem:[%s15883_s1 + $0xcc8] sm:$0xff] }
  0xad   :  { %7722 = vmatprep.subr.bf16.mxu0 %v10419_v26  ;;  %8132 = vmatprep.subr.bf16.mxu1 %v10421_v27  ;;  %v10475_v26 = vcombine.high %v405_v19, %v409_v20  ;;  %v10477_v27 = vcombine.high %v406_v21, %v410_v22  ;;  %v457_v13 = vld [vmem:[%s15883_s1 + $0xce0] sm:$0xff] }
  0xb0   :  { %7723 = vmatpush1.bf16.msra.mxu0 %v10418_v31  ;;  %8133 = vmatpush1.bf16.msra.mxu1 %v10420_v32  ;;  %v10474_v31 = vcombine.low %v405_v19, %v409_v20  ;;  %v10476_v32 = vcombine.low %v406_v21, %v410_v22  ;;  %v461_v20 = vld [vmem:[%s15883_s1 + $0xd00] sm:$0xff]  ;;  %v462_v22 = vld [vmem:[%s15883_s1 + $0xd08] sm:$0xff] }
  0xb1   :  { %7724 = vmatprep.subr.bf16.mxu0 %v10427_v34  ;;  %8134 = vmatprep.subr.bf16.mxu1 %v10429_v35  ;;  %v10483_v34 = vcombine.high %v413_v28, %v417_v59  ;;  %v10485_v35 = vcombine.high %v414_v29, %v418_v30  ;;  %v465_v21 = vld [vmem:[%s15883_s1 + $0xd20] sm:$0xff] }
  0xb4   :  { %7725 = vmatpush1.bf16.msra.mxu0 %v10426_v41  ;;  %8135 = vmatpush1.bf16.msra.mxu1 %v10428_v42  ;;  %v10482_v41 = vcombine.low %v413_v28, %v417_v59  ;;  %v10484_v42 = vcombine.low %v414_v29, %v418_v30  ;;  %v469_v59 = vld [vmem:[%s15883_s1 + $0xd40] sm:$0xff]  ;;  %v470_v30 = vld [vmem:[%s15883_s1 + $0xd48] sm:$0xff] }
  0xb5   :  { %7726 = vmatprep.subr.bf16.mxu0 %v10435_v44  ;;  %8136 = vmatprep.subr.bf16.mxu1 %v10437_v45  ;;  %v10491_v44 = vcombine.high %v421_v36, %v425_v37  ;;  %v10493_v45 = vcombine.high %v422_v38, %v426_v39  ;;  %v473_v29 = vld [vmem:[%s15883_s1 + $0xd60] sm:$0xff] }
  0xb8   :  { %7727 = vmatpush1.bf16.msra.mxu0 %v10434_v51  ;;  %8137 = vmatpush1.bf16.msra.mxu1 %v10436_v52  ;;  %v10490_v51 = vcombine.low %v421_v36, %v425_v37  ;;  %v10492_v52 = vcombine.low %v422_v38, %v426_v39  ;;  %v477_v37 = vld [vmem:[%s15883_s1 + $0xd80] sm:$0xff]  ;;  %v478_v39 = vld [vmem:[%s15883_s1 + $0xd88] sm:$0xff] }
  0xb9   :  { %7728 = vmatprep.subr.bf16.mxu0 %v10443_v54  ;;  %8138 = vmatprep.subr.bf16.mxu1 %v10445_v55  ;;  %v10499_v54 = vcombine.high %v429_v46, %v433_v47  ;;  %v10501_v55 = vcombine.high %v430_v48, %v434_v49  ;;  %v481_v38 = vld [vmem:[%s15883_s1 + $0xda0] sm:$0xff] }
  0xbc   :  { %7729 = vmatpush1.bf16.msra.mxu0 %v10442_v61  ;;  %8139 = vmatpush1.bf16.msra.mxu1 %v10444_v62  ;;  %v442_v61 = vld [vmem:[%s15883_s1 + $0xc68] sm:$0xff]  ;;  %v10498_v62 = vcombine.low %v429_v46, %v433_v47  ;;  %v485_v47 = vld [vmem:[%s15883_s1 + $0xdc0] sm:$0xff] }
  0xbd   :  { %7730 = vmatprep.subr.bf16.mxu0 %v10451_v0  ;;  %8140 = vmatprep.subr.bf16.mxu1 %v10453_v1  ;;  %v10500_v0 = vcombine.low %v430_v48, %v434_v49  ;;  %v10507_v1 = vcombine.high %v437_v56, %v441_v57  ;;  %v10509_v2 = vcombine.high %v438_v60, %v442_v61  ;;  %v489_v48 = vld [vmem:[%s15883_s1 + $0xde0] sm:$0xff]  ;;  %v486_v49 = vld [vmem:[%s15883_s1 + $0xdc8] sm:$0xff] }
  0xc0   :  { %7731 = vmatpush1.bf16.msra.mxu0 %v10450_v6  ;;  %8141 = vmatpush1.bf16.msra.mxu1 %v10452_v7  ;;  %v450_v6 = vld [vmem:[%s15883_s1 + $0xca8] sm:$0xff]  ;;  %v10506_v7 = vcombine.low %v437_v56, %v441_v57  ;;  %v493_v57 = vld [vmem:[%s15883_s1 + $0xe00] sm:$0xff] }
  0xc1   :  { %7732 = vmatprep.subr.bf16.mxu0 %v10459_v8  ;;  %8142 = vmatprep.subr.bf16.mxu1 %v10461_v10  ;;  %v10508_v8 = vcombine.low %v438_v60, %v442_v61  ;;  %v10515_v10 = vcombine.high %v445_v63, %v449_v3  ;;  %v10517_v11 = vcombine.high %v446_v5, %v450_v6  ;;  %v497_v60 = vld [vmem:[%s15883_s1 + $0xe20] sm:$0xff]  ;;  %v494_v61 = vld [vmem:[%s15883_s1 + $0xe08] sm:$0xff] }
  0xc4   :  { %7733 = vmatpush1.bf16.msra.mxu0 %v10458_v15  ;;  %8143 = vmatpush1.bf16.msra.mxu1 %v10460_v16  ;;  %v458_v15 = vld [vmem:[%s15883_s1 + $0xce8] sm:$0xff]  ;;  %v10514_v16 = vcombine.low %v445_v63, %v449_v3  ;;  %v501_v3 = vld [vmem:[%s15883_s1 + $0xe40] sm:$0xff] }
  0xc5   :  { %7734 = vmatprep.subr.bf16.mxu0 %v10467_v17  ;;  %8144 = vmatprep.subr.bf16.mxu1 %v10469_v18  ;;  %v10516_v17 = vcombine.low %v446_v5, %v450_v6  ;;  %v10523_v18 = vcombine.high %v453_v12, %v457_v13  ;;  %v10525_v19 = vcombine.high %v454_v14, %v458_v15  ;;  %v505_v5 = vld [vmem:[%s15883_s1 + $0xe60] sm:$0xff]  ;;  %v502_v6 = vld [vmem:[%s15883_s1 + $0xe48] sm:$0xff] }
  0xc8   :  { %7735 = vmatpush1.bf16.msra.mxu0 %v10466_v24  ;;  %8145 = vmatpush1.bf16.msra.mxu1 %v10468_v25  ;;  %v466_v24 = vld [vmem:[%s15883_s1 + $0xd28] sm:$0xff]  ;;  %v10522_v25 = vcombine.low %v453_v12, %v457_v13  ;;  %v509_v13 = vld [vmem:[%s15883_s1 + $0xe80] sm:$0xff] }
  0xc9   :  { %7736 = vmatprep.subr.bf16.mxu0 %v10475_v26  ;;  %8146 = vmatprep.subr.bf16.mxu1 %v10477_v27  ;;  %v10524_v26 = vcombine.low %v454_v14, %v458_v15  ;;  %v10531_v27 = vcombine.high %v461_v20, %v465_v21  ;;  %v10533_v28 = vcombine.high %v462_v22, %v466_v24  ;;  %v513_v14 = vld [vmem:[%s15883_s1 + $0xea0] sm:$0xff]  ;;  %v510_v15 = vld [vmem:[%s15883_s1 + $0xe88] sm:$0xff] }
  0xcc   :  { %7737 = vmatpush1.bf16.msra.mxu0 %v10474_v31  ;;  %8147 = vmatpush1.bf16.msra.mxu1 %v10476_v32  ;;  %v474_v31 = vld [vmem:[%s15883_s1 + $0xd68] sm:$0xff]  ;;  %v10530_v32 = vcombine.low %v461_v20, %v465_v21  ;;  %v517_v21 = vld [vmem:[%s15883_s1 + $0xec0] sm:$0xff] }
  0xcd   :  { %7738 = vmatprep.subr.bf16.mxu0 %v10483_v34  ;;  %8148 = vmatprep.subr.bf16.mxu1 %v10485_v35  ;;  %v10532_v34 = vcombine.low %v462_v22, %v466_v24  ;;  %v10539_v35 = vcombine.high %v469_v59, %v473_v29  ;;  %v10541_v36 = vcombine.high %v470_v30, %v474_v31  ;;  %v521_v22 = vld [vmem:[%s15883_s1 + $0xee0] sm:$0xff]  ;;  %v518_v24 = vld [vmem:[%s15883_s1 + $0xec8] sm:$0xff] }
  0xd0   :  { %7739 = vmatpush1.bf16.msra.mxu0 %v10482_v41  ;;  %8149 = vmatpush1.bf16.msra.mxu1 %v10484_v42  ;;  %v482_v41 = vld [vmem:[%s15883_s1 + $0xda8] sm:$0xff]  ;;  %v10538_v42 = vcombine.low %v469_v59, %v473_v29  ;;  %v525_v29 = vld [vmem:[%s15883_s1 + $0xf00] sm:$0xff] }
  0xd1   :  { %7740 = vmatprep.subr.bf16.mxu0 %v10491_v44  ;;  %8150 = vmatprep.subr.bf16.mxu1 %v10493_v45  ;;  %v10540_v44 = vcombine.low %v470_v30, %v474_v31  ;;  %v10547_v45 = vcombine.high %v477_v37, %v481_v38  ;;  %v10549_v46 = vcombine.high %v478_v39, %v482_v41  ;;  %v529_v30 = vld [vmem:[%s15883_s1 + $0xf20] sm:$0xff]  ;;  %v526_v31 = vld [vmem:[%s15883_s1 + $0xf08] sm:$0xff] }
  0xd4   :  { %7741 = vmatpush1.bf16.msra.mxu0 %v10490_v51  ;;  %8151 = vmatpush1.bf16.msra.mxu1 %v10492_v52  ;;  %v490_v51 = vld [vmem:[%s15883_s1 + $0xde8] sm:$0xff]  ;;  %v10546_v52 = vcombine.low %v477_v37, %v481_v38  ;;  %v533_v38 = vld [vmem:[%s15883_s1 + $0xf40] sm:$0xff] }
  0xd5   :  { %7751 = vmatprep.subr.bf16.mxu0 %v10499_v54  ;;  %8161 = vmatprep.subr.bf16.mxu1 %v10501_v55  ;;  %v10548_v54 = vcombine.low %v478_v39, %v482_v41  ;;  %v10555_v55 = vcombine.high %v485_v47, %v489_v48  ;;  %v10557_v56 = vcombine.high %v486_v49, %v490_v51  ;;  %v537_v39 = vld [vmem:[%s15883_s1 + $0xf60] sm:$0xff]  ;;  %v534_v41 = vld [vmem:[%s15883_s1 + $0xf48] sm:$0xff] }
  0xd7   :  { %7743 = vmatmul.mubr.bf16.vlgmr.msra.gmra.mrb[0].mxu0 %v12544_v58  ;;  %8153 = vmatmul.mubr.bf16.vlgmr.msra.gmra.mrb[0].mxu1 %v12544_v58 }
  0xd8   :  { %7752 = vmatpush1.bf16.msra.mxu0 %v10498_v62  ;;  %8162 = vmatpush1.bf16.msra.mxu1 %v10500_v0  ;;  %v498_v62 = vld [vmem:[%s15883_s1 + $0xe28] sm:$0xff]  ;;  %v10554_v0 = vcombine.low %v485_v47, %v489_v48  ;;  %v541_v48 = vld [vmem:[%s15883_s1 + $0xf80] sm:$0xff] }
  0xd9   :  { %7753 = vmatprep.subr.bf16.mxu0 %v10507_v1  ;;  %8163 = vmatprep.subr.bf16.mxu1 %v10509_v2  ;;  %v10556_v1 = vcombine.low %v486_v49, %v490_v51  ;;  %v10563_v2 = vcombine.high %v493_v57, %v497_v60  ;;  %v10565_v63 = vcombine.high %v494_v61, %v498_v62  ;;  %v545_v49 = vld [vmem:[%s15883_s1 + $0xfa0] sm:$0xff]  ;;  %v542_v51 = vld [vmem:[%s15883_s1 + $0xf88] sm:$0xff] }
  0xda   :  { %7783 = vmatprep.mubr.bf16.mxu0 %v12560_v4  ;;  %8193 = vmatprep.mubr.bf16.mxu1 %v12560_v4 }
  0xdc   :  { %7754 = vmatpush1.bf16.msra.mxu0 %v10506_v7  ;;  %8164 = vmatpush1.bf16.msra.mxu1 %v10508_v8  ;;  %v506_v7 = vld [vmem:[%s15883_s1 + $0xe68] sm:$0xff]  ;;  %v10562_v8 = vcombine.low %v493_v57, %v497_v60  ;;  %v549_v60 = vld [vmem:[%s15883_s1 + $0xfc0] sm:$0xff] }
  0xdd   :  { %7755 = vmatprep.subr.bf16.mxu0 %v10515_v10  ;;  %8165 = vmatprep.subr.bf16.mxu1 %v10517_v11  ;;  %v10564_v10 = vcombine.low %v494_v61, %v498_v62  ;;  %v10571_v11 = vcombine.high %v501_v3, %v505_v5  ;;  %v10573_v12 = vcombine.high %v502_v6, %v506_v7  ;;  %v553_v61 = vld [vmem:[%s15883_s1 + $0xfe0] sm:$0xff]  ;;  %v550_v62 = vld [vmem:[%s15883_s1 + $0xfc8] sm:$0xff] }
  0xe0   :  { %7756 = vmatpush1.bf16.msra.mxu0 %v10514_v16  ;;  %8166 = vmatpush1.bf16.msra.mxu1 %v10516_v17  ;;  %v514_v16 = vld [vmem:[%s15883_s1 + $0xea8] sm:$0xff]  ;;  %v10570_v17 = vcombine.low %v501_v3, %v505_v5  ;;  %v10619_v3 = vcombine.high %v549_v60, %v553_v61 }
  0xe1   :  { %7757 = vmatprep.subr.bf16.mxu0 %v10523_v18  ;;  %8167 = vmatprep.subr.bf16.mxu1 %v10525_v19  ;;  %v10572_v18 = vcombine.low %v502_v6, %v506_v7  ;;  %v10579_v19 = vcombine.high %v509_v13, %v513_v14  ;;  %v10581_v20 = vcombine.high %v510_v15, %v514_v16  ;;  %v557_v6 = vld [vmem:[%s15883_s1 + $0x1000] sm:$0xff] }
  0xe2   :  { %v561_v7 = vld [vmem:[%s15883_s1 + $0x1020] sm:$0xff] }
  0xe4   :  { %7758 = vmatpush1.bf16.msra.mxu0 %v10522_v25  ;;  %8168 = vmatpush1.bf16.msra.mxu1 %v10524_v26  ;;  %v522_v25 = vld [vmem:[%s15883_s1 + $0xee8] sm:$0xff]  ;;  %v10578_v26 = vcombine.low %v509_v13, %v513_v14  ;;  %v10627_v14 = vcombine.high %v557_v6, %v561_v7 }
  0xe5   :  { %7759 = vmatprep.subr.bf16.mxu0 %v10531_v27  ;;  %8169 = vmatprep.subr.bf16.mxu1 %v10533_v28  ;;  %v10580_v27 = vcombine.low %v510_v15, %v514_v16  ;;  %v10587_v28 = vcombine.high %v517_v21, %v521_v22  ;;  %v10589_v59 = vcombine.high %v518_v24, %v522_v25  ;;  %v565_v16 = vld [vmem:[%s15883_s1 + $0x1040] sm:$0xff] }
  0xe8   :  { %7760 = vmatpush1.bf16.msra.mxu0 %v10530_v32  ;;  %8170 = vmatpush1.bf16.msra.mxu1 %v10532_v34  ;;  %v530_v32 = vld [vmem:[%s15883_s1 + $0xf28] sm:$0xff]  ;;  %v10586_v34 = vcombine.low %v517_v21, %v521_v22  ;;  %v10626_v22 = vcombine.low %v557_v6, %v561_v7 }
  0xe9   :  { %7761 = vmatprep.subr.bf16.mxu0 %v10539_v35  ;;  %8171 = vmatprep.subr.bf16.mxu1 %v10541_v36  ;;  %v10588_v35 = vcombine.low %v518_v24, %v522_v25  ;;  %v10595_v36 = vcombine.high %v525_v29, %v529_v30  ;;  %v10597_v37 = vcombine.high %v526_v31, %v530_v32  ;;  %v570_v21 = vld [vmem:[%s15883_s1 + $0x1068] sm:$0xff] }
  0xea   :  { %v606_v6 = vld [vmem:[%s15883_s1 + $0x1188] sm:$0xff] }
  0xeb   :  { %v610_v7 = vld [vmem:[%s15883_s1 + $0x11a8] sm:$0xff] }
  0xec   :  { %7762 = vmatpush1.bf16.msra.mxu0 %v10538_v42  ;;  %8172 = vmatpush1.bf16.msra.mxu1 %v10540_v44  ;;  %v538_v42 = vld [vmem:[%s15883_s1 + $0xf68] sm:$0xff]  ;;  %v10594_v44 = vcombine.low %v525_v29, %v529_v30 }
  0xed   :  { %7763 = vmatprep.subr.bf16.mxu0 %v10547_v45  ;;  %8173 = vmatprep.subr.bf16.mxu1 %v10549_v46  ;;  %v10596_v45 = vcombine.low %v526_v31, %v530_v32  ;;  %v10603_v46 = vcombine.high %v533_v38, %v537_v39  ;;  %v10605_v47 = vcombine.high %v534_v41, %v538_v42  ;;  %v574_v29 = vld [vmem:[%s15883_s1 + $0x1088] sm:$0xff] }
  0xee   :  { %v578_v30 = vld [vmem:[%s15883_s1 + $0x10a8] sm:$0xff] }
  0xf0   :  { %7764 = vmatpush1.bf16.msra.mxu0 %v10546_v52  ;;  %8174 = vmatpush1.bf16.msra.mxu1 %v10548_v54  ;;  %v546_v52 = vld [vmem:[%s15883_s1 + $0xfa8] sm:$0xff]  ;;  %v10602_v54 = vcombine.low %v533_v38, %v537_v39 }
  0xf1   :  { %7765 = vmatprep.subr.bf16.mxu0 %v10555_v55  ;;  %8175 = vmatprep.subr.bf16.mxu1 %v10557_v56  ;;  %v10604_v55 = vcombine.low %v534_v41, %v538_v42  ;;  %v10611_v56 = vcombine.high %v541_v48, %v545_v49  ;;  %v10613_v57 = vcombine.high %v542_v51, %v546_v52  ;;  %v582_v38 = vld [vmem:[%s15883_s1 + $0x10c8] sm:$0xff] }
  0xf2   :  { %v586_v39 = vld [vmem:[%s15883_s1 + $0x10e8] sm:$0xff]  ;;  %v10644_v42 = vcombine.low %v574_v29, %v578_v30 }
  0xf4   :  { %7766 = vmatpush1.bf16.msra.mxu0 %v10554_v0  ;;  %8176 = vmatpush1.bf16.msra.mxu1 %v10556_v1  ;;  %v554_v0 = vld [vmem:[%s15883_s1 + $0xfe8] sm:$0xff] }
  0xf5   :  { %7767 = vmatprep.subr.bf16.mxu0 %v10563_v2  ;;  %8177 = vmatprep.subr.bf16.mxu1 %v10565_v63  ;;  %v12731_v1 = vld [vmem:[%s15882_s0 + $0x8] sm:$0xff]  ;;  %v10610_v2 = vcombine.low %v541_v48, %v545_v49  ;;  %v10612_v63 = vcombine.low %v542_v51, %v546_v52  ;;  %v10621_v5 = vcombine.high %v550_v62, %v554_v0 }
  0xf6   :  { %v10620_v13 = vcombine.low %v550_v62, %v554_v0  ;;  %v590_v48 = vld [vmem:[%s15883_s1 + $0x1108] sm:$0xff]  ;;  %v10652_v52 = vcombine.low %v582_v38, %v586_v39 }
  0xf7   :  { %v594_v49 = vld [vmem:[%s15883_s1 + $0x1128] sm:$0xff] }
  0xf8   :  { %7768 = vmatpush1.bf16.msra.mxu0 %v10562_v8  ;;  %8178 = vmatpush1.bf16.msra.mxu1 %v10564_v10  ;;  %v12741_v8 = vrot.slane %v12731_v1, %v11978_v53  ;;  %v558_v10 = vld [vmem:[%s15883_s1 + $0x1008] sm:$0xff]  ;;  %v10660_v0 = vcombine.low %v590_v48, %v594_v49 }
  0xf9   :  { %7769 = vmatprep.subr.bf16.mxu0 %v10571_v11  ;;  %8179 = vmatprep.subr.bf16.mxu1 %v10573_v12  ;;  %v562_v11 = vld [vmem:[%s15883_s1 + $0x1028] sm:$0xff]  ;;  %v10618_v12 = vcombine.low %v549_v60, %v553_v61 }
  0xfa   :  { %v10629_v15 = vcombine.high %v558_v10, %v562_v11  ;;  %v10628_v24 = vcombine.low %v558_v10, %v562_v11  ;;  %v598_v60 = vld [vmem:[%s15883_s1 + $0x1148] sm:$0xff] }
  0xfb   :  { %v602_v61 = vld [vmem:[%s15883_s1 + $0x1168] sm:$0xff] }
  0xfc   :  { %7770 = vmatpush1.bf16.msra.mxu0 %v10570_v17  ;;  %8180 = vmatpush1.bf16.msra.mxu1 %v10572_v18  ;;  %v569_v17 = vld [vmem:[%s15883_s1 + $0x1060] sm:$0xff]  ;;  %v1382_v18 = vcombine.high %v12741_v8, %v12741_v8  ;;  %v10668_v11 = vcombine.low %v598_v60, %v602_v61 }
  0xfd   :  { %7771 = vmatprep.subr.bf16.mxu0 %v10579_v19  ;;  %8181 = vmatprep.subr.bf16.mxu1 %v10581_v20  ;;  %v12759_v19 = vcombine.high %v12544_v58, %v12544_v58  ;;  %v566_v20 = vld [vmem:[%s15883_s1 + $0x1048] sm:$0xff]  ;;  %v10635_v25 = vcombine.high %v565_v16, %v569_v17  ;;  %v10634_v31 = vcombine.low %v565_v16, %v569_v17 }
  0xfe   :  { %v10636_v32 = vcombine.low %v566_v20, %v570_v21  ;;  %v614_v16 = vld [vmem:[%s15883_s1 + $0x11c8] sm:$0xff] }
  0xff   :  { %v618_v17 = vld [vmem:[%s15883_s1 + $0x11e8] sm:$0xff] }
 0x100   :  { %7772 = vmatpush1.bf16.msra.mxu0 %v10578_v26  ;;  %8182 = vmatpush1.bf16.msra.mxu1 %v10580_v27  ;;  %v10637_v26 = vcombine.high %v566_v20, %v570_v21  ;;  %v573_v27 = vld [vmem:[%s15883_s1 + $0x1080] sm:$0xff]  ;;  %v10676_v20 = vcombine.low %v606_v6, %v610_v7 }
 0x101   :  { %7773 = vmatprep.subr.bf16.mxu0 %v10587_v28  ;;  %8183 = vmatprep.subr.bf16.mxu1 %v10589_v59  ;;  %v577_v28 = vld [vmem:[%s15883_s1 + $0x10a0] sm:$0xff]  ;;  %v12774_v59 = vrot.slane %v1382_v18, %v11978_v53 }
 0x102   :  { %v10642_v41 = vcombine.low %v573_v27, %v577_v28 }
 0x104   :  { %7774 = vmatpush1.bf16.msra.mxu0 %v10586_v34  ;;  %8184 = vmatpush1.bf16.msra.mxu1 %v10588_v35  ;;  %v10643_v34 = vcombine.high %v573_v27, %v577_v28  ;;  %v10645_v35 = vcombine.high %v574_v29, %v578_v30  ;;  %v626_v27 = vld [vmem:[%s15883_s1 + $0x1228] sm:$0xff]  ;;  %v10684_v29 = vcombine.low %v614_v16, %v618_v17 }
 0x105   :  { %7775 = vmatprep.subr.bf16.mxu0 %v10595_v36  ;;  %8185 = vmatprep.subr.bf16.mxu1 %v10597_v37  ;;  %v581_v36 = vld [vmem:[%s15883_s1 + $0x10c0] sm:$0xff] }
 0x106   :  { %v585_v37 = vld [vmem:[%s15883_s1 + $0x10e0] sm:$0xff] }
 0x107   :  { %v10650_v51 = vcombine.low %v581_v36, %v585_v37 }
 0x108   :  { %7776 = vmatpush1.bf16.msra.mxu0 %v10594_v44  ;;  %8186 = vmatpush1.bf16.msra.mxu1 %v10596_v45  ;;  %v10651_v44 = vcombine.high %v581_v36, %v585_v37  ;;  %v10653_v45 = vcombine.high %v582_v38, %v586_v39  ;;  %v634_v36 = vld [vmem:[%s15883_s1 + $0x1268] sm:$0xff] }
 0x109   :  { %7777 = vmatprep.subr.bf16.mxu0 %v10603_v46  ;;  %8187 = vmatprep.subr.bf16.mxu1 %v10605_v47  ;;  %v589_v46 = vld [vmem:[%s15883_s1 + $0x1100] sm:$0xff] }
 0x10a   :  { %v593_v47 = vld [vmem:[%s15883_s1 + $0x1120] sm:$0xff] }
 0x10b   :  { %v10658_v62 = vcombine.low %v589_v46, %v593_v47 }
 0x10c   :  { %7778 = vmatpush1.bf16.msra.mxu0 %v10602_v54  ;;  %8188 = vmatpush1.bf16.msra.mxu1 %v10604_v55  ;;  %v10659_v54 = vcombine.high %v589_v46, %v593_v47  ;;  %v10661_v55 = vcombine.high %v590_v48, %v594_v49  ;;  %v642_v46 = vld [vmem:[%s15883_s1 + $0x12a8] sm:$0xff] }
 0x10d   :  { %7779 = vmatprep.subr.bf16.mxu0 %v10611_v56  ;;  %8189 = vmatprep.subr.bf16.mxu1 %v10613_v57  ;;  %v597_v56 = vld [vmem:[%s15883_s1 + $0x1140] sm:$0xff] }
 0x10e   :  { %v601_v57 = vld [vmem:[%s15883_s1 + $0x1160] sm:$0xff] }
 0x10f   :  { %v10666_v10 = vcombine.low %v597_v56, %v601_v57 }
 0x110   :  { %7780 = vmatpush1.bf16.msra.mxu0 %v10610_v2  ;;  %8190 = vmatpush1.bf16.msra.mxu1 %v10612_v63  ;;  %v10667_v2 = vcombine.high %v597_v56, %v601_v57  ;;  %v10669_v63 = vcombine.high %v598_v60, %v602_v61  ;;  %v650_v56 = vld [vmem:[%s15883_s1 + $0x12e8] sm:$0xff] }
 0x111   :  { %7781 = vmatprep.subr.bf16.mxu0 %v10619_v3  ;;  %8191 = vmatprep.subr.bf16.mxu1 %v10621_v5  ;;  %v605_v3 = vld [vmem:[%s15883_s1 + $0x1180] sm:$0xff] }
 0x112   :  { %v609_v5 = vld [vmem:[%s15883_s1 + $0x11a0] sm:$0xff] }
 0x113   :  { %v10674_v18 = vcombine.low %v605_v3, %v609_v5 }
 0x114   :  { %7782 = vmatpush1.bf16.msra.mxu0 %v10618_v12  ;;  %8192 = vmatpush1.bf16.msra.mxu1 %v10620_v13  ;;  %v10675_v12 = vcombine.high %v605_v3, %v609_v5  ;;  %v10677_v13 = vcombine.high %v606_v6, %v610_v7  ;;  %v658_v3 = vld [vmem:[%s15883_s1 + $0x1328] sm:$0xff] }
 0x115   :  { %7792 = vmatprep.subr.bf16.mxu0 %v10627_v14  ;;  %8202 = vmatprep.subr.bf16.mxu1 %v10629_v15  ;;  %v613_v14 = vld [vmem:[%s15883_s1 + $0x11c0] sm:$0xff] }
 0x116   :  { %v617_v15 = vld [vmem:[%s15883_s1 + $0x11e0] sm:$0xff] }
 0x117   :  { %7784 = vmatmul.mubr.bf16.vlgmr.msra.gmra.mrb[0].mxu0 %v12759_v19  ;;  %8194 = vmatmul.mubr.bf16.vlgmr.msra.gmra.mrb[0].mxu1 %v12759_v19  ;;  %v10683_v21 = vcombine.high %v613_v14, %v617_v15  ;;  %v10682_v28 = vcombine.low %v613_v14, %v617_v15  ;;  %v666_v14 = vld [vmem:[%s15883_s1 + $0x1368] sm:$0xff] }
 0x118   :  { %7793 = vmatpush1.bf16.msra.mxu0 %v10626_v22  ;;  %8203 = vmatpush1.bf16.msra.mxu1 %v10628_v24  ;;  %v10685_v22 = vcombine.high %v614_v16, %v618_v17  ;;  %v621_v24 = vld [vmem:[%s15883_s1 + $0x1200] sm:$0xff] }
 0x119   :  { %7794 = vmatprep.subr.bf16.mxu0 %v10635_v25  ;;  %8204 = vmatprep.subr.bf16.mxu1 %v10637_v26  ;;  %v625_v25 = vld [vmem:[%s15883_s1 + $0x1220] sm:$0xff]  ;;  %v622_v26 = vld [vmem:[%s15883_s1 + $0x1208] sm:$0xff] }
 0x11a   :  { %7824 = vmatprep.mubr.bf16.mxu0 %v12774_v59  ;;  %8234 = vmatprep.mubr.bf16.mxu1 %v12774_v59  ;;  %v10691_v30 = vcombine.high %v621_v24, %v625_v25  ;;  %v10690_v37 = vcombine.low %v621_v24, %v625_v25  ;;  %v10692_v38 = vcombine.low %v622_v26, %v626_v27  ;;  %v674_v24 = vld [vmem:[%s15883_s1 + $0x13a8] sm:$0xff] }
 0x11c   :  { %7795 = vmatpush1.bf16.msra.mxu0 %v10634_v31  ;;  %8205 = vmatpush1.bf16.msra.mxu1 %v10636_v32  ;;  %v10693_v31 = vcombine.high %v622_v26, %v626_v27  ;;  %v629_v32 = vld [vmem:[%s15883_s1 + $0x1240] sm:$0xff] }
 0x11d   :  { %7796 = vmatprep.subr.bf16.mxu0 %v10643_v34  ;;  %8206 = vmatprep.subr.bf16.mxu1 %v10645_v35  ;;  %v633_v34 = vld [vmem:[%s15883_s1 + $0x1260] sm:$0xff]  ;;  %v630_v35 = vld [vmem:[%s15883_s1 + $0x1248] sm:$0xff] }
 0x11e   :  { %v10699_v39 = vcombine.high %v629_v32, %v633_v34  ;;  %v10698_v47 = vcombine.low %v629_v32, %v633_v34  ;;  %v10700_v48 = vcombine.low %v630_v35, %v634_v36  ;;  %v682_v32 = vld [vmem:[%s15883_s1 + $0x13e8] sm:$0xff] }
 0x120   :  { %7797 = vmatpush1.bf16.msra.mxu0 %v10642_v41  ;;  %8207 = vmatpush1.bf16.msra.mxu1 %v10644_v42  ;;  %v10701_v41 = vcombine.high %v630_v35, %v634_v36  ;;  %v637_v42 = vld [vmem:[%s15883_s1 + $0x1280] sm:$0xff] }
 0x121   :  { %7798 = vmatprep.subr.bf16.mxu0 %v10651_v44  ;;  %8208 = vmatprep.subr.bf16.mxu1 %v10653_v45  ;;  %v641_v44 = vld [vmem:[%s15883_s1 + $0x12a0] sm:$0xff]  ;;  %v638_v45 = vld [vmem:[%s15883_s1 + $0x1288] sm:$0xff] }
 0x122   :  { %v10707_v49 = vcombine.high %v637_v42, %v641_v44  ;;  %v10706_v57 = vcombine.low %v637_v42, %v641_v44  ;;  %v10708_v60 = vcombine.low %v638_v45, %v642_v46  ;;  %v690_v42 = vld [vmem:[%s15883_s1 + $0x1428] sm:$0xff] }
 0x124   :  { %7799 = vmatpush1.bf16.msra.mxu0 %v10650_v51  ;;  %8209 = vmatpush1.bf16.msra.mxu1 %v10652_v52  ;;  %v10709_v51 = vcombine.high %v638_v45, %v642_v46  ;;  %v645_v52 = vld [vmem:[%s15883_s1 + $0x12c0] sm:$0xff] }
 0x125   :  { %7800 = vmatprep.subr.bf16.mxu0 %v10659_v54  ;;  %8210 = vmatprep.subr.bf16.mxu1 %v10661_v55  ;;  %v649_v54 = vld [vmem:[%s15883_s1 + $0x12e0] sm:$0xff]  ;;  %v646_v55 = vld [vmem:[%s15883_s1 + $0x12c8] sm:$0xff] }
 0x126   :  { %v10715_v61 = vcombine.high %v645_v52, %v649_v54  ;;  %v10714_v5 = vcombine.low %v645_v52, %v649_v54  ;;  %v10716_v6 = vcombine.low %v646_v55, %v650_v56  ;;  %v694_v52 = vld [vmem:[%s15883_s1 + $0x1448] sm:$0xff] }
 0x127   :  { %v698_v54 = vld [vmem:[%s15883_s1 + $0x1468] sm:$0xff] }
 0x128   :  { %7801 = vmatpush1.bf16.msra.mxu0 %v10658_v62  ;;  %8211 = vmatpush1.bf16.msra.mxu1 %v10660_v0  ;;  %v10717_v62 = vcombine.high %v646_v55, %v650_v56  ;;  %v653_v0 = vld [vmem:[%s15883_s1 + $0x1300] sm:$0xff] }
 0x129   :  { %7802 = vmatprep.subr.bf16.mxu0 %v10667_v2  ;;  %8212 = vmatprep.subr.bf16.mxu1 %v10669_v63  ;;  %v657_v2 = vld [vmem:[%s15883_s1 + $0x1320] sm:$0xff]  ;;  %v654_v63 = vld [vmem:[%s15883_s1 + $0x1308] sm:$0xff] }
 0x12a   :  { %v10723_v7 = vcombine.high %v653_v0, %v657_v2  ;;  %v10722_v15 = vcombine.low %v653_v0, %v657_v2  ;;  %v10724_v16 = vcombine.low %v654_v63, %v658_v3  ;;  %v702_v0 = vld [vmem:[%s15883_s1 + $0x1488] sm:$0xff] }
 0x12b   :  { %v706_v2 = vld [vmem:[%s15883_s1 + $0x14a8] sm:$0xff] }
 0x12c   :  { %7803 = vmatpush1.bf16.msra.mxu0 %v10666_v10  ;;  %8213 = vmatpush1.bf16.msra.mxu1 %v10668_v11  ;;  %v10725_v10 = vcombine.high %v654_v63, %v658_v3  ;;  %v661_v11 = vld [vmem:[%s15883_s1 + $0x1340] sm:$0xff]  ;;  %v10764_v3 = vcombine.low %v694_v52, %v698_v54 }
 0x12d   :  { %7804 = vmatprep.subr.bf16.mxu0 %v10675_v12  ;;  %8214 = vmatprep.subr.bf16.mxu1 %v10677_v13  ;;  %v665_v12 = vld [vmem:[%s15883_s1 + $0x1360] sm:$0xff]  ;;  %v662_v13 = vld [vmem:[%s15883_s1 + $0x1348] sm:$0xff] }
 0x12e   :  { %v10731_v17 = vcombine.high %v661_v11, %v665_v12  ;;  %v10730_v25 = vcombine.low %v661_v11, %v665_v12  ;;  %v10732_v26 = vcombine.low %v662_v13, %v666_v14  ;;  %v710_v11 = vld [vmem:[%s15883_s1 + $0x14c8] sm:$0xff] }
 0x12f   :  { %v714_v12 = vld [vmem:[%s15883_s1 + $0x14e8] sm:$0xff] }
 0x130   :  { %7805 = vmatpush1.bf16.msra.mxu0 %v10674_v18  ;;  %8215 = vmatpush1.bf16.msra.mxu1 %v10676_v20  ;;  %v10733_v18 = vcombine.high %v662_v13, %v666_v14  ;;  %v669_v20 = vld [vmem:[%s15883_s1 + $0x1380] sm:$0xff]  ;;  %v10772_v14 = vcombine.low %v702_v0, %v706_v2 }
 0x131   :  { %7806 = vmatprep.subr.bf16.mxu0 %v10683_v21  ;;  %8216 = vmatprep.subr.bf16.mxu1 %v10685_v22  ;;  %v673_v21 = vld [vmem:[%s15883_s1 + $0x13a0] sm:$0xff]  ;;  %v670_v22 = vld [vmem:[%s15883_s1 + $0x1388] sm:$0xff] }
 0x132   :  { %v10739_v27 = vcombine.high %v669_v20, %v673_v21  ;;  %v10738_v34 = vcombine.low %v669_v20, %v673_v21  ;;  %v10740_v35 = vcombine.low %v670_v22, %v674_v24  ;;  %v718_v20 = vld [vmem:[%s15883_s1 + $0x1508] sm:$0xff] }
 0x133   :  { %v722_v21 = vld [vmem:[%s15883_s1 + $0x1528] sm:$0xff] }
 0x134   :  { %7807 = vmatpush1.bf16.msra.mxu0 %v10682_v28  ;;  %8217 = vmatpush1.bf16.msra.mxu1 %v10684_v29  ;;  %v10741_v28 = vcombine.high %v670_v22, %v674_v24  ;;  %v677_v29 = vld [vmem:[%s15883_s1 + $0x13c0] sm:$0xff]  ;;  %v10780_v24 = vcombine.low %v710_v11, %v714_v12 }
 0x135   :  { %7808 = vmatprep.subr.bf16.mxu0 %v10691_v30  ;;  %8218 = vmatprep.subr.bf16.mxu1 %v10693_v31  ;;  %v681_v30 = vld [vmem:[%s15883_s1 + $0x13e0] sm:$0xff]  ;;  %v678_v31 = vld [vmem:[%s15883_s1 + $0x13c8] sm:$0xff] }
 0x136   :  { %v10747_v36 = vcombine.high %v677_v29, %v681_v30  ;;  %v10746_v44 = vcombine.low %v677_v29, %v681_v30  ;;  %v10748_v45 = vcombine.low %v678_v31, %v682_v32  ;;  %v726_v29 = vld [vmem:[%s15883_s1 + $0x1548] sm:$0xff] }
 0x137   :  { %v730_v30 = vld [vmem:[%s15883_s1 + $0x1568] sm:$0xff] }
 0x138   :  { %7809 = vmatpush1.bf16.msra.mxu0 %v10690_v37  ;;  %8219 = vmatpush1.bf16.msra.mxu1 %v10692_v38  ;;  %v10749_v37 = vcombine.high %v678_v31, %v682_v32  ;;  %v685_v38 = vld [vmem:[%s15883_s1 + $0x1400] sm:$0xff]  ;;  %v10788_v32 = vcombine.low %v718_v20, %v722_v21 }
 0x139   :  { %7810 = vmatprep.subr.bf16.mxu0 %v10699_v39  ;;  %8220 = vmatprep.subr.bf16.mxu1 %v10701_v41  ;;  %v689_v39 = vld [vmem:[%s15883_s1 + $0x1420] sm:$0xff]  ;;  %v686_v41 = vld [vmem:[%s15883_s1 + $0x1408] sm:$0xff] }
 0x13a   :  { %v10755_v46 = vcombine.high %v685_v38, %v689_v39  ;;  %v10754_v55 = vcombine.low %v685_v38, %v689_v39  ;;  %v10756_v56 = vcombine.low %v686_v41, %v690_v42  ;;  %v734_v38 = vld [vmem:[%s15883_s1 + $0x1588] sm:$0xff] }
 0x13b   :  { %v738_v39 = vld [vmem:[%s15883_s1 + $0x15a8] sm:$0xff] }
 0x13c   :  { %7811 = vmatpush1.bf16.msra.mxu0 %v10698_v47  ;;  %8221 = vmatpush1.bf16.msra.mxu1 %v10700_v48  ;;  %v10757_v47 = vcombine.high %v686_v41, %v690_v42  ;;  %v693_v48 = vld [vmem:[%s15883_s1 + $0x1440] sm:$0xff]  ;;  %v10796_v42 = vcombine.low %v726_v29, %v730_v30 }
 0x13d   :  { %7812 = vmatprep.subr.bf16.mxu0 %v10707_v49  ;;  %8222 = vmatprep.subr.bf16.mxu1 %v10709_v51  ;;  %v697_v49 = vld [vmem:[%s15883_s1 + $0x1460] sm:$0xff]  ;;  %v12962_v51 = vrot.slane %v12741_v8, %v11978_v53 }
 0x13e   :  { %v701_v8 = vld [vmem:[%s15883_s1 + $0x1480] sm:$0xff]  ;;  %v10762_v63 = vcombine.low %v693_v48, %v697_v49 }
 0x140   :  { %7813 = vmatpush1.bf16.msra.mxu0 %v10706_v57  ;;  %8223 = vmatpush1.bf16.msra.mxu1 %v10708_v60  ;;  %v10763_v57 = vcombine.high %v693_v48, %v697_v49  ;;  %v10765_v60 = vcombine.high %v694_v52, %v698_v54  ;;  %v742_v48 = vld [vmem:[%s15883_s1 + $0x15c8] sm:$0xff]  ;;  %v10804_v54 = vcombine.low %v734_v38, %v738_v39 }
 0x141   :  { %7814 = vmatprep.subr.bf16.mxu0 %v10715_v61  ;;  %8224 = vmatprep.subr.bf16.mxu1 %v10717_v62  ;;  %v705_v61 = vld [vmem:[%s15883_s1 + $0x14a0] sm:$0xff]  ;;  %v12978_v62 = vcombine.high %v12774_v59, %v12774_v59  ;;  %v746_v49 = vld [vmem:[%s15883_s1 + $0x15e8] sm:$0xff] }
 0x142   :  { %v10770_v13 = vcombine.low %v701_v8, %v705_v61 }
 0x144   :  { %7815 = vmatpush1.bf16.msra.mxu0 %v10714_v5  ;;  %8225 = vmatpush1.bf16.msra.mxu1 %v10716_v6  ;;  %v10771_v5 = vcombine.high %v701_v8, %v705_v61  ;;  %v10773_v6 = vcombine.high %v702_v0, %v706_v2  ;;  %v750_v8 = vld [vmem:[%s15883_s1 + $0x1608] sm:$0xff]  ;;  %v10812_v2 = vcombine.low %v742_v48, %v746_v49 }
 0x145   :  { %7816 = vmatprep.subr.bf16.mxu0 %v10723_v7  ;;  %8226 = vmatprep.subr.bf16.mxu1 %v10725_v10  ;;  %v709_v7 = vld [vmem:[%s15883_s1 + $0x14c0] sm:$0xff]  ;;  %v754_v61 = vld [vmem:[%s15883_s1 + $0x1628] sm:$0xff] }
 0x146   :  { %v713_v10 = vld [vmem:[%s15883_s1 + $0x14e0] sm:$0xff] }
 0x147   :  { %v10778_v22 = vcombine.low %v709_v7, %v713_v10 }
 0x148   :  { %7817 = vmatpush1.bf16.msra.mxu0 %v10722_v15  ;;  %8227 = vmatpush1.bf16.msra.mxu1 %v10724_v16  ;;  %v10779_v15 = vcombine.high %v709_v7, %v713_v10  ;;  %v10781_v16 = vcombine.high %v710_v11, %v714_v12  ;;  %v758_v7 = vld [vmem:[%s15883_s1 + $0x1648] sm:$0xff]  ;;  %v10820_v12 = vcombine.low %v750_v8, %v754_v61 }
 0x149   :  { %7818 = vmatprep.subr.bf16.mxu0 %v10731_v17  ;;  %8228 = vmatprep.subr.bf16.mxu1 %v10733_v18  ;;  %v717_v17 = vld [vmem:[%s15883_s1 + $0x1500] sm:$0xff]  ;;  %v762_v10 = vld [vmem:[%s15883_s1 + $0x1668] sm:$0xff] }
 0x14a   :  { %v721_v18 = vld [vmem:[%s15883_s1 + $0x1520] sm:$0xff] }
 0x14b   :  { %v10786_v31 = vcombine.low %v717_v17, %v721_v18 }
 0x14c   :  { %7819 = vmatpush1.bf16.msra.mxu0 %v10730_v25  ;;  %8229 = vmatpush1.bf16.msra.mxu1 %v10732_v26  ;;  %v10787_v25 = vcombine.high %v717_v17, %v721_v18  ;;  %v10789_v26 = vcombine.high %v718_v20, %v722_v21  ;;  %v766_v17 = vld [vmem:[%s15883_s1 + $0x1688] sm:$0xff]  ;;  %v10828_v21 = vcombine.low %v758_v7, %v762_v10 }
 0x14d   :  { %7820 = vmatprep.subr.bf16.mxu0 %v10739_v27  ;;  %8230 = vmatprep.subr.bf16.mxu1 %v10741_v28  ;;  %v725_v27 = vld [vmem:[%s15883_s1 + $0x1540] sm:$0xff]  ;;  %v770_v18 = vld [vmem:[%s15883_s1 + $0x16a8] sm:$0xff] }
 0x14e   :  { %v729_v28 = vld [vmem:[%s15883_s1 + $0x1560] sm:$0xff] }
 0x14f   :  { %v10794_v41 = vcombine.low %v725_v27, %v729_v28 }
 0x150   :  { %7821 = vmatpush1.bf16.msra.mxu0 %v10738_v34  ;;  %8231 = vmatpush1.bf16.msra.mxu1 %v10740_v35  ;;  %v10795_v34 = vcombine.high %v725_v27, %v729_v28  ;;  %v10797_v35 = vcombine.high %v726_v29, %v730_v30  ;;  %v774_v27 = vld [vmem:[%s15883_s1 + $0x16c8] sm:$0xff]  ;;  %v10836_v30 = vcombine.low %v766_v17, %v770_v18 }
 0x151   :  { %7822 = vmatprep.subr.bf16.mxu0 %v10747_v36  ;;  %8232 = vmatprep.subr.bf16.mxu1 %v10749_v37  ;;  %v733_v36 = vld [vmem:[%s15883_s1 + $0x1580] sm:$0xff]  ;;  %v778_v28 = vld [vmem:[%s15883_s1 + $0x16e8] sm:$0xff] }
 0x152   :  { %v737_v37 = vld [vmem:[%s15883_s1 + $0x15a0] sm:$0xff] }
 0x153   :  { %v10802_v52 = vcombine.low %v733_v36, %v737_v37 }
 0x154   :  { %7823 = vmatpush1.bf16.msra.mxu0 %v10746_v44  ;;  %8233 = vmatpush1.bf16.msra.mxu1 %v10748_v45  ;;  %v10803_v44 = vcombine.high %v733_v36, %v737_v37  ;;  %v10805_v45 = vcombine.high %v734_v38, %v738_v39  ;;  %v782_v36 = vld [vmem:[%s15883_s1 + $0x1708] sm:$0xff]  ;;  %v10844_v39 = vcombine.low %v774_v27, %v778_v28 }
 0x155   :  { %7833 = vmatprep.subr.bf16.mxu0 %v10755_v46  ;;  %8243 = vmatprep.subr.bf16.mxu1 %v10757_v47  ;;  %v741_v46 = vld [vmem:[%s15883_s1 + $0x15c0] sm:$0xff]  ;;  %v786_v37 = vld [vmem:[%s15883_s1 + $0x1728] sm:$0xff] }
 0x156   :  { %v745_v47 = vld [vmem:[%s15883_s1 + $0x15e0] sm:$0xff] }
 0x157   :  { %7825 = vmatmul.mubr.bf16.vlgmr.msra.gmra.mrb[0].mxu0 %v12962_v51  ;;  %8235 = vmatmul.mubr.bf16.vlgmr.msra.gmra.mrb[0].mxu1 %v12962_v51  ;;  %v10810_v0 = vcombine.low %v741_v46, %v745_v47 }
 0x158   :  { %7834 = vmatpush1.bf16.msra.mxu0 %v10754_v55  ;;  %8244 = vmatpush1.bf16.msra.mxu1 %v10756_v56  ;;  %v10811_v55 = vcombine.high %v741_v46, %v745_v47  ;;  %v10813_v56 = vcombine.high %v742_v48, %v746_v49  ;;  %v790_v46 = vld [vmem:[%s15883_s1 + $0x1748] sm:$0xff]  ;;  %v10852_v49 = vcombine.low %v782_v36, %v786_v37 }
 0x159   :  { %7835 = vmatprep.subr.bf16.mxu0 %v10763_v57  ;;  %8245 = vmatprep.subr.bf16.mxu1 %v10765_v60  ;;  %v749_v57 = vld [vmem:[%s15883_s1 + $0x1600] sm:$0xff]  ;;  %v794_v47 = vld [vmem:[%s15883_s1 + $0x1768] sm:$0xff] }
 0x15a   :  { %7865 = vmatprep.mubr.bf16.mxu0 %v12978_v62  ;;  %8275 = vmatprep.mubr.bf16.mxu1 %v12978_v62  ;;  %v753_v60 = vld [vmem:[%s15883_s1 + $0x1620] sm:$0xff] }
 0x15b   :  { %v10818_v11 = vcombine.low %v749_v57, %v753_v60 }
 0x15c   :  { %7836 = vmatpush1.bf16.msra.mxu0 %v10762_v63  ;;  %8246 = vmatpush1.bf16.msra.mxu1 %v10764_v3  ;;  %v10819_v63 = vcombine.high %v749_v57, %v753_v60  ;;  %v10821_v3 = vcombine.high %v750_v8, %v754_v61  ;;  %v798_v57 = vld [vmem:[%s15883_s1 + $0x1788] sm:$0xff]  ;;  %v10860_v61 = vcombine.low %v790_v46, %v794_v47 }
 0x15d   :  { %7837 = vmatprep.subr.bf16.mxu0 %v10771_v5  ;;  %8247 = vmatprep.subr.bf16.mxu1 %v10773_v6  ;;  %v757_v5 = vld [vmem:[%s15883_s1 + $0x1640] sm:$0xff]  ;;  %v802_v60 = vld [vmem:[%s15883_s1 + $0x17a8] sm:$0xff] }
 0x15e   :  { %v761_v6 = vld [vmem:[%s15883_s1 + $0x1660] sm:$0xff] }
 0x15f   :  { %v10826_v20 = vcombine.low %v757_v5, %v761_v6 }
 0x160   :  { %7838 = vmatpush1.bf16.msra.mxu0 %v10770_v13  ;;  %8248 = vmatpush1.bf16.msra.mxu1 %v10772_v14  ;;  %v10827_v13 = vcombine.high %v757_v5, %v761_v6  ;;  %v10829_v14 = vcombine.high %v758_v7, %v762_v10  ;;  %v1367_v5 = vcombine.high %v12731_v1, %v12731_v1  ;;  %v806_v6 = vld [vmem:[%s15883_s1 + $0x17c8] sm:$0xff]  ;;  %v813_v1 = vld [vmem:[%s15883_s1 + $0x1800] sm:$0xff] }
 0x161   :  { %7839 = vmatprep.subr.bf16.mxu0 %v10779_v15  ;;  %8249 = vmatprep.subr.bf16.mxu1 %v10781_v16  ;;  %v765_v15 = vld [vmem:[%s15883_s1 + $0x1680] sm:$0xff]  ;;  %v810_v7 = vld [vmem:[%s15883_s1 + $0x17e8] sm:$0xff] }
 0x162   :  { %v769_v16 = vld [vmem:[%s15883_s1 + $0x16a0] sm:$0xff] }
 0x163   :  { %v10834_v29 = vcombine.low %v765_v15, %v769_v16 }
 0x164   :  { %7840 = vmatpush1.bf16.msra.mxu0 %v10778_v22  ;;  %8250 = vmatpush1.bf16.msra.mxu1 %v10780_v24  ;;  %v10835_v22 = vcombine.high %v765_v15, %v769_v16  ;;  %v10837_v24 = vcombine.high %v766_v17, %v770_v18  ;;  %v13155_v15 = vrot.slane %v1367_v5, %v11978_v53  ;;  %v814_v16 = vld [vmem:[%s15883_s1 + $0x1808] sm:$0xff]  ;;  %v853_v5 = vld [vmem:[%s15883_s1 + $0x1940] sm:$0xff] }
 0x165   :  { %7841 = vmatprep.subr.bf16.mxu0 %v10787_v25  ;;  %8251 = vmatprep.subr.bf16.mxu1 %v10789_v26  ;;  %v773_v25 = vld [vmem:[%s15883_s1 + $0x16c0] sm:$0xff]  ;;  %v818_v17 = vld [vmem:[%s15883_s1 + $0x1828] sm:$0xff] }
 0x166   :  { %v777_v26 = vld [vmem:[%s15883_s1 + $0x16e0] sm:$0xff] }
 0x167   :  { %v10842_v38 = vcombine.low %v773_v25, %v777_v26 }
 0x168   :  { %7842 = vmatpush1.bf16.msra.mxu0 %v10786_v31  ;;  %8252 = vmatpush1.bf16.msra.mxu1 %v10788_v32  ;;  %v10843_v31 = vcombine.high %v773_v25, %v777_v26  ;;  %v10845_v32 = vcombine.high %v774_v27, %v778_v28  ;;  %v825_v25 = vld [vmem:[%s15883_s1 + $0x1860] sm:$0xff]  ;;  %v1383_v26 = vcombine.high %v13155_v15, %v13155_v15  ;;  %v822_v28 = vld [vmem:[%s15883_s1 + $0x1848] sm:$0xff] }
 0x169   :  { %7843 = vmatprep.subr.bf16.mxu0 %v10795_v34  ;;  %8253 = vmatprep.subr.bf16.mxu1 %v10797_v35  ;;  %v781_v34 = vld [vmem:[%s15883_s1 + $0x1700] sm:$0xff]  ;;  %v13173_v27 = vcombine.high %v12962_v51, %v12962_v51 }
 0x16a   :  { %v785_v35 = vld [vmem:[%s15883_s1 + $0x1720] sm:$0xff] }
 0x16b   :  { %v10850_v48 = vcombine.low %v781_v34, %v785_v35 }
 0x16c   :  { %7844 = vmatpush1.bf16.msra.mxu0 %v10794_v41  ;;  %8254 = vmatpush1.bf16.msra.mxu1 %v10796_v42  ;;  %v10851_v41 = vcombine.high %v781_v34, %v785_v35  ;;  %v10853_v42 = vcombine.high %v782_v36, %v786_v37  ;;  %v829_v35 = vld [vmem:[%s15883_s1 + $0x1880] sm:$0xff]  ;;  %v13188_v37 = vrot.slane %v1383_v26, %v11978_v53 }
 0x16d   :  { %7845 = vmatprep.subr.bf16.mxu0 %v10803_v44  ;;  %8255 = vmatprep.subr.bf16.mxu1 %v10805_v45  ;;  %v789_v44 = vld [vmem:[%s15883_s1 + $0x1740] sm:$0xff] }
 0x16e   :  { %v793_v45 = vld [vmem:[%s15883_s1 + $0x1760] sm:$0xff] }
 0x16f   :  { %v10858_v8 = vcombine.low %v789_v44, %v793_v45  ;;  %v833_v36 = vld [vmem:[%s15883_s1 + $0x18a0] sm:$0xff] }
 0x170   :  { %7846 = vmatpush1.bf16.msra.mxu0 %v10802_v52  ;;  %8256 = vmatpush1.bf16.msra.mxu1 %v10804_v54  ;;  %v10859_v52 = vcombine.high %v789_v44, %v793_v45  ;;  %v10861_v54 = vcombine.high %v790_v46, %v794_v47  ;;  %v10899_v44 = vcombine.high %v829_v35, %v833_v36  ;;  %v837_v46 = vld [vmem:[%s15883_s1 + $0x18c0] sm:$0xff] }
 0x171   :  { %7847 = vmatprep.subr.bf16.mxu0 %v10811_v55  ;;  %8257 = vmatprep.subr.bf16.mxu1 %v10813_v56  ;;  %v797_v55 = vld [vmem:[%s15883_s1 + $0x1780] sm:$0xff] }
 0x172   :  { %v801_v56 = vld [vmem:[%s15883_s1 + $0x17a0] sm:$0xff] }
 0x173   :  { %v10866_v10 = vcombine.low %v797_v55, %v801_v56  ;;  %v841_v47 = vld [vmem:[%s15883_s1 + $0x18e0] sm:$0xff] }
 0x174   :  { %7848 = vmatpush1.bf16.msra.mxu0 %v10810_v0  ;;  %8258 = vmatpush1.bf16.msra.mxu1 %v10812_v2  ;;  %v10867_v0 = vcombine.high %v797_v55, %v801_v56  ;;  %v10869_v2 = vcombine.high %v798_v57, %v802_v60  ;;  %v10907_v55 = vcombine.high %v837_v46, %v841_v47  ;;  %v873_v26 = vld [vmem:[%s15883_s1 + $0x19e0] sm:$0xff] }
 0x175   :  { %7849 = vmatprep.subr.bf16.mxu0 %v10819_v63  ;;  %8259 = vmatprep.subr.bf16.mxu1 %v10821_v3  ;;  %v805_v63 = vld [vmem:[%s15883_s1 + $0x17c0] sm:$0xff] }
 0x176   :  { %v809_v3 = vld [vmem:[%s15883_s1 + $0x17e0] sm:$0xff] }
 0x177   :  { %v10874_v18 = vcombine.low %v805_v63, %v809_v3 }
 0x178   :  { %7850 = vmatpush1.bf16.msra.mxu0 %v10818_v11  ;;  %8260 = vmatpush1.bf16.msra.mxu1 %v10820_v12  ;;  %v10868_v11 = vcombine.low %v798_v57, %v802_v60  ;;  %v10875_v12 = vcombine.high %v805_v63, %v809_v3  ;;  %v845_v57 = vld [vmem:[%s15883_s1 + $0x1900] sm:$0xff] }
 0x179   :  { %7851 = vmatprep.subr.bf16.mxu0 %v10827_v13  ;;  %8261 = vmatprep.subr.bf16.mxu1 %v10829_v14  ;;  %v10877_v13 = vcombine.high %v806_v6, %v810_v7  ;;  %v817_v14 = vld [vmem:[%s15883_s1 + $0x1820] sm:$0xff] }
 0x17a   :  { %v849_v60 = vld [vmem:[%s15883_s1 + $0x1920] sm:$0xff] }
 0x17b   :  { %v10915_v63 = vcombine.high %v845_v57, %v849_v60 }
 0x17c   :  { %7852 = vmatpush1.bf16.msra.mxu0 %v10826_v20  ;;  %8262 = vmatpush1.bf16.msra.mxu1 %v10828_v21  ;;  %v10876_v20 = vcombine.low %v806_v6, %v810_v7  ;;  %v10883_v21 = vcombine.high %v813_v1, %v817_v14  ;;  %v857_v6 = vld [vmem:[%s15883_s1 + $0x1960] sm:$0xff]  ;;  %v854_v7 = vld [vmem:[%s15883_s1 + $0x1948] sm:$0xff] }
 0x17d   :  { %7853 = vmatprep.subr.bf16.mxu0 %v10835_v22  ;;  %8263 = vmatprep.subr.bf16.mxu1 %v10837_v24  ;;  %v10885_v22 = vcombine.high %v814_v16, %v818_v17  ;;  %v821_v24 = vld [vmem:[%s15883_s1 + $0x1840] sm:$0xff] }
 0x180   :  { %7854 = vmatpush1.bf16.msra.mxu0 %v10834_v29  ;;  %8264 = vmatpush1.bf16.msra.mxu1 %v10836_v30  ;;  %v826_v29 = vld [vmem:[%s15883_s1 + $0x1868] sm:$0xff]  ;;  %v10882_v30 = vcombine.low %v813_v1, %v817_v14  ;;  %v861_v14 = vld [vmem:[%s15883_s1 + $0x1980] sm:$0xff] }
 0x181   :  { %7855 = vmatprep.subr.bf16.mxu0 %v10843_v31  ;;  %8265 = vmatprep.subr.bf16.mxu1 %v10845_v32  ;;  %v10884_v31 = vcombine.low %v814_v16, %v818_v17  ;;  %v10891_v32 = vcombine.high %v821_v24, %v825_v25  ;;  %v10893_v34 = vcombine.high %v822_v28, %v826_v29  ;;  %v865_v16 = vld [vmem:[%s15883_s1 + $0x19a0] sm:$0xff]  ;;  %v862_v17 = vld [vmem:[%s15883_s1 + $0x1988] sm:$0xff] }
 0x184   :  { %7856 = vmatpush1.bf16.msra.mxu0 %v10842_v38  ;;  %8266 = vmatpush1.bf16.msra.mxu1 %v10844_v39  ;;  %v830_v38 = vld [vmem:[%s15883_s1 + $0x1888] sm:$0xff] }
 0x185   :  { %7857 = vmatprep.subr.bf16.mxu0 %v10851_v41  ;;  %8267 = vmatprep.subr.bf16.mxu1 %v10853_v42  ;;  %v834_v39 = vld [vmem:[%s15883_s1 + $0x18a8] sm:$0xff]  ;;  %v10890_v41 = vcombine.low %v821_v24, %v825_v25  ;;  %v10892_v42 = vcombine.low %v822_v28, %v826_v29  ;;  %v869_v25 = vld [vmem:[%s15883_s1 + $0x19c0] sm:$0xff] }
 0x186   :  { %v10901_v45 = vcombine.high %v830_v38, %v834_v39  ;;  %v870_v28 = vld [vmem:[%s15883_s1 + $0x19c8] sm:$0xff] }
 0x187   :  { %v874_v29 = vld [vmem:[%s15883_s1 + $0x19e8] sm:$0xff] }
 0x188   :  { %7858 = vmatpush1.bf16.msra.mxu0 %v10850_v48  ;;  %8268 = vmatpush1.bf16.msra.mxu1 %v10852_v49  ;;  %v838_v48 = vld [vmem:[%s15883_s1 + $0x18c8] sm:$0xff] }
 0x189   :  { %7859 = vmatprep.subr.bf16.mxu0 %v10859_v52  ;;  %8269 = vmatprep.subr.bf16.mxu1 %v10861_v54  ;;  %v842_v49 = vld [vmem:[%s15883_s1 + $0x18e8] sm:$0xff]  ;;  %v10898_v52 = vcombine.low %v829_v35, %v833_v36  ;;  %v10900_v54 = vcombine.low %v830_v38, %v834_v39  ;;  %v877_v35 = vld [vmem:[%s15883_s1 + $0x1a00] sm:$0xff] }
 0x18a   :  { %v10909_v56 = vcombine.high %v838_v48, %v842_v49  ;;  %v881_v36 = vld [vmem:[%s15883_s1 + $0x1a20] sm:$0xff]  ;;  %v878_v38 = vld [vmem:[%s15883_s1 + $0x1a08] sm:$0xff] }
 0x18b   :  { %v882_v39 = vld [vmem:[%s15883_s1 + $0x1a28] sm:$0xff] }
 0x18c   :  { %7860 = vmatpush1.bf16.msra.mxu0 %v10858_v8  ;;  %8270 = vmatpush1.bf16.msra.mxu1 %v10860_v61  ;;  %v846_v8 = vld [vmem:[%s15883_s1 + $0x1908] sm:$0xff] }
 0x18d   :  { %7861 = vmatprep.subr.bf16.mxu0 %v10867_v0  ;;  %8271 = vmatprep.subr.bf16.mxu1 %v10869_v2  ;;  %v850_v61 = vld [vmem:[%s15883_s1 + $0x1928] sm:$0xff]  ;;  %v10906_v0 = vcombine.low %v837_v46, %v841_v47  ;;  %v10908_v2 = vcombine.low %v838_v48, %v842_v49  ;;  %v885_v46 = vld [vmem:[%s15883_s1 + $0x1a40] sm:$0xff] }
 0x18e   :  { %v10917_v3 = vcombine.high %v846_v8, %v850_v61  ;;  %v889_v47 = vld [vmem:[%s15883_s1 + $0x1a60] sm:$0xff]  ;;  %v886_v48 = vld [vmem:[%s15883_s1 + $0x1a48] sm:$0xff] }
 0x18f   :  { %v890_v49 = vld [vmem:[%s15883_s1 + $0x1a68] sm:$0xff] }
 0x190   :  { %7862 = vmatpush1.bf16.msra.mxu0 %v10866_v10  ;;  %8272 = vmatpush1.bf16.msra.mxu1 %v10868_v11  ;;  %v858_v10 = vld [vmem:[%s15883_s1 + $0x1968] sm:$0xff]  ;;  %v10914_v11 = vcombine.low %v845_v57, %v849_v60  ;;  %v893_v57 = vld [vmem:[%s15883_s1 + $0x1a80] sm:$0xff] }
 0x191   :  { %7863 = vmatprep.subr.bf16.mxu0 %v10875_v12  ;;  %8273 = vmatprep.subr.bf16.mxu1 %v10877_v13  ;;  %v10916_v12 = vcombine.low %v846_v8, %v850_v61  ;;  %v10923_v13 = vcombine.high %v853_v5, %v857_v6  ;;  %v10925_v1 = vcombine.high %v854_v7, %v858_v10  ;;  %v897_v60 = vld [vmem:[%s15883_s1 + $0x1aa0] sm:$0xff]  ;;  %v894_v8 = vld [vmem:[%s15883_s1 + $0x1a88] sm:$0xff] }
 0x192   :  { %v898_v61 = vld [vmem:[%s15883_s1 + $0x1aa8] sm:$0xff] }
 0x194   :  { %7864 = vmatpush1.bf16.msra.mxu0 %v10874_v18  ;;  %8274 = vmatpush1.bf16.msra.mxu1 %v10876_v20  ;;  %v866_v18 = vld [vmem:[%s15883_s1 + $0x19a8] sm:$0xff]  ;;  %v10922_v20 = vcombine.low %v853_v5, %v857_v6  ;;  %v901_v5 = vld [vmem:[%s15883_s1 + $0x1ac0] sm:$0xff] }
 0x195   :  { %7874 = vmatprep.subr.bf16.mxu0 %v10883_v21  ;;  %8284 = vmatprep.subr.bf16.mxu1 %v10885_v22  ;;  %v10924_v21 = vcombine.low %v854_v7, %v858_v10  ;;  %v10931_v22 = vcombine.high %v861_v14, %v865_v16  ;;  %v10933_v24 = vcombine.high %v862_v17, %v866_v18  ;;  %v905_v6 = vld [vmem:[%s15883_s1 + $0x1ae0] sm:$0xff]  ;;  %v902_v7 = vld [vmem:[%s15883_s1 + $0x1ac8] sm:$0xff] }
 0x196   :  { %v906_v10 = vld [vmem:[%s15883_s1 + $0x1ae8] sm:$0xff] }
 0x197   :  { %7866 = vmatmul.mubr.bf16.vlgmr.msra.gmra.mrb[0].mxu0 %v13173_v27  ;;  %8276 = vmatmul.mubr.bf16.vlgmr.msra.gmra.mrb[0].mxu1 %v13173_v27 }
 0x198   :  { %7875 = vmatpush1.bf16.msra.mxu0 %v10882_v30  ;;  %8285 = vmatpush1.bf16.msra.mxu1 %v10884_v31  ;;  %v10930_v30 = vcombine.low %v861_v14, %v865_v16  ;;  %v10932_v31 = vcombine.low %v862_v17, %v866_v18  ;;  %v909_v14 = vld [vmem:[%s15883_s1 + $0x1b00] sm:$0xff]  ;;  %v910_v17 = vld [vmem:[%s15883_s1 + $0x1b08] sm:$0xff] }
 0x199   :  { %7876 = vmatprep.subr.bf16.mxu0 %v10891_v32  ;;  %8286 = vmatprep.subr.bf16.mxu1 %v10893_v34  ;;  %v10939_v32 = vcombine.high %v869_v25, %v873_v26  ;;  %v10941_v34 = vcombine.high %v870_v28, %v874_v29  ;;  %v913_v16 = vld [vmem:[%s15883_s1 + $0x1b20] sm:$0xff]  ;;  %v914_v18 = vld [vmem:[%s15883_s1 + $0x1b28] sm:$0xff] }
 0x19a   :  { %7906 = vmatprep.mubr.bf16.mxu0 %v13188_v37  ;;  %8316 = vmatprep.mubr.bf16.mxu1 %v13188_v37 }
 0x19c   :  { %7877 = vmatpush1.bf16.msra.mxu0 %v10890_v41  ;;  %8287 = vmatpush1.bf16.msra.mxu1 %v10892_v42  ;;  %v10938_v41 = vcombine.low %v869_v25, %v873_v26  ;;  %v10940_v42 = vcombine.low %v870_v28, %v874_v29  ;;  %v917_v25 = vld [vmem:[%s15883_s1 + $0x1b40] sm:$0xff]  ;;  %v918_v28 = vld [vmem:[%s15883_s1 + $0x1b48] sm:$0xff] }
 0x19d   :  { %7878 = vmatprep.subr.bf16.mxu0 %v10899_v44  ;;  %8288 = vmatprep.subr.bf16.mxu1 %v10901_v45  ;;  %v10947_v44 = vcombine.high %v877_v35, %v881_v36  ;;  %v10949_v45 = vcombine.high %v878_v38, %v882_v39  ;;  %v921_v26 = vld [vmem:[%s15883_s1 + $0x1b60] sm:$0xff]  ;;  %v922_v29 = vld [vmem:[%s15883_s1 + $0x1b68] sm:$0xff] }
 0x1a0   :  { %7879 = vmatpush1.bf16.msra.mxu0 %v10898_v52  ;;  %8289 = vmatpush1.bf16.msra.mxu1 %v10900_v54  ;;  %v10946_v52 = vcombine.low %v877_v35, %v881_v36  ;;  %v10948_v54 = vcombine.low %v878_v38, %v882_v39  ;;  %v925_v35 = vld [vmem:[%s15883_s1 + $0x1b80] sm:$0xff]  ;;  %v926_v38 = vld [vmem:[%s15883_s1 + $0x1b88] sm:$0xff] }
 0x1a1   :  { %7880 = vmatprep.subr.bf16.mxu0 %v10907_v55  ;;  %8290 = vmatprep.subr.bf16.mxu1 %v10909_v56  ;;  %v10955_v55 = vcombine.high %v885_v46, %v889_v47  ;;  %v10957_v56 = vcombine.high %v886_v48, %v890_v49  ;;  %v929_v36 = vld [vmem:[%s15883_s1 + $0x1ba0] sm:$0xff]  ;;  %v930_v39 = vld [vmem:[%s15883_s1 + $0x1ba8] sm:$0xff] }
 0x1a4   :  { %7881 = vmatpush1.bf16.msra.mxu0 %v10906_v0  ;;  %8291 = vmatpush1.bf16.msra.mxu1 %v10908_v2  ;;  %v10954_v0 = vcombine.low %v885_v46, %v889_v47  ;;  %v10956_v2 = vcombine.low %v886_v48, %v890_v49  ;;  %v933_v46 = vld [vmem:[%s15883_s1 + $0x1bc0] sm:$0xff]  ;;  %v934_v48 = vld [vmem:[%s15883_s1 + $0x1bc8] sm:$0xff] }
 0x1a5   :  { %7882 = vmatprep.subr.bf16.mxu0 %v10915_v63  ;;  %8292 = vmatprep.subr.bf16.mxu1 %v10917_v3  ;;  %v10963_v63 = vcombine.high %v893_v57, %v897_v60  ;;  %v10965_v3 = vcombine.high %v894_v8, %v898_v61  ;;  %v937_v47 = vld [vmem:[%s15883_s1 + $0x1be0] sm:$0xff]  ;;  %v938_v49 = vld [vmem:[%s15883_s1 + $0x1be8] sm:$0xff] }
 0x1a8   :  { %7883 = vmatpush1.bf16.msra.mxu0 %v10914_v11  ;;  %8293 = vmatpush1.bf16.msra.mxu1 %v10916_v12  ;;  %v10962_v11 = vcombine.low %v893_v57, %v897_v60  ;;  %v10964_v12 = vcombine.low %v894_v8, %v898_v61  ;;  %v941_v57 = vld [vmem:[%s15883_s1 + $0x1c00] sm:$0xff]  ;;  %v942_v8 = vld [vmem:[%s15883_s1 + $0x1c08] sm:$0xff] }
 0x1a9   :  { %7884 = vmatprep.subr.bf16.mxu0 %v10923_v13  ;;  %8294 = vmatprep.subr.bf16.mxu1 %v10925_v1  ;;  %v10971_v13 = vcombine.high %v901_v5, %v905_v6  ;;  %v10973_v1 = vcombine.high %v902_v7, %v906_v10  ;;  %v945_v60 = vld [vmem:[%s15883_s1 + $0x1c20] sm:$0xff]  ;;  %v946_v61 = vld [vmem:[%s15883_s1 + $0x1c28] sm:$0xff] }
 0x1ac   :  { %7885 = vmatpush1.bf16.msra.mxu0 %v10922_v20  ;;  %8295 = vmatpush1.bf16.msra.mxu1 %v10924_v21  ;;  %v10970_v20 = vcombine.low %v901_v5, %v905_v6  ;;  %v10972_v21 = vcombine.low %v902_v7, %v906_v10  ;;  %v949_v5 = vld [vmem:[%s15883_s1 + $0x1c40] sm:$0xff]  ;;  %v13376_v7 = vrot.slane %v13155_v15, %v11978_v53  ;;  %v950_v10 = vld [vmem:[%s15883_s1 + $0x1c48] sm:$0xff] }
 0x1ad   :  { %7886 = vmatprep.subr.bf16.mxu0 %v10931_v22  ;;  %8296 = vmatprep.subr.bf16.mxu1 %v10933_v24  ;;  %v10979_v22 = vcombine.high %v909_v14, %v913_v16  ;;  %v10981_v24 = vcombine.high %v910_v17, %v914_v18  ;;  %v953_v6 = vld [vmem:[%s15883_s1 + $0x1c60] sm:$0xff] }
 0x1ae   :  { %v957_v15 = vld [vmem:[%s15883_s1 + $0x1c80] sm:$0xff] }
 0x1b0   :  { %7887 = vmatpush1.bf16.msra.mxu0 %v10930_v30  ;;  %8297 = vmatpush1.bf16.msra.mxu1 %v10932_v31  ;;  %v10978_v30 = vcombine.low %v909_v14, %v913_v16  ;;  %v10980_v31 = vcombine.low %v910_v17, %v914_v18  ;;  %v961_v16 = vld [vmem:[%s15883_s1 + $0x1ca0] sm:$0xff]  ;;  %v13392_v17 = vcombine.high %v13188_v37, %v13188_v37  ;;  %v958_v18 = vld [vmem:[%s15883_s1 + $0x1c88] sm:$0xff] }
 0x1b1   :  { %7888 = vmatprep.subr.bf16.mxu0 %v10939_v32  ;;  %8298 = vmatprep.subr.bf16.mxu1 %v10941_v34  ;;  %v10987_v32 = vcombine.high %v917_v25, %v921_v26  ;;  %v10989_v34 = vcombine.high %v918_v28, %v922_v29 }
 0x1b4   :  { %7889 = vmatpush1.bf16.msra.mxu0 %v10938_v41  ;;  %8299 = vmatpush1.bf16.msra.mxu1 %v10940_v42  ;;  %v10986_v41 = vcombine.low %v917_v25, %v921_v26  ;;  %v10988_v42 = vcombine.low %v918_v28, %v922_v29  ;;  %v965_v26 = vld [vmem:[%s15883_s1 + $0x1cc0] sm:$0xff]  ;;  %v966_v29 = vld [vmem:[%s15883_s1 + $0x1cc8] sm:$0xff] }
 0x1b5   :  { %7890 = vmatprep.subr.bf16.mxu0 %v10947_v44  ;;  %8300 = vmatprep.subr.bf16.mxu1 %v10949_v45  ;;  %v10995_v44 = vcombine.high %v925_v35, %v929_v36  ;;  %v10997_v45 = vcombine.high %v926_v38, %v930_v39  ;;  %v969_v28 = vld [vmem:[%s15883_s1 + $0x1ce0] sm:$0xff] }
 0x1b8   :  { %7891 = vmatpush1.bf16.msra.mxu0 %v10946_v52  ;;  %8301 = vmatpush1.bf16.msra.mxu1 %v10948_v54  ;;  %v10994_v52 = vcombine.low %v925_v35, %v929_v36  ;;  %v10996_v54 = vcombine.low %v926_v38, %v930_v39  ;;  %v973_v36 = vld [vmem:[%s15883_s1 + $0x1d00] sm:$0xff]  ;;  %v974_v39 = vld [vmem:[%s15883_s1 + $0x1d08] sm:$0xff] }
 0x1b9   :  { %7892 = vmatprep.subr.bf16.mxu0 %v10955_v55  ;;  %8302 = vmatprep.subr.bf16.mxu1 %v10957_v56  ;;  %v11003_v55 = vcombine.high %v933_v46, %v937_v47  ;;  %v11005_v56 = vcombine.high %v934_v48, %v938_v49  ;;  %v977_v38 = vld [vmem:[%s15883_s1 + $0x1d20] sm:$0xff] }
 0x1bc   :  { %7893 = vmatpush1.bf16.msra.mxu0 %v10954_v0  ;;  %8303 = vmatpush1.bf16.msra.mxu1 %v10956_v2  ;;  %v11002_v0 = vcombine.low %v933_v46, %v937_v47  ;;  %v11004_v2 = vcombine.low %v934_v48, %v938_v49  ;;  %v981_v47 = vld [vmem:[%s15883_s1 + $0x1d40] sm:$0xff]  ;;  %v982_v49 = vld [vmem:[%s15883_s1 + $0x1d48] sm:$0xff] }
 0x1bd   :  { %7894 = vmatprep.subr.bf16.mxu0 %v10963_v63  ;;  %8304 = vmatprep.subr.bf16.mxu1 %v10965_v3  ;;  %v11011_v63 = vcombine.high %v941_v57, %v945_v60  ;;  %v11013_v3 = vcombine.high %v942_v8, %v946_v61  ;;  %v985_v48 = vld [vmem:[%s15883_s1 + $0x1d60] sm:$0xff] }
 0x1c0   :  { %7895 = vmatpush1.bf16.msra.mxu0 %v10962_v11  ;;  %8305 = vmatpush1.bf16.msra.mxu1 %v10964_v12  ;;  %v954_v11 = vld [vmem:[%s15883_s1 + $0x1c68] sm:$0xff]  ;;  %v11010_v12 = vcombine.low %v941_v57, %v945_v60  ;;  %v989_v60 = vld [vmem:[%s15883_s1 + $0x1d80] sm:$0xff] }
 0x1c1   :  { %7896 = vmatprep.subr.bf16.mxu0 %v10971_v13  ;;  %8306 = vmatprep.subr.bf16.mxu1 %v10973_v1  ;;  %v11012_v13 = vcombine.low %v942_v8, %v946_v61  ;;  %v11019_v1 = vcombine.high %v949_v5, %v953_v6  ;;  %v11021_v14 = vcombine.high %v950_v10, %v954_v11  ;;  %v993_v8 = vld [vmem:[%s15883_s1 + $0x1da0] sm:$0xff]  ;;  %v990_v61 = vld [vmem:[%s15883_s1 + $0x1d88] sm:$0xff] }
 0x1c4   :  { %7897 = vmatpush1.bf16.msra.mxu0 %v10970_v20  ;;  %8307 = vmatpush1.bf16.msra.mxu1 %v10972_v21  ;;  %v962_v20 = vld [vmem:[%s15883_s1 + $0x1ca8] sm:$0xff]  ;;  %v11018_v21 = vcombine.low %v949_v5, %v953_v6  ;;  %v997_v6 = vld [vmem:[%s15883_s1 + $0x1dc0] sm:$0xff] }
 0x1c5   :  { %7898 = vmatprep.subr.bf16.mxu0 %v10979_v22  ;;  %8308 = vmatprep.subr.bf16.mxu1 %v10981_v24  ;;  %v11020_v22 = vcombine.low %v950_v10, %v954_v11  ;;  %v11027_v24 = vcombine.high %v957_v15, %v961_v16  ;;  %v11029_v25 = vcombine.high %v958_v18, %v962_v20  ;;  %v1001_v10 = vld [vmem:[%s15883_s1 + $0x1de0] sm:$0xff]  ;;  %v998_v11 = vld [vmem:[%s15883_s1 + $0x1dc8] sm:$0xff] }
 0x1c8   :  { %7899 = vmatpush1.bf16.msra.mxu0 %v10978_v30  ;;  %8309 = vmatpush1.bf16.msra.mxu1 %v10980_v31  ;;  %v970_v30 = vld [vmem:[%s15883_s1 + $0x1ce8] sm:$0xff]  ;;  %v11026_v31 = vcombine.low %v957_v15, %v961_v16  ;;  %v1005_v16 = vld [vmem:[%s15883_s1 + $0x1e00] sm:$0xff] }
 0x1c9   :  { %7900 = vmatprep.subr.bf16.mxu0 %v10987_v32  ;;  %8310 = vmatprep.subr.bf16.mxu1 %v10989_v34  ;;  %v11028_v32 = vcombine.low %v958_v18, %v962_v20  ;;  %v11035_v34 = vcombine.high %v965_v26, %v969_v28  ;;  %v11037_v35 = vcombine.high %v966_v29, %v970_v30  ;;  %v1009_v18 = vld [vmem:[%s15883_s1 + $0x1e20] sm:$0xff]  ;;  %v1006_v20 = vld [vmem:[%s15883_s1 + $0x1e08] sm:$0xff] }
 0x1cc   :  { %7901 = vmatpush1.bf16.msra.mxu0 %v10986_v41  ;;  %8311 = vmatpush1.bf16.msra.mxu1 %v10988_v42  ;;  %v978_v41 = vld [vmem:[%s15883_s1 + $0x1d28] sm:$0xff]  ;;  %v11034_v42 = vcombine.low %v965_v26, %v969_v28  ;;  %v1013_v28 = vld [vmem:[%s15883_s1 + $0x1e40] sm:$0xff] }
 0x1cd   :  { %7902 = vmatprep.subr.bf16.mxu0 %v10995_v44  ;;  %8312 = vmatprep.subr.bf16.mxu1 %v10997_v45  ;;  %v11036_v44 = vcombine.low %v966_v29, %v970_v30  ;;  %v11043_v45 = vcombine.high %v973_v36, %v977_v38  ;;  %v11045_v46 = vcombine.high %v974_v39, %v978_v41  ;;  %v1017_v29 = vld [vmem:[%s15883_s1 + $0x1e60] sm:$0xff]  ;;  %v1014_v30 = vld [vmem:[%s15883_s1 + $0x1e48] sm:$0xff] }
 0x1d0   :  { %7903 = vmatpush1.bf16.msra.mxu0 %v10994_v52  ;;  %8313 = vmatpush1.bf16.msra.mxu1 %v10996_v54  ;;  %v986_v52 = vld [vmem:[%s15883_s1 + $0x1d68] sm:$0xff]  ;;  %v11042_v54 = vcombine.low %v973_v36, %v977_v38  ;;  %v1021_v38 = vld [vmem:[%s15883_s1 + $0x1e80] sm:$0xff] }
 0x1d1   :  { %7904 = vmatprep.subr.bf16.mxu0 %v11003_v55  ;;  %8314 = vmatprep.subr.bf16.mxu1 %v11005_v56  ;;  %v11044_v55 = vcombine.low %v974_v39, %v978_v41  ;;  %v11051_v56 = vcombine.high %v981_v47, %v985_v48  ;;  %v11053_v57 = vcombine.high %v982_v49, %v986_v52  ;;  %v1025_v39 = vld [vmem:[%s15883_s1 + $0x1ea0] sm:$0xff]  ;;  %v1022_v41 = vld [vmem:[%s15883_s1 + $0x1e88] sm:$0xff] }
 0x1d4   :  { %7905 = vmatpush1.bf16.msra.mxu0 %v11002_v0  ;;  %8315 = vmatpush1.bf16.msra.mxu1 %v11004_v2  ;;  %v994_v0 = vld [vmem:[%s15883_s1 + $0x1da8] sm:$0xff]  ;;  %v11050_v2 = vcombine.low %v981_v47, %v985_v48  ;;  %v1029_v48 = vld [vmem:[%s15883_s1 + $0x1ec0] sm:$0xff] }
 0x1d5   :  { %7915 = vmatprep.subr.bf16.mxu0 %v11011_v63  ;;  %8325 = vmatprep.subr.bf16.mxu1 %v11013_v3  ;;  %v11052_v63 = vcombine.low %v982_v49, %v986_v52  ;;  %v11059_v3 = vcombine.high %v989_v60, %v993_v8  ;;  %v11061_v5 = vcombine.high %v990_v61, %v994_v0  ;;  %v1033_v49 = vld [vmem:[%s15883_s1 + $0x1ee0] sm:$0xff]  ;;  %v1030_v52 = vld [vmem:[%s15883_s1 + $0x1ec8] sm:$0xff] }
 0x1d7   :  { %7907 = vmatmul.mubr.bf16.vlgmr.msra.gmra.mrb[0].mxu0 %v13376_v7  ;;  %8317 = vmatmul.mubr.bf16.vlgmr.msra.gmra.mrb[0].mxu1 %v13376_v7 }
 0x1d8   :  { %7916 = vmatpush1.bf16.msra.mxu0 %v11010_v12  ;;  %8326 = vmatpush1.bf16.msra.mxu1 %v11012_v13  ;;  %v1002_v12 = vld [vmem:[%s15883_s1 + $0x1de8] sm:$0xff]  ;;  %v11058_v13 = vcombine.low %v989_v60, %v993_v8  ;;  %v1037_v8 = vld [vmem:[%s15883_s1 + $0x1f00] sm:$0xff] }
 0x1d9   :  { %7917 = vmatprep.subr.bf16.mxu0 %v11019_v1  ;;  %8327 = vmatprep.subr.bf16.mxu1 %v11021_v14  ;;  %v11060_v1 = vcombine.low %v990_v61, %v994_v0  ;;  %v11067_v14 = vcombine.high %v997_v6, %v1001_v10  ;;  %v11069_v15 = vcombine.high %v998_v11, %v1002_v12  ;;  %v1041_v61 = vld [vmem:[%s15883_s1 + $0x1f20] sm:$0xff]  ;;  %v1038_v0 = vld [vmem:[%s15883_s1 + $0x1f08] sm:$0xff] }
 0x1da   :  { %7947 = vmatprep.mubr.bf16.mxu0 %v13392_v17  ;;  %8357 = vmatprep.mubr.bf16.mxu1 %v13392_v17 }
 0x1dc   :  { %7918 = vmatpush1.bf16.msra.mxu0 %v11018_v21  ;;  %8328 = vmatpush1.bf16.msra.mxu1 %v11020_v22  ;;  %v1010_v21 = vld [vmem:[%s15883_s1 + $0x1e28] sm:$0xff]  ;;  %v11066_v22 = vcombine.low %v997_v6, %v1001_v10  ;;  %v1045_v10 = vld [vmem:[%s15883_s1 + $0x1f40] sm:$0xff] }
 0x1dd   :  { %7919 = vmatprep.subr.bf16.mxu0 %v11027_v24  ;;  %8329 = vmatprep.subr.bf16.mxu1 %v11029_v25  ;;  %v11068_v24 = vcombine.low %v998_v11, %v1002_v12  ;;  %v11075_v25 = vcombine.high %v1005_v16, %v1009_v18  ;;  %v11077_v26 = vcombine.high %v1006_v20, %v1010_v21  ;;  %v1049_v11 = vld [vmem:[%s15883_s1 + $0x1f60] sm:$0xff]  ;;  %v1046_v12 = vld [vmem:[%s15883_s1 + $0x1f48] sm:$0xff] }
 0x1e0   :  { %7920 = vmatpush1.bf16.msra.mxu0 %v11026_v31  ;;  %8330 = vmatpush1.bf16.msra.mxu1 %v11028_v32  ;;  %v1018_v31 = vld [vmem:[%s15883_s1 + $0x1e68] sm:$0xff]  ;;  %v11074_v32 = vcombine.low %v1005_v16, %v1009_v18  ;;  %v1053_v18 = vld [vmem:[%s15883_s1 + $0x1f80] sm:$0xff] }
 0x1e1   :  { %7921 = vmatprep.subr.bf16.mxu0 %v11035_v34  ;;  %8331 = vmatprep.subr.bf16.mxu1 %v11037_v35  ;;  %v11076_v34 = vcombine.low %v1006_v20, %v1010_v21  ;;  %v11083_v35 = vcombine.high %v1013_v28, %v1017_v29  ;;  %v11085_v36 = vcombine.high %v1014_v30, %v1018_v31  ;;  %v1057_v20 = vld [vmem:[%s15883_s1 + $0x1fa0] sm:$0xff]  ;;  %v1054_v21 = vld [vmem:[%s15883_s1 + $0x1f88] sm:$0xff] }
 0x1e4   :  { %7922 = vmatpush1.bf16.msra.mxu0 %v11034_v42  ;;  %8332 = vmatpush1.bf16.msra.mxu1 %v11036_v44  ;;  %v1026_v42 = vld [vmem:[%s15883_s1 + $0x1ea8] sm:$0xff]  ;;  %v11082_v44 = vcombine.low %v1013_v28, %v1017_v29  ;;  %v1061_v29 = vld [vmem:[%s15883_s1 + $0x1fc0] sm:$0xff] }
 0x1e5   :  { %7923 = vmatprep.subr.bf16.mxu0 %v11043_v45  ;;  %8333 = vmatprep.subr.bf16.mxu1 %v11045_v46  ;;  %v11084_v45 = vcombine.low %v1014_v30, %v1018_v31  ;;  %v11091_v46 = vcombine.high %v1021_v38, %v1025_v39  ;;  %v11093_v47 = vcombine.high %v1022_v41, %v1026_v42  ;;  %v1065_v30 = vld [vmem:[%s15883_s1 + $0x1fe0] sm:$0xff]  ;;  %v1062_v31 = vld [vmem:[%s15883_s1 + $0x1fc8] sm:$0xff] }
 0x1e8   :  { %7924 = vmatpush1.bf16.msra.mxu0 %v11042_v54  ;;  %8334 = vmatpush1.bf16.msra.mxu1 %v11044_v55  ;;  %v1034_v54 = vld [vmem:[%s15883_s1 + $0x1ee8] sm:$0xff]  ;;  %v11090_v55 = vcombine.low %v1021_v38, %v1025_v39  ;;  %v1069_v39 = vld [vmem:[%s15883_s1 + $0x2000] sm:$0xff] }
 0x1e9   :  { %7925 = vmatprep.subr.bf16.mxu0 %v11051_v56  ;;  %8335 = vmatprep.subr.bf16.mxu1 %v11053_v57  ;;  %v11092_v56 = vcombine.low %v1022_v41, %v1026_v42  ;;  %v11099_v57 = vcombine.high %v1029_v48, %v1033_v49  ;;  %v11101_v60 = vcombine.high %v1030_v52, %v1034_v54  ;;  %v1073_v41 = vld [vmem:[%s15883_s1 + $0x2020] sm:$0xff]  ;;  %v1070_v42 = vld [vmem:[%s15883_s1 + $0x2008] sm:$0xff] }
 0x1ec   :  { %7926 = vmatpush1.bf16.msra.mxu0 %v11050_v2  ;;  %8336 = vmatpush1.bf16.msra.mxu1 %v11052_v63  ;;  %v1042_v2 = vld [vmem:[%s15883_s1 + $0x1f28] sm:$0xff]  ;;  %v11098_v63 = vcombine.low %v1029_v48, %v1033_v49  ;;  %v11139_v48 = vcombine.high %v1069_v39, %v1073_v41 }
 0x1ed   :  { %7927 = vmatprep.subr.bf16.mxu0 %v11059_v3  ;;  %8337 = vmatprep.subr.bf16.mxu1 %v11061_v5  ;;  %v11100_v3 = vcombine.low %v1030_v52, %v1034_v54  ;;  %v11107_v5 = vcombine.high %v1037_v8, %v1041_v61  ;;  %v11109_v6 = vcombine.high %v1038_v0, %v1042_v2  ;;  %v1077_v52 = vld [vmem:[%s15883_s1 + $0x2040] sm:$0xff] }
 0x1ee   :  { %v1081_v54 = vld [vmem:[%s15883_s1 + $0x2060] sm:$0xff] }
 0x1f0   :  { %7928 = vmatpush1.bf16.msra.mxu0 %v11058_v13  ;;  %8338 = vmatpush1.bf16.msra.mxu1 %v11060_v1  ;;  %v1050_v13 = vld [vmem:[%s15883_s1 + $0x1f68] sm:$0xff]  ;;  %v11106_v1 = vcombine.low %v1037_v8, %v1041_v61  ;;  %v11138_v8 = vcombine.low %v1069_v39, %v1073_v41 }
 0x1f1   :  { %7929 = vmatprep.subr.bf16.mxu0 %v11067_v14  ;;  %8339 = vmatprep.subr.bf16.mxu1 %v11069_v15  ;;  %v11108_v14 = vcombine.low %v1038_v0, %v1042_v2  ;;  %v11115_v15 = vcombine.high %v1045_v10, %v1049_v11  ;;  %v11117_v16 = vcombine.high %v1046_v12, %v1050_v13  ;;  %v1114_v39 = vld [vmem:[%s15883_s1 + $0x2168] sm:$0xff] }
 0x1f2   :  { %v11147_v0 = vcombine.high %v1077_v52, %v1081_v54 }
 0x1f4   :  { %7930 = vmatpush1.bf16.msra.mxu0 %v11066_v22  ;;  %8340 = vmatpush1.bf16.msra.mxu1 %v11068_v24  ;;  %v1058_v22 = vld [vmem:[%s15883_s1 + $0x1fa8] sm:$0xff]  ;;  %v11114_v24 = vcombine.low %v1045_v10, %v1049_v11  ;;  %v11146_v11 = vcombine.low %v1077_v52, %v1081_v54 }
 0x1f5   :  { %7931 = vmatprep.subr.bf16.mxu0 %v11075_v25  ;;  %8341 = vmatprep.subr.bf16.mxu1 %v11077_v26  ;;  %v11116_v25 = vcombine.low %v1046_v12, %v1050_v13  ;;  %v11123_v26 = vcombine.high %v1053_v18, %v1057_v20  ;;  %v11125_v28 = vcombine.high %v1054_v21, %v1058_v22  ;;  %v1090_v10 = vld [vmem:[%s15883_s1 + $0x20a8] sm:$0xff] }
 0x1f6   :  { %v1122_v52 = vld [vmem:[%s15883_s1 + $0x21a8] sm:$0xff] }
 0x1f8   :  { %7932 = vmatpush1.bf16.msra.mxu0 %v11074_v32  ;;  %8342 = vmatpush1.bf16.msra.mxu1 %v11076_v34  ;;  %v1066_v32 = vld [vmem:[%s15883_s1 + $0x1fe8] sm:$0xff]  ;;  %v11122_v34 = vcombine.low %v1053_v18, %v1057_v20 }
 0x1f9   :  { %7933 = vmatprep.subr.bf16.mxu0 %v11083_v35  ;;  %8343 = vmatprep.subr.bf16.mxu1 %v11085_v36  ;;  %v11124_v35 = vcombine.low %v1054_v21, %v1058_v22  ;;  %v11131_v36 = vcombine.high %v1061_v29, %v1065_v30  ;;  %v11133_v38 = vcombine.high %v1062_v31, %v1066_v32  ;;  %v1098_v18 = vld [vmem:[%s15883_s1 + $0x20e8] sm:$0xff] }
 0x1fc   :  { %7934 = vmatpush1.bf16.msra.mxu0 %v11082_v44  ;;  %8344 = vmatpush1.bf16.msra.mxu1 %v11084_v45  ;;  %v1074_v44 = vld [vmem:[%s15883_s1 + $0x2028] sm:$0xff]  ;;  %v13575_v45 = vld.sshfl [vmem:[%s15882_s0 + $0x10] sm:$0x33 pattern:$0x75316420] }
 0x1fd   :  { %7935 = vmatprep.subr.bf16.mxu0 %v11091_v46  ;;  %8345 = vmatprep.subr.bf16.mxu1 %v11093_v47  ;;  %v11130_v46 = vcombine.low %v1061_v29, %v1065_v30  ;;  %v11132_v47 = vcombine.low %v1062_v31, %v1066_v32  ;;  %v11141_v49 = vcombine.high %v1070_v42, %v1074_v44  ;;  %v1106_v29 = vld [vmem:[%s15883_s1 + $0x2128] sm:$0xff] }
 0x1fe   :  { %v11140_v61 = vcombine.low %v1070_v42, %v1074_v44 }
 0x200   :  { %7936 = vmatpush1.bf16.msra.mxu0 %v11090_v55  ;;  %8346 = vmatpush1.bf16.msra.mxu1 %v11092_v56  ;;  %v1423_v55 = vcombine.high %v13575_v45, %v13575_v45  ;;  %v13587_v56 = vcombine.high %v13376_v7, %v13376_v7 }
 0x201   :  { %7937 = vmatprep.subr.bf16.mxu0 %v11099_v57  ;;  %8347 = vmatprep.subr.bf16.mxu1 %v11101_v60  ;;  %v1078_v57 = vld [vmem:[%s15883_s1 + $0x2048] sm:$0xff] }
 0x202   :  { %v1082_v60 = vld [vmem:[%s15883_s1 + $0x2068] sm:$0xff] }
 0x203   :  { %v11149_v2 = vcombine.high %v1078_v57, %v1082_v60  ;;  %v11148_v12 = vcombine.low %v1078_v57, %v1082_v60 }
 0x204   :  { %7938 = vmatpush1.bf16.msra.mxu0 %v11098_v63  ;;  %8348 = vmatpush1.bf16.msra.mxu1 %v11100_v3  ;;  %v1085_v63 = vld [vmem:[%s15883_s1 + $0x2080] sm:$0xff] }
 0x205   :  { %7939 = vmatprep.subr.bf16.mxu0 %v11107_v5  ;;  %8349 = vmatprep.subr.bf16.mxu1 %v11109_v6  ;;  %v1089_v3 = vld [vmem:[%s15883_s1 + $0x20a0] sm:$0xff]  ;;  %v13602_v5 = vrot.slane %v1423_v55, %v11978_v53  ;;  %v1086_v6 = vld [vmem:[%s15883_s1 + $0x2088] sm:$0xff] }
 0x206   :  { %v11155_v13 = vcombine.high %v1085_v63, %v1089_v3  ;;  %v11154_v20 = vcombine.low %v1085_v63, %v1089_v3  ;;  %v11156_v21 = vcombine.low %v1086_v6, %v1090_v10 }
 0x208   :  { %7940 = vmatpush1.bf16.msra.mxu0 %v11106_v1  ;;  %8350 = vmatpush1.bf16.msra.mxu1 %v11108_v14  ;;  %v11157_v1 = vcombine.high %v1086_v6, %v1090_v10  ;;  %v1093_v14 = vld [vmem:[%s15883_s1 + $0x20c0] sm:$0xff] }
 0x209   :  { %7941 = vmatprep.subr.bf16.mxu0 %v11115_v15  ;;  %8351 = vmatprep.subr.bf16.mxu1 %v11117_v16  ;;  %v1097_v15 = vld [vmem:[%s15883_s1 + $0x20e0] sm:$0xff]  ;;  %v1094_v16 = vld [vmem:[%s15883_s1 + $0x20c8] sm:$0xff] }
 0x20a   :  { %v11163_v22 = vcombine.high %v1093_v14, %v1097_v15  ;;  %v11162_v30 = vcombine.low %v1093_v14, %v1097_v15  ;;  %v11164_v31 = vcombine.low %v1094_v16, %v1098_v18 }
 0x20c   :  { %7942 = vmatpush1.bf16.msra.mxu0 %v11114_v24  ;;  %8352 = vmatpush1.bf16.msra.mxu1 %v11116_v25  ;;  %v11165_v24 = vcombine.high %v1094_v16, %v1098_v18  ;;  %v1101_v25 = vld [vmem:[%s15883_s1 + $0x2100] sm:$0xff] }
 0x20d   :  { %7943 = vmatprep.subr.bf16.mxu0 %v11123_v26  ;;  %8353 = vmatprep.subr.bf16.mxu1 %v11125_v28  ;;  %v1105_v26 = vld [vmem:[%s15883_s1 + $0x2120] sm:$0xff]  ;;  %v1102_v28 = vld [vmem:[%s15883_s1 + $0x2108] sm:$0xff] }
 0x20e   :  { %v11171_v32 = vcombine.high %v1101_v25, %v1105_v26  ;;  %v11170_v41 = vcombine.low %v1101_v25, %v1105_v26  ;;  %v11172_v42 = vcombine.low %v1102_v28, %v1106_v29 }
 0x210   :  { %7944 = vmatpush1.bf16.msra.mxu0 %v11122_v34  ;;  %8354 = vmatpush1.bf16.msra.mxu1 %v11124_v35  ;;  %v11173_v34 = vcombine.high %v1102_v28, %v1106_v29  ;;  %v1109_v35 = vld [vmem:[%s15883_s1 + $0x2140] sm:$0xff] }
 0x211   :  { %7945 = vmatprep.subr.bf16.mxu0 %v11131_v36  ;;  %8355 = vmatprep.subr.bf16.mxu1 %v11133_v38  ;;  %v1113_v36 = vld [vmem:[%s15883_s1 + $0x2160] sm:$0xff]  ;;  %v1110_v38 = vld [vmem:[%s15883_s1 + $0x2148] sm:$0xff] }
 0x212   :  { %v11179_v44 = vcombine.high %v1109_v35, %v1113_v36  ;;  %v11178_v54 = vcombine.low %v1109_v35, %v1113_v36  ;;  %v11180_v55 = vcombine.low %v1110_v38, %v1114_v39 }
 0x214   :  { %7946 = vmatpush1.bf16.msra.mxu0 %v11130_v46  ;;  %8356 = vmatpush1.bf16.msra.mxu1 %v11132_v47  ;;  %v11181_v46 = vcombine.high %v1110_v38, %v1114_v39  ;;  %v1117_v47 = vld [vmem:[%s15883_s1 + $0x2180] sm:$0xff] }
 0x215   :  { %7956 = vmatprep.subr.bf16.mxu0 %v11139_v48  ;;  %8366 = vmatprep.subr.bf16.mxu1 %v11141_v49  ;;  %v1121_v48 = vld [vmem:[%s15883_s1 + $0x21a0] sm:$0xff]  ;;  %v1118_v49 = vld [vmem:[%s15883_s1 + $0x2188] sm:$0xff] }
 0x216   :  { %v11187_v57 = vcombine.high %v1117_v47, %v1121_v48  ;;  %v11189_v60 = vcombine.high %v1118_v49, %v1122_v52  ;;  %v11186_v63 = vcombine.low %v1117_v47, %v1121_v48  ;;  %v11188_v3 = vcombine.low %v1118_v49, %v1122_v52 }
 0x217   :  { %7948 = vmatmul.mubr.bf16.vlgmr.msra.gmra.mrb[0].mxu0 %v13587_v56  ;;  %8358 = vmatmul.mubr.bf16.vlgmr.msra.gmra.mrb[0].mxu1 %v13587_v56 }
 0x218   :  { %7957 = vmatpush1.bf16.msra.mxu0 %v11138_v8  ;;  %8367 = vmatpush1.bf16.msra.mxu1 %v11140_v61  ;;  %v1125_v8 = vld [vmem:[%s15883_s1 + $0x21c0] sm:$0xff] }
 0x219   :  { %7958 = vmatprep.subr.bf16.mxu0 %v11147_v0  ;;  %8368 = vmatprep.subr.bf16.mxu1 %v11149_v2  ;;  %v1129_v61 = vld [vmem:[%s15883_s1 + $0x21e0] sm:$0xff]  ;;  %v1126_v0 = vld [vmem:[%s15883_s1 + $0x21c8] sm:$0xff] }
 0x21a   :  { %7988 = vmatprep.mubr.bf16.mxu0 %v13602_v5  ;;  %8398 = vmatprep.mubr.bf16.mxu1 %v13602_v5  ;;  %v1130_v2 = vld [vmem:[%s15883_s1 + $0x21e8] sm:$0xff]  ;;  %v11195_v6 = vcombine.high %v1125_v8, %v1129_v61  ;;  %v11194_v14 = vcombine.low %v1125_v8, %v1129_v61 }
 0x21b   :  { %v11197_v10 = vcombine.high %v1126_v0, %v1130_v2  ;;  %v11196_v15 = vcombine.low %v1126_v0, %v1130_v2 }
 0x21c   :  { %7959 = vmatpush1.bf16.msra.mxu0 %v11146_v11  ;;  %8369 = vmatpush1.bf16.msra.mxu1 %v11148_v12  ;;  %v1133_v11 = vld [vmem:[%s15883_s1 + $0x2200] sm:$0xff] }
 0x21d   :  { %7960 = vmatprep.subr.bf16.mxu0 %v11155_v13  ;;  %8370 = vmatprep.subr.bf16.mxu1 %v11157_v1  ;;  %v1137_v12 = vld [vmem:[%s15883_s1 + $0x2220] sm:$0xff]  ;;  %v1134_v13 = vld [vmem:[%s15883_s1 + $0x2208] sm:$0xff] }
 0x21e   :  { %v1138_v1 = vld [vmem:[%s15883_s1 + $0x2228] sm:$0xff]  ;;  %v11203_v16 = vcombine.high %v1133_v11, %v1137_v12  ;;  %v11202_v25 = vcombine.low %v1133_v11, %v1137_v12 }
 0x21f   :  { %v11205_v18 = vcombine.high %v1134_v13, %v1138_v1  ;;  %v11204_v26 = vcombine.low %v1134_v13, %v1138_v1 }
 0x220   :  { %7961 = vmatpush1.bf16.msra.mxu0 %v11154_v20  ;;  %8371 = vmatpush1.bf16.msra.mxu1 %v11156_v21  ;;  %v1141_v20 = vld [vmem:[%s15883_s1 + $0x2240] sm:$0xff] }
 0x221   :  { %7962 = vmatprep.subr.bf16.mxu0 %v11163_v22  ;;  %8372 = vmatprep.subr.bf16.mxu1 %v11165_v24  ;;  %v1145_v21 = vld [vmem:[%s15883_s1 + $0x2260] sm:$0xff]  ;;  %v1142_v22 = vld [vmem:[%s15883_s1 + $0x2248] sm:$0xff] }
 0x222   :  { %v1146_v24 = vld [vmem:[%s15883_s1 + $0x2268] sm:$0xff]  ;;  %v11211_v28 = vcombine.high %v1141_v20, %v1145_v21  ;;  %v11210_v35 = vcombine.low %v1141_v20, %v1145_v21 }
 0x223   :  { %v11213_v29 = vcombine.high %v1142_v22, %v1146_v24  ;;  %v11212_v36 = vcombine.low %v1142_v22, %v1146_v24 }
 0x224   :  { %7963 = vmatpush1.bf16.msra.mxu0 %v11162_v30  ;;  %8373 = vmatpush1.bf16.msra.mxu1 %v11164_v31  ;;  %v1149_v30 = vld [vmem:[%s15883_s1 + $0x2280] sm:$0xff] }
 0x225   :  { %7964 = vmatprep.subr.bf16.mxu0 %v11171_v32  ;;  %8374 = vmatprep.subr.bf16.mxu1 %v11173_v34  ;;  %v1153_v31 = vld [vmem:[%s15883_s1 + $0x22a0] sm:$0xff]  ;;  %v1150_v32 = vld [vmem:[%s15883_s1 + $0x2288] sm:$0xff] }
 0x226   :  { %v1154_v34 = vld [vmem:[%s15883_s1 + $0x22a8] sm:$0xff]  ;;  %v11219_v38 = vcombine.high %v1149_v30, %v1153_v31  ;;  %v11218_v47 = vcombine.low %v1149_v30, %v1153_v31 }
 0x227   :  { %v11221_v39 = vcombine.high %v1150_v32, %v1154_v34  ;;  %v11220_v48 = vcombine.low %v1150_v32, %v1154_v34 }
 0x228   :  { %7965 = vmatpush1.bf16.msra.mxu0 %v11170_v41  ;;  %8375 = vmatpush1.bf16.msra.mxu1 %v11172_v42  ;;  %v1157_v41 = vld [vmem:[%s15883_s1 + $0x22c0] sm:$0xff] }
 0x229   :  { %7966 = vmatprep.subr.bf16.mxu0 %v11179_v44  ;;  %8376 = vmatprep.subr.bf16.mxu1 %v11181_v46  ;;  %v1161_v42 = vld [vmem:[%s15883_s1 + $0x22e0] sm:$0xff]  ;;  %v1158_v44 = vld [vmem:[%s15883_s1 + $0x22c8] sm:$0xff] }
 0x22a   :  { %v1162_v46 = vld [vmem:[%s15883_s1 + $0x22e8] sm:$0xff]  ;;  %v11227_v49 = vcombine.high %v1157_v41, %v1161_v42  ;;  %v11226_v8 = vcombine.low %v1157_v41, %v1161_v42 }
 0x22b   :  { %v11229_v52 = vcombine.high %v1158_v44, %v1162_v46  ;;  %v11228_v61 = vcombine.low %v1158_v44, %v1162_v46 }
 0x22c   :  { %7967 = vmatpush1.bf16.msra.mxu0 %v11178_v54  ;;  %8377 = vmatpush1.bf16.msra.mxu1 %v11180_v55  ;;  %v1165_v54 = vld [vmem:[%s15883_s1 + $0x2300] sm:$0xff] }
 0x22d   :  { %7968 = vmatprep.subr.bf16.mxu0 %v11187_v57  ;;  %8378 = vmatprep.subr.bf16.mxu1 %v11189_v60  ;;  %v1169_v55 = vld [vmem:[%s15883_s1 + $0x2320] sm:$0xff]  ;;  %v1166_v57 = vld [vmem:[%s15883_s1 + $0x2308] sm:$0xff] }
 0x22e   :  { %v1170_v60 = vld [vmem:[%s15883_s1 + $0x2328] sm:$0xff]  ;;  %v11235_v0 = vcombine.high %v1165_v54, %v1169_v55  ;;  %v11234_v11 = vcombine.low %v1165_v54, %v1169_v55 }
 0x22f   :  { %v11237_v2 = vcombine.high %v1166_v57, %v1170_v60  ;;  %v11236_v12 = vcombine.low %v1166_v57, %v1170_v60  ;;  %v1210_v54 = vld [vmem:[%s15883_s1 + $0x2468] sm:$0xff] }
 0x230   :  { %7969 = vmatpush1.bf16.msra.mxu0 %v11186_v63  ;;  %8379 = vmatpush1.bf16.msra.mxu1 %v11188_v3  ;;  %v1173_v63 = vld [vmem:[%s15883_s1 + $0x2340] sm:$0xff] }
 0x231   :  { %7970 = vmatprep.subr.bf16.mxu0 %v11195_v6  ;;  %8380 = vmatprep.subr.bf16.mxu1 %v11197_v10  ;;  %v1177_v3 = vld [vmem:[%s15883_s1 + $0x2360] sm:$0xff]  ;;  %v1174_v6 = vld [vmem:[%s15883_s1 + $0x2348] sm:$0xff] }
 0x232   :  { %v1178_v10 = vld [vmem:[%s15883_s1 + $0x2368] sm:$0xff]  ;;  %v11243_v13 = vcombine.high %v1173_v63, %v1177_v3  ;;  %v11242_v20 = vcombine.low %v1173_v63, %v1177_v3 }
 0x233   :  { %v11245_v1 = vcombine.high %v1174_v6, %v1178_v10  ;;  %v11244_v21 = vcombine.low %v1174_v6, %v1178_v10 }
 0x234   :  { %7971 = vmatpush1.bf16.msra.mxu0 %v11194_v14  ;;  %8381 = vmatpush1.bf16.msra.mxu1 %v11196_v15  ;;  %v1181_v14 = vld [vmem:[%s15883_s1 + $0x2380] sm:$0xff] }
 0x235   :  { %7972 = vmatprep.subr.bf16.mxu0 %v11203_v16  ;;  %8382 = vmatprep.subr.bf16.mxu1 %v11205_v18  ;;  %v1185_v15 = vld [vmem:[%s15883_s1 + $0x23a0] sm:$0xff]  ;;  %v1182_v16 = vld [vmem:[%s15883_s1 + $0x2388] sm:$0xff] }
 0x236   :  { %v1186_v18 = vld [vmem:[%s15883_s1 + $0x23a8] sm:$0xff]  ;;  %v11251_v22 = vcombine.high %v1181_v14, %v1185_v15  ;;  %v11250_v30 = vcombine.low %v1181_v14, %v1185_v15 }
 0x237   :  { %v11253_v24 = vcombine.high %v1182_v16, %v1186_v18  ;;  %v11252_v31 = vcombine.low %v1182_v16, %v1186_v18 }
 0x238   :  { %7973 = vmatpush1.bf16.msra.mxu0 %v11202_v25  ;;  %8383 = vmatpush1.bf16.msra.mxu1 %v11204_v26  ;;  %v1189_v25 = vld [vmem:[%s15883_s1 + $0x23c0] sm:$0xff] }
 0x239   :  { %7974 = vmatprep.subr.bf16.mxu0 %v11211_v28  ;;  %8384 = vmatprep.subr.bf16.mxu1 %v11213_v29  ;;  %v1193_v26 = vld [vmem:[%s15883_s1 + $0x23e0] sm:$0xff]  ;;  %v1190_v28 = vld [vmem:[%s15883_s1 + $0x23c8] sm:$0xff] }
 0x23a   :  { %v1194_v29 = vld [vmem:[%s15883_s1 + $0x23e8] sm:$0xff]  ;;  %v11259_v32 = vcombine.high %v1189_v25, %v1193_v26  ;;  %v11258_v41 = vcombine.low %v1189_v25, %v1193_v26 }
 0x23b   :  { %v11261_v34 = vcombine.high %v1190_v28, %v1194_v29  ;;  %v11260_v42 = vcombine.low %v1190_v28, %v1194_v29 }
 0x23c   :  { %7975 = vmatpush1.bf16.msra.mxu0 %v11210_v35  ;;  %8385 = vmatpush1.bf16.msra.mxu1 %v11212_v36  ;;  %v1197_v35 = vld [vmem:[%s15883_s1 + $0x2400] sm:$0xff] }
 0x23d   :  { %7976 = vmatprep.subr.bf16.mxu0 %v11219_v38  ;;  %8386 = vmatprep.subr.bf16.mxu1 %v11221_v39  ;;  %v1201_v36 = vld [vmem:[%s15883_s1 + $0x2420] sm:$0xff]  ;;  %v1198_v38 = vld [vmem:[%s15883_s1 + $0x2408] sm:$0xff] }
 0x23e   :  { %v1202_v39 = vld [vmem:[%s15883_s1 + $0x2428] sm:$0xff]  ;;  %v11267_v44 = vcombine.high %v1197_v35, %v1201_v36  ;;  %v11266_v55 = vcombine.low %v1197_v35, %v1201_v36 }
 0x23f   :  { %v11269_v46 = vcombine.high %v1198_v38, %v1202_v39  ;;  %v11268_v57 = vcombine.low %v1198_v38, %v1202_v39 }
 0x240   :  { %7977 = vmatpush1.bf16.msra.mxu0 %v11218_v47  ;;  %8387 = vmatpush1.bf16.msra.mxu1 %v11220_v48  ;;  %v1205_v47 = vld [vmem:[%s15883_s1 + $0x2440] sm:$0xff] }
 0x241   :  { %7978 = vmatprep.subr.bf16.mxu0 %v11227_v49  ;;  %8388 = vmatprep.subr.bf16.mxu1 %v11229_v52  ;;  %v1209_v48 = vld [vmem:[%s15883_s1 + $0x2460] sm:$0xff]  ;;  %v13790_v49 = vrot.slane %v13575_v45, %v11978_v53  ;;  %v1206_v52 = vld [vmem:[%s15883_s1 + $0x2448] sm:$0xff] }
 0x242   :  { %v11275_v60 = vcombine.high %v1205_v47, %v1209_v48  ;;  %v1213_v53 = vld [vmem:[%s15883_s1 + $0x2480] sm:$0xff]  ;;  %v11274_v63 = vcombine.low %v1205_v47, %v1209_v48  ;;  %v11276_v3 = vcombine.low %v1206_v52, %v1210_v54 }
 0x243   :  { %v1217_v45 = vld [vmem:[%s15883_s1 + $0x24a0] sm:$0xff] }
 0x244   :  { %7979 = vmatpush1.bf16.msra.mxu0 %v11226_v8  ;;  %8389 = vmatpush1.bf16.msra.mxu1 %v11228_v61  ;;  %v11277_v8 = vcombine.high %v1206_v52, %v1210_v54  ;;  %v13806_v61 = vcombine.high %v13602_v5, %v13602_v5  ;;  %v11283_v6 = vcombine.high %v1213_v53, %v1217_v45 }
 0x245   :  { %7980 = vmatprep.subr.bf16.mxu0 %v11235_v0  ;;  %8390 = vmatprep.subr.bf16.mxu1 %v11237_v2  ;;  %v1214_v0 = vld [vmem:[%s15883_s1 + $0x2488] sm:$0xff]  ;;  %v11282_v14 = vcombine.low %v1213_v53, %v1217_v45 }
 0x246   :  { %v1218_v2 = vld [vmem:[%s15883_s1 + $0x24a8] sm:$0xff] }
 0x247   :  { %v11285_v10 = vcombine.high %v1214_v0, %v1218_v2  ;;  %v11284_v15 = vcombine.low %v1214_v0, %v1218_v2 }
 0x248   :  { %7981 = vmatpush1.bf16.msra.mxu0 %v11234_v11  ;;  %8391 = vmatpush1.bf16.msra.mxu1 %v11236_v12  ;;  %v1221_v11 = vld [vmem:[%s15883_s1 + $0x24c0] sm:$0xff] }
 0x249   :  { %7982 = vmatprep.subr.bf16.mxu0 %v11243_v13  ;;  %8392 = vmatprep.subr.bf16.mxu1 %v11245_v1  ;;  %v1225_v12 = vld [vmem:[%s15883_s1 + $0x24e0] sm:$0xff]  ;;  %v1222_v13 = vld [vmem:[%s15883_s1 + $0x24c8] sm:$0xff] }
 0x24a   :  { %v1226_v1 = vld [vmem:[%s15883_s1 + $0x24e8] sm:$0xff]  ;;  %v11291_v16 = vcombine.high %v1221_v11, %v1225_v12  ;;  %v11290_v25 = vcombine.low %v1221_v11, %v1225_v12 }
 0x24b   :  { %v11293_v18 = vcombine.high %v1222_v13, %v1226_v1  ;;  %v11292_v26 = vcombine.low %v1222_v13, %v1226_v1 }
 0x24c   :  { %7983 = vmatpush1.bf16.msra.mxu0 %v11242_v20  ;;  %8393 = vmatpush1.bf16.msra.mxu1 %v11244_v21  ;;  %v1229_v20 = vld [vmem:[%s15883_s1 + $0x2500] sm:$0xff] }
 0x24d   :  { %7984 = vmatprep.subr.bf16.mxu0 %v11251_v22  ;;  %8394 = vmatprep.subr.bf16.mxu1 %v11253_v24  ;;  %v1233_v21 = vld [vmem:[%s15883_s1 + $0x2520] sm:$0xff]  ;;  %v1230_v22 = vld [vmem:[%s15883_s1 + $0x2508] sm:$0xff] }
 0x24e   :  { %v1234_v24 = vld [vmem:[%s15883_s1 + $0x2528] sm:$0xff]  ;;  %v11299_v28 = vcombine.high %v1229_v20, %v1233_v21  ;;  %v11298_v35 = vcombine.low %v1229_v20, %v1233_v21 }
 0x24f   :  { %v11301_v29 = vcombine.high %v1230_v22, %v1234_v24  ;;  %v11300_v36 = vcombine.low %v1230_v22, %v1234_v24 }
 0x250   :  { %7985 = vmatpush1.bf16.msra.mxu0 %v11250_v30  ;;  %8395 = vmatpush1.bf16.msra.mxu1 %v11252_v31  ;;  %v1237_v30 = vld [vmem:[%s15883_s1 + $0x2540] sm:$0xff] }
 0x251   :  { %7986 = vmatprep.subr.bf16.mxu0 %v11259_v32  ;;  %8396 = vmatprep.subr.bf16.mxu1 %v11261_v34  ;;  %v1241_v31 = vld [vmem:[%s15883_s1 + $0x2560] sm:$0xff]  ;;  %v1238_v32 = vld [vmem:[%s15883_s1 + $0x2548] sm:$0xff] }
 0x252   :  { %v1242_v34 = vld [vmem:[%s15883_s1 + $0x2568] sm:$0xff]  ;;  %v11307_v38 = vcombine.high %v1237_v30, %v1241_v31  ;;  %v11306_v47 = vcombine.low %v1237_v30, %v1241_v31 }
 0x253   :  { %v11309_v39 = vcombine.high %v1238_v32, %v1242_v34  ;;  %v11308_v48 = vcombine.low %v1238_v32, %v1242_v34 }
 0x254   :  { %7987 = vmatpush1.bf16.msra.mxu0 %v11258_v41  ;;  %8397 = vmatpush1.bf16.msra.mxu1 %v11260_v42  ;;  %v1245_v41 = vld [vmem:[%s15883_s1 + $0x2580] sm:$0xff] }
 0x255   :  { %7997 = vmatprep.subr.bf16.mxu0 %v11267_v44  ;;  %8407 = vmatprep.subr.bf16.mxu1 %v11269_v46  ;;  %v1249_v42 = vld [vmem:[%s15883_s1 + $0x25a0] sm:$0xff]  ;;  %v1246_v44 = vld [vmem:[%s15883_s1 + $0x2588] sm:$0xff] }
 0x256   :  { %v1250_v46 = vld [vmem:[%s15883_s1 + $0x25a8] sm:$0xff]  ;;  %v11315_v52 = vcombine.high %v1245_v41, %v1249_v42  ;;  %v11314_v53 = vcombine.low %v1245_v41, %v1249_v42  ;;  %v60_v41 = vld [vmem:[%s15883_s1 + $0x78] sm:$0xff] }
 0x257   :  { %7989 = vmatmul.mubr.bf16.vlgmr.msra.gmra.mrb[0].mxu0 %v13790_v49  ;;  %8399 = vmatmul.mubr.bf16.vlgmr.msra.gmra.mrb[0].mxu1 %v13790_v49  ;;  %v11317_v54 = vcombine.high %v1246_v44, %v1250_v46  ;;  %v11316_v45 = vcombine.low %v1246_v44, %v1250_v46 }
 0x258   :  { %7998 = vmatpush1.bf16.msra.mxu0 %v11266_v55  ;;  %8408 = vmatpush1.bf16.msra.mxu1 %v11268_v57  ;;  %v1253_v55 = vld [vmem:[%s15883_s1 + $0x25c0] sm:$0xff] }
 0x259   :  { %7999 = vmatprep.subr.bf16.mxu0 %v11275_v60  ;;  %8409 = vmatprep.subr.bf16.mxu1 %v11277_v8  ;;  %v1257_v57 = vld [vmem:[%s15883_s1 + $0x25e0] sm:$0xff]  ;;  %v1254_v60 = vld [vmem:[%s15883_s1 + $0x25c8] sm:$0xff] }
 0x25a   :  { %11347 = vmatprep.mubr.msk.bf16.mxu0 %vm7599_vm0, %v13806_v61  ;;  %11349 = vmatprep.mubr.msk.bf16.mxu1 %vm7599_vm0, %v13806_v61  ;;  %v1258_v8 = vld [vmem:[%s15883_s1 + $0x25e8] sm:$0xff]  ;;  %v11323_v0 = vcombine.high %v1253_v55, %v1257_v57  ;;  %v11322_v11 = vcombine.low %v1253_v55, %v1257_v57  ;;  %v68_v55 = vld [vmem:[%s15883_s1 + $0xb8] sm:$0xff] }
 0x25b   :  { %v11325_v2 = vcombine.high %v1254_v60, %v1258_v8  ;;  %v11324_v12 = vcombine.low %v1254_v60, %v1258_v8 }
 0x25c   :  { %8000 = vmatpush1.bf16.msra.mxu0 %v11274_v63  ;;  %8410 = vmatpush1.bf16.msra.mxu1 %v11276_v3  ;;  %v1261_v63 = vld [vmem:[%s15883_s1 + $0x2600] sm:$0xff] }
 0x25d   :  { %8001 = vmatprep.subr.bf16.mxu0 %v11283_v6  ;;  %8411 = vmatprep.subr.bf16.mxu1 %v11285_v10  ;;  %v1265_v3 = vld [vmem:[%s15883_s1 + $0x2620] sm:$0xff]  ;;  %v1262_v6 = vld [vmem:[%s15883_s1 + $0x2608] sm:$0xff] }
 0x25e   :  { %v1266_v10 = vld [vmem:[%s15883_s1 + $0x2628] sm:$0xff]  ;;  %v11331_v13 = vcombine.high %v1261_v63, %v1265_v3 }
 0x25f   :  { %v11333_v1 = vcombine.high %v1262_v6, %v1266_v10 }
 0x260   :  { %8002 = vmatpush1.bf16.msra.mxu0 %v11282_v14  ;;  %8412 = vmatpush1.bf16.msra.mxu1 %v11284_v15  ;;  %v1269_v14 = vld [vmem:[%s15883_s1 + $0x2640] sm:$0x11]  ;;  %v1270_v15 = vld [vmem:[%s15883_s1 + $0x2648] sm:$0x11] }
 0x261   :  { %8003 = vmatprep.subr.bf16.mxu0 %v11291_v16  ;;  %8413 = vmatprep.subr.bf16.mxu1 %v11293_v18  ;;  %v11330_v16 = vcombine.low %v1261_v63, %v1265_v3  ;;  %v11332_v18 = vcombine.low %v1262_v6, %v1266_v10  ;;  %v11339_v20 = vcombine.high %v1269_v14, %v1269_v14  ;;  %v76_v63 = vld [vmem:[%s15883_s1 + $0xf8] sm:$0xff] }
 0x262   :  { %v11338_v21 = vcombine.low %v1269_v14, %v1269_v14  ;;  %v11341_v22 = vcombine.high %v1270_v15, %v1270_v15  ;;  %v11340_v24 = vcombine.low %v1270_v15, %v1270_v15 }
 0x264   :  { %8004 = vmatpush1.bf16.msra.mxu0 %v11290_v25  ;;  %8414 = vmatpush1.bf16.msra.mxu1 %v11292_v26  ;;  %v47_v25 = vld [vmem:[%s15883_s1 + $0x10] sm:$0xff]  ;;  %v7605_v30 = vsel %vm7603_vm1, %v11338_v21, 0  ;;  %v7611_v32 = vsel %vm7603_vm1, %v11340_v24, 0  ;;  %v92_v24 = vld [vmem:[%s15883_s1 + $0x178] sm:$0xff] }
 0x265   :  { %8005 = vmatprep.subr.bf16.mxu0 %v11299_v28  ;;  %8415 = vmatprep.subr.bf16.mxu1 %v11301_v29  ;;  %v51_v26 = vld [vmem:[%s15883_s1 + $0x30] sm:$0xff]  ;;  %v48_v28 = vld [vmem:[%s15883_s1 + $0x18] sm:$0xff] }
 0x266   :  { %v52_v29 = vld [vmem:[%s15883_s1 + $0x38] sm:$0xff]  ;;  %v10119_v31 = vcombine.high %v47_v25, %v51_v26  ;;  %v10118_v42 = vcombine.low %v47_v25, %v51_v26  ;;  %v91_v21 = vld [vmem:[%s15883_s1 + $0x170] sm:$0xff] }
 0x267   :  { %v10121_v34 = vcombine.high %v48_v28, %v52_v29  ;;  %v10120_v44 = vcombine.low %v48_v28, %v52_v29 }
 0x268   :  { %8006 = vmatpush1.bf16.msra.mxu0 %v11298_v35  ;;  %8416 = vmatpush1.bf16.msra.mxu1 %v11300_v36  ;;  %v55_v35 = vld [vmem:[%s15883_s1 + $0x50] sm:$0xff] }
 0x269   :  { %8007 = vmatprep.subr.bf16.mxu0 %v11307_v38  ;;  %8417 = vmatprep.subr.bf16.mxu1 %v11309_v39  ;;  %v59_v36 = vld [vmem:[%s15883_s1 + $0x70] sm:$0xff]  ;;  %v13922_v38 = vcombine.high %v13790_v49, %v13790_v49  ;;  %v56_v39 = vld [vmem:[%s15883_s1 + $0x58] sm:$0xff] }
 0x26a   :  { %v10127_v46 = vcombine.high %v55_v35, %v59_v36  ;;  %v10126_v57 = vcombine.low %v55_v35, %v59_v36  ;;  %v10128_v60 = vcombine.low %v56_v39, %v60_v41 }
 0x26c   :  { %8008 = vmatpush1.bf16.msra.mxu0 %v11306_v47  ;;  %8418 = vmatpush1.bf16.msra.mxu1 %v11308_v48  ;;  %v10129_v47 = vcombine.high %v56_v39, %v60_v41  ;;  %v63_v48 = vld [vmem:[%s15883_s1 + $0x90] sm:$0xff] }
 0x26d   :  { %8009 = vmatprep.subr.bf16.mxu0 %v11315_v52  ;;  %8419 = vmatprep.subr.bf16.mxu1 %v11317_v54  ;;  %v67_v52 = vld [vmem:[%s15883_s1 + $0xb0] sm:$0xff]  ;;  %v64_v54 = vld [vmem:[%s15883_s1 + $0x98] sm:$0xff] }
 0x26e   :  { %v10135_v8 = vcombine.high %v63_v48, %v67_v52  ;;  %v10134_v3 = vcombine.low %v63_v48, %v67_v52  ;;  %v10136_v6 = vcombine.low %v64_v54, %v68_v55 }
 0x270   :  { %8010 = vmatpush1.bf16.msra.mxu0 %v11314_v53  ;;  %8420 = vmatpush1.bf16.msra.mxu1 %v11316_v45  ;;  %v10137_v53 = vcombine.high %v64_v54, %v68_v55  ;;  %v71_v45 = vld [vmem:[%s15883_s1 + $0xd0] sm:$0xff] }
 0x271   :  { %8011 = vmatprep.subr.bf16.mxu0 %v11323_v0  ;;  %8421 = vmatprep.subr.bf16.mxu1 %v11325_v2  ;;  %v75_v0 = vld [vmem:[%s15883_s1 + $0xf0] sm:$0xff]  ;;  %v72_v2 = vld [vmem:[%s15883_s1 + $0xd8] sm:$0xff] }
 0x272   :  { %v10143_v10 = vcombine.high %v71_v45, %v75_v0  ;;  %v10142_v14 = vcombine.low %v71_v45, %v75_v0  ;;  %v10144_v15 = vcombine.low %v72_v2, %v76_v63 }
 0x274   :  { %8012 = vmatpush1.bf16.msra.mxu0 %v11322_v11  ;;  %8422 = vmatpush1.bf16.msra.mxu1 %v11324_v12  ;;  %v10145_v11 = vcombine.high %v72_v2, %v76_v63  ;;  %v79_v12 = vld [vmem:[%s15883_s1 + $0x110] sm:$0xff] }
 0x275   :  { %8013 = vmatprep.subr.bf16.mxu0 %v11331_v13  ;;  %8423 = vmatprep.subr.bf16.mxu1 %v11333_v1  ;;  %v83_v13 = vld [vmem:[%s15883_s1 + $0x130] sm:$0xff]  ;;  %v84_v1 = vld [vmem:[%s15883_s1 + $0x138] sm:$0xff] }
 0x276   :  { %v10150_v25 = vcombine.low %v79_v12, %v83_v13 }
 0x278   :  { %8014 = vmatpush1.bf16.msra.mxu0 %v11330_v16  ;;  %8424 = vmatpush1.bf16.msra.mxu1 %v11332_v18  ;;  %v10151_v16 = vcombine.high %v79_v12, %v83_v13 }
 0x279   :  { %11346 = vmatprep.subr.msk.bf16.mxu0 %vm7603_vm1, %v11339_v20  ;;  %11348 = vmatprep.subr.msk.bf16.mxu1 %vm7603_vm1, %v11341_v22  ;;  %v87_v20 = vld [vmem:[%s15883_s1 + $0x150] sm:$0xff]  ;;  %v88_v22 = vld [vmem:[%s15883_s1 + $0x158] sm:$0xff] }
 0x27a   :  { %v10159_v28 = vcombine.high %v87_v20, %v91_v21  ;;  %v10161_v29 = vcombine.high %v88_v22, %v92_v24  ;;  %v10158_v35 = vcombine.low %v87_v20, %v91_v21  ;;  %v10160_v36 = vcombine.low %v88_v22, %v92_v24 }
 0x27c   :  { %8016 = vmatpush1.bf16.msra.mxu0 %v7605_v30  ;;  %8426 = vmatpush1.bf16.msra.mxu1 %v7611_v32  ;;  %v95_v30 = vld [vmem:[%s15883_s1 + $0x190] sm:$0xff]  ;;  %v96_v32 = vld [vmem:[%s15883_s1 + $0x198] sm:$0xff] }
 0x27d   :  { %8448 = vmatprep.subr.bf16.mxu0 %v10119_v31  ;;  %8858 = vmatprep.subr.bf16.mxu1 %v10121_v34  ;;  %v99_v31 = vld [vmem:[%s15883_s1 + $0x1b0] sm:$0xff]  ;;  %v100_v34 = vld [vmem:[%s15883_s1 + $0x1b8] sm:$0xff] }
 0x27e   :  { %v10167_v39 = vcombine.high %v95_v30, %v99_v31  ;;  %v10169_v41 = vcombine.high %v96_v32, %v100_v34  ;;  %v10166_v48 = vcombine.low %v95_v30, %v99_v31  ;;  %v10168_v52 = vcombine.low %v96_v32, %v100_v34 }
 0x27f   :  { %8030 = vmatmul.mubr.bf16.vlgmr.msra.gmra.mrb[0].mxu0 %v13922_v38  ;;  %8440 = vmatmul.mubr.bf16.vlgmr.msra.gmra.mrb[0].mxu1 %v13922_v38 }
 0x280   :  { %8449 = vmatpush1.bf16.msra.mxu0 %v10118_v42  ;;  %8859 = vmatpush1.bf16.msra.mxu1 %v10120_v44  ;;  %v103_v42 = vld [vmem:[%s15883_s1 + $0x1d0] sm:$0xff] }
 0x281   :  { %8450 = vmatprep.subr.bf16.mxu0 %v10127_v46  ;;  %8860 = vmatprep.subr.bf16.mxu1 %v10129_v47  ;;  %v107_v44 = vld [vmem:[%s15883_s1 + $0x1f0] sm:$0xff]  ;;  %v104_v46 = vld [vmem:[%s15883_s1 + $0x1d8] sm:$0xff] }
 0x282   :  { %8480 = vmatprep.mubr.bf16.mxu0 %v12016_v9  ;;  %8890 = vmatprep.mubr.bf16.mxu1 %v12016_v9  ;;  %v80_v9 = vld [vmem:[%s15883_s1 + $0x118] sm:$0xff]  ;;  %v10175_v54 = vcombine.high %v103_v42, %v107_v44  ;;  %v10174_v45 = vcombine.low %v103_v42, %v107_v44 }
 0x283   :  { %v10153_v18 = vcombine.high %v80_v9, %v84_v1  ;;  %v10152_v26 = vcombine.low %v80_v9, %v84_v1  ;;  %v108_v47 = vld [vmem:[%s15883_s1 + $0x1f8] sm:$0xff] }
 0x284   :  { %8451 = vmatpush1.bf16.msra.mxu0 %v10126_v57  ;;  %8861 = vmatpush1.bf16.msra.mxu1 %v10128_v60  ;;  %v10177_v55 = vcombine.high %v104_v46, %v108_v47  ;;  %v111_v57 = vld [vmem:[%s15883_s1 + $0x210] sm:$0xff]  ;;  %v10176_v0 = vcombine.low %v104_v46, %v108_v47 }
 0x285   :  { %8452 = vmatprep.subr.bf16.mxu0 %v10135_v8  ;;  %8862 = vmatprep.subr.bf16.mxu1 %v10137_v53  ;;  %v115_v60 = vld [vmem:[%s15883_s1 + $0x230] sm:$0xff]  ;;  %v112_v8 = vld [vmem:[%s15883_s1 + $0x218] sm:$0xff] }
 0x286   :  { %v116_v53 = vld [vmem:[%s15883_s1 + $0x238] sm:$0xff]  ;;  %v10183_v2 = vcombine.high %v111_v57, %v115_v60  ;;  %v10182_v12 = vcombine.low %v111_v57, %v115_v60 }
 0x287   :  { %v10185_v63 = vcombine.high %v112_v8, %v116_v53  ;;  %v10184_v13 = vcombine.low %v112_v8, %v116_v53 }
 0x288   :  { %8453 = vmatpush1.bf16.msra.mxu0 %v10134_v3  ;;  %8863 = vmatpush1.bf16.msra.mxu1 %v10136_v6  ;;  %v119_v3 = vld [vmem:[%s15883_s1 + $0x250] sm:$0xff] }
 0x289   :  { %8454 = vmatprep.subr.bf16.mxu0 %v10143_v10  ;;  %8864 = vmatprep.subr.bf16.mxu1 %v10145_v11  ;;  %v123_v6 = vld [vmem:[%s15883_s1 + $0x270] sm:$0xff]  ;;  %v120_v10 = vld [vmem:[%s15883_s1 + $0x258] sm:$0xff] }
 0x28a   :  { %v124_v11 = vld [vmem:[%s15883_s1 + $0x278] sm:$0xff]  ;;  %v10191_v9 = vcombine.high %v119_v3, %v123_v6  ;;  %v10190_v20 = vcombine.low %v119_v3, %v123_v6 }
 0x28b   :  { %v10193_v1 = vcombine.high %v120_v10, %v124_v11  ;;  %v10192_v21 = vcombine.low %v120_v10, %v124_v11 }
 0x28c   :  { %8455 = vmatpush1.bf16.msra.mxu0 %v10142_v14  ;;  %8865 = vmatpush1.bf16.msra.mxu1 %v10144_v15  ;;  %v127_v14 = vld [vmem:[%s15883_s1 + $0x290] sm:$0xff] }
 0x28d   :  { %8456 = vmatprep.subr.bf16.mxu0 %v10151_v16  ;;  %8866 = vmatprep.subr.bf16.mxu1 %v10153_v18  ;;  %v131_v15 = vld [vmem:[%s15883_s1 + $0x2b0] sm:$0xff]  ;;  %v128_v16 = vld [vmem:[%s15883_s1 + $0x298] sm:$0xff] }
 0x28e   :  { %v132_v18 = vld [vmem:[%s15883_s1 + $0x2b8] sm:$0xff]  ;;  %v10199_v22 = vcombine.high %v127_v14, %v131_v15  ;;  %v10198_v30 = vcombine.low %v127_v14, %v131_v15 }
 0x28f   :  { %v10201_v24 = vcombine.high %v128_v16, %v132_v18  ;;  %v10200_v31 = vcombine.low %v128_v16, %v132_v18 }
 0x290   :  { %8457 = vmatpush1.bf16.msra.mxu0 %v10150_v25  ;;  %8867 = vmatpush1.bf16.msra.mxu1 %v10152_v26  ;;  %v135_v25 = vld [vmem:[%s15883_s1 + $0x2d0] sm:$0xff] }
 0x291   :  { %8458 = vmatprep.subr.bf16.mxu0 %v10159_v28  ;;  %8868 = vmatprep.subr.bf16.mxu1 %v10161_v29  ;;  %v139_v26 = vld [vmem:[%s15883_s1 + $0x2f0] sm:$0xff]  ;;  %v136_v28 = vld [vmem:[%s15883_s1 + $0x2d8] sm:$0xff] }
 0x292   :  { %v140_v29 = vld [vmem:[%s15883_s1 + $0x2f8] sm:$0xff]  ;;  %v10207_v32 = vcombine.high %v135_v25, %v139_v26  ;;  %v10206_v42 = vcombine.low %v135_v25, %v139_v26 }
 0x293   :  { %v10209_v34 = vcombine.high %v136_v28, %v140_v29  ;;  %v10208_v44 = vcombine.low %v136_v28, %v140_v29 }
 0x294   :  { %8459 = vmatpush1.bf16.msra.mxu0 %v10158_v35  ;;  %8869 = vmatpush1.bf16.msra.mxu1 %v10160_v36  ;;  %v143_v35 = vld [vmem:[%s15883_s1 + $0x310] sm:$0xff] }
 0x295   :  { %8460 = vmatprep.subr.bf16.mxu0 %v10167_v39  ;;  %8870 = vmatprep.subr.bf16.mxu1 %v10169_v41  ;;  %v147_v36 = vld [vmem:[%s15883_s1 + $0x330] sm:$0xff]  ;;  %v144_v39 = vld [vmem:[%s15883_s1 + $0x318] sm:$0xff] }
 0x296   :  { %v148_v41 = vld [vmem:[%s15883_s1 + $0x338] sm:$0xff]  ;;  %v10215_v46 = vcombine.high %v143_v35, %v147_v36  ;;  %v10214_v57 = vcombine.low %v143_v35, %v147_v36 }
 0x297   :  { %v10217_v47 = vcombine.high %v144_v39, %v148_v41  ;;  %v10216_v60 = vcombine.low %v144_v39, %v148_v41 }
 0x298   :  { %8461 = vmatpush1.bf16.msra.mxu0 %v10166_v48  ;;  %8871 = vmatpush1.bf16.msra.mxu1 %v10168_v52  ;;  %v151_v48 = vld [vmem:[%s15883_s1 + $0x350] sm:$0xff] }
 0x299   :  { %8462 = vmatprep.subr.bf16.mxu0 %v10175_v54  ;;  %8872 = vmatprep.subr.bf16.mxu1 %v10177_v55  ;;  %v155_v52 = vld [vmem:[%s15883_s1 + $0x370] sm:$0xff]  ;;  %v152_v54 = vld [vmem:[%s15883_s1 + $0x358] sm:$0xff] }
 0x29a   :  { %v156_v55 = vld [vmem:[%s15883_s1 + $0x378] sm:$0xff]  ;;  %v10223_v8 = vcombine.high %v151_v48, %v155_v52  ;;  %v10222_v3 = vcombine.low %v151_v48, %v155_v52 }
 0x29b   :  { %v10225_v53 = vcombine.high %v152_v54, %v156_v55  ;;  %v10224_v6 = vcombine.low %v152_v54, %v156_v55 }
 0x29c   :  { %8463 = vmatpush1.bf16.msra.mxu0 %v10174_v45  ;;  %8873 = vmatpush1.bf16.msra.mxu1 %v10176_v0  ;;  %v159_v45 = vld [vmem:[%s15883_s1 + $0x390] sm:$0xff] }
 0x29d   :  { %8464 = vmatprep.subr.bf16.mxu0 %v10183_v2  ;;  %8874 = vmatprep.subr.bf16.mxu1 %v10185_v63  ;;  %v163_v0 = vld [vmem:[%s15883_s1 + $0x3b0] sm:$0xff]  ;;  %v160_v2 = vld [vmem:[%s15883_s1 + $0x398] sm:$0xff] }
 0x29e   :  { %v164_v63 = vld [vmem:[%s15883_s1 + $0x3b8] sm:$0xff]  ;;  %v10231_v10 = vcombine.high %v159_v45, %v163_v0  ;;  %v10230_v14 = vcombine.low %v159_v45, %v163_v0 }
 0x29f   :  { %v10233_v11 = vcombine.high %v160_v2, %v164_v63  ;;  %v10232_v15 = vcombine.low %v160_v2, %v164_v63  ;;  %v207_v63 = vld [vmem:[%s15883_s1 + $0x510] sm:$0xff] }
 0x2a0   :  { %8465 = vmatpush1.bf16.msra.mxu0 %v10182_v12  ;;  %8875 = vmatpush1.bf16.msra.mxu1 %v10184_v13  ;;  %v167_v12 = vld [vmem:[%s15883_s1 + $0x3d0] sm:$0xff] }
 0x2a1   :  { %8466 = vmatprep.subr.bf16.mxu0 %v10191_v9  ;;  %8876 = vmatprep.subr.bf16.mxu1 %v10193_v1  ;;  %v171_v13 = vld [vmem:[%s15883_s1 + $0x3f0] sm:$0xff]  ;;  %v168_v9 = vld [vmem:[%s15883_s1 + $0x3d8] sm:$0xff] }
 0x2a2   :  { %v172_v1 = vld [vmem:[%s15883_s1 + $0x3f8] sm:$0xff]  ;;  %v10239_v16 = vcombine.high %v167_v12, %v171_v13  ;;  %v10238_v25 = vcombine.low %v167_v12, %v171_v13 }
 0x2a3   :  { %v10241_v18 = vcombine.high %v168_v9, %v172_v1  ;;  %v10240_v26 = vcombine.low %v168_v9, %v172_v1  ;;  %v215_v9 = vld [vmem:[%s15883_s1 + $0x550] sm:$0xff] }
 0x2a4   :  { %8467 = vmatpush1.bf16.msra.mxu0 %v10190_v20  ;;  %8877 = vmatpush1.bf16.msra.mxu1 %v10192_v21  ;;  %v175_v20 = vld [vmem:[%s15883_s1 + $0x410] sm:$0xff] }
 0x2a5   :  { %8468 = vmatprep.subr.bf16.mxu0 %v10199_v22  ;;  %8878 = vmatprep.subr.bf16.mxu1 %v10201_v24  ;;  %v179_v21 = vld [vmem:[%s15883_s1 + $0x430] sm:$0xff]  ;;  %v176_v22 = vld [vmem:[%s15883_s1 + $0x418] sm:$0xff] }
 0x2a6   :  { %v180_v24 = vld [vmem:[%s15883_s1 + $0x438] sm:$0xff]  ;;  %v10247_v28 = vcombine.high %v175_v20, %v179_v21  ;;  %v10246_v35 = vcombine.low %v175_v20, %v179_v21  ;;  %v219_v1 = vld [vmem:[%s15883_s1 + $0x570] sm:$0xff] }
 0x2a7   :  { %v10249_v29 = vcombine.high %v176_v22, %v180_v24  ;;  %v10248_v36 = vcombine.low %v176_v22, %v180_v24  ;;  %v10287_v20 = vcombine.high %v215_v9, %v219_v1  ;;  %v223_v22 = vld [vmem:[%s15883_s1 + $0x590] sm:$0xff] }
 0x2a8   :  { %8469 = vmatpush1.bf16.msra.mxu0 %v10198_v30  ;;  %8879 = vmatpush1.bf16.msra.mxu1 %v10200_v31  ;;  %v183_v30 = vld [vmem:[%s15883_s1 + $0x450] sm:$0xff] }
 0x2a9   :  { %8470 = vmatprep.subr.bf16.mxu0 %v10207_v32  ;;  %8880 = vmatprep.subr.bf16.mxu1 %v10209_v34  ;;  %v187_v31 = vld [vmem:[%s15883_s1 + $0x470] sm:$0xff]  ;;  %v184_v32 = vld [vmem:[%s15883_s1 + $0x458] sm:$0xff] }
 0x2aa   :  { %v188_v34 = vld [vmem:[%s15883_s1 + $0x478] sm:$0xff]  ;;  %v10255_v39 = vcombine.high %v183_v30, %v187_v31  ;;  %v10254_v48 = vcombine.low %v183_v30, %v187_v31  ;;  %v227_v24 = vld [vmem:[%s15883_s1 + $0x5b0] sm:$0xff] }
 0x2ab   :  { %v10257_v41 = vcombine.high %v184_v32, %v188_v34  ;;  %v10256_v52 = vcombine.low %v184_v32, %v188_v34  ;;  %v10295_v30 = vcombine.high %v223_v22, %v227_v24  ;;  %v231_v32 = vld [vmem:[%s15883_s1 + $0x5d0] sm:$0xff] }
 0x2ac   :  { %8471 = vmatpush1.bf16.msra.mxu0 %v10206_v42  ;;  %8881 = vmatpush1.bf16.msra.mxu1 %v10208_v44  ;;  %v191_v42 = vld [vmem:[%s15883_s1 + $0x490] sm:$0xff] }
 0x2ad   :  { %8472 = vmatprep.subr.bf16.mxu0 %v10215_v46  ;;  %8882 = vmatprep.subr.bf16.mxu1 %v10217_v47  ;;  %v195_v44 = vld [vmem:[%s15883_s1 + $0x4b0] sm:$0xff]  ;;  %v192_v46 = vld [vmem:[%s15883_s1 + $0x498] sm:$0xff] }
 0x2ae   :  { %v196_v47 = vld [vmem:[%s15883_s1 + $0x4b8] sm:$0xff]  ;;  %v10263_v54 = vcombine.high %v191_v42, %v195_v44  ;;  %v235_v34 = vld [vmem:[%s15883_s1 + $0x5f0] sm:$0xff] }
 0x2af   :  { %v10265_v55 = vcombine.high %v192_v46, %v196_v47  ;;  %v10264_v45 = vcombine.low %v192_v46, %v196_v47  ;;  %v239_v46 = vld [vmem:[%s15883_s1 + $0x610] sm:$0xff] }
 0x2b0   :  { %8473 = vmatpush1.bf16.msra.mxu0 %v10214_v57  ;;  %8883 = vmatpush1.bf16.msra.mxu1 %v10216_v60  ;;  %v199_v57 = vld [vmem:[%s15883_s1 + $0x4d0] sm:$0xff] }
 0x2b1   :  { %8474 = vmatprep.subr.bf16.mxu0 %v10223_v8  ;;  %8884 = vmatprep.subr.bf16.mxu1 %v10225_v53  ;;  %v203_v60 = vld [vmem:[%s15883_s1 + $0x4f0] sm:$0xff]  ;;  %v204_v8 = vld [vmem:[%s15883_s1 + $0x4f8] sm:$0xff]  ;;  %v10262_v53 = vcombine.low %v191_v42, %v195_v44  ;;  %v10303_v42 = vcombine.high %v231_v32, %v235_v34 }
 0x2b2   :  { %v10271_v0 = vcombine.high %v199_v57, %v203_v60  ;;  %v243_v47 = vld [vmem:[%s15883_s1 + $0x630] sm:$0xff] }
 0x2b4   :  { %8475 = vmatpush1.bf16.msra.mxu0 %v10222_v3  ;;  %8885 = vmatpush1.bf16.msra.mxu1 %v10224_v6  ;;  %v211_v3 = vld [vmem:[%s15883_s1 + $0x530] sm:$0xff]  ;;  %v212_v6 = vld [vmem:[%s15883_s1 + $0x538] sm:$0xff] }
 0x2b5   :  { %8476 = vmatprep.subr.bf16.mxu0 %v10231_v10  ;;  %8886 = vmatprep.subr.bf16.mxu1 %v10233_v11  ;;  %v10270_v10 = vcombine.low %v199_v57, %v203_v60  ;;  %v10279_v12 = vcombine.high %v207_v63, %v211_v3  ;;  %v10311_v57 = vcombine.high %v239_v46, %v243_v47 }
 0x2b8   :  { %8477 = vmatpush1.bf16.msra.mxu0 %v10230_v14  ;;  %8887 = vmatpush1.bf16.msra.mxu1 %v10232_v15  ;;  %v216_v14 = vld [vmem:[%s15883_s1 + $0x558] sm:$0xff] }
 0x2b9   :  { %8478 = vmatprep.subr.bf16.mxu0 %v10239_v16  ;;  %8888 = vmatprep.subr.bf16.mxu1 %v10241_v18  ;;  %v220_v15 = vld [vmem:[%s15883_s1 + $0x578] sm:$0xff]  ;;  %v10278_v16 = vcombine.low %v207_v63, %v211_v3 }
 0x2ba   :  { %v10289_v21 = vcombine.high %v216_v14, %v220_v15 }
 0x2bc   :  { %8479 = vmatpush1.bf16.msra.mxu0 %v10238_v25  ;;  %8889 = vmatpush1.bf16.msra.mxu1 %v10240_v26  ;;  %v224_v25 = vld [vmem:[%s15883_s1 + $0x598] sm:$0xff] }
 0x2bd   :  { %8489 = vmatprep.subr.bf16.mxu0 %v10247_v28  ;;  %8899 = vmatprep.subr.bf16.mxu1 %v10249_v29  ;;  %v228_v26 = vld [vmem:[%s15883_s1 + $0x5b8] sm:$0xff]  ;;  %v10286_v28 = vcombine.low %v215_v9, %v219_v1  ;;  %v10288_v29 = vcombine.low %v216_v14, %v220_v15  ;;  %v263_v14 = vld [vmem:[%s15883_s1 + $0x6d0] sm:$0xff] }
 0x2be   :  { %v10297_v31 = vcombine.high %v224_v25, %v228_v26  ;;  %v267_v15 = vld [vmem:[%s15883_s1 + $0x6f0] sm:$0xff] }
 0x2bf   :  { %8481 = vmatmul.mubr.bf16.vlgmr.msra.gmra.mrb[4].mxu0 %v12130_v23  ;;  %8891 = vmatmul.mubr.bf16.vlgmr.msra.gmra.mrb[4].mxu1 %v12130_v23  ;;  %v200_v23 = vld [vmem:[%s15883_s1 + $0x4d8] sm:$0xff] }
 0x2c0   :  { %8490 = vmatpush1.bf16.msra.mxu0 %v10246_v35  ;;  %8900 = vmatpush1.bf16.msra.mxu1 %v10248_v36  ;;  %v10273_v2 = vcombine.high %v200_v23, %v204_v8  ;;  %v10272_v11 = vcombine.low %v200_v23, %v204_v8  ;;  %v232_v35 = vld [vmem:[%s15883_s1 + $0x5d8] sm:$0xff]  ;;  %v247_v23 = vld [vmem:[%s15883_s1 + $0x650] sm:$0xff] }
 0x2c1   :  { %8491 = vmatprep.subr.bf16.mxu0 %v10255_v39  ;;  %8901 = vmatprep.subr.bf16.mxu1 %v10257_v41  ;;  %v236_v36 = vld [vmem:[%s15883_s1 + $0x5f8] sm:$0xff]  ;;  %v10294_v39 = vcombine.low %v223_v22, %v227_v24  ;;  %v10296_v41 = vcombine.low %v224_v25, %v228_v26  ;;  %v251_v8 = vld [vmem:[%s15883_s1 + $0x670] sm:$0xff]  ;;  %v10335_v22 = vcombine.high %v263_v14, %v267_v15 }
 0x2c2   :  { %8521 = vmatprep.mubr.bf16.mxu0 %v12152_v33  ;;  %8931 = vmatprep.mubr.bf16.mxu1 %v12152_v33  ;;  %v208_v33 = vld [vmem:[%s15883_s1 + $0x518] sm:$0xff]  ;;  %v10305_v44 = vcombine.high %v232_v35, %v236_v36  ;;  %v10319_v63 = vcombine.high %v247_v23, %v251_v8  ;;  %v271_v25 = vld [vmem:[%s15883_s1 + $0x710] sm:$0xff] }
 0x2c3   :  { %v10281_v13 = vcombine.high %v208_v33, %v212_v6  ;;  %v10280_v18 = vcombine.low %v208_v33, %v212_v6  ;;  %v255_v33 = vld [vmem:[%s15883_s1 + $0x690] sm:$0xff] }
 0x2c4   :  { %8492 = vmatpush1.bf16.msra.mxu0 %v10254_v48  ;;  %8902 = vmatpush1.bf16.msra.mxu1 %v10256_v52  ;;  %v240_v48 = vld [vmem:[%s15883_s1 + $0x618] sm:$0xff]  ;;  %v259_v6 = vld [vmem:[%s15883_s1 + $0x6b0] sm:$0xff] }
 0x2c5   :  { %8493 = vmatprep.subr.bf16.mxu0 %v10263_v54  ;;  %8903 = vmatprep.subr.bf16.mxu1 %v10265_v55  ;;  %v244_v52 = vld [vmem:[%s15883_s1 + $0x638] sm:$0xff]  ;;  %v10302_v54 = vcombine.low %v231_v32, %v235_v34  ;;  %v10304_v55 = vcombine.low %v232_v35, %v236_v36  ;;  %v10327_v9 = vcombine.high %v255_v33, %v259_v6  ;;  %v275_v26 = vld [vmem:[%s15883_s1 + $0x730] sm:$0xff] }
 0x2c6   :  { %v10313_v60 = vcombine.high %v240_v48, %v244_v52  ;;  %v10343_v32 = vcombine.high %v271_v25, %v275_v26  ;;  %v279_v35 = vld [vmem:[%s15883_s1 + $0x750] sm:$0xff] }
 0x2c7   :  { %v283_v36 = vld [vmem:[%s15883_s1 + $0x770] sm:$0xff] }
 0x2c8   :  { %8494 = vmatpush1.bf16.msra.mxu0 %v10262_v53  ;;  %8904 = vmatpush1.bf16.msra.mxu1 %v10264_v45  ;;  %v248_v53 = vld [vmem:[%s15883_s1 + $0x658] sm:$0xff] }
 0x2c9   :  { %8495 = vmatprep.subr.bf16.mxu0 %v10271_v0  ;;  %8905 = vmatprep.subr.bf16.mxu1 %v10273_v2  ;;  %v252_v45 = vld [vmem:[%s15883_s1 + $0x678] sm:$0xff]  ;;  %v10310_v0 = vcombine.low %v239_v46, %v243_v47  ;;  %v10312_v2 = vcombine.low %v240_v48, %v244_v52  ;;  %v10351_v46 = vcombine.high %v279_v35, %v283_v36  ;;  %v287_v48 = vld [vmem:[%s15883_s1 + $0x790] sm:$0xff] }
 0x2ca   :  { %v10321_v3 = vcombine.high %v248_v53, %v252_v45  ;;  %v291_v52 = vld [vmem:[%s15883_s1 + $0x7b0] sm:$0xff] }
 0x2cc   :  { %8496 = vmatpush1.bf16.msra.mxu0 %v10270_v10  ;;  %8906 = vmatpush1.bf16.msra.mxu1 %v10272_v11  ;;  %v256_v10 = vld [vmem:[%s15883_s1 + $0x698] sm:$0xff] }
 0x2cd   :  { %8497 = vmatprep.subr.bf16.mxu0 %v10279_v12  ;;  %8907 = vmatprep.subr.bf16.mxu1 %v10281_v13  ;;  %v260_v11 = vld [vmem:[%s15883_s1 + $0x6b8] sm:$0xff]  ;;  %v10318_v12 = vcombine.low %v247_v23, %v251_v8  ;;  %v10320_v13 = vcombine.low %v248_v53, %v252_v45  ;;  %v10359_v23 = vcombine.high %v287_v48, %v291_v52  ;;  %v295_v53 = vld [vmem:[%s15883_s1 + $0x7d0] sm:$0xff] }
 0x2ce   :  { %v10329_v1 = vcombine.high %v256_v10, %v260_v11  ;;  %v299_v45 = vld [vmem:[%s15883_s1 + $0x7f0] sm:$0xff] }
 0x2d0   :  { %8498 = vmatpush1.bf16.msra.mxu0 %v10278_v16  ;;  %8908 = vmatpush1.bf16.msra.mxu1 %v10280_v18  ;;  %v264_v16 = vld [vmem:[%s15883_s1 + $0x6d8] sm:$0xff] }
 0x2d1   :  { %8499 = vmatprep.subr.bf16.mxu0 %v10287_v20  ;;  %8909 = vmatprep.subr.bf16.mxu1 %v10289_v21  ;;  %v268_v18 = vld [vmem:[%s15883_s1 + $0x6f8] sm:$0xff]  ;;  %v10326_v20 = vcombine.low %v255_v33, %v259_v6  ;;  %v10328_v21 = vcombine.low %v256_v10, %v260_v11  ;;  %v10367_v33 = vcombine.high %v295_v53, %v299_v45  ;;  %v303_v10 = vld [vmem:[%s15883_s1 + $0x810] sm:$0xff] }
 0x2d2   :  { %v10337_v24 = vcombine.high %v264_v16, %v268_v18  ;;  %v307_v11 = vld [vmem:[%s15883_s1 + $0x830] sm:$0xff] }
 0x2d4   :  { %8500 = vmatpush1.bf16.msra.mxu0 %v10286_v28  ;;  %8910 = vmatpush1.bf16.msra.mxu1 %v10288_v29  ;;  %v272_v28 = vld [vmem:[%s15883_s1 + $0x718] sm:$0xff] }
 0x2d5   :  { %8501 = vmatprep.subr.bf16.mxu0 %v10295_v30  ;;  %8911 = vmatprep.subr.bf16.mxu1 %v10297_v31  ;;  %v276_v29 = vld [vmem:[%s15883_s1 + $0x738] sm:$0xff]  ;;  %v10334_v30 = vcombine.low %v263_v14, %v267_v15  ;;  %v10336_v31 = vcombine.low %v264_v16, %v268_v18  ;;  %v10375_v14 = vcombine.high %v303_v10, %v307_v11  ;;  %v311_v16 = vld [vmem:[%s15883_s1 + $0x850] sm:$0xff] }
 0x2d6   :  { %v10345_v34 = vcombine.high %v272_v28, %v276_v29  ;;  %v315_v18 = vld [vmem:[%s15883_s1 + $0x870] sm:$0xff] }
 0x2d8   :  { %8502 = vmatpush1.bf16.msra.mxu0 %v10294_v39  ;;  %8912 = vmatpush1.bf16.msra.mxu1 %v10296_v41  ;;  %v280_v39 = vld [vmem:[%s15883_s1 + $0x758] sm:$0xff] }
 0x2d9   :  { %8503 = vmatprep.subr.bf16.mxu0 %v10303_v42  ;;  %8913 = vmatprep.subr.bf16.mxu1 %v10305_v44  ;;  %v284_v41 = vld [vmem:[%s15883_s1 + $0x778] sm:$0xff]  ;;  %v10342_v42 = vcombine.low %v271_v25, %v275_v26  ;;  %v10344_v44 = vcombine.low %v272_v28, %v276_v29  ;;  %v10383_v25 = vcombine.high %v311_v16, %v315_v18  ;;  %v319_v28 = vld [vmem:[%s15883_s1 + $0x890] sm:$0xff] }
 0x2da   :  { %v10353_v47 = vcombine.high %v280_v39, %v284_v41  ;;  %v323_v29 = vld [vmem:[%s15883_s1 + $0x8b0] sm:$0xff] }
 0x2dc   :  { %8504 = vmatpush1.bf16.msra.mxu0 %v10302_v54  ;;  %8914 = vmatpush1.bf16.msra.mxu1 %v10304_v55  ;;  %v288_v54 = vld [vmem:[%s15883_s1 + $0x798] sm:$0xff] }
 0x2dd   :  { %8505 = vmatprep.subr.bf16.mxu0 %v10311_v57  ;;  %8915 = vmatprep.subr.bf16.mxu1 %v10313_v60  ;;  %v292_v55 = vld [vmem:[%s15883_s1 + $0x7b8] sm:$0xff]  ;;  %v10350_v57 = vcombine.low %v279_v35, %v283_v36  ;;  %v10352_v60 = vcombine.low %v280_v39, %v284_v41  ;;  %v10391_v35 = vcombine.high %v319_v28, %v323_v29  ;;  %v327_v39 = vld [vmem:[%s15883_s1 + $0x8d0] sm:$0xff] }
 0x2de   :  { %v10361_v8 = vcombine.high %v288_v54, %v292_v55  ;;  %v331_v41 = vld [vmem:[%s15883_s1 + $0x8f0] sm:$0xff] }
 0x2e0   :  { %8506 = vmatpush1.bf16.msra.mxu0 %v10310_v0  ;;  %8916 = vmatpush1.bf16.msra.mxu1 %v10312_v2  ;;  %v296_v0 = vld [vmem:[%s15883_s1 + $0x7d8] sm:$0xff] }
 0x2e1   :  { %8507 = vmatprep.subr.bf16.mxu0 %v10319_v63  ;;  %8917 = vmatprep.subr.bf16.mxu1 %v10321_v3  ;;  %v300_v2 = vld [vmem:[%s15883_s1 + $0x7f8] sm:$0xff]  ;;  %v10358_v63 = vcombine.low %v287_v48, %v291_v52  ;;  %v10360_v3 = vcombine.low %v288_v54, %v292_v55  ;;  %v335_v52 = vld [vmem:[%s15883_s1 + $0x910] sm:$0xff] }
 0x2e2   :  { %v10369_v6 = vcombine.high %v296_v0, %v300_v2  ;;  %v339_v54 = vld [vmem:[%s15883_s1 + $0x930] sm:$0xff]  ;;  %v340_v55 = vld [vmem:[%s15883_s1 + $0x938] sm:$0xff] }
 0x2e4   :  { %8508 = vmatpush1.bf16.msra.mxu0 %v10318_v12  ;;  %8918 = vmatpush1.bf16.msra.mxu1 %v10320_v13  ;;  %v304_v12 = vld [vmem:[%s15883_s1 + $0x818] sm:$0xff] }
 0x2e5   :  { %8509 = vmatprep.subr.bf16.mxu0 %v10327_v9  ;;  %8919 = vmatprep.subr.bf16.mxu1 %v10329_v1  ;;  %v308_v13 = vld [vmem:[%s15883_s1 + $0x838] sm:$0xff]  ;;  %v10366_v9 = vcombine.low %v295_v53, %v299_v45  ;;  %v10368_v1 = vcombine.low %v296_v0, %v300_v2  ;;  %v343_v53 = vld [vmem:[%s15883_s1 + $0x950] sm:$0xff] }
 0x2e6   :  { %v10377_v15 = vcombine.high %v304_v12, %v308_v13  ;;  %v347_v45 = vld [vmem:[%s15883_s1 + $0x970] sm:$0xff]  ;;  %v344_v0 = vld [vmem:[%s15883_s1 + $0x958] sm:$0xff] }
 0x2e7   :  { %v348_v2 = vld [vmem:[%s15883_s1 + $0x978] sm:$0xff] }
 0x2e8   :  { %8510 = vmatpush1.bf16.msra.mxu0 %v10326_v20  ;;  %8920 = vmatpush1.bf16.msra.mxu1 %v10328_v21  ;;  %v312_v20 = vld [vmem:[%s15883_s1 + $0x858] sm:$0xff] }
 0x2e9   :  { %8511 = vmatprep.subr.bf16.mxu0 %v10335_v22  ;;  %8921 = vmatprep.subr.bf16.mxu1 %v10337_v24  ;;  %v316_v21 = vld [vmem:[%s15883_s1 + $0x878] sm:$0xff]  ;;  %v10374_v22 = vcombine.low %v303_v10, %v307_v11  ;;  %v10376_v24 = vcombine.low %v304_v12, %v308_v13  ;;  %v351_v10 = vld [vmem:[%s15883_s1 + $0x990] sm:$0xff] }
 0x2ea   :  { %v10385_v26 = vcombine.high %v312_v20, %v316_v21  ;;  %v355_v11 = vld [vmem:[%s15883_s1 + $0x9b0] sm:$0xff]  ;;  %v352_v12 = vld [vmem:[%s15883_s1 + $0x998] sm:$0xff] }
 0x2eb   :  { %v356_v13 = vld [vmem:[%s15883_s1 + $0x9b8] sm:$0xff] }
 0x2ec   :  { %8512 = vmatpush1.bf16.msra.mxu0 %v10334_v30  ;;  %8922 = vmatpush1.bf16.msra.mxu1 %v10336_v31  ;;  %v320_v30 = vld [vmem:[%s15883_s1 + $0x898] sm:$0xff] }
 0x2ed   :  { %8513 = vmatprep.subr.bf16.mxu0 %v10343_v32  ;;  %8923 = vmatprep.subr.bf16.mxu1 %v10345_v34  ;;  %v324_v31 = vld [vmem:[%s15883_s1 + $0x8b8] sm:$0xff]  ;;  %v10382_v32 = vcombine.low %v311_v16, %v315_v18  ;;  %v10384_v34 = vcombine.low %v312_v20, %v316_v21  ;;  %v359_v16 = vld [vmem:[%s15883_s1 + $0x9d0] sm:$0xff] }
 0x2ee   :  { %v10393_v36 = vcombine.high %v320_v30, %v324_v31  ;;  %v363_v18 = vld [vmem:[%s15883_s1 + $0x9f0] sm:$0xff]  ;;  %v360_v20 = vld [vmem:[%s15883_s1 + $0x9d8] sm:$0xff] }
 0x2ef   :  { %v364_v21 = vld [vmem:[%s15883_s1 + $0x9f8] sm:$0xff] }
 0x2f0   :  { %8514 = vmatpush1.bf16.msra.mxu0 %v10342_v42  ;;  %8924 = vmatpush1.bf16.msra.mxu1 %v10344_v44  ;;  %v332_v42 = vld [vmem:[%s15883_s1 + $0x8f8] sm:$0xff]  ;;  %v10390_v44 = vcombine.low %v319_v28, %v323_v29  ;;  %v367_v28 = vld [vmem:[%s15883_s1 + $0xa10] sm:$0xff] }
 0x2f1   :  { %8515 = vmatprep.subr.bf16.mxu0 %v10351_v46  ;;  %8925 = vmatprep.subr.bf16.mxu1 %v10353_v47  ;;  %v10392_v46 = vcombine.low %v320_v30, %v324_v31  ;;  %v10399_v47 = vcombine.high %v327_v39, %v331_v41  ;;  %v371_v29 = vld [vmem:[%s15883_s1 + $0xa30] sm:$0xff]  ;;  %v368_v30 = vld [vmem:[%s15883_s1 + $0xa18] sm:$0xff] }
 0x2f2   :  { %v372_v31 = vld [vmem:[%s15883_s1 + $0xa38] sm:$0xff] }
 0x2f4   :  { %8516 = vmatpush1.bf16.msra.mxu0 %v10350_v57  ;;  %8926 = vmatpush1.bf16.msra.mxu1 %v10352_v60  ;;  %v10398_v57 = vcombine.low %v327_v39, %v331_v41  ;;  %v375_v39 = vld [vmem:[%s15883_s1 + $0xa50] sm:$0xff] }
 0x2f5   :  { %8517 = vmatprep.subr.bf16.mxu0 %v10359_v23  ;;  %8927 = vmatprep.subr.bf16.mxu1 %v10361_v8  ;;  %v10407_v23 = vcombine.high %v335_v52, %v339_v54  ;;  %v379_v41 = vld [vmem:[%s15883_s1 + $0xa70] sm:$0xff] }
 0x2f8   :  { %8518 = vmatpush1.bf16.msra.mxu0 %v10358_v63  ;;  %8928 = vmatpush1.bf16.msra.mxu1 %v10360_v3  ;;  %v10406_v63 = vcombine.low %v335_v52, %v339_v54  ;;  %v383_v52 = vld [vmem:[%s15883_s1 + $0xa90] sm:$0xff] }
 0x2f9   :  { %8519 = vmatprep.subr.bf16.mxu0 %v10367_v33  ;;  %8929 = vmatprep.subr.bf16.mxu1 %v10369_v6  ;;  %v10415_v33 = vcombine.high %v343_v53, %v347_v45  ;;  %v10417_v6 = vcombine.high %v344_v0, %v348_v2  ;;  %v387_v54 = vld [vmem:[%s15883_s1 + $0xab0] sm:$0xff] }
 0x2fc   :  { %8520 = vmatpush1.bf16.msra.mxu0 %v10366_v9  ;;  %8930 = vmatpush1.bf16.msra.mxu1 %v10368_v1  ;;  %v10414_v9 = vcombine.low %v343_v53, %v347_v45  ;;  %v10416_v1 = vcombine.low %v344_v0, %v348_v2  ;;  %v391_v53 = vld [vmem:[%s15883_s1 + $0xad0] sm:$0xff]  ;;  %v392_v0 = vld [vmem:[%s15883_s1 + $0xad8] sm:$0xff] }
 0x2fd   :  { %8530 = vmatprep.subr.bf16.mxu0 %v10375_v14  ;;  %8940 = vmatprep.subr.bf16.mxu1 %v10377_v15  ;;  %v10423_v14 = vcombine.high %v351_v10, %v355_v11  ;;  %v10425_v15 = vcombine.high %v352_v12, %v356_v13  ;;  %v395_v45 = vld [vmem:[%s15883_s1 + $0xaf0] sm:$0xff]  ;;  %v396_v2 = vld [vmem:[%s15883_s1 + $0xaf8] sm:$0xff] }
 0x2ff   :  { %8522 = vmatmul.mubr.bf16.vlgmr.msra.gmra.mrb[4].mxu0 %v12347_v40  ;;  %8932 = vmatmul.mubr.bf16.vlgmr.msra.gmra.mrb[4].mxu1 %v12347_v40  ;;  %v328_v40 = vld [vmem:[%s15883_s1 + $0x8d8] sm:$0xff] }
 0x300   :  { %8531 = vmatpush1.bf16.msra.mxu0 %v10374_v22  ;;  %8941 = vmatpush1.bf16.msra.mxu1 %v10376_v24  ;;  %v10401_v48 = vcombine.high %v328_v40, %v332_v42  ;;  %v10400_v60 = vcombine.low %v328_v40, %v332_v42  ;;  %v10422_v22 = vcombine.low %v351_v10, %v355_v11  ;;  %v376_v40 = vld [vmem:[%s15883_s1 + $0xa58] sm:$0xff]  ;;  %v399_v10 = vld [vmem:[%s15883_s1 + $0xb10] sm:$0xff] }
 0x301   :  { %8532 = vmatprep.subr.bf16.mxu0 %v10383_v25  ;;  %8942 = vmatprep.subr.bf16.mxu1 %v10385_v26  ;;  %v10424_v24 = vcombine.low %v352_v12, %v356_v13  ;;  %v10431_v25 = vcombine.high %v359_v16, %v363_v18  ;;  %v10433_v26 = vcombine.high %v360_v20, %v364_v21  ;;  %v380_v42 = vld [vmem:[%s15883_s1 + $0xa78] sm:$0xff]  ;;  %v403_v11 = vld [vmem:[%s15883_s1 + $0xb30] sm:$0xff] }
 0x302   :  { %8562 = vmatprep.mubr.bf16.mxu0 %v12362_v50  ;;  %8972 = vmatprep.mubr.bf16.mxu1 %v12362_v50  ;;  %v336_v50 = vld [vmem:[%s15883_s1 + $0x918] sm:$0xff] }
 0x303   :  { %v10409_v8 = vcombine.high %v336_v50, %v340_v55  ;;  %v10408_v3 = vcombine.low %v336_v50, %v340_v55  ;;  %v384_v50 = vld [vmem:[%s15883_s1 + $0xa98] sm:$0xff] }
 0x304   :  { %8533 = vmatpush1.bf16.msra.mxu0 %v10382_v32  ;;  %8943 = vmatpush1.bf16.msra.mxu1 %v10384_v34  ;;  %v10430_v32 = vcombine.low %v359_v16, %v363_v18  ;;  %v10432_v34 = vcombine.low %v360_v20, %v364_v21  ;;  %v388_v55 = vld [vmem:[%s15883_s1 + $0xab8] sm:$0xff]  ;;  %v407_v16 = vld [vmem:[%s15883_s1 + $0xb50] sm:$0xff] }
 0x305   :  { %8534 = vmatprep.subr.bf16.mxu0 %v10391_v35  ;;  %8944 = vmatprep.subr.bf16.mxu1 %v10393_v36  ;;  %v10439_v35 = vcombine.high %v367_v28, %v371_v29  ;;  %v10441_v36 = vcombine.high %v368_v30, %v372_v31  ;;  %v400_v12 = vld [vmem:[%s15883_s1 + $0xb18] sm:$0xff]  ;;  %v411_v18 = vld [vmem:[%s15883_s1 + $0xb70] sm:$0xff] }
 0x306   :  { %v404_v13 = vld [vmem:[%s15883_s1 + $0xb38] sm:$0xff] }
 0x307   :  { %v408_v20 = vld [vmem:[%s15883_s1 + $0xb58] sm:$0xff] }
 0x308   :  { %8535 = vmatpush1.bf16.msra.mxu0 %v10390_v44  ;;  %8945 = vmatpush1.bf16.msra.mxu1 %v10392_v46  ;;  %v10438_v44 = vcombine.low %v367_v28, %v371_v29  ;;  %v10440_v46 = vcombine.low %v368_v30, %v372_v31  ;;  %v412_v21 = vld [vmem:[%s15883_s1 + $0xb78] sm:$0xff]  ;;  %v415_v28 = vld [vmem:[%s15883_s1 + $0xb90] sm:$0xff] }
 0x309   :  { %8536 = vmatprep.subr.bf16.mxu0 %v10399_v47  ;;  %8946 = vmatprep.subr.bf16.mxu1 %v10401_v48  ;;  %v10447_v47 = vcombine.high %v375_v39, %v379_v41  ;;  %v10449_v48 = vcombine.high %v376_v40, %v380_v42  ;;  %v419_v29 = vld [vmem:[%s15883_s1 + $0xbb0] sm:$0xff]  ;;  %v416_v30 = vld [vmem:[%s15883_s1 + $0xb98] sm:$0xff] }
 0x30a   :  { %v420_v31 = vld [vmem:[%s15883_s1 + $0xbb8] sm:$0xff] }
 0x30c   :  { %8537 = vmatpush1.bf16.msra.mxu0 %v10398_v57  ;;  %8947 = vmatpush1.bf16.msra.mxu1 %v10400_v60  ;;  %v10446_v57 = vcombine.low %v375_v39, %v379_v41  ;;  %v10448_v60 = vcombine.low %v376_v40, %v380_v42  ;;  %v423_v39 = vld [vmem:[%s15883_s1 + $0xbd0] sm:$0xff]  ;;  %v424_v40 = vld [vmem:[%s15883_s1 + $0xbd8] sm:$0xff] }
 0x30d   :  { %8538 = vmatprep.subr.bf16.mxu0 %v10407_v23  ;;  %8948 = vmatprep.subr.bf16.mxu1 %v10409_v8  ;;  %v10455_v23 = vcombine.high %v383_v52, %v387_v54  ;;  %v10457_v8 = vcombine.high %v384_v50, %v388_v55  ;;  %v427_v41 = vld [vmem:[%s15883_s1 + $0xbf0] sm:$0xff]  ;;  %v428_v42 = vld [vmem:[%s15883_s1 + $0xbf8] sm:$0xff] }
 0x310   :  { %8539 = vmatpush1.bf16.msra.mxu0 %v10406_v63  ;;  %8949 = vmatpush1.bf16.msra.mxu1 %v10408_v3  ;;  %v10454_v63 = vcombine.low %v383_v52, %v387_v54  ;;  %v10456_v3 = vcombine.low %v384_v50, %v388_v55  ;;  %v431_v52 = vld [vmem:[%s15883_s1 + $0xc10] sm:$0xff]  ;;  %v432_v50 = vld [vmem:[%s15883_s1 + $0xc18] sm:$0xff] }
 0x311   :  { %8540 = vmatprep.subr.bf16.mxu0 %v10415_v33  ;;  %8950 = vmatprep.subr.bf16.mxu1 %v10417_v6  ;;  %v10463_v33 = vcombine.high %v391_v53, %v395_v45  ;;  %v10465_v6 = vcombine.high %v392_v0, %v396_v2  ;;  %v435_v54 = vld [vmem:[%s15883_s1 + $0xc30] sm:$0xff]  ;;  %v436_v55 = vld [vmem:[%s15883_s1 + $0xc38] sm:$0xff] }
 0x314   :  { %8541 = vmatpush1.bf16.msra.mxu0 %v10414_v9  ;;  %8951 = vmatpush1.bf16.msra.mxu1 %v10416_v1  ;;  %v10462_v9 = vcombine.low %v391_v53, %v395_v45  ;;  %v10464_v1 = vcombine.low %v392_v0, %v396_v2  ;;  %v439_v53 = vld [vmem:[%s15883_s1 + $0xc50] sm:$0xff]  ;;  %v440_v0 = vld [vmem:[%s15883_s1 + $0xc58] sm:$0xff] }
 0x315   :  { %8542 = vmatprep.subr.bf16.mxu0 %v10423_v14  ;;  %8952 = vmatprep.subr.bf16.mxu1 %v10425_v15  ;;  %v10471_v14 = vcombine.high %v399_v10, %v403_v11  ;;  %v10473_v15 = vcombine.high %v400_v12, %v404_v13  ;;  %v443_v45 = vld [vmem:[%s15883_s1 + $0xc70] sm:$0xff]  ;;  %v444_v2 = vld [vmem:[%s15883_s1 + $0xc78] sm:$0xff] }
 0x318   :  { %8543 = vmatpush1.bf16.msra.mxu0 %v10422_v22  ;;  %8953 = vmatpush1.bf16.msra.mxu1 %v10424_v24  ;;  %v10470_v22 = vcombine.low %v399_v10, %v403_v11  ;;  %v10472_v24 = vcombine.low %v400_v12, %v404_v13  ;;  %v447_v10 = vld [vmem:[%s15883_s1 + $0xc90] sm:$0xff]  ;;  %v448_v12 = vld [vmem:[%s15883_s1 + $0xc98] sm:$0xff] }
 0x319   :  { %8544 = vmatprep.subr.bf16.mxu0 %v10431_v25  ;;  %8954 = vmatprep.subr.bf16.mxu1 %v10433_v26  ;;  %v10479_v25 = vcombine.high %v407_v16, %v411_v18  ;;  %v10481_v26 = vcombine.high %v408_v20, %v412_v21  ;;  %v451_v11 = vld [vmem:[%s15883_s1 + $0xcb0] sm:$0xff]  ;;  %v452_v13 = vld [vmem:[%s15883_s1 + $0xcb8] sm:$0xff] }
 0x31c   :  { %8545 = vmatpush1.bf16.msra.mxu0 %v10430_v32  ;;  %8955 = vmatpush1.bf16.msra.mxu1 %v10432_v34  ;;  %v10478_v32 = vcombine.low %v407_v16, %v411_v18  ;;  %v10480_v34 = vcombine.low %v408_v20, %v412_v21  ;;  %v455_v16 = vld [vmem:[%s15883_s1 + $0xcd0] sm:$0xff]  ;;  %v460_v20 = vld [vmem:[%s15883_s1 + $0xcf8] sm:$0xff]  ;;  %v10518_v21 = vcombine.low %v447_v10, %v451_v11 }
 0x31d   :  { %8546 = vmatprep.subr.bf16.mxu0 %v10439_v35  ;;  %8956 = vmatprep.subr.bf16.mxu1 %v10441_v36  ;;  %v10487_v35 = vcombine.high %v415_v28, %v419_v29  ;;  %v10489_v36 = vcombine.high %v416_v30, %v420_v31  ;;  %v459_v18 = vld [vmem:[%s15883_s1 + $0xcf0] sm:$0xff] }
 0x320   :  { %8547 = vmatpush1.bf16.msra.mxu0 %v10438_v44  ;;  %8957 = vmatpush1.bf16.msra.mxu1 %v10440_v46  ;;  %v10486_v44 = vcombine.low %v415_v28, %v419_v29  ;;  %v10488_v46 = vcombine.low %v416_v30, %v420_v31  ;;  %v467_v28 = vld [vmem:[%s15883_s1 + $0xd30] sm:$0xff]  ;;  %v468_v29 = vld [vmem:[%s15883_s1 + $0xd38] sm:$0xff]  ;;  %v10526_v30 = vcombine.low %v455_v16, %v459_v18 }
 0x321   :  { %8548 = vmatprep.subr.bf16.mxu0 %v10447_v47  ;;  %8958 = vmatprep.subr.bf16.mxu1 %v10449_v48  ;;  %v10495_v47 = vcombine.high %v423_v39, %v427_v41  ;;  %v10497_v48 = vcombine.high %v424_v40, %v428_v42 }
 0x324   :  { %8549 = vmatpush1.bf16.msra.mxu0 %v10446_v57  ;;  %8959 = vmatpush1.bf16.msra.mxu1 %v10448_v60  ;;  %v10494_v57 = vcombine.low %v423_v39, %v427_v41  ;;  %v10496_v60 = vcombine.low %v424_v40, %v428_v42  ;;  %v472_v39 = vld [vmem:[%s15883_s1 + $0xd58] sm:$0xff] }
 0x325   :  { %8550 = vmatprep.subr.bf16.mxu0 %v10455_v23  ;;  %8960 = vmatprep.subr.bf16.mxu1 %v10457_v8  ;;  %v10503_v23 = vcombine.high %v431_v52, %v435_v54  ;;  %v10505_v8 = vcombine.high %v432_v50, %v436_v55  ;;  %v476_v41 = vld [vmem:[%s15883_s1 + $0xd78] sm:$0xff] }
 0x328   :  { %8551 = vmatpush1.bf16.msra.mxu0 %v10454_v63  ;;  %8961 = vmatpush1.bf16.msra.mxu1 %v10456_v3  ;;  %v10502_v63 = vcombine.low %v431_v52, %v435_v54  ;;  %v10504_v3 = vcombine.low %v432_v50, %v436_v55  ;;  %v480_v52 = vld [vmem:[%s15883_s1 + $0xd98] sm:$0xff]  ;;  %v10544_v55 = vcombine.low %v472_v39, %v476_v41 }
 0x329   :  { %8552 = vmatprep.subr.bf16.mxu0 %v10463_v33  ;;  %8962 = vmatprep.subr.bf16.mxu1 %v10465_v6  ;;  %v10511_v33 = vcombine.high %v439_v53, %v443_v45  ;;  %v10513_v6 = vcombine.high %v440_v0, %v444_v2  ;;  %v484_v54 = vld [vmem:[%s15883_s1 + $0xdb8] sm:$0xff] }
 0x32c   :  { %8553 = vmatpush1.bf16.msra.mxu0 %v10462_v9  ;;  %8963 = vmatpush1.bf16.msra.mxu1 %v10464_v1  ;;  %v10510_v9 = vcombine.low %v439_v53, %v443_v45  ;;  %v10512_v1 = vcombine.low %v440_v0, %v444_v2  ;;  %v491_v53 = vld [vmem:[%s15883_s1 + $0xdf0] sm:$0xff]  ;;  %v488_v2 = vld [vmem:[%s15883_s1 + $0xdd8] sm:$0xff] }
 0x32d   :  { %8554 = vmatprep.subr.bf16.mxu0 %v10471_v14  ;;  %8964 = vmatprep.subr.bf16.mxu1 %v10473_v15  ;;  %v10519_v14 = vcombine.high %v447_v10, %v451_v11  ;;  %v10521_v15 = vcombine.high %v448_v12, %v452_v13 }
 0x330   :  { %8555 = vmatpush1.bf16.msra.mxu0 %v10470_v22  ;;  %8965 = vmatpush1.bf16.msra.mxu1 %v10472_v24  ;;  %v10520_v22 = vcombine.low %v448_v12, %v452_v13  ;;  %v10527_v24 = vcombine.high %v455_v16, %v459_v18  ;;  %v10552_v12 = vcombine.low %v480_v52, %v484_v54  ;;  %v496_v16 = vld [vmem:[%s15883_s1 + $0xe18] sm:$0xff] }
 0x331   :  { %8556 = vmatprep.subr.bf16.mxu0 %v10479_v25  ;;  %8966 = vmatprep.subr.bf16.mxu1 %v10481_v26  ;;  %v463_v26 = vld [vmem:[%s15883_s1 + $0xd10] sm:$0xff]  ;;  %v500_v18 = vld [vmem:[%s15883_s1 + $0xe38] sm:$0xff] }
 0x332   :  { %v10534_v40 = vcombine.low %v463_v26, %v467_v28 }
 0x334   :  { %8557 = vmatpush1.bf16.msra.mxu0 %v10478_v32  ;;  %8967 = vmatpush1.bf16.msra.mxu1 %v10480_v34  ;;  %v10535_v32 = vcombine.high %v463_v26, %v467_v28  ;;  %v504_v26 = vld [vmem:[%s15883_s1 + $0xe58] sm:$0xff] }
 0x335   :  { %8558 = vmatprep.subr.bf16.mxu0 %v10487_v35  ;;  %8968 = vmatprep.subr.bf16.mxu1 %v10489_v36  ;;  %v471_v35 = vld [vmem:[%s15883_s1 + $0xd50] sm:$0xff]  ;;  %v508_v28 = vld [vmem:[%s15883_s1 + $0xe78] sm:$0xff] }
 0x336   :  { %v475_v36 = vld [vmem:[%s15883_s1 + $0xd70] sm:$0xff] }
 0x337   :  { %v10542_v50 = vcombine.low %v471_v35, %v475_v36 }
 0x338   :  { %8559 = vmatpush1.bf16.msra.mxu0 %v10486_v44  ;;  %8969 = vmatpush1.bf16.msra.mxu1 %v10488_v46  ;;  %v10543_v44 = vcombine.high %v471_v35, %v475_v36  ;;  %v10545_v46 = vcombine.high %v472_v39, %v476_v41  ;;  %v512_v35 = vld [vmem:[%s15883_s1 + $0xe98] sm:$0xff]  ;;  %v10576_v41 = vcombine.low %v504_v26, %v508_v28 }
 0x339   :  { %8560 = vmatprep.subr.bf16.mxu0 %v10495_v47  ;;  %8970 = vmatprep.subr.bf16.mxu1 %v10497_v48  ;;  %v479_v47 = vld [vmem:[%s15883_s1 + $0xd90] sm:$0xff]  ;;  %v516_v36 = vld [vmem:[%s15883_s1 + $0xeb8] sm:$0xff] }
 0x33a   :  { %v483_v48 = vld [vmem:[%s15883_s1 + $0xdb0] sm:$0xff] }
 0x33c   :  { %8561 = vmatpush1.bf16.msra.mxu0 %v10494_v57  ;;  %8971 = vmatpush1.bf16.msra.mxu1 %v10496_v60  ;;  %v10551_v57 = vcombine.high %v479_v47, %v483_v48 }
 0x33d   :  { %8571 = vmatprep.subr.bf16.mxu0 %v10503_v23  ;;  %8981 = vmatprep.subr.bf16.mxu1 %v10505_v8  ;;  %v10553_v23 = vcombine.high %v480_v52, %v484_v54  ;;  %v487_v8 = vld [vmem:[%s15883_s1 + $0xdd0] sm:$0xff]  ;;  %v10584_v54 = vcombine.low %v512_v35, %v516_v36 }
 0x33e   :  { %v10559_v13 = vcombine.high %v487_v8, %v491_v53 }
 0x33f   :  { %8563 = vmatmul.mubr.bf16.vlgmr.msra.gmra.mrb[4].mxu0 %v12544_v58  ;;  %8973 = vmatmul.mubr.bf16.vlgmr.msra.gmra.mrb[4].mxu1 %v12544_v58  ;;  %v456_v58 = vld [vmem:[%s15883_s1 + $0xcd8] sm:$0xff] }
 0x340   :  { %8572 = vmatpush1.bf16.msra.mxu0 %v10502_v63  ;;  %8982 = vmatpush1.bf16.msra.mxu1 %v10504_v3  ;;  %v10529_v25 = vcombine.high %v456_v58, %v460_v20  ;;  %v10528_v31 = vcombine.low %v456_v58, %v460_v20  ;;  %v492_v63 = vld [vmem:[%s15883_s1 + $0xdf8] sm:$0xff]  ;;  %v10558_v58 = vcombine.low %v487_v8, %v491_v53 }
 0x341   :  { %8573 = vmatprep.subr.bf16.mxu0 %v10511_v33  ;;  %8983 = vmatprep.subr.bf16.mxu1 %v10513_v6  ;;  %v10550_v6 = vcombine.low %v479_v47, %v483_v48  ;;  %v10560_v20 = vcombine.low %v488_v2, %v492_v63  ;;  %v520_v47 = vld [vmem:[%s15883_s1 + $0xed8] sm:$0xff] }
 0x342   :  { %8603 = vmatprep.mubr.bf16.mxu0 %v12560_v4  ;;  %9013 = vmatprep.mubr.bf16.mxu1 %v12560_v4  ;;  %v464_v4 = vld [vmem:[%s15883_s1 + $0xd18] sm:$0xff] }
 0x343   :  { %v10537_v34 = vcombine.high %v464_v4, %v468_v29  ;;  %v10536_v42 = vcombine.low %v464_v4, %v468_v29  ;;  %v10568_v29 = vcombine.low %v496_v16, %v500_v18  ;;  %v524_v48 = vld [vmem:[%s15883_s1 + $0xef8] sm:$0xff] }
 0x344   :  { %8574 = vmatpush1.bf16.msra.mxu0 %v10510_v9  ;;  %8984 = vmatpush1.bf16.msra.mxu1 %v10512_v1  ;;  %v10561_v1 = vcombine.high %v488_v2, %v492_v63  ;;  %v528_v8 = vld [vmem:[%s15883_s1 + $0xf18] sm:$0xff]  ;;  %v10592_v63 = vcombine.low %v520_v47, %v524_v48 }
 0x345   :  { %8575 = vmatprep.subr.bf16.mxu0 %v10519_v14  ;;  %8985 = vmatprep.subr.bf16.mxu1 %v10521_v15  ;;  %v495_v14 = vld [vmem:[%s15883_s1 + $0xe10] sm:$0xff]  ;;  %v532_v53 = vld [vmem:[%s15883_s1 + $0xf38] sm:$0xff] }
 0x346   :  { %v499_v15 = vld [vmem:[%s15883_s1 + $0xe30] sm:$0xff] }
 0x347   :  { %v10566_v4 = vcombine.low %v495_v14, %v499_v15 }
 0x348   :  { %8576 = vmatpush1.bf16.msra.mxu0 %v10518_v21  ;;  %8986 = vmatpush1.bf16.msra.mxu1 %v10520_v22  ;;  %v10567_v21 = vcombine.high %v495_v14, %v499_v15  ;;  %v10569_v22 = vcombine.high %v496_v16, %v500_v18  ;;  %v543_v16 = vld [vmem:[%s15883_s1 + $0xf90] sm:$0xff] }
 0x349   :  { %8577 = vmatprep.subr.bf16.mxu0 %v10527_v24  ;;  %8987 = vmatprep.subr.bf16.mxu1 %v10529_v25  ;;  %v503_v24 = vld [vmem:[%s15883_s1 + $0xe50] sm:$0xff] }
 0x34a   :  { %v507_v25 = vld [vmem:[%s15883_s1 + $0xe70] sm:$0xff] }
 0x34b   :  { %v10574_v39 = vcombine.low %v503_v24, %v507_v25  ;;  %v547_v18 = vld [vmem:[%s15883_s1 + $0xfb0] sm:$0xff] }
 0x34c   :  { %8578 = vmatpush1.bf16.msra.mxu0 %v10526_v30  ;;  %8988 = vmatpush1.bf16.msra.mxu1 %v10528_v31  ;;  %v10575_v30 = vcombine.high %v503_v24, %v507_v25  ;;  %v10577_v31 = vcombine.high %v504_v26, %v508_v28  ;;  %v10615_v24 = vcombine.high %v543_v16, %v547_v18  ;;  %v551_v26 = vld [vmem:[%s15883_s1 + $0xfd0] sm:$0xff] }
 0x34d   :  { %8579 = vmatprep.subr.bf16.mxu0 %v10535_v32  ;;  %8989 = vmatprep.subr.bf16.mxu1 %v10537_v34  ;;  %v511_v32 = vld [vmem:[%s15883_s1 + $0xe90] sm:$0xff] }
 0x34e   :  { %v515_v34 = vld [vmem:[%s15883_s1 + $0xeb0] sm:$0xff] }
 0x34f   :  { %v10582_v52 = vcombine.low %v511_v32, %v515_v34  ;;  %v555_v28 = vld [vmem:[%s15883_s1 + $0xff0] sm:$0xff] }
 0x350   :  { %8580 = vmatpush1.bf16.msra.mxu0 %v10534_v40  ;;  %8990 = vmatpush1.bf16.msra.mxu1 %v10536_v42  ;;  %v10583_v40 = vcombine.high %v511_v32, %v515_v34  ;;  %v10585_v42 = vcombine.high %v512_v35, %v516_v36  ;;  %v10623_v32 = vcombine.high %v551_v26, %v555_v28  ;;  %v559_v35 = vld [vmem:[%s15883_s1 + $0x1010] sm:$0xff] }
 0x351   :  { %8581 = vmatprep.subr.bf16.mxu0 %v10543_v44  ;;  %8991 = vmatprep.subr.bf16.mxu1 %v10545_v46  ;;  %v519_v44 = vld [vmem:[%s15883_s1 + $0xed0] sm:$0xff] }
 0x352   :  { %v14582_v60 = vpop.f32.mrb[0].mxu0  ;;  %v14590_v45 = vpop.f32.mrb[0].mxu1  ;;  %v523_v46 = vld [vmem:[%s15883_s1 + $0xef0] sm:$0xff] }
 0x353   :  { %v14592_v0 = vpop.f32.mrb[1].mxu0  ;;  %v14600_v3 = vpop.f32.mrb[1].mxu1  ;;  %v10590_v2 = vcombine.low %v519_v44, %v523_v46  ;;  %v563_v36 = vld [vmem:[%s15883_s1 + $0x1030] sm:$0xff] }
 0x354   :  { %v8035_v33 = vpop.f32.mrb[2].mxu0  ;;  %8582 = vmatpush1.bf16.msra.mxu0 %v10542_v50  ;;  %v8445_v10 = vpop.f32.mrb[2].mxu1  ;;  %8992 = vmatpush1.bf16.msra.mxu1 %v10544_v55  ;;  %v10591_v50 = vcombine.high %v519_v44, %v523_v46  ;;  %v10593_v55 = vcombine.high %v520_v47, %v524_v48  ;;  %v10631_v44 = vcombine.high %v559_v35, %v563_v36  ;;  %v567_v47 = vld [vmem:[%s15883_s1 + $0x1050] sm:$0xff] }
 0x355   :  { %v8036_v11 = vpop.f32.mrb[3].mxu0  ;;  %8583 = vmatprep.subr.bf16.mxu0 %v10551_v57  ;;  %v8446_v9 = vpop.f32.mrb[3].mxu1  ;;  %8993 = vmatprep.subr.bf16.mxu1 %v10553_v23  ;;  %v527_v57 = vld [vmem:[%s15883_s1 + $0xf10] sm:$0xff] }
 0x356   :  { %v531_v23 = vld [vmem:[%s15883_s1 + $0xf30] sm:$0xff] }
 0x357   :  { %v10599_v33 = vcombine.high %v527_v57, %v531_v23  ;;  %v535_v10 = vld [vmem:[%s15883_s1 + $0xf50] sm:$0xff]  ;;  %v10598_v9 = vcombine.low %v527_v57, %v531_v23 }
 0x358   :  { %8584 = vmatpush1.bf16.msra.mxu0 %v10550_v6  ;;  %8994 = vmatpush1.bf16.msra.mxu1 %v10552_v12  ;;  %v10601_v6 = vcombine.high %v528_v8, %v532_v53  ;;  %v539_v11 = vld [vmem:[%s15883_s1 + $0xf70] sm:$0xff]  ;;  %v536_v12 = vld [vmem:[%s15883_s1 + $0xf58] sm:$0xff] }
 0x359   :  { %8585 = vmatprep.subr.bf16.mxu0 %v10559_v13  ;;  %8995 = vmatprep.subr.bf16.mxu1 %v10561_v1  ;;  %v540_v13 = vld [vmem:[%s15883_s1 + $0xf78] sm:$0xff]  ;;  %v10600_v1 = vcombine.low %v528_v8, %v532_v53  ;;  %v10607_v14 = vcombine.high %v535_v10, %v539_v11  ;;  %v571_v48 = vld [vmem:[%s15883_s1 + $0x1070] sm:$0xff] }
 0x35a   :  { %v10609_v15 = vcombine.high %v536_v12, %v540_v13  ;;  %v10639_v57 = vcombine.high %v567_v47, %v571_v48  ;;  %v575_v8 = vld [vmem:[%s15883_s1 + $0x1090] sm:$0xff] }
 0x35b   :  { %v579_v53 = vld [vmem:[%s15883_s1 + $0x10b0] sm:$0xff] }
 0x35c   :  { %8586 = vmatpush1.bf16.msra.mxu0 %v10558_v58  ;;  %8996 = vmatpush1.bf16.msra.mxu1 %v10560_v20  ;;  %v544_v58 = vld [vmem:[%s15883_s1 + $0xf98] sm:$0xff] }
 0x35d   :  { %8587 = vmatprep.subr.bf16.mxu0 %v10567_v21  ;;  %8997 = vmatprep.subr.bf16.mxu1 %v10569_v22  ;;  %v548_v20 = vld [vmem:[%s15883_s1 + $0xfb8] sm:$0xff]  ;;  %v10606_v21 = vcombine.low %v535_v10, %v539_v11  ;;  %v10608_v22 = vcombine.low %v536_v12, %v540_v13  ;;  %v10647_v10 = vcombine.high %v575_v8, %v579_v53  ;;  %v583_v12 = vld [vmem:[%s15883_s1 + $0x10d0] sm:$0xff] }
 0x35e   :  { %v10617_v25 = vcombine.high %v544_v58, %v548_v20  ;;  %v587_v13 = vld [vmem:[%s15883_s1 + $0x10f0] sm:$0xff] }
 0x360   :  { %8588 = vmatpush1.bf16.msra.mxu0 %v10566_v4  ;;  %8998 = vmatpush1.bf16.msra.mxu1 %v10568_v29  ;;  %v552_v4 = vld [vmem:[%s15883_s1 + $0xfd8] sm:$0xff] }
 0x361   :  { %8589 = vmatprep.subr.bf16.mxu0 %v10575_v30  ;;  %8999 = vmatprep.subr.bf16.mxu1 %v10577_v31  ;;  %v556_v29 = vld [vmem:[%s15883_s1 + $0xff8] sm:$0xff]  ;;  %v10614_v30 = vcombine.low %v543_v16, %v547_v18  ;;  %v10616_v31 = vcombine.low %v544_v58, %v548_v20  ;;  %v591_v18 = vld [vmem:[%s15883_s1 + $0x1110] sm:$0xff] }
 0x362   :  { %v10625_v34 = vcombine.high %v552_v4, %v556_v29  ;;  %v595_v58 = vld [vmem:[%s15883_s1 + $0x1130] sm:$0xff]  ;;  %v596_v20 = vld [vmem:[%s15883_s1 + $0x1138] sm:$0xff] }
 0x364   :  { %8590 = vmatpush1.bf16.msra.mxu0 %v10574_v39  ;;  %9000 = vmatpush1.bf16.msra.mxu1 %v10576_v41  ;;  %v560_v39 = vld [vmem:[%s15883_s1 + $0x1018] sm:$0xff] }
 0x365   :  { %8591 = vmatprep.subr.bf16.mxu0 %v10583_v40  ;;  %9001 = vmatprep.subr.bf16.mxu1 %v10585_v42  ;;  %v564_v41 = vld [vmem:[%s15883_s1 + $0x1038] sm:$0xff]  ;;  %v10622_v40 = vcombine.low %v551_v26, %v555_v28  ;;  %v10624_v42 = vcombine.low %v552_v4, %v556_v29  ;;  %v599_v26 = vld [vmem:[%s15883_s1 + $0x1150] sm:$0xff] }
 0x366   :  { %v10633_v46 = vcombine.high %v560_v39, %v564_v41  ;;  %v603_v28 = vld [vmem:[%s15883_s1 + $0x1170] sm:$0xff]  ;;  %v600_v4 = vld [vmem:[%s15883_s1 + $0x1158] sm:$0xff] }
 0x367   :  { %v604_v29 = vld [vmem:[%s15883_s1 + $0x1178] sm:$0xff] }
 0x368   :  { %8592 = vmatpush1.bf16.msra.mxu0 %v10582_v52  ;;  %9002 = vmatpush1.bf16.msra.mxu1 %v10584_v54  ;;  %v568_v52 = vld [vmem:[%s15883_s1 + $0x1058] sm:$0xff] }
 0x369   :  { %8593 = vmatprep.subr.bf16.mxu0 %v10591_v50  ;;  %9003 = vmatprep.subr.bf16.mxu1 %v10593_v55  ;;  %v572_v54 = vld [vmem:[%s15883_s1 + $0x1078] sm:$0xff]  ;;  %v10630_v50 = vcombine.low %v559_v35, %v563_v36  ;;  %v10632_v55 = vcombine.low %v560_v39, %v564_v41  ;;  %v607_v35 = vld [vmem:[%s15883_s1 + $0x1190] sm:$0xff] }
 0x36a   :  { %v10641_v23 = vcombine.high %v568_v52, %v572_v54  ;;  %v611_v36 = vld [vmem:[%s15883_s1 + $0x11b0] sm:$0xff]  ;;  %v608_v39 = vld [vmem:[%s15883_s1 + $0x1198] sm:$0xff] }
 0x36b   :  { %v612_v41 = vld [vmem:[%s15883_s1 + $0x11b8] sm:$0xff] }
 0x36c   :  { %8594 = vmatpush1.bf16.msra.mxu0 %v10590_v2  ;;  %9004 = vmatpush1.bf16.msra.mxu1 %v10592_v63  ;;  %v576_v2 = vld [vmem:[%s15883_s1 + $0x1098] sm:$0xff] }
 0x36d   :  { %8595 = vmatprep.subr.bf16.mxu0 %v10599_v33  ;;  %9005 = vmatprep.subr.bf16.mxu1 %v10601_v6  ;;  %v580_v63 = vld [vmem:[%s15883_s1 + $0x10b8] sm:$0xff]  ;;  %v10638_v33 = vcombine.low %v567_v47, %v571_v48  ;;  %v10640_v6 = vcombine.low %v568_v52, %v572_v54  ;;  %v615_v47 = vld [vmem:[%s15883_s1 + $0x11d0] sm:$0xff] }
 0x36e   :  { %v10649_v11 = vcombine.high %v576_v2, %v580_v63  ;;  %v619_v48 = vld [vmem:[%s15883_s1 + $0x11f0] sm:$0xff]  ;;  %v616_v52 = vld [vmem:[%s15883_s1 + $0x11d8] sm:$0xff] }
 0x36f   :  { %v620_v54 = vld [vmem:[%s15883_s1 + $0x11f8] sm:$0xff] }
 0x370   :  { %8596 = vmatpush1.bf16.msra.mxu0 %v10598_v9  ;;  %9006 = vmatpush1.bf16.msra.mxu1 %v10600_v1  ;;  %v588_v9 = vld [vmem:[%s15883_s1 + $0x10f8] sm:$0xff]  ;;  %v10646_v1 = vcombine.low %v575_v8, %v579_v53  ;;  %v623_v8 = vld [vmem:[%s15883_s1 + $0x1210] sm:$0xff] }
 0x371   :  { %8597 = vmatprep.subr.bf16.mxu0 %v10607_v14  ;;  %9007 = vmatprep.subr.bf16.mxu1 %v10609_v15  ;;  %v10648_v14 = vcombine.low %v576_v2, %v580_v63  ;;  %v10655_v15 = vcombine.high %v583_v12, %v587_v13  ;;  %v627_v53 = vld [vmem:[%s15883_s1 + $0x1230] sm:$0xff]  ;;  %v624_v2 = vld [vmem:[%s15883_s1 + $0x1218] sm:$0xff] }
 0x372   :  { %v628_v63 = vld [vmem:[%s15883_s1 + $0x1238] sm:$0xff] }
 0x374   :  { %8598 = vmatpush1.bf16.msra.mxu0 %v10606_v21  ;;  %9008 = vmatpush1.bf16.msra.mxu1 %v10608_v22  ;;  %v10654_v21 = vcombine.low %v583_v12, %v587_v13  ;;  %v631_v12 = vld [vmem:[%s15883_s1 + $0x1250] sm:$0xff] }
 0x375   :  { %8599 = vmatprep.subr.bf16.mxu0 %v10615_v24  ;;  %9009 = vmatprep.subr.bf16.mxu1 %v10617_v25  ;;  %v10663_v24 = vcombine.high %v591_v18, %v595_v58  ;;  %v635_v13 = vld [vmem:[%s15883_s1 + $0x1270] sm:$0xff] }
 0x378   :  { %8600 = vmatpush1.bf16.msra.mxu0 %v10614_v30  ;;  %9010 = vmatpush1.bf16.msra.mxu1 %v10616_v31  ;;  %v10662_v30 = vcombine.low %v591_v18, %v595_v58  ;;  %v639_v18 = vld [vmem:[%s15883_s1 + $0x1290] sm:$0xff] }
 0x379   :  { %8601 = vmatprep.subr.bf16.mxu0 %v10623_v32  ;;  %9011 = vmatprep.subr.bf16.mxu1 %v10625_v34  ;;  %v10671_v32 = vcombine.high %v599_v26, %v603_v28  ;;  %v10673_v34 = vcombine.high %v600_v4, %v604_v29  ;;  %v643_v58 = vld [vmem:[%s15883_s1 + $0x12b0] sm:$0xff] }
 0x37c   :  { %8602 = vmatpush1.bf16.msra.mxu0 %v10622_v40  ;;  %9012 = vmatpush1.bf16.msra.mxu1 %v10624_v42  ;;  %v10670_v40 = vcombine.low %v599_v26, %v603_v28  ;;  %v10672_v42 = vcombine.low %v600_v4, %v604_v29  ;;  %v647_v26 = vld [vmem:[%s15883_s1 + $0x12d0] sm:$0xff]  ;;  %v648_v4 = vld [vmem:[%s15883_s1 + $0x12d8] sm:$0xff] }
 0x37d   :  { %8612 = vmatprep.subr.bf16.mxu0 %v10631_v44  ;;  %9022 = vmatprep.subr.bf16.mxu1 %v10633_v46  ;;  %v10679_v44 = vcombine.high %v607_v35, %v611_v36  ;;  %v10681_v46 = vcombine.high %v608_v39, %v612_v41  ;;  %v651_v28 = vld [vmem:[%s15883_s1 + $0x12f0] sm:$0xff]  ;;  %v652_v29 = vld [vmem:[%s15883_s1 + $0x12f8] sm:$0xff] }
 0x37f   :  { %8604 = vmatmul.mubr.bf16.vlgmr.msra.gmra.mrb[4].mxu0 %v12759_v19  ;;  %9014 = vmatmul.mubr.bf16.vlgmr.msra.gmra.mrb[4].mxu1 %v12759_v19  ;;  %v584_v19 = vld [vmem:[%s15883_s1 + $0x10d8] sm:$0xff] }
 0x380   :  { %8613 = vmatpush1.bf16.msra.mxu0 %v10630_v50  ;;  %9023 = vmatpush1.bf16.msra.mxu1 %v10632_v55  ;;  %v10657_v16 = vcombine.high %v584_v19, %v588_v9  ;;  %v10656_v22 = vcombine.low %v584_v19, %v588_v9  ;;  %v10678_v50 = vcombine.low %v607_v35, %v611_v36  ;;  %v632_v19 = vld [vmem:[%s15883_s1 + $0x1258] sm:$0xff]  ;;  %v655_v35 = vld [vmem:[%s15883_s1 + $0x1310] sm:$0xff] }
 0x381   :  { %8614 = vmatprep.subr.bf16.mxu0 %v10639_v57  ;;  %9024 = vmatprep.subr.bf16.mxu1 %v10641_v23  ;;  %v10680_v55 = vcombine.low %v608_v39, %v612_v41  ;;  %v10687_v57 = vcombine.high %v615_v47, %v619_v48  ;;  %v10689_v23 = vcombine.high %v616_v52, %v620_v54  ;;  %v636_v9 = vld [vmem:[%s15883_s1 + $0x1278] sm:$0xff]  ;;  %v659_v36 = vld [vmem:[%s15883_s1 + $0x1330] sm:$0xff] }
 0x382   :  { %8644 = vmatprep.mubr.bf16.mxu0 %v12774_v59  ;;  %9054 = vmatprep.mubr.bf16.mxu1 %v12774_v59  ;;  %v592_v59 = vld [vmem:[%s15883_s1 + $0x1118] sm:$0xff] }
 0x383   :  { %v10665_v25 = vcombine.high %v592_v59, %v596_v20  ;;  %v10664_v31 = vcombine.low %v592_v59, %v596_v20  ;;  %v640_v59 = vld [vmem:[%s15883_s1 + $0x1298] sm:$0xff] }
 0x384   :  { %8615 = vmatpush1.bf16.msra.mxu0 %v10638_v33  ;;  %9025 = vmatpush1.bf16.msra.mxu1 %v10640_v6  ;;  %v10686_v33 = vcombine.low %v615_v47, %v619_v48  ;;  %v10688_v6 = vcombine.low %v616_v52, %v620_v54  ;;  %v644_v20 = vld [vmem:[%s15883_s1 + $0x12b8] sm:$0xff]  ;;  %v663_v47 = vld [vmem:[%s15883_s1 + $0x1350] sm:$0xff] }
 0x385   :  { %8616 = vmatprep.subr.bf16.mxu0 %v10647_v10  ;;  %9026 = vmatprep.subr.bf16.mxu1 %v10649_v11  ;;  %v10695_v10 = vcombine.high %v623_v8, %v627_v53  ;;  %v10697_v11 = vcombine.high %v624_v2, %v628_v63  ;;  %v656_v39 = vld [vmem:[%s15883_s1 + $0x1318] sm:$0xff]  ;;  %v667_v48 = vld [vmem:[%s15883_s1 + $0x1370] sm:$0xff] }
 0x386   :  { %v660_v41 = vld [vmem:[%s15883_s1 + $0x1338] sm:$0xff] }
 0x387   :  { %v664_v52 = vld [vmem:[%s15883_s1 + $0x1358] sm:$0xff] }
 0x388   :  { %8617 = vmatpush1.bf16.msra.mxu0 %v10646_v1  ;;  %9027 = vmatpush1.bf16.msra.mxu1 %v10648_v14  ;;  %v10694_v1 = vcombine.low %v623_v8, %v627_v53  ;;  %v10696_v14 = vcombine.low %v624_v2, %v628_v63  ;;  %v668_v54 = vld [vmem:[%s15883_s1 + $0x1378] sm:$0xff]  ;;  %v671_v8 = vld [vmem:[%s15883_s1 + $0x1390] sm:$0xff] }
 0x389   :  { %8618 = vmatprep.subr.bf16.mxu0 %v10655_v15  ;;  %9028 = vmatprep.subr.bf16.mxu1 %v10657_v16  ;;  %v10703_v15 = vcombine.high %v631_v12, %v635_v13  ;;  %v10705_v16 = vcombine.high %v632_v19, %v636_v9  ;;  %v675_v53 = vld [vmem:[%s15883_s1 + $0x13b0] sm:$0xff]  ;;  %v672_v2 = vld [vmem:[%s15883_s1 + $0x1398] sm:$0xff] }
 0x38a   :  { %v676_v63 = vld [vmem:[%s15883_s1 + $0x13b8] sm:$0xff] }
 0x38c   :  { %8619 = vmatpush1.bf16.msra.mxu0 %v10654_v21  ;;  %9029 = vmatpush1.bf16.msra.mxu1 %v10656_v22  ;;  %v10702_v21 = vcombine.low %v631_v12, %v635_v13  ;;  %v10704_v22 = vcombine.low %v632_v19, %v636_v9  ;;  %v679_v12 = vld [vmem:[%s15883_s1 + $0x13d0] sm:$0xff]  ;;  %v680_v19 = vld [vmem:[%s15883_s1 + $0x13d8] sm:$0xff] }
 0x38d   :  { %8620 = vmatprep.subr.bf16.mxu0 %v10663_v24  ;;  %9030 = vmatprep.subr.bf16.mxu1 %v10665_v25  ;;  %v10711_v24 = vcombine.high %v639_v18, %v643_v58  ;;  %v10713_v25 = vcombine.high %v640_v59, %v644_v20  ;;  %v683_v13 = vld [vmem:[%s15883_s1 + $0x13f0] sm:$0xff]  ;;  %v684_v9 = vld [vmem:[%s15883_s1 + $0x13f8] sm:$0xff] }
 0x390   :  { %8621 = vmatpush1.bf16.msra.mxu0 %v10662_v30  ;;  %9031 = vmatpush1.bf16.msra.mxu1 %v10664_v31  ;;  %v10710_v30 = vcombine.low %v639_v18, %v643_v58  ;;  %v10712_v31 = vcombine.low %v640_v59, %v644_v20  ;;  %v687_v18 = vld [vmem:[%s15883_s1 + $0x1410] sm:$0xff]  ;;  %v688_v59 = vld [vmem:[%s15883_s1 + $0x1418] sm:$0xff] }
 0x391   :  { %8622 = vmatprep.subr.bf16.mxu0 %v10671_v32  ;;  %9032 = vmatprep.subr.bf16.mxu1 %v10673_v34  ;;  %v10719_v32 = vcombine.high %v647_v26, %v651_v28  ;;  %v10721_v34 = vcombine.high %v648_v4, %v652_v29  ;;  %v691_v58 = vld [vmem:[%s15883_s1 + $0x1430] sm:$0xff]  ;;  %v692_v20 = vld [vmem:[%s15883_s1 + $0x1438] sm:$0xff] }
 0x394   :  { %8623 = vmatpush1.bf16.msra.mxu0 %v10670_v40  ;;  %9033 = vmatpush1.bf16.msra.mxu1 %v10672_v42  ;;  %v10718_v40 = vcombine.low %v647_v26, %v651_v28  ;;  %v10720_v42 = vcombine.low %v648_v4, %v652_v29  ;;  %v695_v26 = vld [vmem:[%s15883_s1 + $0x1450] sm:$0xff]  ;;  %v696_v4 = vld [vmem:[%s15883_s1 + $0x1458] sm:$0xff] }
 0x395   :  { %8624 = vmatprep.subr.bf16.mxu0 %v10679_v44  ;;  %9034 = vmatprep.subr.bf16.mxu1 %v10681_v46  ;;  %v10727_v44 = vcombine.high %v655_v35, %v659_v36  ;;  %v10729_v46 = vcombine.high %v656_v39, %v660_v41  ;;  %v699_v28 = vld [vmem:[%s15883_s1 + $0x1470] sm:$0xff]  ;;  %v700_v29 = vld [vmem:[%s15883_s1 + $0x1478] sm:$0xff] }
 0x398   :  { %8625 = vmatpush1.bf16.msra.mxu0 %v10678_v50  ;;  %9035 = vmatpush1.bf16.msra.mxu1 %v10680_v55  ;;  %v10726_v50 = vcombine.low %v655_v35, %v659_v36  ;;  %v10728_v55 = vcombine.low %v656_v39, %v660_v41  ;;  %v703_v35 = vld [vmem:[%s15883_s1 + $0x1490] sm:$0xff]  ;;  %v704_v39 = vld [vmem:[%s15883_s1 + $0x1498] sm:$0xff] }
 0x399   :  { %8626 = vmatprep.subr.bf16.mxu0 %v10687_v57  ;;  %9036 = vmatprep.subr.bf16.mxu1 %v10689_v23  ;;  %v10735_v57 = vcombine.high %v663_v47, %v667_v48  ;;  %v10737_v23 = vcombine.high %v664_v52, %v668_v54  ;;  %v707_v36 = vld [vmem:[%s15883_s1 + $0x14b0] sm:$0xff]  ;;  %v708_v41 = vld [vmem:[%s15883_s1 + $0x14b8] sm:$0xff] }
 0x39c   :  { %8627 = vmatpush1.bf16.msra.mxu0 %v10686_v33  ;;  %9037 = vmatpush1.bf16.msra.mxu1 %v10688_v6  ;;  %v10734_v33 = vcombine.low %v663_v47, %v667_v48  ;;  %v10736_v6 = vcombine.low %v664_v52, %v668_v54  ;;  %v711_v47 = vld [vmem:[%s15883_s1 + $0x14d0] sm:$0xff]  ;;  %v716_v52 = vld [vmem:[%s15883_s1 + $0x14f8] sm:$0xff]  ;;  %v10774_v54 = vcombine.low %v703_v35, %v707_v36 }
 0x39d   :  { %8628 = vmatprep.subr.bf16.mxu0 %v10695_v10  ;;  %9038 = vmatprep.subr.bf16.mxu1 %v10697_v11  ;;  %v10743_v10 = vcombine.high %v671_v8, %v675_v53  ;;  %v10745_v11 = vcombine.high %v672_v2, %v676_v63  ;;  %v715_v48 = vld [vmem:[%s15883_s1 + $0x14f0] sm:$0xff] }
 0x3a0   :  { %8629 = vmatpush1.bf16.msra.mxu0 %v10694_v1  ;;  %9039 = vmatpush1.bf16.msra.mxu1 %v10696_v14  ;;  %v10742_v1 = vcombine.low %v671_v8, %v675_v53  ;;  %v10744_v14 = vcombine.low %v672_v2, %v676_v63  ;;  %v723_v8 = vld [vmem:[%s15883_s1 + $0x1530] sm:$0xff]  ;;  %v724_v53 = vld [vmem:[%s15883_s1 + $0x1538] sm:$0xff]  ;;  %v10782_v2 = vcombine.low %v711_v47, %v715_v48 }
 0x3a1   :  { %8630 = vmatprep.subr.bf16.mxu0 %v10703_v15  ;;  %9040 = vmatprep.subr.bf16.mxu1 %v10705_v16  ;;  %v10751_v15 = vcombine.high %v679_v12, %v683_v13  ;;  %v10753_v16 = vcombine.high %v680_v19, %v684_v9 }
 0x3a4   :  { %8631 = vmatpush1.bf16.msra.mxu0 %v10702_v21  ;;  %9041 = vmatpush1.bf16.msra.mxu1 %v10704_v22  ;;  %v10750_v21 = vcombine.low %v679_v12, %v683_v13  ;;  %v10752_v22 = vcombine.low %v680_v19, %v684_v9  ;;  %v728_v12 = vld [vmem:[%s15883_s1 + $0x1558] sm:$0xff] }
 0x3a5   :  { %8632 = vmatprep.subr.bf16.mxu0 %v10711_v24  ;;  %9042 = vmatprep.subr.bf16.mxu1 %v10713_v25  ;;  %v10759_v24 = vcombine.high %v687_v18, %v691_v58  ;;  %v10761_v25 = vcombine.high %v688_v59, %v692_v20  ;;  %v732_v13 = vld [vmem:[%s15883_s1 + $0x1578] sm:$0xff] }
 0x3a8   :  { %8633 = vmatpush1.bf16.msra.mxu0 %v10710_v30  ;;  %9043 = vmatpush1.bf16.msra.mxu1 %v10712_v31  ;;  %v10758_v30 = vcombine.low %v687_v18, %v691_v58  ;;  %v10760_v31 = vcombine.low %v688_v59, %v692_v20  ;;  %v736_v18 = vld [vmem:[%s15883_s1 + $0x1598] sm:$0xff]  ;;  %v10800_v20 = vcombine.low %v728_v12, %v732_v13 }
 0x3a9   :  { %8634 = vmatprep.subr.bf16.mxu0 %v10719_v32  ;;  %9044 = vmatprep.subr.bf16.mxu1 %v10721_v34  ;;  %v10767_v32 = vcombine.high %v695_v26, %v699_v28  ;;  %v10769_v34 = vcombine.high %v696_v4, %v700_v29  ;;  %v740_v58 = vld [vmem:[%s15883_s1 + $0x15b8] sm:$0xff] }
 0x3ac   :  { %8635 = vmatpush1.bf16.msra.mxu0 %v10718_v40  ;;  %9045 = vmatpush1.bf16.msra.mxu1 %v10720_v42  ;;  %v10766_v40 = vcombine.low %v695_v26, %v699_v28  ;;  %v10768_v42 = vcombine.low %v696_v4, %v700_v29  ;;  %v744_v26 = vld [vmem:[%s15883_s1 + $0x15d8] sm:$0xff]  ;;  %v10808_v29 = vcombine.low %v736_v18, %v740_v58 }
 0x3ad   :  { %8636 = vmatprep.subr.bf16.mxu0 %v10727_v44  ;;  %9046 = vmatprep.subr.bf16.mxu1 %v10729_v46  ;;  %v10775_v44 = vcombine.high %v703_v35, %v707_v36  ;;  %v10777_v46 = vcombine.high %v704_v39, %v708_v41  ;;  %v748_v28 = vld [vmem:[%s15883_s1 + $0x15f8] sm:$0xff] }
 0x3ae   :  { %v752_v35 = vld [vmem:[%s15883_s1 + $0x1618] sm:$0xff] }
 0x3af   :  { %v756_v36 = vld [vmem:[%s15883_s1 + $0x1638] sm:$0xff] }
 0x3b0   :  { %8637 = vmatpush1.bf16.msra.mxu0 %v10726_v50  ;;  %9047 = vmatpush1.bf16.msra.mxu1 %v10728_v55  ;;  %v10776_v50 = vcombine.low %v704_v39, %v708_v41  ;;  %v10783_v55 = vcombine.high %v711_v47, %v715_v48  ;;  %v10816_v41 = vcombine.low %v744_v26, %v748_v28  ;;  %v760_v47 = vld [vmem:[%s15883_s1 + $0x1658] sm:$0xff] }
 0x3b1   :  { %8638 = vmatprep.subr.bf16.mxu0 %v10735_v57  ;;  %9048 = vmatprep.subr.bf16.mxu1 %v10737_v23  ;;  %v719_v23 = vld [vmem:[%s15883_s1 + $0x1510] sm:$0xff]  ;;  %v764_v48 = vld [vmem:[%s15883_s1 + $0x1678] sm:$0xff] }
 0x3b2   :  { %v10790_v19 = vcombine.low %v719_v23, %v723_v8 }
 0x3b4   :  { %8639 = vmatpush1.bf16.msra.mxu0 %v10734_v33  ;;  %9049 = vmatpush1.bf16.msra.mxu1 %v10736_v6  ;;  %v10791_v33 = vcombine.high %v719_v23, %v723_v8  ;;  %v768_v23 = vld [vmem:[%s15883_s1 + $0x1698] sm:$0xff] }
 0x3b5   :  { %8640 = vmatprep.subr.bf16.mxu0 %v10743_v10  ;;  %9050 = vmatprep.subr.bf16.mxu1 %v10745_v11  ;;  %v727_v10 = vld [vmem:[%s15883_s1 + $0x1550] sm:$0xff]  ;;  %v772_v8 = vld [vmem:[%s15883_s1 + $0x16b8] sm:$0xff] }
 0x3b6   :  { %v731_v11 = vld [vmem:[%s15883_s1 + $0x1570] sm:$0xff] }
 0x3b7   :  { %v10798_v59 = vcombine.low %v727_v10, %v731_v11 }
 0x3b8   :  { %8641 = vmatpush1.bf16.msra.mxu0 %v10742_v1  ;;  %9051 = vmatpush1.bf16.msra.mxu1 %v10744_v14  ;;  %v10799_v1 = vcombine.high %v727_v10, %v731_v11  ;;  %v10801_v14 = vcombine.high %v728_v12, %v732_v13  ;;  %v776_v10 = vld [vmem:[%s15883_s1 + $0x16d8] sm:$0xff]  ;;  %v10840_v13 = vcombine.low %v768_v23, %v772_v8 }
 0x3b9   :  { %8642 = vmatprep.subr.bf16.mxu0 %v10751_v15  ;;  %9052 = vmatprep.subr.bf16.mxu1 %v10753_v16  ;;  %v735_v15 = vld [vmem:[%s15883_s1 + $0x1590] sm:$0xff]  ;;  %v780_v11 = vld [vmem:[%s15883_s1 + $0x16f8] sm:$0xff] }
 0x3ba   :  { %v739_v16 = vld [vmem:[%s15883_s1 + $0x15b0] sm:$0xff] }
 0x3bb   :  { %v10806_v4 = vcombine.low %v735_v15, %v739_v16 }
 0x3bc   :  { %8643 = vmatpush1.bf16.msra.mxu0 %v10750_v21  ;;  %9053 = vmatpush1.bf16.msra.mxu1 %v10752_v22  ;;  %v10807_v21 = vcombine.high %v735_v15, %v739_v16  ;;  %v10809_v22 = vcombine.high %v736_v18, %v740_v58  ;;  %v784_v15 = vld [vmem:[%s15883_s1 + $0x1718] sm:$0xff]  ;;  %v10848_v58 = vcombine.low %v776_v10, %v780_v11 }
 0x3bd   :  { %8653 = vmatprep.subr.bf16.mxu0 %v10759_v24  ;;  %9063 = vmatprep.subr.bf16.mxu1 %v10761_v25  ;;  %v743_v24 = vld [vmem:[%s15883_s1 + $0x15d0] sm:$0xff]  ;;  %v788_v16 = vld [vmem:[%s15883_s1 + $0x1738] sm:$0xff] }
 0x3be   :  { %v747_v25 = vld [vmem:[%s15883_s1 + $0x15f0] sm:$0xff] }
 0x3bf   :  { %8645 = vmatmul.mubr.bf16.vlgmr.msra.gmra.mrb[4].mxu0 %v12962_v51  ;;  %9055 = vmatmul.mubr.bf16.vlgmr.msra.gmra.mrb[4].mxu1 %v12962_v51  ;;  %v712_v51 = vld [vmem:[%s15883_s1 + $0x14d8] sm:$0xff]  ;;  %v10814_v39 = vcombine.low %v743_v24, %v747_v25 }
 0x3c0   :  { %8654 = vmatpush1.bf16.msra.mxu0 %v10758_v30  ;;  %9064 = vmatpush1.bf16.msra.mxu1 %v10760_v31  ;;  %v10785_v57 = vcombine.high %v712_v51, %v716_v52  ;;  %v10784_v63 = vcombine.low %v712_v51, %v716_v52  ;;  %v10815_v30 = vcombine.high %v743_v24, %v747_v25  ;;  %v792_v24 = vld [vmem:[%s15883_s1 + $0x1758] sm:$0xff] }
 0x3c1   :  { %8655 = vmatprep.subr.bf16.mxu0 %v10767_v32  ;;  %9065 = vmatprep.subr.bf16.mxu1 %v10769_v34  ;;  %v10817_v31 = vcombine.high %v744_v26, %v748_v28  ;;  %v751_v32 = vld [vmem:[%s15883_s1 + $0x1610] sm:$0xff]  ;;  %v10824_v52 = vcombine.low %v752_v35, %v756_v36  ;;  %v796_v25 = vld [vmem:[%s15883_s1 + $0x1778] sm:$0xff]  ;;  %v10856_v28 = vcombine.low %v784_v15, %v788_v16 }
 0x3c2   :  { %8685 = vmatprep.mubr.bf16.mxu0 %v12978_v62  ;;  %9095 = vmatprep.mubr.bf16.mxu1 %v12978_v62  ;;  %v720_v62 = vld [vmem:[%s15883_s1 + $0x1518] sm:$0xff]  ;;  %v755_v34 = vld [vmem:[%s15883_s1 + $0x1630] sm:$0xff] }
 0x3c3   :  { %v10793_v6 = vcombine.high %v720_v62, %v724_v53  ;;  %v10792_v9 = vcombine.low %v720_v62, %v724_v53  ;;  %v10822_v51 = vcombine.low %v751_v32, %v755_v34  ;;  %v10832_v53 = vcombine.low %v760_v47, %v764_v48 }
 0x3c4   :  { %8656 = vmatpush1.bf16.msra.mxu0 %v10766_v40  ;;  %9066 = vmatpush1.bf16.msra.mxu1 %v10768_v42  ;;  %v10823_v40 = vcombine.high %v751_v32, %v755_v34  ;;  %v10825_v42 = vcombine.high %v752_v35, %v756_v36  ;;  %v800_v32 = vld [vmem:[%s15883_s1 + $0x1798] sm:$0xff]  ;;  %v10864_v36 = vcombine.low %v792_v24, %v796_v25 }
 0x3c5   :  { %8657 = vmatprep.subr.bf16.mxu0 %v10775_v44  ;;  %9067 = vmatprep.subr.bf16.mxu1 %v10777_v46  ;;  %v759_v44 = vld [vmem:[%s15883_s1 + $0x1650] sm:$0xff]  ;;  %v804_v34 = vld [vmem:[%s15883_s1 + $0x17b8] sm:$0xff] }
 0x3c6   :  { %v763_v46 = vld [vmem:[%s15883_s1 + $0x1670] sm:$0xff] }
 0x3c7   :  { %v10830_v62 = vcombine.low %v759_v44, %v763_v46 }
 0x3c8   :  { %8658 = vmatpush1.bf16.msra.mxu0 %v10774_v54  ;;  %9068 = vmatpush1.bf16.msra.mxu1 %v10776_v50  ;;  %v10831_v54 = vcombine.high %v759_v44, %v763_v46  ;;  %v10833_v50 = vcombine.high %v760_v47, %v764_v48  ;;  %v808_v44 = vld [vmem:[%s15883_s1 + $0x17d8] sm:$0xff]  ;;  %v10872_v48 = vcombine.low %v800_v32, %v804_v34 }
 0x3c9   :  { %8659 = vmatprep.subr.bf16.mxu0 %v10783_v55  ;;  %9069 = vmatprep.subr.bf16.mxu1 %v10785_v57  ;;  %v767_v55 = vld [vmem:[%s15883_s1 + $0x1690] sm:$0xff]  ;;  %v812_v46 = vld [vmem:[%s15883_s1 + $0x17f8] sm:$0xff] }
 0x3ca   :  { %v771_v57 = vld [vmem:[%s15883_s1 + $0x16b0] sm:$0xff] }
 0x3cb   :  { %v10838_v12 = vcombine.low %v767_v55, %v771_v57 }
 0x3cc   :  { %8660 = vmatpush1.bf16.msra.mxu0 %v10782_v2  ;;  %9070 = vmatpush1.bf16.msra.mxu1 %v10784_v63  ;;  %v10839_v2 = vcombine.high %v767_v55, %v771_v57  ;;  %v10841_v63 = vcombine.high %v768_v23, %v772_v8  ;;  %v816_v55 = vld [vmem:[%s15883_s1 + $0x1818] sm:$0xff]  ;;  %v10880_v8 = vcombine.low %v808_v44, %v812_v46 }
 0x3cd   :  { %8661 = vmatprep.subr.bf16.mxu0 %v10791_v33  ;;  %9071 = vmatprep.subr.bf16.mxu1 %v10793_v6  ;;  %v775_v33 = vld [vmem:[%s15883_s1 + $0x16d0] sm:$0xff]  ;;  %v820_v57 = vld [vmem:[%s15883_s1 + $0x1838] sm:$0xff] }
 0x3ce   :  { %v779_v6 = vld [vmem:[%s15883_s1 + $0x16f0] sm:$0xff] }
 0x3cf   :  { %v10846_v18 = vcombine.low %v775_v33, %v779_v6 }
 0x3d0   :  { %8662 = vmatpush1.bf16.msra.mxu0 %v10790_v19  ;;  %9072 = vmatpush1.bf16.msra.mxu1 %v10792_v9  ;;  %v10847_v19 = vcombine.high %v775_v33, %v779_v6  ;;  %v10849_v9 = vcombine.high %v776_v10, %v780_v11  ;;  %v824_v33 = vld [vmem:[%s15883_s1 + $0x1858] sm:$0xff]  ;;  %v10888_v11 = vcombine.low %v816_v55, %v820_v57 }
 0x3d1   :  { %8663 = vmatprep.subr.bf16.mxu0 %v10799_v1  ;;  %9073 = vmatprep.subr.bf16.mxu1 %v10801_v14  ;;  %v783_v1 = vld [vmem:[%s15883_s1 + $0x1710] sm:$0xff]  ;;  %v828_v6 = vld [vmem:[%s15883_s1 + $0x1878] sm:$0xff] }
 0x3d2   :  { %v787_v14 = vld [vmem:[%s15883_s1 + $0x1730] sm:$0xff] }
 0x3d3   :  { %v10854_v26 = vcombine.low %v783_v1, %v787_v14 }
 0x3d4   :  { %8664 = vmatpush1.bf16.msra.mxu0 %v10798_v59  ;;  %9074 = vmatpush1.bf16.msra.mxu1 %v10800_v20  ;;  %v10855_v59 = vcombine.high %v783_v1, %v787_v14  ;;  %v10857_v20 = vcombine.high %v784_v15, %v788_v16  ;;  %v832_v1 = vld [vmem:[%s15883_s1 + $0x1898] sm:$0xff]  ;;  %v10896_v16 = vcombine.low %v824_v33, %v828_v6 }
 0x3d5   :  { %8665 = vmatprep.subr.bf16.mxu0 %v10807_v21  ;;  %9075 = vmatprep.subr.bf16.mxu1 %v10809_v22  ;;  %v791_v21 = vld [vmem:[%s15883_s1 + $0x1750] sm:$0xff]  ;;  %v836_v14 = vld [vmem:[%s15883_s1 + $0x18b8] sm:$0xff] }
 0x3d6   :  { %v795_v22 = vld [vmem:[%s15883_s1 + $0x1770] sm:$0xff] }
 0x3d7   :  { %v10862_v35 = vcombine.low %v791_v21, %v795_v22 }
 0x3d8   :  { %8666 = vmatpush1.bf16.msra.mxu0 %v10806_v4  ;;  %9076 = vmatpush1.bf16.msra.mxu1 %v10808_v29  ;;  %v10863_v4 = vcombine.high %v791_v21, %v795_v22  ;;  %v10865_v29 = vcombine.high %v792_v24, %v796_v25  ;;  %v844_v21 = vld [vmem:[%s15883_s1 + $0x18f8] sm:$0xff]  ;;  %v10904_v24 = vcombine.low %v832_v1, %v836_v14 }
 0x3d9   :  { %8667 = vmatprep.subr.bf16.mxu0 %v10815_v30  ;;  %9077 = vmatprep.subr.bf16.mxu1 %v10817_v31  ;;  %v799_v30 = vld [vmem:[%s15883_s1 + $0x1790] sm:$0xff] }
 0x3da   :  { %v803_v31 = vld [vmem:[%s15883_s1 + $0x17b0] sm:$0xff] }
 0x3db   :  { %v10870_v47 = vcombine.low %v799_v30, %v803_v31 }
 0x3dc   :  { %8668 = vmatpush1.bf16.msra.mxu0 %v10814_v39  ;;  %9078 = vmatpush1.bf16.msra.mxu1 %v10816_v41  ;;  %v10871_v39 = vcombine.high %v799_v30, %v803_v31  ;;  %v10873_v41 = vcombine.high %v800_v32, %v804_v34 }
 0x3dd   :  { %8669 = vmatprep.subr.bf16.mxu0 %v10823_v40  ;;  %9079 = vmatprep.subr.bf16.mxu1 %v10825_v42  ;;  %v807_v40 = vld [vmem:[%s15883_s1 + $0x17d0] sm:$0xff] }
 0x3de   :  { %v811_v42 = vld [vmem:[%s15883_s1 + $0x17f0] sm:$0xff] }
 0x3df   :  { %v10878_v23 = vcombine.low %v807_v40, %v811_v42 }
 0x3e0   :  { %8670 = vmatpush1.bf16.msra.mxu0 %v10822_v51  ;;  %9080 = vmatpush1.bf16.msra.mxu1 %v10824_v52  ;;  %v10879_v51 = vcombine.high %v807_v40, %v811_v42  ;;  %v10881_v52 = vcombine.high %v808_v44, %v812_v46 }
 0x3e1   :  { %8671 = vmatprep.subr.bf16.mxu0 %v10831_v54  ;;  %9081 = vmatprep.subr.bf16.mxu1 %v10833_v50  ;;  %v815_v54 = vld [vmem:[%s15883_s1 + $0x1810] sm:$0xff] }
 0x3e2   :  { %v819_v50 = vld [vmem:[%s15883_s1 + $0x1830] sm:$0xff] }
 0x3e3   :  { %v10886_v10 = vcombine.low %v815_v54, %v819_v50 }
 0x3e4   :  { %8672 = vmatpush1.bf16.msra.mxu0 %v10830_v62  ;;  %9082 = vmatpush1.bf16.msra.mxu1 %v10832_v53  ;;  %v10887_v62 = vcombine.high %v815_v54, %v819_v50  ;;  %v10889_v53 = vcombine.high %v816_v55, %v820_v57 }
 0x3e5   :  { %8673 = vmatprep.subr.bf16.mxu0 %v10839_v2  ;;  %9083 = vmatprep.subr.bf16.mxu1 %v10841_v63  ;;  %v823_v2 = vld [vmem:[%s15883_s1 + $0x1850] sm:$0xff] }
 0x3e6   :  { %v827_v63 = vld [vmem:[%s15883_s1 + $0x1870] sm:$0xff] }
 0x3e7   :  { %v10894_v15 = vcombine.low %v823_v2, %v827_v63 }
 0x3e8   :  { %8674 = vmatpush1.bf16.msra.mxu0 %v10838_v12  ;;  %9084 = vmatpush1.bf16.msra.mxu1 %v10840_v13  ;;  %v10895_v12 = vcombine.high %v823_v2, %v827_v63  ;;  %v10897_v13 = vcombine.high %v824_v33, %v828_v6 }
 0x3e9   :  { %8675 = vmatprep.subr.bf16.mxu0 %v10847_v19  ;;  %9085 = vmatprep.subr.bf16.mxu1 %v10849_v9  ;;  %v831_v19 = vld [vmem:[%s15883_s1 + $0x1890] sm:$0xff] }
 0x3ea   :  { %v835_v9 = vld [vmem:[%s15883_s1 + $0x18b0] sm:$0xff] }
 0x3eb   :  { %v10902_v22 = vcombine.low %v831_v19, %v835_v9 }
 0x3ec   :  { %8676 = vmatpush1.bf16.msra.mxu0 %v10846_v18  ;;  %9086 = vmatpush1.bf16.msra.mxu1 %v10848_v58  ;;  %v10903_v18 = vcombine.high %v831_v19, %v835_v9  ;;  %v10905_v58 = vcombine.high %v832_v1, %v836_v14 }
 0x3ed   :  { %8677 = vmatprep.subr.bf16.mxu0 %v10855_v59  ;;  %9087 = vmatprep.subr.bf16.mxu1 %v10857_v20  ;;  %v839_v59 = vld [vmem:[%s15883_s1 + $0x18d0] sm:$0xff] }
 0x3ee   :  { %v843_v20 = vld [vmem:[%s15883_s1 + $0x18f0] sm:$0xff] }
 0x3ef   :  { %v10911_v25 = vcombine.high %v839_v59, %v843_v20  ;;  %v10910_v30 = vcombine.low %v839_v59, %v843_v20 }
 0x3f0   :  { %8678 = vmatpush1.bf16.msra.mxu0 %v10854_v26  ;;  %9088 = vmatpush1.bf16.msra.mxu1 %v10856_v28  ;;  %v847_v28 = vld [vmem:[%s15883_s1 + $0x1910] sm:$0xff] }
 0x3f1   :  { %8679 = vmatprep.subr.bf16.mxu0 %v10863_v4  ;;  %9089 = vmatprep.subr.bf16.mxu1 %v10865_v29  ;;  %v851_v4 = vld [vmem:[%s15883_s1 + $0x1930] sm:$0xff]  ;;  %v852_v29 = vld [vmem:[%s15883_s1 + $0x1938] sm:$0xff] }
 0x3f2   :  { %v10919_v32 = vcombine.high %v847_v28, %v851_v4  ;;  %v10918_v40 = vcombine.low %v847_v28, %v851_v4 }
 0x3f4   :  { %8680 = vmatpush1.bf16.msra.mxu0 %v10862_v35  ;;  %9090 = vmatpush1.bf16.msra.mxu1 %v10864_v36  ;;  %v855_v35 = vld [vmem:[%s15883_s1 + $0x1950] sm:$0xff] }
 0x3f5   :  { %8681 = vmatprep.subr.bf16.mxu0 %v10871_v39  ;;  %9091 = vmatprep.subr.bf16.mxu1 %v10873_v41  ;;  %v859_v36 = vld [vmem:[%s15883_s1 + $0x1970] sm:$0xff]  ;;  %v856_v39 = vld [vmem:[%s15883_s1 + $0x1958] sm:$0xff] }
 0x3f6   :  { %v860_v41 = vld [vmem:[%s15883_s1 + $0x1978] sm:$0xff]  ;;  %v10927_v44 = vcombine.high %v855_v35, %v859_v36  ;;  %v10926_v54 = vcombine.low %v855_v35, %v859_v36 }
 0x3f7   :  { %v10929_v46 = vcombine.high %v856_v39, %v860_v41  ;;  %v10928_v50 = vcombine.low %v856_v39, %v860_v41 }
 0x3f8   :  { %8682 = vmatpush1.bf16.msra.mxu0 %v10870_v47  ;;  %9092 = vmatpush1.bf16.msra.mxu1 %v10872_v48  ;;  %v863_v47 = vld [vmem:[%s15883_s1 + $0x1990] sm:$0xff] }
 0x3f9   :  { %8683 = vmatprep.subr.bf16.mxu0 %v10879_v51  ;;  %9093 = vmatprep.subr.bf16.mxu1 %v10881_v52  ;;  %v867_v48 = vld [vmem:[%s15883_s1 + $0x19b0] sm:$0xff]  ;;  %v864_v51 = vld [vmem:[%s15883_s1 + $0x1998] sm:$0xff] }
 0x3fa   :  { %v868_v52 = vld [vmem:[%s15883_s1 + $0x19b8] sm:$0xff]  ;;  %v10935_v55 = vcombine.high %v863_v47, %v867_v48  ;;  %v10934_v2 = vcombine.low %v863_v47, %v867_v48 }
 0x3fb   :  { %v10937_v57 = vcombine.high %v864_v51, %v868_v52  ;;  %v10936_v63 = vcombine.low %v864_v51, %v868_v52 }
 0x3fc   :  { %8684 = vmatpush1.bf16.msra.mxu0 %v10878_v23  ;;  %9094 = vmatpush1.bf16.msra.mxu1 %v10880_v8  ;;  %v871_v23 = vld [vmem:[%s15883_s1 + $0x19d0] sm:$0xff] }
 0x3fd   :  { %8694 = vmatprep.subr.bf16.mxu0 %v10887_v62  ;;  %9104 = vmatprep.subr.bf16.mxu1 %v10889_v53  ;;  %v875_v8 = vld [vmem:[%s15883_s1 + $0x19f0] sm:$0xff]  ;;  %v872_v62 = vld [vmem:[%s15883_s1 + $0x19d8] sm:$0xff] }
 0x3fe   :  { %v876_v53 = vld [vmem:[%s15883_s1 + $0x19f8] sm:$0xff]  ;;  %v10943_v33 = vcombine.high %v871_v23, %v875_v8  ;;  %v10942_v19 = vcombine.low %v871_v23, %v875_v8 }
 0x3ff   :  { %8686 = vmatmul.mubr.bf16.vlgmr.msra.gmra.mrb[4].mxu0 %v13173_v27  ;;  %9096 = vmatmul.mubr.bf16.vlgmr.msra.gmra.mrb[4].mxu1 %v13173_v27  ;;  %v840_v27 = vld [vmem:[%s15883_s1 + $0x18d8] sm:$0xff]  ;;  %v10945_v6 = vcombine.high %v872_v62, %v876_v53  ;;  %v10944_v9 = vcombine.low %v872_v62, %v876_v53 }
 0x400   :  { %8695 = vmatpush1.bf16.msra.mxu0 %v10886_v10  ;;  %9105 = vmatpush1.bf16.msra.mxu1 %v10888_v11  ;;  %v10913_v26 = vcombine.high %v840_v27, %v844_v21  ;;  %v10912_v31 = vcombine.low %v840_v27, %v844_v21  ;;  %v879_v10 = vld [vmem:[%s15883_s1 + $0x1a10] sm:$0xff] }
 0x401   :  { %8696 = vmatprep.subr.bf16.mxu0 %v10895_v12  ;;  %9106 = vmatprep.subr.bf16.mxu1 %v10897_v13  ;;  %v883_v11 = vld [vmem:[%s15883_s1 + $0x1a30] sm:$0xff]  ;;  %v880_v12 = vld [vmem:[%s15883_s1 + $0x1a18] sm:$0xff] }
 0x402   :  { %8726 = vmatprep.mubr.bf16.mxu0 %v13188_v37  ;;  %9136 = vmatprep.mubr.bf16.mxu1 %v13188_v37  ;;  %v848_v37 = vld [vmem:[%s15883_s1 + $0x1918] sm:$0xff]  ;;  %v10951_v1 = vcombine.high %v879_v10, %v883_v11  ;;  %v10950_v59 = vcombine.low %v879_v10, %v883_v11 }
 0x403   :  { %v10921_v34 = vcombine.high %v848_v37, %v852_v29  ;;  %v10920_v42 = vcombine.low %v848_v37, %v852_v29  ;;  %v884_v13 = vld [vmem:[%s15883_s1 + $0x1a38] sm:$0xff] }
 0x404   :  { %8697 = vmatpush1.bf16.msra.mxu0 %v10894_v15  ;;  %9107 = vmatpush1.bf16.msra.mxu1 %v10896_v16  ;;  %v10953_v14 = vcombine.high %v880_v12, %v884_v13  ;;  %v887_v15 = vld [vmem:[%s15883_s1 + $0x1a50] sm:$0xff]  ;;  %v10952_v20 = vcombine.low %v880_v12, %v884_v13 }
 0x405   :  { %8698 = vmatprep.subr.bf16.mxu0 %v10903_v18  ;;  %9108 = vmatprep.subr.bf16.mxu1 %v10905_v58  ;;  %v891_v16 = vld [vmem:[%s15883_s1 + $0x1a70] sm:$0xff]  ;;  %v888_v18 = vld [vmem:[%s15883_s1 + $0x1a58] sm:$0xff] }
 0x406   :  { %v892_v58 = vld [vmem:[%s15883_s1 + $0x1a78] sm:$0xff]  ;;  %v10959_v27 = vcombine.high %v887_v15, %v891_v16  ;;  %v10958_v28 = vcombine.low %v887_v15, %v891_v16 }
 0x407   :  { %v10961_v21 = vcombine.high %v888_v18, %v892_v58  ;;  %v10960_v4 = vcombine.low %v888_v18, %v892_v58 }
 0x408   :  { %8699 = vmatpush1.bf16.msra.mxu0 %v10902_v22  ;;  %9109 = vmatpush1.bf16.msra.mxu1 %v10904_v24  ;;  %v895_v22 = vld [vmem:[%s15883_s1 + $0x1a90] sm:$0xff] }
 0x409   :  { %8700 = vmatprep.subr.bf16.mxu0 %v10911_v25  ;;  %9110 = vmatprep.subr.bf16.mxu1 %v10913_v26  ;;  %v899_v24 = vld [vmem:[%s15883_s1 + $0x1ab0] sm:$0xff]  ;;  %v896_v25 = vld [vmem:[%s15883_s1 + $0x1a98] sm:$0xff] }
 0x40a   :  { %v900_v26 = vld [vmem:[%s15883_s1 + $0x1ab8] sm:$0xff]  ;;  %v10967_v37 = vcombine.high %v895_v22, %v899_v24  ;;  %v10966_v35 = vcombine.low %v895_v22, %v899_v24 }
 0x40b   :  { %v10969_v29 = vcombine.high %v896_v25, %v900_v26  ;;  %v10968_v36 = vcombine.low %v896_v25, %v900_v26 }
 0x40c   :  { %8701 = vmatpush1.bf16.msra.mxu0 %v10910_v30  ;;  %9111 = vmatpush1.bf16.msra.mxu1 %v10912_v31  ;;  %v903_v30 = vld [vmem:[%s15883_s1 + $0x1ad0] sm:$0xff] }
 0x40d   :  { %8702 = vmatprep.subr.bf16.mxu0 %v10919_v32  ;;  %9112 = vmatprep.subr.bf16.mxu1 %v10921_v34  ;;  %v907_v31 = vld [vmem:[%s15883_s1 + $0x1af0] sm:$0xff]  ;;  %v904_v32 = vld [vmem:[%s15883_s1 + $0x1ad8] sm:$0xff] }
 0x40e   :  { %v908_v34 = vld [vmem:[%s15883_s1 + $0x1af8] sm:$0xff]  ;;  %v10975_v39 = vcombine.high %v903_v30, %v907_v31  ;;  %v10974_v47 = vcombine.low %v903_v30, %v907_v31 }
 0x40f   :  { %v10977_v41 = vcombine.high %v904_v32, %v908_v34  ;;  %v10976_v48 = vcombine.low %v904_v32, %v908_v34 }
 0x410   :  { %8703 = vmatpush1.bf16.msra.mxu0 %v10918_v40  ;;  %9113 = vmatpush1.bf16.msra.mxu1 %v10920_v42  ;;  %v911_v40 = vld [vmem:[%s15883_s1 + $0x1b10] sm:$0xff] }
 0x411   :  { %8704 = vmatprep.subr.bf16.mxu0 %v10927_v44  ;;  %9114 = vmatprep.subr.bf16.mxu1 %v10929_v46  ;;  %v915_v42 = vld [vmem:[%s15883_s1 + $0x1b30] sm:$0xff]  ;;  %v912_v44 = vld [vmem:[%s15883_s1 + $0x1b18] sm:$0xff] }
 0x412   :  { %v916_v46 = vld [vmem:[%s15883_s1 + $0x1b38] sm:$0xff]  ;;  %v10983_v51 = vcombine.high %v911_v40, %v915_v42  ;;  %v10982_v23 = vcombine.low %v911_v40, %v915_v42 }
 0x413   :  { %v10985_v52 = vcombine.high %v912_v44, %v916_v46  ;;  %v10984_v8 = vcombine.low %v912_v44, %v916_v46 }
 0x414   :  { %8705 = vmatpush1.bf16.msra.mxu0 %v10926_v54  ;;  %9115 = vmatpush1.bf16.msra.mxu1 %v10928_v50  ;;  %v919_v54 = vld [vmem:[%s15883_s1 + $0x1b50] sm:$0xff] }
 0x415   :  { %8706 = vmatprep.subr.bf16.mxu0 %v10935_v55  ;;  %9116 = vmatprep.subr.bf16.mxu1 %v10937_v57  ;;  %v923_v50 = vld [vmem:[%s15883_s1 + $0x1b70] sm:$0xff]  ;;  %v920_v55 = vld [vmem:[%s15883_s1 + $0x1b58] sm:$0xff] }
 0x416   :  { %v924_v57 = vld [vmem:[%s15883_s1 + $0x1b78] sm:$0xff]  ;;  %v10991_v62 = vcombine.high %v919_v54, %v923_v50  ;;  %v10990_v10 = vcombine.low %v919_v54, %v923_v50 }
 0x417   :  { %v10993_v53 = vcombine.high %v920_v55, %v924_v57  ;;  %v10992_v11 = vcombine.low %v920_v55, %v924_v57  ;;  %v975_v57 = vld [vmem:[%s15883_s1 + $0x1d10] sm:$0xff] }
 0x418   :  { %8707 = vmatpush1.bf16.msra.mxu0 %v10934_v2  ;;  %9117 = vmatpush1.bf16.msra.mxu1 %v10936_v63  ;;  %v927_v2 = vld [vmem:[%s15883_s1 + $0x1b90] sm:$0xff] }
 0x419   :  { %8708 = vmatprep.subr.bf16.mxu0 %v10943_v33  ;;  %9118 = vmatprep.subr.bf16.mxu1 %v10945_v6  ;;  %v931_v63 = vld [vmem:[%s15883_s1 + $0x1bb0] sm:$0xff]  ;;  %v928_v33 = vld [vmem:[%s15883_s1 + $0x1b98] sm:$0xff] }
 0x41a   :  { %v932_v6 = vld [vmem:[%s15883_s1 + $0x1bb8] sm:$0xff]  ;;  %v10999_v12 = vcombine.high %v927_v2, %v931_v63  ;;  %v10998_v15 = vcombine.low %v927_v2, %v931_v63 }
 0x41b   :  { %v11001_v13 = vcombine.high %v928_v33, %v932_v6  ;;  %v11000_v16 = vcombine.low %v928_v33, %v932_v6  ;;  %v983_v33 = vld [vmem:[%s15883_s1 + $0x1d50] sm:$0xff] }
 0x41c   :  { %8709 = vmatpush1.bf16.msra.mxu0 %v10942_v19  ;;  %9119 = vmatpush1.bf16.msra.mxu1 %v10944_v9  ;;  %v935_v19 = vld [vmem:[%s15883_s1 + $0x1bd0] sm:$0xff] }
 0x41d   :  { %8710 = vmatprep.subr.bf16.mxu0 %v10951_v1  ;;  %9120 = vmatprep.subr.bf16.mxu1 %v10953_v14  ;;  %v939_v9 = vld [vmem:[%s15883_s1 + $0x1bf0] sm:$0xff]  ;;  %v936_v1 = vld [vmem:[%s15883_s1 + $0x1bd8] sm:$0xff] }
 0x41e   :  { %v940_v14 = vld [vmem:[%s15883_s1 + $0x1bf8] sm:$0xff]  ;;  %v11007_v18 = vcombine.high %v935_v19, %v939_v9  ;;  %v11006_v22 = vcombine.low %v935_v19, %v939_v9  ;;  %v987_v6 = vld [vmem:[%s15883_s1 + $0x1d70] sm:$0xff] }
 0x41f   :  { %v11009_v58 = vcombine.high %v936_v1, %v940_v14  ;;  %v11008_v24 = vcombine.low %v936_v1, %v940_v14  ;;  %v11055_v19 = vcombine.high %v983_v33, %v987_v6  ;;  %v991_v1 = vld [vmem:[%s15883_s1 + $0x1d90] sm:$0xff] }
 0x420   :  { %8711 = vmatpush1.bf16.msra.mxu0 %v10950_v59  ;;  %9121 = vmatpush1.bf16.msra.mxu1 %v10952_v20  ;;  %v943_v59 = vld [vmem:[%s15883_s1 + $0x1c10] sm:$0xff] }
 0x421   :  { %8712 = vmatprep.subr.bf16.mxu0 %v10959_v27  ;;  %9122 = vmatprep.subr.bf16.mxu1 %v10961_v21  ;;  %v947_v20 = vld [vmem:[%s15883_s1 + $0x1c30] sm:$0xff]  ;;  %v944_v27 = vld [vmem:[%s15883_s1 + $0x1c18] sm:$0xff] }
 0x422   :  { %v948_v21 = vld [vmem:[%s15883_s1 + $0x1c38] sm:$0xff]  ;;  %v11015_v25 = vcombine.high %v943_v59, %v947_v20  ;;  %v11014_v30 = vcombine.low %v943_v59, %v947_v20  ;;  %v995_v14 = vld [vmem:[%s15883_s1 + $0x1db0] sm:$0xff] }
 0x423   :  { %v11017_v26 = vcombine.high %v944_v27, %v948_v21  ;;  %v11016_v31 = vcombine.low %v944_v27, %v948_v21  ;;  %v11063_v59 = vcombine.high %v991_v1, %v995_v14  ;;  %v999_v27 = vld [vmem:[%s15883_s1 + $0x1dd0] sm:$0xff] }
 0x424   :  { %8713 = vmatpush1.bf16.msra.mxu0 %v10958_v28  ;;  %9123 = vmatpush1.bf16.msra.mxu1 %v10960_v4  ;;  %v951_v28 = vld [vmem:[%s15883_s1 + $0x1c50] sm:$0xff] }
 0x425   :  { %8714 = vmatprep.subr.bf16.mxu0 %v10967_v37  ;;  %9124 = vmatprep.subr.bf16.mxu1 %v10969_v29  ;;  %v955_v4 = vld [vmem:[%s15883_s1 + $0x1c70] sm:$0xff]  ;;  %v952_v37 = vld [vmem:[%s15883_s1 + $0x1c58] sm:$0xff] }
 0x426   :  { %v956_v29 = vld [vmem:[%s15883_s1 + $0x1c78] sm:$0xff]  ;;  %v11023_v32 = vcombine.high %v951_v28, %v955_v4  ;;  %v11022_v40 = vcombine.low %v951_v28, %v955_v4  ;;  %v1003_v21 = vld [vmem:[%s15883_s1 + $0x1df0] sm:$0xff] }
 0x427   :  { %v11025_v34 = vcombine.high %v952_v37, %v956_v29  ;;  %v11024_v42 = vcombine.low %v952_v37, %v956_v29  ;;  %v11071_v28 = vcombine.high %v999_v27, %v1003_v21  ;;  %v1007_v37 = vld [vmem:[%s15883_s1 + $0x1e10] sm:$0xff] }
 0x428   :  { %8715 = vmatpush1.bf16.msra.mxu0 %v10966_v35  ;;  %9125 = vmatpush1.bf16.msra.mxu1 %v10968_v36  ;;  %v959_v35 = vld [vmem:[%s15883_s1 + $0x1c90] sm:$0xff] }
 0x429   :  { %8716 = vmatprep.subr.bf16.mxu0 %v10975_v39  ;;  %9126 = vmatprep.subr.bf16.mxu1 %v10977_v41  ;;  %v963_v36 = vld [vmem:[%s15883_s1 + $0x1cb0] sm:$0xff]  ;;  %v960_v39 = vld [vmem:[%s15883_s1 + $0x1c98] sm:$0xff] }
 0x42a   :  { %v964_v41 = vld [vmem:[%s15883_s1 + $0x1cb8] sm:$0xff]  ;;  %v11031_v44 = vcombine.high %v959_v35, %v963_v36  ;;  %v1011_v29 = vld [vmem:[%s15883_s1 + $0x1e30] sm:$0xff] }
 0x42b   :  { %v11033_v46 = vcombine.high %v960_v39, %v964_v41  ;;  %v11032_v54 = vcombine.low %v960_v39, %v964_v41  ;;  %v1015_v39 = vld [vmem:[%s15883_s1 + $0x1e50] sm:$0xff] }
 0x42c   :  { %8717 = vmatpush1.bf16.msra.mxu0 %v10974_v47  ;;  %9127 = vmatpush1.bf16.msra.mxu1 %v10976_v48  ;;  %v967_v47 = vld [vmem:[%s15883_s1 + $0x1cd0] sm:$0xff] }
 0x42d   :  { %8718 = vmatprep.subr.bf16.mxu0 %v10983_v51  ;;  %9128 = vmatprep.subr.bf16.mxu1 %v10985_v52  ;;  %v971_v48 = vld [vmem:[%s15883_s1 + $0x1cf0] sm:$0xff]  ;;  %v972_v51 = vld [vmem:[%s15883_s1 + $0x1cf8] sm:$0xff]  ;;  %v11030_v52 = vcombine.low %v959_v35, %v963_v36  ;;  %v11079_v35 = vcombine.high %v1007_v37, %v1011_v29 }
 0x42e   :  { %v11039_v50 = vcombine.high %v967_v47, %v971_v48  ;;  %v1019_v41 = vld [vmem:[%s15883_s1 + $0x1e70] sm:$0xff] }
 0x430   :  { %8719 = vmatpush1.bf16.msra.mxu0 %v10982_v23  ;;  %9129 = vmatpush1.bf16.msra.mxu1 %v10984_v8  ;;  %v979_v23 = vld [vmem:[%s15883_s1 + $0x1d30] sm:$0xff]  ;;  %v980_v8 = vld [vmem:[%s15883_s1 + $0x1d38] sm:$0xff] }
 0x431   :  { %8720 = vmatprep.subr.bf16.mxu0 %v10991_v62  ;;  %9130 = vmatprep.subr.bf16.mxu1 %v10993_v53  ;;  %v11038_v62 = vcombine.low %v967_v47, %v971_v48  ;;  %v11047_v2 = vcombine.high %v975_v57, %v979_v23  ;;  %v11087_v47 = vcombine.high %v1015_v39, %v1019_v41 }
 0x434   :  { %8721 = vmatpush1.bf16.msra.mxu0 %v10990_v10  ;;  %9131 = vmatpush1.bf16.msra.mxu1 %v10992_v11  ;;  %v984_v10 = vld [vmem:[%s15883_s1 + $0x1d58] sm:$0xff] }
 0x435   :  { %8722 = vmatprep.subr.bf16.mxu0 %v10999_v12  ;;  %9132 = vmatprep.subr.bf16.mxu1 %v11001_v13  ;;  %v988_v11 = vld [vmem:[%s15883_s1 + $0x1d78] sm:$0xff]  ;;  %v11046_v12 = vcombine.low %v975_v57, %v979_v23 }
 0x436   :  { %v11057_v9 = vcombine.high %v984_v10, %v988_v11 }
 0x438   :  { %8723 = vmatpush1.bf16.msra.mxu0 %v10998_v15  ;;  %9133 = vmatpush1.bf16.msra.mxu1 %v11000_v16  ;;  %v992_v15 = vld [vmem:[%s15883_s1 + $0x1d98] sm:$0xff] }
 0x439   :  { %8724 = vmatprep.subr.bf16.mxu0 %v11007_v18  ;;  %9134 = vmatprep.subr.bf16.mxu1 %v11009_v58  ;;  %v996_v16 = vld [vmem:[%s15883_s1 + $0x1db8] sm:$0xff]  ;;  %v11054_v18 = vcombine.low %v983_v33, %v987_v6  ;;  %v11056_v58 = vcombine.low %v984_v10, %v988_v11  ;;  %v1039_v10 = vld [vmem:[%s15883_s1 + $0x1f10] sm:$0xff] }
 0x43a   :  { %v11065_v20 = vcombine.high %v992_v15, %v996_v16  ;;  %v1043_v11 = vld [vmem:[%s15883_s1 + $0x1f30] sm:$0xff] }
 0x43c   :  { %8725 = vmatpush1.bf16.msra.mxu0 %v11006_v22  ;;  %9135 = vmatpush1.bf16.msra.mxu1 %v11008_v24  ;;  %v1000_v22 = vld [vmem:[%s15883_s1 + $0x1dd8] sm:$0xff] }
 0x43d   :  { %8735 = vmatprep.subr.bf16.mxu0 %v11015_v25  ;;  %9145 = vmatprep.subr.bf16.mxu1 %v11017_v26  ;;  %v1004_v24 = vld [vmem:[%s15883_s1 + $0x1df8] sm:$0xff]  ;;  %v11062_v25 = vcombine.low %v991_v1, %v995_v14  ;;  %v11064_v26 = vcombine.low %v992_v15, %v996_v16  ;;  %v11111_v1 = vcombine.high %v1039_v10, %v1043_v11  ;;  %v1047_v15 = vld [vmem:[%s15883_s1 + $0x1f50] sm:$0xff] }
 0x43e   :  { %v11073_v4 = vcombine.high %v1000_v22, %v1004_v24  ;;  %v1051_v16 = vld [vmem:[%s15883_s1 + $0x1f70] sm:$0xff] }
 0x43f   :  { %8727 = vmatmul.mubr.bf16.vlgmr.msra.gmra.mrb[4].mxu0 %v13376_v7  ;;  %9137 = vmatmul.mubr.bf16.vlgmr.msra.gmra.mrb[4].mxu1 %v13376_v7  ;;  %v968_v7 = vld [vmem:[%s15883_s1 + $0x1cd8] sm:$0xff] }
 0x440   :  { %8736 = vmatpush1.bf16.msra.mxu0 %v11014_v30  ;;  %9146 = vmatpush1.bf16.msra.mxu1 %v11016_v31  ;;  %v11041_v55 = vcombine.high %v968_v7, %v972_v51  ;;  %v11040_v53 = vcombine.low %v968_v7, %v972_v51  ;;  %v1008_v30 = vld [vmem:[%s15883_s1 + $0x1e18] sm:$0xff]  ;;  %v1023_v7 = vld [vmem:[%s15883_s1 + $0x1e90] sm:$0xff] }
 0x441   :  { %8737 = vmatprep.subr.bf16.mxu0 %v11023_v32  ;;  %9147 = vmatprep.subr.bf16.mxu1 %v11025_v34  ;;  %v1012_v31 = vld [vmem:[%s15883_s1 + $0x1e38] sm:$0xff]  ;;  %v11070_v32 = vcombine.low %v999_v27, %v1003_v21  ;;  %v11072_v34 = vcombine.low %v1000_v22, %v1004_v24  ;;  %v1027_v51 = vld [vmem:[%s15883_s1 + $0x1eb0] sm:$0xff]  ;;  %v11119_v27 = vcombine.high %v1047_v15, %v1051_v16 }
 0x442   :  { %8767 = vmatprep.mubr.bf16.mxu0 %v13392_v17  ;;  %9177 = vmatprep.mubr.bf16.mxu1 %v13392_v17  ;;  %v976_v17 = vld [vmem:[%s15883_s1 + $0x1d18] sm:$0xff]  ;;  %v11081_v36 = vcombine.high %v1008_v30, %v1012_v31  ;;  %v11095_v57 = vcombine.high %v1023_v7, %v1027_v51  ;;  %v1055_v22 = vld [vmem:[%s15883_s1 + $0x1f90] sm:$0xff] }
 0x443   :  { %v11049_v63 = vcombine.high %v976_v17, %v980_v8  ;;  %v11048_v13 = vcombine.low %v976_v17, %v980_v8  ;;  %v1031_v17 = vld [vmem:[%s15883_s1 + $0x1ed0] sm:$0xff] }
 0x444   :  { %8738 = vmatpush1.bf16.msra.mxu0 %v11022_v40  ;;  %9148 = vmatpush1.bf16.msra.mxu1 %v11024_v42  ;;  %v1016_v40 = vld [vmem:[%s15883_s1 + $0x1e58] sm:$0xff]  ;;  %v1035_v8 = vld [vmem:[%s15883_s1 + $0x1ef0] sm:$0xff] }
 0x445   :  { %8739 = vmatprep.subr.bf16.mxu0 %v11031_v44  ;;  %9149 = vmatprep.subr.bf16.mxu1 %v11033_v46  ;;  %v1020_v42 = vld [vmem:[%s15883_s1 + $0x1e78] sm:$0xff]  ;;  %v11078_v44 = vcombine.low %v1007_v37, %v1011_v29  ;;  %v11080_v46 = vcombine.low %v1008_v30, %v1012_v31  ;;  %v11103_v33 = vcombine.high %v1031_v17, %v1035_v8  ;;  %v1059_v24 = vld [vmem:[%s15883_s1 + $0x1fb0] sm:$0xff] }
 0x446   :  { %v11089_v48 = vcombine.high %v1016_v40, %v1020_v42  ;;  %v11127_v37 = vcombine.high %v1055_v22, %v1059_v24  ;;  %v1063_v30 = vld [vmem:[%s15883_s1 + $0x1fd0] sm:$0xff] }
 0x447   :  { %v1067_v31 = vld [vmem:[%s15883_s1 + $0x1ff0] sm:$0xff] }
 0x448   :  { %8740 = vmatpush1.bf16.msra.mxu0 %v11030_v52  ;;  %9150 = vmatpush1.bf16.msra.mxu1 %v11032_v54  ;;  %v1024_v52 = vld [vmem:[%s15883_s1 + $0x1e98] sm:$0xff] }
 0x449   :  { %8741 = vmatprep.subr.bf16.mxu0 %v11039_v50  ;;  %9151 = vmatprep.subr.bf16.mxu1 %v11041_v55  ;;  %v1028_v54 = vld [vmem:[%s15883_s1 + $0x1eb8] sm:$0xff]  ;;  %v11086_v50 = vcombine.low %v1015_v39, %v1019_v41  ;;  %v11088_v55 = vcombine.low %v1016_v40, %v1020_v42  ;;  %v11135_v39 = vcombine.high %v1063_v30, %v1067_v31  ;;  %v1071_v40 = vld [vmem:[%s15883_s1 + $0x2010] sm:$0xff] }
 0x44a   :  { %v11097_v23 = vcombine.high %v1024_v52, %v1028_v54  ;;  %v1075_v42 = vld [vmem:[%s15883_s1 + $0x2030] sm:$0xff] }
 0x44c   :  { %8742 = vmatpush1.bf16.msra.mxu0 %v11038_v62  ;;  %9152 = vmatpush1.bf16.msra.mxu1 %v11040_v53  ;;  %v1032_v62 = vld [vmem:[%s15883_s1 + $0x1ed8] sm:$0xff] }
 0x44d   :  { %8743 = vmatprep.subr.bf16.mxu0 %v11047_v2  ;;  %9153 = vmatprep.subr.bf16.mxu1 %v11049_v63  ;;  %v1036_v53 = vld [vmem:[%s15883_s1 + $0x1ef8] sm:$0xff]  ;;  %v11094_v2 = vcombine.low %v1023_v7, %v1027_v51  ;;  %v11096_v63 = vcombine.low %v1024_v52, %v1028_v54  ;;  %v11143_v7 = vcombine.high %v1071_v40, %v1075_v42  ;;  %v1079_v52 = vld [vmem:[%s15883_s1 + $0x2050] sm:$0xff] }
 0x44e   :  { %v11105_v6 = vcombine.high %v1032_v62, %v1036_v53  ;;  %v1083_v54 = vld [vmem:[%s15883_s1 + $0x2070] sm:$0xff] }
 0x450   :  { %8744 = vmatpush1.bf16.msra.mxu0 %v11046_v12  ;;  %9154 = vmatpush1.bf16.msra.mxu1 %v11048_v13  ;;  %v1040_v12 = vld [vmem:[%s15883_s1 + $0x1f18] sm:$0xff] }
 0x451   :  { %8745 = vmatprep.subr.bf16.mxu0 %v11055_v19  ;;  %9155 = vmatprep.subr.bf16.mxu1 %v11057_v9  ;;  %v1044_v13 = vld [vmem:[%s15883_s1 + $0x1f38] sm:$0xff]  ;;  %v11102_v19 = vcombine.low %v1031_v17, %v1035_v8  ;;  %v11104_v9 = vcombine.low %v1032_v62, %v1036_v53  ;;  %v11151_v17 = vcombine.high %v1079_v52, %v1083_v54  ;;  %v1087_v62 = vld [vmem:[%s15883_s1 + $0x2090] sm:$0xff] }
 0x452   :  { %v11113_v14 = vcombine.high %v1040_v12, %v1044_v13  ;;  %v1091_v53 = vld [vmem:[%s15883_s1 + $0x20b0] sm:$0xff] }
 0x454   :  { %8746 = vmatpush1.bf16.msra.mxu0 %v11054_v18  ;;  %9156 = vmatpush1.bf16.msra.mxu1 %v11056_v58  ;;  %v1048_v18 = vld [vmem:[%s15883_s1 + $0x1f58] sm:$0xff] }
 0x455   :  { %8747 = vmatprep.subr.bf16.mxu0 %v11063_v59  ;;  %9157 = vmatprep.subr.bf16.mxu1 %v11065_v20  ;;  %v1052_v58 = vld [vmem:[%s15883_s1 + $0x1f78] sm:$0xff]  ;;  %v11110_v59 = vcombine.low %v1039_v10, %v1043_v11  ;;  %v11112_v20 = vcombine.low %v1040_v12, %v1044_v13  ;;  %v11159_v10 = vcombine.high %v1087_v62, %v1091_v53  ;;  %v1095_v12 = vld [vmem:[%s15883_s1 + $0x20d0] sm:$0xff] }
 0x456   :  { %v11121_v21 = vcombine.high %v1048_v18, %v1052_v58  ;;  %v1099_v13 = vld [vmem:[%s15883_s1 + $0x20f0] sm:$0xff] }
 0x458   :  { %8748 = vmatpush1.bf16.msra.mxu0 %v11062_v25  ;;  %9158 = vmatpush1.bf16.msra.mxu1 %v11064_v26  ;;  %v1056_v25 = vld [vmem:[%s15883_s1 + $0x1f98] sm:$0xff] }
 0x459   :  { %8749 = vmatprep.subr.bf16.mxu0 %v11071_v28  ;;  %9159 = vmatprep.subr.bf16.mxu1 %v11073_v4  ;;  %v1060_v26 = vld [vmem:[%s15883_s1 + $0x1fb8] sm:$0xff]  ;;  %v11118_v28 = vcombine.low %v1047_v15, %v1051_v16  ;;  %v11120_v4 = vcombine.low %v1048_v18, %v1052_v58  ;;  %v1103_v16 = vld [vmem:[%s15883_s1 + $0x2110] sm:$0xff] }
 0x45a   :  { %v11129_v29 = vcombine.high %v1056_v25, %v1060_v26  ;;  %v1107_v18 = vld [vmem:[%s15883_s1 + $0x2130] sm:$0xff]  ;;  %v1108_v58 = vld [vmem:[%s15883_s1 + $0x2138] sm:$0xff] }
 0x45c   :  { %8750 = vmatpush1.bf16.msra.mxu0 %v11070_v32  ;;  %9160 = vmatpush1.bf16.msra.mxu1 %v11072_v34  ;;  %v1064_v32 = vld [vmem:[%s15883_s1 + $0x1fd8] sm:$0xff] }
 0x45d   :  { %8751 = vmatprep.subr.bf16.mxu0 %v11079_v35  ;;  %9161 = vmatprep.subr.bf16.mxu1 %v11081_v36  ;;  %v1068_v34 = vld [vmem:[%s15883_s1 + $0x1ff8] sm:$0xff]  ;;  %v11126_v35 = vcombine.low %v1055_v22, %v1059_v24  ;;  %v11128_v36 = vcombine.low %v1056_v25, %v1060_v26  ;;  %v1111_v22 = vld [vmem:[%s15883_s1 + $0x2150] sm:$0xff] }
 0x45e   :  { %v11137_v41 = vcombine.high %v1064_v32, %v1068_v34  ;;  %v1115_v24 = vld [vmem:[%s15883_s1 + $0x2170] sm:$0xff]  ;;  %v1112_v25 = vld [vmem:[%s15883_s1 + $0x2158] sm:$0xff] }
 0x45f   :  { %v1116_v26 = vld [vmem:[%s15883_s1 + $0x2178] sm:$0xff] }
 0x460   :  { %8752 = vmatpush1.bf16.msra.mxu0 %v11078_v44  ;;  %9162 = vmatpush1.bf16.msra.mxu1 %v11080_v46  ;;  %v1072_v44 = vld [vmem:[%s15883_s1 + $0x2018] sm:$0xff] }
 0x461   :  { %8753 = vmatprep.subr.bf16.mxu0 %v11087_v47  ;;  %9163 = vmatprep.subr.bf16.mxu1 %v11089_v48  ;;  %v1076_v46 = vld [vmem:[%s15883_s1 + $0x2038] sm:$0xff]  ;;  %v11134_v47 = vcombine.low %v1063_v30, %v1067_v31  ;;  %v11136_v48 = vcombine.low %v1064_v32, %v1068_v34  ;;  %v1119_v30 = vld [vmem:[%s15883_s1 + $0x2190] sm:$0xff] }
 0x462   :  { %v11145_v51 = vcombine.high %v1072_v44, %v1076_v46  ;;  %v1123_v31 = vld [vmem:[%s15883_s1 + $0x21b0] sm:$0xff]  ;;  %v1120_v32 = vld [vmem:[%s15883_s1 + $0x2198] sm:$0xff] }
 0x463   :  { %v1124_v34 = vld [vmem:[%s15883_s1 + $0x21b8] sm:$0xff] }
 0x464   :  { %8754 = vmatpush1.bf16.msra.mxu0 %v11086_v50  ;;  %9164 = vmatpush1.bf16.msra.mxu1 %v11088_v55  ;;  %v1080_v50 = vld [vmem:[%s15883_s1 + $0x2058] sm:$0xff] }
 0x465   :  { %8755 = vmatprep.subr.bf16.mxu0 %v11095_v57  ;;  %9165 = vmatprep.subr.bf16.mxu1 %v11097_v23  ;;  %v1084_v55 = vld [vmem:[%s15883_s1 + $0x2078] sm:$0xff]  ;;  %v11142_v57 = vcombine.low %v1071_v40, %v1075_v42  ;;  %v11144_v23 = vcombine.low %v1072_v44, %v1076_v46  ;;  %v1127_v40 = vld [vmem:[%s15883_s1 + $0x21d0] sm:$0xff] }
 0x466   :  { %v11153_v8 = vcombine.high %v1080_v50, %v1084_v55  ;;  %v1131_v42 = vld [vmem:[%s15883_s1 + $0x21f0] sm:$0xff]  ;;  %v1128_v44 = vld [vmem:[%s15883_s1 + $0x21d8] sm:$0xff] }
 0x467   :  { %v1132_v46 = vld [vmem:[%s15883_s1 + $0x21f8] sm:$0xff] }
 0x468   :  { %8756 = vmatpush1.bf16.msra.mxu0 %v11094_v2  ;;  %9166 = vmatpush1.bf16.msra.mxu1 %v11096_v63  ;;  %v1088_v2 = vld [vmem:[%s15883_s1 + $0x2098] sm:$0xff] }
 0x469   :  { %8757 = vmatprep.subr.bf16.mxu0 %v11103_v33  ;;  %9167 = vmatprep.subr.bf16.mxu1 %v11105_v6  ;;  %v1092_v63 = vld [vmem:[%s15883_s1 + $0x20b8] sm:$0xff]  ;;  %v11150_v33 = vcombine.low %v1079_v52, %v1083_v54  ;;  %v11152_v6 = vcombine.low %v1080_v50, %v1084_v55  ;;  %v1135_v52 = vld [vmem:[%s15883_s1 + $0x2210] sm:$0xff] }
 0x46a   :  { %v11161_v11 = vcombine.high %v1088_v2, %v1092_v63  ;;  %v1139_v54 = vld [vmem:[%s15883_s1 + $0x2230] sm:$0xff]  ;;  %v1136_v50 = vld [vmem:[%s15883_s1 + $0x2218] sm:$0xff] }
 0x46b   :  { %v1140_v55 = vld [vmem:[%s15883_s1 + $0x2238] sm:$0xff] }
 0x46c   :  { %8758 = vmatpush1.bf16.msra.mxu0 %v11102_v19  ;;  %9168 = vmatpush1.bf16.msra.mxu1 %v11104_v9  ;;  %v1100_v19 = vld [vmem:[%s15883_s1 + $0x20f8] sm:$0xff]  ;;  %v11158_v9 = vcombine.low %v1087_v62, %v1091_v53  ;;  %v1143_v62 = vld [vmem:[%s15883_s1 + $0x2250] sm:$0xff] }
 0x46d   :  { %8759 = vmatprep.subr.bf16.mxu0 %v11111_v1  ;;  %9169 = vmatprep.subr.bf16.mxu1 %v11113_v14  ;;  %v11160_v1 = vcombine.low %v1088_v2, %v1092_v63  ;;  %v11167_v14 = vcombine.high %v1095_v12, %v1099_v13  ;;  %v1147_v53 = vld [vmem:[%s15883_s1 + $0x2270] sm:$0xff]  ;;  %v1144_v2 = vld [vmem:[%s15883_s1 + $0x2258] sm:$0xff] }
 0x46e   :  { %v1148_v63 = vld [vmem:[%s15883_s1 + $0x2278] sm:$0xff] }
 0x470   :  { %8760 = vmatpush1.bf16.msra.mxu0 %v11110_v59  ;;  %9170 = vmatpush1.bf16.msra.mxu1 %v11112_v20  ;;  %v11166_v59 = vcombine.low %v1095_v12, %v1099_v13  ;;  %v1151_v12 = vld [vmem:[%s15883_s1 + $0x2290] sm:$0xff] }
 0x471   :  { %8761 = vmatprep.subr.bf16.mxu0 %v11119_v27  ;;  %9171 = vmatprep.subr.bf16.mxu1 %v11121_v21  ;;  %v11175_v27 = vcombine.high %v1103_v16, %v1107_v18  ;;  %v1155_v13 = vld [vmem:[%s15883_s1 + $0x22b0] sm:$0xff] }
 0x474   :  { %8762 = vmatpush1.bf16.msra.mxu0 %v11118_v28  ;;  %9172 = vmatpush1.bf16.msra.mxu1 %v11120_v4  ;;  %v11174_v28 = vcombine.low %v1103_v16, %v1107_v18  ;;  %v1159_v16 = vld [vmem:[%s15883_s1 + $0x22d0] sm:$0xff] }
 0x475   :  { %8763 = vmatprep.subr.bf16.mxu0 %v11127_v37  ;;  %9173 = vmatprep.subr.bf16.mxu1 %v11129_v29  ;;  %v11183_v37 = vcombine.high %v1111_v22, %v1115_v24  ;;  %v11185_v29 = vcombine.high %v1112_v25, %v1116_v26  ;;  %v1163_v18 = vld [vmem:[%s15883_s1 + $0x22f0] sm:$0xff] }
 0x478   :  { %8764 = vmatpush1.bf16.msra.mxu0 %v11126_v35  ;;  %9174 = vmatpush1.bf16.msra.mxu1 %v11128_v36  ;;  %v11182_v35 = vcombine.low %v1111_v22, %v1115_v24  ;;  %v11184_v36 = vcombine.low %v1112_v25, %v1116_v26  ;;  %v1167_v22 = vld [vmem:[%s15883_s1 + $0x2310] sm:$0xff]  ;;  %v1168_v25 = vld [vmem:[%s15883_s1 + $0x2318] sm:$0xff] }
 0x479   :  { %8765 = vmatprep.subr.bf16.mxu0 %v11135_v39  ;;  %9175 = vmatprep.subr.bf16.mxu1 %v11137_v41  ;;  %v11191_v39 = vcombine.high %v1119_v30, %v1123_v31  ;;  %v11193_v41 = vcombine.high %v1120_v32, %v1124_v34  ;;  %v1171_v24 = vld [vmem:[%s15883_s1 + $0x2330] sm:$0xff]  ;;  %v1172_v26 = vld [vmem:[%s15883_s1 + $0x2338] sm:$0xff] }
 0x47c   :  { %8766 = vmatpush1.bf16.msra.mxu0 %v11134_v47  ;;  %9176 = vmatpush1.bf16.msra.mxu1 %v11136_v48  ;;  %v11190_v47 = vcombine.low %v1119_v30, %v1123_v31  ;;  %v11192_v48 = vcombine.low %v1120_v32, %v1124_v34  ;;  %v1175_v30 = vld [vmem:[%s15883_s1 + $0x2350] sm:$0xff]  ;;  %v1176_v32 = vld [vmem:[%s15883_s1 + $0x2358] sm:$0xff] }
 0x47d   :  { %8776 = vmatprep.subr.bf16.mxu0 %v11143_v7  ;;  %9186 = vmatprep.subr.bf16.mxu1 %v11145_v51  ;;  %v11199_v7 = vcombine.high %v1127_v40, %v1131_v42  ;;  %v11201_v51 = vcombine.high %v1128_v44, %v1132_v46  ;;  %v1179_v31 = vld [vmem:[%s15883_s1 + $0x2370] sm:$0xff]  ;;  %v1180_v34 = vld [vmem:[%s15883_s1 + $0x2378] sm:$0xff] }
 0x47f   :  { %8768 = vmatmul.mubr.bf16.vlgmr.msra.gmra.mrb[4].mxu0 %v13587_v56  ;;  %9178 = vmatmul.mubr.bf16.vlgmr.msra.gmra.mrb[4].mxu1 %v13587_v56  ;;  %v1096_v56 = vld [vmem:[%s15883_s1 + $0x20d8] sm:$0xff] }
 0x480   :  { %8777 = vmatpush1.bf16.msra.mxu0 %v11142_v57  ;;  %9187 = vmatpush1.bf16.msra.mxu1 %v11144_v23  ;;  %v11169_v15 = vcombine.high %v1096_v56, %v1100_v19  ;;  %v11168_v20 = vcombine.low %v1096_v56, %v1100_v19  ;;  %v11198_v57 = vcombine.low %v1127_v40, %v1131_v42  ;;  %v1152_v56 = vld [vmem:[%s15883_s1 + $0x2298] sm:$0xff]  ;;  %v1183_v40 = vld [vmem:[%s15883_s1 + $0x2390] sm:$0xff] }
 0x481   :  { %8778 = vmatprep.subr.bf16.mxu0 %v11151_v17  ;;  %9188 = vmatprep.subr.bf16.mxu1 %v11153_v8  ;;  %v11200_v23 = vcombine.low %v1128_v44, %v1132_v46  ;;  %v11207_v17 = vcombine.high %v1135_v52, %v1139_v54  ;;  %v11209_v8 = vcombine.high %v1136_v50, %v1140_v55  ;;  %v1156_v19 = vld [vmem:[%s15883_s1 + $0x22b8] sm:$0xff]  ;;  %v1187_v42 = vld [vmem:[%s15883_s1 + $0x23b0] sm:$0xff] }
 0x482   :  { %8808 = vmatprep.mubr.bf16.mxu0 %v13602_v5  ;;  %9218 = vmatprep.mubr.bf16.mxu1 %v13602_v5  ;;  %v1104_v5 = vld [vmem:[%s15883_s1 + $0x2118] sm:$0xff] }
 0x483   :  { %v11177_v21 = vcombine.high %v1104_v5, %v1108_v58  ;;  %v11176_v4 = vcombine.low %v1104_v5, %v1108_v58  ;;  %v1160_v5 = vld [vmem:[%s15883_s1 + $0x22d8] sm:$0xff] }
 0x484   :  { %8779 = vmatpush1.bf16.msra.mxu0 %v11150_v33  ;;  %9189 = vmatpush1.bf16.msra.mxu1 %v11152_v6  ;;  %v11206_v33 = vcombine.low %v1135_v52, %v1139_v54  ;;  %v11208_v6 = vcombine.low %v1136_v50, %v1140_v55  ;;  %v1164_v58 = vld [vmem:[%s15883_s1 + $0x22f8] sm:$0xff]  ;;  %v1191_v52 = vld [vmem:[%s15883_s1 + $0x23d0] sm:$0xff] }
 0x485   :  { %8780 = vmatprep.subr.bf16.mxu0 %v11159_v10  ;;  %9190 = vmatprep.subr.bf16.mxu1 %v11161_v11  ;;  %v11215_v10 = vcombine.high %v1143_v62, %v1147_v53  ;;  %v11217_v11 = vcombine.high %v1144_v2, %v1148_v63  ;;  %v1184_v44 = vld [vmem:[%s15883_s1 + $0x2398] sm:$0xff]  ;;  %v1195_v54 = vld [vmem:[%s15883_s1 + $0x23f0] sm:$0xff] }
 0x486   :  { %v1188_v46 = vld [vmem:[%s15883_s1 + $0x23b8] sm:$0xff] }
 0x487   :  { %v1192_v50 = vld [vmem:[%s15883_s1 + $0x23d8] sm:$0xff] }
 0x488   :  { %8781 = vmatpush1.bf16.msra.mxu0 %v11158_v9  ;;  %9191 = vmatpush1.bf16.msra.mxu1 %v11160_v1  ;;  %v11214_v9 = vcombine.low %v1143_v62, %v1147_v53  ;;  %v11216_v1 = vcombine.low %v1144_v2, %v1148_v63  ;;  %v1196_v55 = vld [vmem:[%s15883_s1 + $0x23f8] sm:$0xff]  ;;  %v1199_v62 = vld [vmem:[%s15883_s1 + $0x2410] sm:$0xff] }
 0x489   :  { %8782 = vmatprep.subr.bf16.mxu0 %v11167_v14  ;;  %9192 = vmatprep.subr.bf16.mxu1 %v11169_v15  ;;  %v11223_v14 = vcombine.high %v1151_v12, %v1155_v13  ;;  %v11225_v15 = vcombine.high %v1152_v56, %v1156_v19  ;;  %v1203_v53 = vld [vmem:[%s15883_s1 + $0x2430] sm:$0xff]  ;;  %v1200_v2 = vld [vmem:[%s15883_s1 + $0x2418] sm:$0xff] }
 0x48a   :  { %v1204_v63 = vld [vmem:[%s15883_s1 + $0x2438] sm:$0xff] }
 0x48c   :  { %8783 = vmatpush1.bf16.msra.mxu0 %v11166_v59  ;;  %9193 = vmatpush1.bf16.msra.mxu1 %v11168_v20  ;;  %v11222_v59 = vcombine.low %v1151_v12, %v1155_v13  ;;  %v11224_v20 = vcombine.low %v1152_v56, %v1156_v19  ;;  %v1207_v12 = vld [vmem:[%s15883_s1 + $0x2450] sm:$0xff]  ;;  %v1208_v56 = vld [vmem:[%s15883_s1 + $0x2458] sm:$0xff] }
 0x48d   :  { %8784 = vmatprep.subr.bf16.mxu0 %v11175_v27  ;;  %9194 = vmatprep.subr.bf16.mxu1 %v11177_v21  ;;  %v11231_v27 = vcombine.high %v1159_v16, %v1163_v18  ;;  %v11233_v21 = vcombine.high %v1160_v5, %v1164_v58  ;;  %v1211_v13 = vld [vmem:[%s15883_s1 + $0x2470] sm:$0xff]  ;;  %v1212_v19 = vld [vmem:[%s15883_s1 + $0x2478] sm:$0xff] }
 0x490   :  { %8785 = vmatpush1.bf16.msra.mxu0 %v11174_v28  ;;  %9195 = vmatpush1.bf16.msra.mxu1 %v11176_v4  ;;  %v11230_v28 = vcombine.low %v1159_v16, %v1163_v18  ;;  %v11232_v4 = vcombine.low %v1160_v5, %v1164_v58  ;;  %v1215_v16 = vld [vmem:[%s15883_s1 + $0x2490] sm:$0xff]  ;;  %v1216_v5 = vld [vmem:[%s15883_s1 + $0x2498] sm:$0xff] }
 0x491   :  { %8786 = vmatprep.subr.bf16.mxu0 %v11183_v37  ;;  %9196 = vmatprep.subr.bf16.mxu1 %v11185_v29  ;;  %v11239_v37 = vcombine.high %v1167_v22, %v1171_v24  ;;  %v11241_v29 = vcombine.high %v1168_v25, %v1172_v26  ;;  %v1219_v18 = vld [vmem:[%s15883_s1 + $0x24b0] sm:$0xff]  ;;  %v1220_v58 = vld [vmem:[%s15883_s1 + $0x24b8] sm:$0xff] }
 0x494   :  { %8787 = vmatpush1.bf16.msra.mxu0 %v11182_v35  ;;  %9197 = vmatpush1.bf16.msra.mxu1 %v11184_v36  ;;  %v11238_v35 = vcombine.low %v1167_v22, %v1171_v24  ;;  %v11240_v36 = vcombine.low %v1168_v25, %v1172_v26  ;;  %v1223_v22 = vld [vmem:[%s15883_s1 + $0x24d0] sm:$0xff]  ;;  %v1228_v25 = vld [vmem:[%s15883_s1 + $0x24f8] sm:$0xff]  ;;  %v11286_v26 = vcombine.low %v1215_v16, %v1219_v18 }
 0x495   :  { %8788 = vmatprep.subr.bf16.mxu0 %v11191_v39  ;;  %9198 = vmatprep.subr.bf16.mxu1 %v11193_v41  ;;  %v11247_v39 = vcombine.high %v1175_v30, %v1179_v31  ;;  %v11249_v41 = vcombine.high %v1176_v32, %v1180_v34  ;;  %v1227_v24 = vld [vmem:[%s15883_s1 + $0x24f0] sm:$0xff] }
 0x498   :  { %8789 = vmatpush1.bf16.msra.mxu0 %v11190_v47  ;;  %9199 = vmatpush1.bf16.msra.mxu1 %v11192_v48  ;;  %v11246_v47 = vcombine.low %v1175_v30, %v1179_v31  ;;  %v11248_v48 = vcombine.low %v1176_v32, %v1180_v34  ;;  %v1235_v30 = vld [vmem:[%s15883_s1 + $0x2530] sm:$0xff]  ;;  %v1236_v31 = vld [vmem:[%s15883_s1 + $0x2538] sm:$0xff]  ;;  %v11294_v32 = vcombine.low %v1223_v22, %v1227_v24 }
 0x499   :  { %8790 = vmatprep.subr.bf16.mxu0 %v11199_v7  ;;  %9200 = vmatprep.subr.bf16.mxu1 %v11201_v51  ;;  %v11255_v7 = vcombine.high %v1183_v40, %v1187_v42  ;;  %v11257_v51 = vcombine.high %v1184_v44, %v1188_v46 }
 0x49c   :  { %8791 = vmatpush1.bf16.msra.mxu0 %v11198_v57  ;;  %9201 = vmatpush1.bf16.msra.mxu1 %v11200_v23  ;;  %v11254_v57 = vcombine.low %v1183_v40, %v1187_v42  ;;  %v11256_v23 = vcombine.low %v1184_v44, %v1188_v46  ;;  %v1240_v40 = vld [vmem:[%s15883_s1 + $0x2558] sm:$0xff] }
 0x49d   :  { %8792 = vmatprep.subr.bf16.mxu0 %v11207_v17  ;;  %9202 = vmatprep.subr.bf16.mxu1 %v11209_v8  ;;  %v11263_v17 = vcombine.high %v1191_v52, %v1195_v54  ;;  %v11265_v8 = vcombine.high %v1192_v50, %v1196_v55  ;;  %v1244_v42 = vld [vmem:[%s15883_s1 + $0x2578] sm:$0xff] }
 0x4a0   :  { %8793 = vmatpush1.bf16.msra.mxu0 %v11206_v33  ;;  %9203 = vmatpush1.bf16.msra.mxu1 %v11208_v6  ;;  %v11262_v33 = vcombine.low %v1191_v52, %v1195_v54  ;;  %v11264_v6 = vcombine.low %v1192_v50, %v1196_v55  ;;  %v1248_v52 = vld [vmem:[%s15883_s1 + $0x2598] sm:$0xff]  ;;  %v11312_v55 = vcombine.low %v1240_v40, %v1244_v42 }
 0x4a1   :  { %8794 = vmatprep.subr.bf16.mxu0 %v11215_v10  ;;  %9204 = vmatprep.subr.bf16.mxu1 %v11217_v11  ;;  %v11271_v10 = vcombine.high %v1199_v62, %v1203_v53  ;;  %v11273_v11 = vcombine.high %v1200_v2, %v1204_v63  ;;  %v1252_v54 = vld [vmem:[%s15883_s1 + $0x25b8] sm:$0xff] }
 0x4a4   :  { %8795 = vmatpush1.bf16.msra.mxu0 %v11214_v9  ;;  %9205 = vmatpush1.bf16.msra.mxu1 %v11216_v1  ;;  %v11270_v9 = vcombine.low %v1199_v62, %v1203_v53  ;;  %v11272_v1 = vcombine.low %v1200_v2, %v1204_v63  ;;  %v1256_v62 = vld [vmem:[%s15883_s1 + $0x25d8] sm:$0xff]  ;;  %v11320_v63 = vcombine.low %v1248_v52, %v1252_v54 }
 0x4a5   :  { %8796 = vmatprep.subr.bf16.mxu0 %v11223_v14  ;;  %9206 = vmatprep.subr.bf16.mxu1 %v11225_v15  ;;  %v11279_v14 = vcombine.high %v1207_v12, %v1211_v13  ;;  %v11281_v15 = vcombine.high %v1208_v56, %v1212_v19  ;;  %v1260_v53 = vld [vmem:[%s15883_s1 + $0x25f8] sm:$0xff] }
 0x4a8   :  { %8797 = vmatpush1.bf16.msra.mxu0 %v11222_v59  ;;  %9207 = vmatpush1.bf16.msra.mxu1 %v11224_v20  ;;  %v11278_v59 = vcombine.low %v1207_v12, %v1211_v13  ;;  %v11280_v20 = vcombine.low %v1208_v56, %v1212_v19  ;;  %v1281_v12 = vsub.s32 1, %v11963_v43  ;;  %v1264_v13 = vld [vmem:[%s15883_s1 + $0x2618] sm:$0xff]  ;;  %v15796_v19 = vld [vmem:[%s15884_s2] sm:$0xff] }
 0x4a9   :  { %8798 = vmatprep.subr.bf16.mxu0 %v11231_v27  ;;  %9208 = vmatprep.subr.bf16.mxu1 %v11233_v21  ;;  %v11287_v27 = vcombine.high %v1215_v16, %v1219_v18  ;;  %v11289_v21 = vcombine.high %v1216_v5, %v1220_v58  ;;  %v1268_v56 = vld [vmem:[%s15883_s1 + $0x2638] sm:$0xff]  ;;  %v1271_v18 = vld [vmem:[%s15883_s1 + $0x2650] sm:$0x11] }
 0x4aa   :  { %v11337_v16 = vcombine.high %v1264_v13, %v1268_v56 }
 0x4ac   :  { %8799 = vmatpush1.bf16.msra.mxu0 %v11230_v28  ;;  %9209 = vmatpush1.bf16.msra.mxu1 %v11232_v4  ;;  %v11288_v28 = vcombine.low %v1216_v5, %v1220_v58  ;;  %v11295_v4 = vcombine.high %v1223_v22, %v1227_v24  ;;  %v1282_v5 = vrot.slane %v15796_v19, %v1281_v12  ;;  %v1272_v58 = vld [vmem:[%s15883_s1 + $0x2658] sm:$0x11] }
 0x4ad   :  { %8800 = vmatprep.subr.bf16.mxu0 %v11239_v37  ;;  %9210 = vmatprep.subr.bf16.mxu1 %v11241_v29  ;;  %v1231_v29 = vld [vmem:[%s15883_s1 + $0x2510] sm:$0xff]  ;;  %v11342_v22 = vcombine.low %v1271_v18, %v1271_v18  ;;  %v11345_v24 = vcombine.high %v1272_v58, %v1272_v58 }
 0x4ae   :  { %v11302_v44 = vcombine.low %v1231_v29, %v1235_v30 }
 0x4b0   :  { %8801 = vmatpush1.bf16.msra.mxu0 %v11238_v35  ;;  %9211 = vmatpush1.bf16.msra.mxu1 %v11240_v36  ;;  %v11303_v35 = vcombine.high %v1231_v29, %v1235_v30  ;;  %v11715_v29 = vld [vmem:[#allocation2 + $0xc0] sm:$0xff]  }
 0x4b1   :  { %8802 = vmatprep.subr.bf16.mxu0 %v11247_v39  ;;  %9212 = vmatprep.subr.bf16.mxu1 %v11249_v41  ;;  %v1239_v39 = vld [vmem:[%s15883_s1 + $0x2550] sm:$0xff] }
 0x4b2   :  { %v1243_v41 = vld [vmem:[%s15883_s1 + $0x2570] sm:$0xff] }
 0x4b3   :  { %v11310_v50 = vcombine.low %v1239_v39, %v1243_v41 }
 0x4b4   :  { %8803 = vmatpush1.bf16.msra.mxu0 %v11246_v47  ;;  %9213 = vmatpush1.bf16.msra.mxu1 %v11248_v48  ;;  %v11311_v47 = vcombine.high %v1239_v39, %v1243_v41  ;;  %v11313_v48 = vcombine.high %v1240_v40, %v1244_v42  ;;  %v11721_v39 = vld [vmem:[#allocation2 + $0x88] sm:$0xff]   ;;  %v11722_v41 = vld [vmem:[#allocation2 + $0x50] sm:$0xff]  }
 0x4b5   :  { %8804 = vmatprep.subr.bf16.mxu0 %v11255_v7  ;;  %9214 = vmatprep.subr.bf16.mxu1 %v11257_v51  ;;  %v1247_v7 = vld [vmem:[%s15883_s1 + $0x2590] sm:$0xff] }
 0x4b6   :  { %v1251_v51 = vld [vmem:[%s15883_s1 + $0x25b0] sm:$0xff] }
 0x4b7   :  { %v11318_v2 = vcombine.low %v1247_v7, %v1251_v51  ;;  %v11723_v40 = vld [vmem:[#allocation2 + $0xd0] sm:$0xff]  }
 0x4b8   :  { %8805 = vmatpush1.bf16.msra.mxu0 %v11254_v57  ;;  %9215 = vmatpush1.bf16.msra.mxu1 %v11256_v23  ;;  %v11319_v57 = vcombine.high %v1247_v7, %v1251_v51  ;;  %v11321_v23 = vcombine.high %v1248_v52, %v1252_v54  ;;  %v11724_v42 = vld [vmem:[#allocation2 + $0x10] sm:$0xff]   ;;  %v11730_v7 = vld [vmem:[#allocation2 + $0x60] sm:$0xff]   ;;  %v1277_v54 = vsub.s32 0, %v11963_v43 }
 0x4b9   :  { %8806 = vmatprep.subr.bf16.mxu0 %v11263_v17  ;;  %9216 = vmatprep.subr.bf16.mxu1 %v11265_v8  ;;  %v1255_v17 = vld [vmem:[%s15883_s1 + $0x25d0] sm:$0xff]  ;;  %v11731_v51 = vld [vmem:[#allocation2 + $0xe0] sm:$0xff]  }
 0x4ba   :  { %v1259_v8 = vld [vmem:[%s15883_s1 + $0x25f0] sm:$0xff]  ;;  %v11732_v52 = vld [vmem:[#allocation2 + $0x20] sm:$0xff]  }
 0x4bc   :  { %8807 = vmatpush1.bf16.msra.mxu0 %v11262_v33  ;;  %9217 = vmatpush1.bf16.msra.mxu1 %v11264_v6  ;;  %v11327_v33 = vcombine.high %v1255_v17, %v1259_v8  ;;  %v11329_v6 = vcombine.high %v1256_v62, %v1260_v53 }
 0x4bd   :  { %8817 = vmatprep.subr.bf16.mxu0 %v11271_v10  ;;  %9227 = vmatprep.subr.bf16.mxu1 %v11273_v11  ;;  %v1263_v10 = vld [vmem:[%s15883_s1 + $0x2610] sm:$0xff] }
 0x4be   :  { %v1267_v11 = vld [vmem:[%s15883_s1 + $0x2630] sm:$0xff] }
 0x4bf   :  { %8809 = vmatmul.mubr.bf16.vlgmr.msra.gmra.mrb[4].mxu0 %v13790_v49  ;;  %9219 = vmatmul.mubr.bf16.vlgmr.msra.gmra.mrb[4].mxu1 %v13790_v49  ;;  %v1224_v49 = vld [vmem:[%s15883_s1 + $0x24d8] sm:$0xff] }
 0x4c0   :  { %8818 = vmatpush1.bf16.msra.mxu0 %v11270_v9  ;;  %9228 = vmatpush1.bf16.msra.mxu1 %v11272_v1  ;;  %v11297_v37 = vcombine.high %v1224_v49, %v1228_v25  ;;  %v11296_v34 = vcombine.low %v1224_v49, %v1228_v25  ;;  %v1289_v9 = vsub.s32 3, %v11963_v43  ;;  %v11326_v1 = vcombine.low %v1255_v17, %v1259_v8  ;;  %v11736_v17 = vld [vmem:[#allocation2 + $0x28] sm:$0xff]  }
 0x4c1   :  { %8819 = vmatprep.subr.bf16.mxu0 %v11279_v14  ;;  %9229 = vmatprep.subr.bf16.mxu1 %v11281_v15  ;;  %v11328_v14 = vcombine.low %v1256_v62, %v1260_v53  ;;  %v11335_v15 = vcombine.high %v1263_v10, %v1267_v11  ;;  %v11344_v49 = vcombine.low %v1272_v58, %v1272_v58  ;;  %v11737_v62 = vld [vmem:[#allocation2 + $0xa8] sm:$0xff]   ;;  %v11738_v53 = vld [vmem:[#allocation2 + $0x70] sm:$0xff]  }
 0x4c2   :  { %11351 = vmatprep.mubr.msk.bf16.mxu0 %vm7599_vm0, %v13806_v61  ;;  %11353 = vmatprep.mubr.msk.bf16.mxu1 %vm7599_vm0, %v13806_v61  ;;  %v1232_v61 = vld [vmem:[%s15883_s1 + $0x2518] sm:$0xff]  ;;  %v11546_v25 = vadd.f32 %v14592_v0, %v1282_v5  ;;  %v11717_v0 = vld [vmem:[#allocation2 + $0x80] sm:$0xff]   ;;  %v1278_v8 = vrot.slane %v15796_v19, %v1277_v54  ;;  %v11750_v58 = vld [vmem:[#allocation2 + $0x148] sm:$0xff]  }
 0x4c3   :  { %v11305_v36 = vcombine.high %v1232_v61, %v1236_v31  ;;  %v11304_v46 = vcombine.low %v1232_v61, %v1236_v31  ;;  %v11716_v31 = vld [vmem:[#allocation2] sm:$0xff]  }
 0x4c4   :  { %8820 = vmatpush1.bf16.msra.mxu0 %v11278_v59  ;;  %9230 = vmatpush1.bf16.msra.mxu1 %v11280_v20  ;;  %v1290_v59 = vrot.slane %v15796_v19, %v1289_v9  ;;  %v11334_v20 = vcombine.low %v1263_v10, %v1267_v11  ;;  %v9269_v30 = vmax.f32 %v11546_v25, 0.0  ;;  %v11741_v10 = vld [vmem:[#allocation2 + $0xb0] sm:$0xff]   ;;  %v11742_v11 = vld [vmem:[#allocation2 + $0x78] sm:$0xff]   ;;  %v11749_v5 = vld [vmem:[#allocation2 + $0x180] sm:$0xff]  }
 0x4c5   :  { %8821 = vmatprep.subr.bf16.mxu0 %v11287_v27  ;;  %9231 = vmatprep.subr.bf16.mxu1 %v11289_v21  ;;  %v11336_v27 = vcombine.low %v1264_v13, %v1268_v56  ;;  %v11343_v21 = vcombine.high %v1271_v18, %v1271_v18  ;;  %v11743_v13 = vld [vmem:[#allocation2 + $0xf8] sm:$0xff]  }
 0x4c6   :  { %v11744_v56 = vld [vmem:[#allocation2 + $0x38] sm:$0xff]  }
 0x4c7   :  { %v11758_v25 = vld [vmem:[#allocation2 + $0x158] sm:$0xff]  }
 0x4c8   :  { %8822 = vmatpush1.bf16.msra.mxu0 %v11286_v26  ;;  %9232 = vmatpush1.bf16.msra.mxu1 %v11288_v28  ;;  %v11548_v26 = vadd.f32 %v14600_v3, %v1290_v59  ;;  %v7617_v28 = vsel %vm7603_vm1, %v11342_v22, 0  ;;  %v11718_v3 = vld [vmem:[#allocation2 + $0x48] sm:$0xff]   ;;  %v11755_v22 = vld [vmem:[#allocation2 + $0x1d0] sm:$0xff]  }
 0x4c9   :  { %8823 = vmatprep.subr.bf16.mxu0 %v11295_v4  ;;  %9233 = vmatprep.subr.bf16.mxu1 %v11297_v37  ;;  %v11714_v4 = vld [vmem:[#allocation2 + $0x40] sm:$0xff]   ;;  %v7623_v37 = vsel %vm7603_vm1, %v11344_v49, 0  ;;  %v11751_v59 = vld [vmem:[#allocation2 + $0x1c8] sm:$0xff]   ;;  %v11757_v49 = vld [vmem:[#allocation2 + $0x190] sm:$0xff]  }
 0x4ca   :  { %v9271_v61 = vmax.f32 %v11548_v26, 0.0  ;;  %v11759_v26 = vld [vmem:[#allocation2 + $0x1d8] sm:$0xff]  }
 0x4cc   :  { %8824 = vmatpush1.bf16.msra.mxu0 %v11294_v32  ;;  %9234 = vmatpush1.bf16.msra.mxu1 %v11296_v34  ;;  %v9277_v32 = vpack.c.bf16 %v9269_v30, %v9269_v30  ;;  %v11719_v34 = vld [vmem:[#allocation2 + $0xc8] sm:$0xff]   ;;  %v11764_v30 = vld [vmem:[#allocation2 + $0x120] sm:$0xff]  }
 0x4cd   :  { %8825 = vmatprep.subr.bf16.mxu0 %v11303_v35  ;;  %9235 = vmatprep.subr.bf16.mxu1 %v11305_v36  ;;  %v9279_v35 = vpack.c.bf16 %v9271_v61, %v9271_v61  ;;  %v11720_v36 = vld [vmem:[#allocation2 + $0x8] sm:$0xff]   ;;  %v11765_v61 = vld [vmem:[#allocation2 + $0x1a0] sm:$0xff]  }
 0x4d0   :  { %8826 = vmatpush1.bf16.msra.mxu0 %v11302_v44  ;;  %9236 = vmatpush1.bf16.msra.mxu1 %v11304_v46  ;;  %v11725_v44 = vld [vmem:[#allocation2 + $0x90] sm:$0xff]   ;;  %v11726_v46 = vld [vmem:[#allocation2 + $0x58] sm:$0xff]  }
 0x4d1   :  { %8827 = vmatprep.subr.bf16.mxu0 %v11311_v47  ;;  %9237 = vmatprep.subr.bf16.mxu1 %v11313_v48  ;;  %v11727_v47 = vld [vmem:[#allocation2 + $0xd8] sm:$0xff]  }
 0x4d2   :  { %v11729_v48 = vld [vmem:[#allocation2 + $0x98] sm:$0xff]  }
 0x4d4   :  { %8828 = vmatpush1.bf16.msra.mxu0 %v11310_v50  ;;  %9238 = vmatpush1.bf16.msra.mxu1 %v11312_v55  ;;  %v11733_v50 = vld [vmem:[#allocation2 + $0xa0] sm:$0xff]   ;;  %v11734_v55 = vld [vmem:[#allocation2 + $0x68] sm:$0xff]  }
 0x4d5   :  { %8829 = vmatprep.subr.bf16.mxu0 %v11319_v57  ;;  %9239 = vmatprep.subr.bf16.mxu1 %v11321_v23  ;;  %v1285_v57 = vsub.s32 2, %v11963_v43  ;;  %v11735_v23 = vld [vmem:[#allocation2 + $0xe8] sm:$0xff]  }
 0x4d8   :  { %8830 = vmatpush1.bf16.msra.mxu0 %v11318_v2  ;;  %9240 = vmatpush1.bf16.msra.mxu1 %v11320_v63  ;;  %v1286_v2 = vrot.slane %v15796_v19, %v1285_v57  ;;  %v11739_v63 = vld [vmem:[#allocation2 + $0xf0] sm:$0xff]  }
 0x4d9   :  { %8831 = vmatprep.subr.bf16.mxu0 %v11327_v33  ;;  %9241 = vmatprep.subr.bf16.mxu1 %v11329_v6  ;;  %v11740_v33 = vld [vmem:[#allocation2 + $0x30] sm:$0xff]   ;;  %v11545_v6 = vadd.f32 %v14582_v60, %v1278_v8  ;;  %v11748_v60 = vld [vmem:[#allocation2 + $0x100] sm:$0xff]  }
 0x4da   :  { %v11547_v12 = vadd.f32 %v14590_v45, %v1286_v2 }
 0x4db   :  { %v9268_v9 = vmax.f32 %v11545_v6, 0.0 }
 0x4dc   :  { %8832 = vmatpush1.bf16.msra.mxu0 %v11326_v1  ;;  %9242 = vmatpush1.bf16.msra.mxu1 %v11328_v14  ;;  %v11745_v1 = vld [vmem:[#allocation2 + $0xb8] sm:$0xff]   ;;  %v11746_v14 = vld [vmem:[#allocation2 + $0x140] sm:$0xff]  }
 0x4dd   :  { %8833 = vmatprep.subr.bf16.mxu0 %v11335_v15  ;;  %9243 = vmatprep.subr.bf16.mxu1 %v11337_v16  ;;  %v9270_v15 = vmax.f32 %v11547_v12, 0.0  ;;  %v11747_v16 = vld [vmem:[#allocation2 + $0x1c0] sm:$0xff]   ;;  %v9276_v18 = vpack.c.bf16 %v9268_v9, %v9268_v9 }
 0x4df   :  { %v9278_v45 = vpack.c.bf16 %v9270_v15, %v9270_v15  ;;  %v11779_v15 = vld [vmem:[%s15887_s5 + $0x8] sm:$0xff]  }
 0x4e0   :  { %8834 = vmatpush1.bf16.msra.mxu0 %v11334_v20  ;;  %9244 = vmatpush1.bf16.msra.mxu1 %v11336_v27  ;;  %v11752_v20 = vld [vmem:[#allocation2 + $0x108] sm:$0xff]  }
 0x4e1   :  { %11350 = vmatprep.subr.msk.bf16.mxu0 %vm7603_vm1, %v11343_v21  ;;  %11352 = vmatprep.subr.msk.bf16.mxu1 %vm7603_vm1, %v11345_v24  ;;  %v11753_v27 = vld [vmem:[#allocation2 + $0x188] sm:$0xff]   ;;  %v11754_v21 = vld [vmem:[#allocation2 + $0x150] sm:$0xff]  }
 0x4e2   :  { %v11756_v24 = vld [vmem:[#allocation2 + $0x110] sm:$0xff]  }
 0x4e4   :  { %8836 = vmatpush1.bf16.msra.mxu0 %v7617_v28  ;;  %9246 = vmatpush1.bf16.msra.mxu1 %v7623_v37  ;;  %v11760_v28 = vld [vmem:[#allocation2 + $0x118] sm:$0xff]   ;;  %v11762_v37 = vld [vmem:[#allocation2 + $0x160] sm:$0xff]  }
 0x4e5   :  { %11428 = vmatprep.subr.bf16.mxu0 %v11714_v4  ;;  %11450 = vmatprep.subr.bf16.mxu1 %v11715_v29  ;;  %v11761_v4 = vld [vmem:[#allocation2 + $0x198] sm:$0xff]   ;;  %v11763_v29 = vld [vmem:[#allocation2 + $0x1e0] sm:$0xff]  }
 0x4e7   :  { %8850 = vmatmul.mubr.bf16.vlgmr.msra.gmra.mrb[4].mxu0 %v13922_v38  ;;  %9260 = vmatmul.mubr.bf16.vlgmr.msra.gmra.mrb[4].mxu1 %v13922_v38  ;;  %v11728_v38 = vld [vmem:[#allocation2 + $0x18] sm:$0xff]  }
 0x4e8   :  { %11429 = vmatpush3.bf16.msra.mxu0 %v11716_v31  ;;  %9835 = vmatprep.mubr.bf16.mxu0 %v9277_v32  ;;  %v11766_v31 = vld [vmem:[#allocation2 + $0x168] sm:$0xff]  }
 0x4e9   :  { %11451 = vmatpush3.bf16.msra.mxu1 %v11717_v0  ;;  %9875 = vmatprep.mubr.bf16.mxu1 %v9279_v35  ;;  %v11767_v0 = vld [vmem:[#allocation2 + $0x1e8] sm:$0xff]   ;;  %v11771_v35 = vld [vmem:[#allocation2 + $0x1f0] sm:$0xff]  }
 0x4ea   :  { %11430 = vmatprep.subr.bf16.mxu0 %v11718_v3  ;;  %11452 = vmatprep.subr.bf16.mxu1 %v11719_v34  ;;  %v11768_v3 = vld [vmem:[#allocation2 + $0x128] sm:$0xff]   ;;  %v11770_v34 = vld [vmem:[#allocation2 + $0x170] sm:$0xff]  }
 0x4eb   :  { %v11769_v32 = vld [vmem:[#allocation2 + $0x1a8] sm:$0xff]  }
 0x4ec   :  { %11431 = vmatpush3.bf16.msra.mxu0 %v11720_v36  ;;  %v11772_v36 = vld [vmem:[#allocation2 + $0x130] sm:$0xff]  }
 0x4ed   :  { %11453 = vmatpush3.bf16.msra.mxu1 %v11721_v39  ;;  %11432 = vmatprep.subr.bf16.mxu0 %v11722_v41  ;;  %v11773_v39 = vld [vmem:[#allocation2 + $0x1b0] sm:$0xff]   ;;  %v11774_v41 = vld [vmem:[#allocation2 + $0x178] sm:$0xff]  }
 0x4ee   :  { %11454 = vmatprep.subr.bf16.mxu1 %v11723_v40  ;;  %v11775_v40 = vld [vmem:[#allocation2 + $0x1f8] sm:$0xff]  }
 0x4f0   :  { %11433 = vmatpush3.bf16.msra.mxu0 %v11724_v42  ;;  %v11776_v42 = vld [vmem:[#allocation2 + $0x138] sm:$0xff]  }
 0x4f1   :  { %11455 = vmatpush3.bf16.msra.mxu1 %v11725_v44  ;;  %11434 = vmatprep.subr.bf16.mxu0 %v11726_v46  ;;  %v11777_v44 = vld [vmem:[#allocation2 + $0x1b8] sm:$0xff]   ;;  %v11842_v46 = vmov 0.0  }
 0x4f2   :  { %11456 = vmatprep.subr.bf16.mxu1 %v11727_v47  ;;  %v1293_v47 = vsub.s32 4, %v11963_v43 }
 0x4f4   :  { %11435 = vmatpush3.bf16.msra.mxu0 %v11728_v38  ;;  %v1301_v38 = vsub.s32 6, %v11963_v43 }
 0x4f5   :  { %11457 = vmatpush3.bf16.msra.mxu1 %v11729_v48  ;;  %11436 = vmatprep.subr.bf16.mxu0 %v11730_v7  ;;  %v1297_v48 = vsub.s32 5, %v11963_v43  ;;  %v1305_v7 = vsub.s32 7, %v11963_v43 }
 0x4f6   :  { %11458 = vmatprep.subr.bf16.mxu1 %v11731_v51  ;;  %v1294_v51 = vrot.slane %v15796_v19, %v1293_v47  ;;  %v11419_v47 = vld [vmem:[%s15888_s6] ss:$0 sm:$0xff]  ;;  %s11844_s6 = smov [#allocation5]  }
 0x4f7   :  { %v1298_v54 = vrot.slane %v15796_v19, %v1297_v48  ;;  %s10104_s13 = sshll.u32 %s11844_s6, 4  ;;  %s10105_s13 = int_to_ptr.vmem [resolvable:$true] %s10104_s13 }
 0x4f8   :  { %11437 = vmatpush3.bf16.msra.mxu0 %v11732_v52  ;;  %v1302_v52 = vrot.slane %v15796_v19, %v1301_v38  ;;  %s11812_s14 = scalar_lea.vmem %s10105_s13, 32  ;;  %p11817_p9 = scmp.lt.s32.totalorder %s10105_s13, %s10105_s13 }
 0x4f9   :  { %11459 = vmatpush3.bf16.msra.mxu1 %v11733_v50  ;;  %11438 = vmatprep.subr.bf16.mxu0 %v11734_v55  ;;  %v1306_v50 = vrot.slane %v15796_v19, %v1305_v7  ;;  %v11778_v19 = vld [vmem:[%s15887_s5] sm:$0xff]   ;;  %p11813_p8 = scmp.ne.s32.totalorder %s10105_s13, %s11812_s14  ;;  %p11818_p10 = scmp.lt.s32.totalorder %s11812_s14, %s11812_s14 }
 0x4fa   :  { %11460 = vmatprep.subr.bf16.mxu1 %v11735_v23 }
 0x4fb   :  { %p11819_p11 = por %p11818_p10, %p11817_p9 }
 0x4fc   :  { %11439 = vmatpush3.bf16.msra.mxu0 %v11736_v17 }
 0x4fd   :  { %11461 = vmatpush3.bf16.msra.mxu1 %v11737_v62  ;;  %11440 = vmatprep.subr.bf16.mxu0 %v11738_v53  ;;  %p11820_p12 = pnand %p11819_p11, %p11813_p8 }
 0x4fe   :  { %11462 = vmatprep.subr.bf16.mxu1 %v11739_v63 }
 0x500   :  { %11441 = vmatpush3.bf16.msra.mxu0 %v11740_v33 }
 0x501   :  { %11463 = vmatpush3.bf16.msra.mxu1 %v11741_v10  ;;  %11442 = vmatprep.subr.bf16.mxu0 %v11742_v11 }
 0x502   :  { %11464 = vmatprep.subr.bf16.mxu1 %v11743_v13 }
 0x504   :  { %11443 = vmatpush3.bf16.msra.mxu0 %v11744_v56 }
 0x505   :  { %11465 = vmatpush3.bf16.msra.mxu1 %v11745_v1  ;;  %11472 = vmatprep.subr.bf16.mxu0 %v11746_v14 }
 0x506   :  { %11494 = vmatprep.subr.bf16.mxu1 %v11747_v16  ;;  %v11780_v16 = vld [vmem:[%s15887_s5 + $0x10] sm:$0xff]  }
 0x507   :  { %9836 = vmatmul.mubr.bf16.vlgmr.msra.gmra.mrb[8].mxu0 %v9276_v18  ;;  %v11782_v18 = vld [vmem:[%s15887_s5 + $0x20] sm:$0xff]  }
 0x508   :  { %9876 = vmatmul.mubr.bf16.vlgmr.msra.gmra.mrb[8].mxu1 %v9278_v45  ;;  %11473 = vmatpush3.bf16.msra.mxu0 %v11748_v60  ;;  %v11781_v60 = vld [vmem:[%s15887_s5 + $0x18] sm:$0xff]   ;;  %v11354_v45 = vld [vmem:[%s15886_s4] ss:$0 sm:$0xff] }
 0x509   :  { %11495 = vmatpush3.bf16.msra.mxu1 %v11749_v5  ;;  %11474 = vmatprep.subr.bf16.mxu0 %v11750_v58 }
 0x50a   :  { %11496 = vmatprep.subr.bf16.mxu1 %v11751_v59 }
 0x50c   :  { %11475 = vmatpush3.bf16.msra.mxu0 %v11752_v20 }
 0x50d   :  { %11497 = vmatpush3.bf16.msra.mxu1 %v11753_v27  ;;  %11476 = vmatprep.subr.bf16.mxu0 %v11754_v21 }
 0x50e   :  { %11498 = vmatprep.subr.bf16.mxu1 %v11755_v22 }
 0x510   :  { %11477 = vmatpush3.bf16.msra.mxu0 %v11756_v24 }
 0x511   :  { %11499 = vmatpush3.bf16.msra.mxu1 %v11757_v49  ;;  %11478 = vmatprep.subr.bf16.mxu0 %v11758_v25 }
 0x512   :  { %11500 = vmatprep.subr.bf16.mxu1 %v11759_v26 }
 0x514   :  { %11479 = vmatpush3.bf16.msra.mxu0 %v11760_v28 }
 0x515   :  { %11501 = vmatpush3.bf16.msra.mxu1 %v11761_v4  ;;  %11480 = vmatprep.subr.bf16.mxu0 %v11762_v37  ;;  %v11783_v4 = vld [vmem:[%s15887_s5 + $0x28] sm:$0xff]   ;;  %v11784_v37 = vld [vmem:[%s15887_s5 + $0x30] sm:$0xff]  }
 0x516   :  { %11502 = vmatprep.subr.bf16.mxu1 %v11763_v29  ;;  %v11785_v29 = vld [vmem:[%s15887_s5 + $0x38] sm:$0xff]  }
 0x518   :  { %11481 = vmatpush3.bf16.msra.mxu0 %v11764_v30 }
 0x519   :  { %11503 = vmatpush3.bf16.msra.mxu1 %v11765_v61  ;;  %11482 = vmatprep.subr.bf16.mxu0 %v11766_v31 }
 0x51a   :  { %11504 = vmatprep.subr.bf16.mxu1 %v11767_v0 }
 0x51c   :  { %11483 = vmatpush3.bf16.msra.mxu0 %v11768_v3 }
 0x51d   :  { %11505 = vmatpush3.bf16.msra.mxu1 %v11769_v32  ;;  %11484 = vmatprep.subr.bf16.mxu0 %v11770_v34 }
 0x51e   :  { %11506 = vmatprep.subr.bf16.mxu1 %v11771_v35 }
 0x520   :  { %11485 = vmatpush3.bf16.msra.mxu0 %v11772_v36 }
 0x521   :  { %11507 = vmatpush3.bf16.msra.mxu1 %v11773_v39  ;;  %11486 = vmatprep.subr.bf16.mxu0 %v11774_v41 }
 0x522   :  { %11508 = vmatprep.subr.bf16.mxu1 %v11775_v40 }
 0x524   :  { %11487 = vmatpush3.bf16.msra.mxu0 %v11776_v42 }
 0x525   :  { %11509 = vmatpush3.bf16.msra.mxu1 %v11777_v44  ;;  %11525 = vmatprep.subr.bf16.mxu0 %v11842_v46 }
 0x5ba   :  { %v8851_v55 = vpop.f32.mrb[4].mxu0  ;;  %v9261_v23 = vpop.f32.mrb[4].mxu1 }
 0x5bb   :  { %v11549_v57 = vadd.f32 %v8851_v55, %v1294_v51  ;;  %v8853_v17 = vpop.f32.mrb[5].mxu0  ;;  %v11551_v8 = vadd.f32 %v9261_v23, %v1302_v52  ;;  %v9263_v53 = vpop.f32.mrb[5].mxu1 }
 0x5bc   :  { %v11550_v62 = vadd.f32 %v8853_v17, %v1298_v54  ;;  %v8855_v2 = vpop.f32.mrb[6].mxu0  ;;  %v11552_v33 = vadd.f32 %v9263_v53, %v1306_v50  ;;  %v9265_v6 = vpop.f32.mrb[6].mxu1 }
 0x5bd   :  { %v9272_v63 = vmax.f32 %v11549_v57, 0.0  ;;  %v8856_v43 = vpop.f32.mrb[7].mxu0  ;;  %v9274_v10 = vmax.f32 %v11551_v8, 0.0  ;;  %v9266_v12 = vpop.f32.mrb[7].mxu1 }
 0x5be   :  { %v9273_v11 = vmax.f32 %v11550_v62, 0.0  ;;  %v9275_v13 = vmax.f32 %v11552_v33, 0.0 }
 0x5bf   :  { %v9280_v9 = vpack.c.bf16 %v9272_v63, %v9272_v63  ;;  %v9282_v14 = vpack.c.bf16 %v9274_v10, %v9274_v10 }
 0x5c0   :  { %v9281_v56 = vpack.c.bf16 %v9273_v11, %v9273_v11  ;;  %v9283_v1 = vpack.c.bf16 %v9275_v13, %v9275_v13 }
 0x5c2   :  { %9915 = vmatprep.mubr.bf16.mxu0 %v9281_v56  ;;  %9955 = vmatprep.mubr.bf16.mxu1 %v9283_v1 }
 0x5c3   :  { %9916 = vmatmul.mubr.bf16.vlgmr.msra.gmra.mrb[12].mxu0 %v9280_v9  ;;  %9956 = vmatmul.mubr.bf16.vlgmr.msra.gmra.mrb[12].mxu1 %v9282_v14 }
 0x5c4   :  { %11526 = vmatpush3.bf16.msra.mxu0 %v11778_v19  ;;  %11541 = vmatprep.mubr.msk.bf16.mxu0 %vm11843_vm2, %v11842_v46 }
 0x5c5   :  { %11527 = vmatprep.subr.bf16.mxu0 %v11842_v46 }
 0x5c8   :  { %11528 = vmatpush3.bf16.msra.mxu0 %v11779_v15 }
 0x5c9   :  { %11529 = vmatprep.subr.bf16.mxu0 %v11842_v46 }
 0x5cc   :  { %11530 = vmatpush3.bf16.msra.mxu0 %v11780_v16 }
 0x5cd   :  { %11531 = vmatprep.subr.bf16.mxu0 %v11842_v46 }
 0x5d0   :  { %11532 = vmatpush3.bf16.msra.mxu0 %v11781_v60 }
 0x5d1   :  { %11533 = vmatprep.subr.bf16.mxu0 %v11842_v46 }
 0x5d4   :  { %11534 = vmatpush3.bf16.msra.mxu0 %v11782_v18 }
 0x5d5   :  { %11535 = vmatprep.subr.bf16.mxu0 %v11842_v46 }
 0x5d8   :  { %11536 = vmatpush3.bf16.msra.mxu0 %v11783_v4 }
 0x5d9   :  { %11537 = vmatprep.subr.bf16.mxu0 %v11842_v46 }
 0x5da   :  { %v11444_v5 = vpop.f32.mrb[8].mxu0 }
 0x5db   :  { %v11466_v58 = vpop.f32.mrb[8].mxu1  ;;  %v11445_v59 = vpop.f32.mrb[9].mxu0 }
 0x5dc   :  { %v11446_v20 = vadd.f32 %v11445_v59, %v11444_v5  ;;  %v11467_v27 = vpop.f32.mrb[9].mxu1  ;;  %v11447_v21 = vpop.f32.mrb[10].mxu0  ;;  %11538 = vmatpush3.bf16.msra.mxu0 %v11784_v37 }
 0x5dd   :  { %v11468_v22 = vadd.f32 %v11467_v27, %v11466_v58  ;;  %v11469_v24 = vpop.f32.mrb[10].mxu1  ;;  %v11448_v49 = vpop.f32.mrb[11].mxu0  ;;  %11539 = vmatprep.subr.bf16.mxu0 %v11842_v46 }
 0x5de   :  { %v9838_v25 = vadd.f32 %v11446_v20, %v11354_v45  ;;  %v11470_v26 = vpop.f32.mrb[11].mxu1 }
 0x5e0   :  { %v9878_v28 = vadd.f32 %v11468_v22, %v9838_v25  ;;  %11540 = vmatpush3.bf16.msra.mxu0 %v11785_v29 }
 0x696   :  { %v11488_v30 = vpop.f32.mrb[12].mxu0  ;;  %v11510_v61 = vpop.f32.mrb[12].mxu1 }
 0x697   :  { %v11489_v31 = vpop.f32.mrb[13].mxu0  ;;  %v11511_v3 = vpop.f32.mrb[13].mxu1 }
 0x698   :  { %v11490_v0 = vadd.f32 %v11489_v31, %v11488_v30  ;;  %v11491_v32 = vpop.f32.mrb[14].mxu0  ;;  %v11512_v34 = vadd.f32 %v11511_v3, %v11510_v61  ;;  %v11513_v35 = vpop.f32.mrb[14].mxu1 }
 0x699   :  { %v11492_v36 = vpop.f32.mrb[15].mxu0  ;;  %v11514_v41 = vpop.f32.mrb[15].mxu1 }
 0x69a   :  { %v9918_v39 = vadd.f32 %v11490_v0, %v9878_v28 }
 0x69c   :  { %v9958_v40 = vadd.f32 %v11512_v34, %v9918_v39 }
 0x69e   :  { %v9963_v42 = vmax.f32 %v9958_v40, 0.0 }
 0x6a0   :  { %v9964_v44 = vpack.c.bf16 %v9963_v42, %v9963_v42 }
 0x6a2   :  { %11542 = vmatmul.mubr.bf16.vlgmr.msra.gmra.mrb[16].mxu0 %v9964_v44 }
 0x775   :  { %v10070_v46 = vpop.f32.mrb[16].mxu0 }
 0x776   :  { %v10071_v38 = vadd.f32 %v11419_v47, %v10070_v46  ;;  %v11543_v48 = vpop.f32.mrb[17].mxu0 }
 0x777   :  { %v10073_v7 = vpop.f32.mrb[18].mxu0 }
 0x778   :  { %v10077_v51 = vsel %vm10076_vm3, %v10071_v38, -inf  ;;  %v11544_v52 = vpop.f32.mrb[19].mxu0 }
 0x779   :  { %v10078_v54 = vrot.slane %v10077_v51, 4 }
 0x77b   :  { %v10079_v50 = vmax.f32 %v10077_v51, %v10078_v54 }
 0x77d   :  { %v10080_v55 = vrot.slane %v10079_v50, 2 }
 0x77f   :  { %v10081_v57 = vmax.f32 %v10079_v50, %v10080_v55 }
 0x781   :  { %v10082_v23 = vrot.slane %v10081_v57, 1 }
 0x783   :  { %v10083_v17 = vmax.f32 %v10081_v57, %v10082_v23 }
 0x785   :  { %v10084_v8 = vsub.f32 %v10071_v38, %v10083_v17 }
 0x787   :  { %v10085_v62 = vmul.f32 1.442695, %v10084_v8 }
 0x789   :  { %11786 = vpow2.f32 %v10085_v62 }
 0x793   :  { %v11787_v53 = vpop.eup %11786 }
 0x794   :  { %v10087_v2 = vsel %vm10076_vm3, %v11787_v53, 0.0 }
 0x795   :  { %v10088_v63 = vrot.slane %v10087_v2, 4 }
 0x797   :  { %v10089_v33 = vadd.f32 %v10088_v63, %v10087_v2 }
 0x799   :  { %v10090_v6 = vrot.slane %v10089_v33, 2 }
 0x79b   :  { %v10091_v43 = vadd.f32 %v10090_v6, %v10089_v33 }
 0x79d   :  { %v10092_v10 = vrot.slane %v10091_v43, 1 }
 0x79f   :  { %v10093_v11 = vadd.f32 %v10092_v10, %v10091_v43 }
 0x7a1   :  { %11788 = vlog2.f32 %v10093_v11 }
 0x7ab   :  { %v11789_v12 = vpop.eup %11788 }
 0x7ac   :  { %v10095_v13 = vmul.f32 0.6931472, %v11789_v12 }
 0x7ae   :  { %v10096_v56 = vsub.f32 %v10084_v8, %v10095_v13 }
 0x7b0   :  { %10097 = vst [vmem:[#allocation5] sm:$0x3] %v10096_v56 }
 0x7b1   :  { %11823 = shalt.err (!%p11820_p12)
}
 0x7b2   :  { %s11824_s17 = scalar_lea.hbm %s15889_s7, 32 }
 0x7b3   :  { %p11825_p13 = scmp.ne.s32.totalorder %s15889_s7, %s11824_s17  ;;  %p11828_p0 = scmp.lt.u32.totalorder %s11824_s17, %s15889_s7 }
 0x7b5   :  { %p11830_p1 = pnand %p11828_p0, %p11825_p13 }
 0x7b7   :  { %11833 = shalt.err (!%p11830_p1)
}
 0x7b8   :  { %10107 = dma.vmem_to_hbm [thread:$0]  %s10105_s13, 32, %s15889_s7, [#allocation4]  }
 0x7b9   :  { %11836 = dma.done.wait [#allocation4], 32  }
 0x7ba   :  { %11837 = vsyncadd [#allocation4], 4294967264 }
 0x7bb   :  { %10111 = vsyncpa [#allocation3], 1 }
 0x7bc   :  { %10112 = vsyncpa [#allocation4], 1 }

</bundles_post_ra>
